<compile_context>
chip_gen: v5e
topology: v5e:2x2
jax: 0.10.0
libtpu: 0.0.40
codegen_flags: <defaults>
</compile_context>

<pallas_src>
from functools import partial

import numpy as np

import jax
import jax.numpy as jnp
from jax.experimental import pallas as pl
from jax.experimental.pallas import tpu as pltpu


# --------------------------- in-kernel helpers ------------------------------ #

def _conv3x3_bn_relu(inp, w_ref, shift_ref, h, wp):
    """3x3 conv over a zero-padded, flattened input.

    inp:   ((h+2)*wp + 2, Cin) bf16 value, rows = (y_pad)*wp + x_pad, the last
           2 rows are zeros (bounds slack for the (ky=2, kx=2) tap).
    w_ref: (9, Cin, Cout) bf16 ref, BN scale pre-folded.
    Returns ReLU(conv + shift) as (h*wp, Cout) f32.  Columns x >= wp-2 of each
    row are garbage (padded-width matmul) and are dropped downstream.
    """
    rows = h * wp
    cout = w_ref.shape[-1]
    acc = jnp.zeros((rows, cout), jnp.float32)
    for ky in range(3):
        for kx in range(3):
            start = ky * wp + kx
            tap = inp[start:start + rows]                  # contiguous slice
            acc = acc + jnp.dot(tap, w_ref[ky * 3 + kx],
                                preferred_element_type=jnp.float32)
    return jnp.maximum(acc + shift_ref[...], 0.0)


def _pool_and_pad(act, row_stride, p_ref):
    """2x2/stride-2 maxpool + zero-repad, fused into the conv epilogue.

    act: (h*row_stride, C) f32 post-ReLU activations (row = y*row_stride + x).
    m[j] = max over the 2x2 window starting at flattened row j; the precomputed
    0/1 matrix p_ref then selects the pooled rows (even y, even x) directly
    into the NEXT layer's zero-padded flattened layout (zero rows = padding).
    Returns ((h/2+2)*(w/2+2) + 2, C) bf16.
    """
    n = act.shape[0]
    L = n - row_stride - 1
    m = jnp.maximum(jnp.maximum(act[0:L], act[1:L + 1]),
                    jnp.maximum(act[row_stride:row_stride + L],
                                act[row_stride + 1:row_stride + 1 + L]))
    return jnp.dot(p_ref[...], m.astype(jnp.bfloat16),
                   preferred_element_type=jnp.float32).astype(jnp.bfloat16)


# ------------------------------ fused kernel -------------------------------- #

def _fused_cnn_kernel(p_ref, w1_ref, s1_ref, p1_ref,
                      w2_ref, s2_ref, p2_ref,
                      w3_ref, s3_ref, p3_ref,
                      w4_ref, s4_ref,
                      fw1_ref, fb1_ref, fw2_ref, fb2_ref,
                      o_ref, *, hw):
    h1, w1 = hw

    # conv1 + BN + ReLU: single (H*W, 9*Cin) @ (9*Cin, 64) MXU matmul (im2col).
    act1 = jnp.maximum(
        jnp.dot(p_ref[0], w1_ref[...], preferred_element_type=jnp.float32)
        + s1_ref[...], 0.0)                                    # (h1*w1, 64)

    # maxpool+repad, then conv2..conv4 on flattened padded-width activations.
    in2 = _pool_and_pad(act1, w1, p1_ref)                      # bf16
    h2, w2 = h1 // 2, w1 // 2
    act2 = _conv3x3_bn_relu(in2, w2_ref, s2_ref, h2, w2 + 2)   # (h2*(w2+2), 128)

    in3 = _pool_and_pad(act2, w2 + 2, p2_ref)
    h3, w3 = h2 // 2, w2 // 2
    act3 = _conv3x3_bn_relu(in3, w3_ref, s3_ref, h3, w3 + 2)   # (h3*(w3+2), 256)

    in4 = _pool_and_pad(act3, w3 + 2, p3_ref)
    h4, w4 = h3 // 2, w3 // 2
    act4 = _conv3x3_bn_relu(in4, w4_ref, s4_ref, h4, w4 + 2)   # (h4*(w4+2), 512)

    # Global average pool over the h4 x w4 VALID positions: mask the 2 garbage
    # columns of the padded-width layout before the mean (keeps the denominator
    # and maxima exact), all on the f32 accumulator.
    wp4 = w4 + 2
    col = jax.lax.broadcasted_iota(jnp.int32, act4.shape, 0) % wp4
    feat = jnp.sum(jnp.where(col < w4, act4, 0.0), axis=0, keepdims=True)
    feat = feat * (1.0 / float(h4 * w4))                       # (1, 512) f32
    # Dropout(0.5): identity in eval mode.

    # Classifier head: Linear -> ReLU -> (Dropout) -> Linear, 128-lane output.
    hid = jnp.dot(feat.astype(jnp.bfloat16), fw1_ref[...],
                  preferred_element_type=jnp.float32) + fb1_ref[...]
    hid = jnp.maximum(hid, 0.0)
    out = jnp.dot(hid.astype(jnp.bfloat16), fw2_ref[...],
                  preferred_element_type=jnp.float32) + fb2_ref[...]
    o_ref[0] = out


# ------------------------------ host wrappers -------------------------------- #

def _pool_pad_matrix(h, w, row_stride):
    """0/1 matrix fusing 2x2 maxpool row-selection with zero-pad insertion.

    (h, w):     spatial dims of the conv output being pooled.
    row_stride: flattened row stride of that output (w, or w+2 when it carries
                the 2 padded-width garbage columns).
    Shape: ((h/2+2)*(w/2+2) + 2, h*row_stride - row_stride - 1).
    """
    ho, wo = h // 2, w // 2
    hp, wp = ho + 2, wo + 2
    L = h * row_stride - row_stride - 1
    P = np.zeros((hp * wp + 2, L), np.float32)
    for py in range(hp):
        for px in range(wp):
            if 1 <= py <= ho and 1 <= px <= wo:
                src = 2 * (py - 1) * row_stride + 2 * (px - 1)
                P[py * wp + px, src] = 1.0
    return P


def _resident_spec(arr):
    zeros = (0,) * arr.ndim
    return pl.BlockSpec(arr.shape, lambda n, _z=zeros: _z)   # VMEM-resident const


def custom_cnn_forward(x_nchw, params, num_classes):
    """Single fused Pallas call for the whole CustomCNN forward (eval mode)."""
    x = jnp.transpose(x_nchw, (0, 2, 3, 1)).astype(jnp.float32)   # NCHW -> NHWC
    N, H, W, Cin = x.shape
    assert H % 8 == 0 and W % 8 == 0, "spatial dims must survive three 2x2 pools"

    # Host-side im2col for conv1 only (input is tiny); everything downstream
    # stays in VMEM inside the fused kernel.
    xp = jnp.pad(x, ((0, 0), (1, 1), (1, 1), (0, 0)))
    cols = [xp[:, ky:ky + H, kx:kx + W, :] for ky in range(3) for kx in range(3)]
    patches = jnp.concatenate(cols, axis=-1).reshape(N, H * W, 9 * Cin)
    patches = patches.astype(jnp.bfloat16)

    # Trace-time constant pool+repad selection matrices (become jit constants).
    p1 = jnp.asarray(_pool_pad_matrix(H, W, W), jnp.bfloat16)
    H2, W2 = H // 2, W // 2
    p2 = jnp.asarray(_pool_pad_matrix(H2, W2, W2 + 2), jnp.bfloat16)
    H3, W3 = H2 // 2, W2 // 2
    p3 = jnp.asarray(_pool_pad_matrix(H3, W3, W3 + 2), jnp.bfloat16)

    c1, c2, c3, c4 = (params["conv1"], params["conv2"],
                      params["conv3"], params["conv4"])
    cls = params["classifier"]
    nc_pad = cls["w2"].shape[1]

    inputs = (patches,
              c1["w"], c1["shift"], p1,
              c2["w"], c2["shift"], p2,
              c3["w"], c3["shift"], p3,
              c4["w"], c4["shift"],
              cls["w1"], cls["b1"], cls["w2"], cls["b2"])

    in_specs = [pl.BlockSpec((1, H * W, 9 * Cin), lambda n: (n, 0, 0))]
    in_specs += [_resident_spec(a) for a in inputs[1:]]

    out = pl.pallas_call(
        partial(_fused_cnn_kernel, hw=(H, W)),
        out_shape=jax.ShapeDtypeStruct((N, 1, nc_pad), jnp.float32),
        grid_spec=pltpu.PrefetchScalarGridSpec(
            num_scalar_prefetch=0,
            grid=(N,),                       # >=2 parallel steps -> both v7x TCs
            in_specs=in_specs,
            out_specs=pl.BlockSpec((1, 1, nc_pad), lambda n: (n, 0, 0)),
        ),
        compiler_params=pltpu.CompilerParams(
            dimension_semantics=("parallel",),
            vmem_limit_bytes=32 * 1024 * 1024,
        ),
    )(*inputs)

    return out.reshape(N, nc_pad)[:, :num_classes]


# ----------------------- deterministic (eval) parameters --------------------- #

def init_params(key, num_classes, eps=1e-5):
    channels = [3, 64, 128, 256, 512]
    params = {}
    k = key
    for i in range(4):
        cin, cout = channels[i], channels[i + 1]
        k, kw, kb, kg, kbe, km = jax.random.split(k, 6)
        w = jax.random.normal(kw, (3, 3, cin, cout), jnp.float32) * 0.05
        conv_b = jax.random.normal(kb, (cout,), jnp.float32) * 0.01
        gamma = 1.0 + jax.random.normal(kg, (cout,), jnp.float32) * 0.01
        beta = jax.random.normal(kbe, (cout,), jnp.float32) * 0.01
        running_mean = jax.random.normal(km, (cout,), jnp.float32) * 0.01
        running_var = jnp.ones((cout,), jnp.float32)
        scale = gamma / jnp.sqrt(running_var + eps)          # fold BN (eval mode)
        shift = beta + (conv_b - running_mean) * scale       # fold conv bias + BN
        w_folded = w * scale[None, None, None, :]            # scale into weights
        if i == 0:
            w_k = w_folded.reshape(9 * cin, cout).astype(jnp.bfloat16)  # im2col
        else:
            w_k = w_folded.reshape(9, cin, cout).astype(jnp.bfloat16)
        params[f"conv{i + 1}"] = {"w": w_k,
                                  "shift": shift.reshape(1, cout)}
    k, k1, k2, k3, k4 = jax.random.split(k, 5)
    w1 = jax.random.normal(k1, (512, 512), jnp.float32) * 0.05
    b1 = jax.random.normal(k2, (512,), jnp.float32) * 0.01
    w2 = jax.random.normal(k3, (512, num_classes), jnp.float32) * 0.05
    b2 = jax.random.normal(k4, (num_classes,), jnp.float32) * 0.01
    nc_pad = max(128, ((num_classes + 127) // 128) * 128)    # lane-dense output
    params["classifier"] = {
        "w1": w1.astype(jnp.bfloat16),
        "b1": b1.reshape(1, 512),
        "w2": jnp.pad(w2, ((0, 0), (0, nc_pad - num_classes))).astype(jnp.bfloat16),
        "b2": jnp.pad(b2, (0, nc_pad - num_classes)).reshape(1, nc_pad),
    }
    return params


# ----------------------------- pure-JAX reference ---------------------------- #

def reference_forward(x_nchw, params, num_classes):
    x = jnp.transpose(x_nchw, (0, 2, 3, 1)).astype(jnp.float32)
    feat = None
    for i in range(1, 5):
        p = params[f"conv{i}"]
        w = p["w"].astype(jnp.float32)
        if w.ndim == 2:                                       # conv1: (9*cin, cout)
            cin = w.shape[0] // 9
            w = w.reshape(3, 3, cin, w.shape[1])
        else:                                                 # (9, cin, cout)
            w = w.reshape(3, 3, w.shape[1], w.shape[2])
        y = jax.lax.conv_general_dilated(
            x, w, window_strides=(1, 1), padding="SAME",
            dimension_numbers=("NHWC", "HWIO", "NHWC"),
            precision=jax.lax.Precision.HIGHEST)
        y = jnp.maximum(y + p["shift"].astype(jnp.float32).reshape(1, 1, 1, -1), 0.0)
        if i < 4:
            n, hh, ww, c = y.shape
            x = y.reshape(n, hh // 2, 2, ww // 2, 2, c).max(axis=(2, 4))
        else:
            feat = y.mean(axis=(1, 2))
    c = params["classifier"]
    h = jnp.maximum(feat @ c["w1"].astype(jnp.float32) + c["b1"], 0.0)
    out = h @ c["w2"].astype(jnp.float32) + c["b2"]
    return out[:, :num_classes]


# TODO(synk): dataset loading / torchvision augmentations (CustomDataset,
# RandomResizedCrop, ColorJitter, ...) have no kernel equivalent; only the
# model forward pass is implemented.

if __name__ == "__main__":
    num_classes = 10
    key = jax.random.PRNGKey(0)
    kx, kp = jax.random.split(key)
    # Small NCHW input consistent with the module (3 input channels).
    x = jax.random.normal(kx, (2, 3, 16, 16), jnp.float32)
    params = init_params(kp, num_classes)

    fwd = jax.jit(partial(custom_cnn_forward, num_classes=num_classes))
    out = jax.block_until_ready(fwd(x, params))
    assert out.shape == (2, num_classes), out.shape
    assert bool(jnp.all(jnp.isfinite(out)))

    ref = jax.block_until_ready(reference_forward(x, params, num_classes))
    err = float(jnp.max(jnp.abs(out - ref)))
    scale = float(jnp.max(jnp.abs(ref)))
    assert err <= 0.08 * scale + 2e-2, (err, scale)   # bf16 compute vs f32 ref
    print("KERNEL_OK")
</pallas_src>

<mosaic_0001>
module attributes {stable_mosaic.version = 11 : i64} {
  func.func @_fused_cnn_kernel(%arg0: i32, %arg1: memref<1x256x27xbf16, #tpu.memory_space<vmem>>, %arg2: memref<27x64xbf16, #tpu.memory_space<vmem>>, %arg3: memref<1x64xf32, #tpu.memory_space<vmem>>, %arg4: memref<102x239xbf16, #tpu.memory_space<vmem>>, %arg5: memref<9x64x128xbf16, #tpu.memory_space<vmem>>, %arg6: memref<1x128xf32, #tpu.memory_space<vmem>>, %arg7: memref<38x69xbf16, #tpu.memory_space<vmem>>, %arg8: memref<9x128x256xbf16, #tpu.memory_space<vmem>>, %arg9: memref<1x256xf32, #tpu.memory_space<vmem>>, %arg10: memref<18x17xbf16, #tpu.memory_space<vmem>>, %arg11: memref<9x256x512xbf16, #tpu.memory_space<vmem>>, %arg12: memref<1x512xf32, #tpu.memory_space<vmem>>, %arg13: memref<512x512xbf16, #tpu.memory_space<vmem>>, %arg14: memref<1x512xf32, #tpu.memory_space<vmem>>, %arg15: memref<512x128xbf16, #tpu.memory_space<vmem>>, %arg16: memref<1x128xf32, #tpu.memory_space<vmem>>, %arg17: memref<1x1x128xf32, #tpu.memory_space<vmem>>) attributes {dimension_semantics = [#tpu.dimension_semantics<parallel>], iteration_bounds = array<i64: 2>, scalar_prefetch = 0 : i64, scratch_operands = 0 : i64, tpu.core_type = #tpu.core_type<tc>, window_params = [{transform_indices = @transform_0, window_bounds = array<i64: 1, 256, 27>}, {pipeline_mode = #tpu.pipeline_mode<synchronous>, transform_indices = @transform_1, window_bounds = array<i64: 27, 64>}, {pipeline_mode = #tpu.pipeline_mode<synchronous>, transform_indices = @transform_2, window_bounds = array<i64: 1, 64>}, {pipeline_mode = #tpu.pipeline_mode<synchronous>, transform_indices = @transform_3, window_bounds = array<i64: 102, 239>}, {pipeline_mode = #tpu.pipeline_mode<synchronous>, transform_indices = @transform_4, window_bounds = array<i64: 9, 64, 128>}, {pipeline_mode = #tpu.pipeline_mode<synchronous>, transform_indices = @transform_5, window_bounds = array<i64: 1, 128>}, {pipeline_mode = #tpu.pipeline_mode<synchronous>, transform_indices = @transform_6, window_bounds = array<i64: 38, 69>}, {pipeline_mode = #tpu.pipeline_mode<synchronous>, transform_indices = @transform_7, window_bounds = array<i64: 9, 128, 256>}, {pipeline_mode = #tpu.pipeline_mode<synchronous>, transform_indices = @transform_8, window_bounds = array<i64: 1, 256>}, {pipeline_mode = #tpu.pipeline_mode<synchronous>, transform_indices = @transform_9, window_bounds = array<i64: 18, 17>}, {pipeline_mode = #tpu.pipeline_mode<synchronous>, transform_indices = @transform_10, window_bounds = array<i64: 9, 256, 512>}, {pipeline_mode = #tpu.pipeline_mode<synchronous>, transform_indices = @transform_11, window_bounds = array<i64: 1, 512>}, {pipeline_mode = #tpu.pipeline_mode<synchronous>, transform_indices = @transform_12, window_bounds = array<i64: 512, 512>}, {pipeline_mode = #tpu.pipeline_mode<synchronous>, transform_indices = @transform_13, window_bounds = array<i64: 1, 512>}, {pipeline_mode = #tpu.pipeline_mode<synchronous>, transform_indices = @transform_14, window_bounds = array<i64: 512, 128>}, {pipeline_mode = #tpu.pipeline_mode<synchronous>, transform_indices = @transform_15, window_bounds = array<i64: 1, 128>}, {transform_indices = @transform_16, window_bounds = array<i64: 1, 1, 128>}]} {
    %c0 = arith.constant 0 : index
    %c0_0 = arith.constant 0 : index
    %c0_1 = arith.constant 0 : index
    %0 = vector.load %arg1[%c0, %c0_0, %c0_1] : memref<1x256x27xbf16, #tpu.memory_space<vmem>>, vector<1x256x27xbf16>
    %1 = vector.shape_cast %0 : vector<1x256x27xbf16> to vector<256x27xbf16>
    %c0_2 = arith.constant 0 : index
    %c0_3 = arith.constant 0 : index
    %2 = vector.load %arg2[%c0_2, %c0_3] : memref<27x64xbf16, #tpu.memory_space<vmem>>, vector<27x64xbf16>
    %cst = arith.constant dense<0.000000e+00> : vector<256x64xf32>
    %3 = tpu.matmul %1, %2, %cst {dimension_numbers = #tpu.dot_dimension_numbers<[1], [0], [0], [1], [0, 0, 1, 1], [], []>} : vector<256x27xbf16>, vector<27x64xbf16>, vector<256x64xf32> -> vector<256x64xf32>
    %c0_4 = arith.constant 0 : index
    %c0_5 = arith.constant 0 : index
    %4 = vector.load %arg3[%c0_4, %c0_5] : memref<1x64xf32, #tpu.memory_space<vmem>>, vector<1x64xf32>
    %5 = vector.broadcast %4 : vector<1x64xf32> to vector<256x64xf32>
    %6 = arith.addf %3, %5 : vector<256x64xf32>
    %cst_6 = arith.constant 0.000000e+00 : f32
    %7 = vector.broadcast %cst_6 : f32 to vector<256x64xf32>
    %8 = arith.maximumf %6, %7 : vector<256x64xf32>
    %9 = vector.extract_strided_slice %8 {offsets = [0, 0], sizes = [239, 64], strides = [1, 1]} : vector<256x64xf32> to vector<239x64xf32>
    %10 = vector.extract_strided_slice %8 {offsets = [1, 0], sizes = [239, 64], strides = [1, 1]} : vector<256x64xf32> to vector<239x64xf32>
    %11 = arith.maximumf %9, %10 : vector<239x64xf32>
    %12 = vector.extract_strided_slice %8 {offsets = [16, 0], sizes = [239, 64], strides = [1, 1]} : vector<256x64xf32> to vector<239x64xf32>
    %13 = vector.extract_strided_slice %8 {offsets = [17, 0], sizes = [239, 64], strides = [1, 1]} : vector<256x64xf32> to vector<239x64xf32>
    %14 = arith.maximumf %12, %13 : vector<239x64xf32>
    %15 = arith.maximumf %11, %14 : vector<239x64xf32>
    %c0_7 = arith.constant 0 : index
    %c0_8 = arith.constant 0 : index
    %16 = vector.load %arg4[%c0_7, %c0_8] : memref<102x239xbf16, #tpu.memory_space<vmem>>, vector<102x239xbf16>
    %17 = arith.truncf %15 : vector<239x64xf32> to vector<239x64xbf16>
    %cst_9 = arith.constant dense<0.000000e+00> : vector<102x64xf32>
    %18 = tpu.matmul %16, %17, %cst_9 {dimension_numbers = #tpu.dot_dimension_numbers<[1], [0], [0], [1], [0, 0, 1, 1], [], []>} : vector<102x239xbf16>, vector<239x64xbf16>, vector<102x64xf32> -> vector<102x64xf32>
    %19 = arith.truncf %18 : vector<102x64xf32> to vector<102x64xbf16>
    %cst_10 = arith.constant 0.000000e+00 : f32
    %20 = vector.broadcast %cst_10 : f32 to vector<80x128xf32>
    %21 = vector.extract_strided_slice %19 {offsets = [0, 0], sizes = [80, 64], strides = [1, 1]} : vector<102x64xbf16> to vector<80x64xbf16>
    %c0_11 = arith.constant 0 : index
    %c0_12 = arith.constant 0 : index
    %c0_13 = arith.constant 0 : index
    %22 = vector.load %arg5[%c0_11, %c0_12, %c0_13] : memref<9x64x128xbf16, #tpu.memory_space<vmem>>, vector<1x64x128xbf16>
    %23 = vector.shape_cast %22 : vector<1x64x128xbf16> to vector<64x128xbf16>
    %cst_14 = arith.constant dense<0.000000e+00> : vector<80x128xf32>
    %24 = tpu.matmul %21, %23, %cst_14 {dimension_numbers = #tpu.dot_dimension_numbers<[1], [0], [0], [1], [0, 0, 1, 1], [], []>} : vector<80x64xbf16>, vector<64x128xbf16>, vector<80x128xf32> -> vector<80x128xf32>
    %25 = arith.addf %20, %24 : vector<80x128xf32>
    %26 = vector.extract_strided_slice %19 {offsets = [1, 0], sizes = [80, 64], strides = [1, 1]} : vector<102x64xbf16> to vector<80x64xbf16>
    %c1 = arith.constant 1 : index
    %c0_15 = arith.constant 0 : index
    %c0_16 = arith.constant 0 : index
    %27 = vector.load %arg5[%c1, %c0_15, %c0_16] : memref<9x64x128xbf16, #tpu.memory_space<vmem>>, vector<1x64x128xbf16>
    %28 = vector.shape_cast %27 : vector<1x64x128xbf16> to vector<64x128xbf16>
    %cst_17 = arith.constant dense<0.000000e+00> : vector<80x128xf32>
    %29 = tpu.matmul %26, %28, %cst_17 {dimension_numbers = #tpu.dot_dimension_numbers<[1], [0], [0], [1], [0, 0, 1, 1], [], []>} : vector<80x64xbf16>, vector<64x128xbf16>, vector<80x128xf32> -> vector<80x128xf32>
    %30 = arith.addf %25, %29 : vector<80x128xf32>
    %31 = vector.extract_strided_slice %19 {offsets = [2, 0], sizes = [80, 64], strides = [1, 1]} : vector<102x64xbf16> to vector<80x64xbf16>
    %c2 = arith.constant 2 : index
    %c0_18 = arith.constant 0 : index
    %c0_19 = arith.constant 0 : index
    %32 = vector.load %arg5[%c2, %c0_18, %c0_19] : memref<9x64x128xbf16, #tpu.memory_space<vmem>>, vector<1x64x128xbf16>
    %33 = vector.shape_cast %32 : vector<1x64x128xbf16> to vector<64x128xbf16>
    %cst_20 = arith.constant dense<0.000000e+00> : vector<80x128xf32>
    %34 = tpu.matmul %31, %33, %cst_20 {dimension_numbers = #tpu.dot_dimension_numbers<[1], [0], [0], [1], [0, 0, 1, 1], [], []>} : vector<80x64xbf16>, vector<64x128xbf16>, vector<80x128xf32> -> vector<80x128xf32>
    %35 = arith.addf %30, %34 : vector<80x128xf32>
    %36 = vector.extract_strided_slice %19 {offsets = [10, 0], sizes = [80, 64], strides = [1, 1]} : vector<102x64xbf16> to vector<80x64xbf16>
    %c3 = arith.constant 3 : index
    %c0_21 = arith.constant 0 : index
    %c0_22 = arith.constant 0 : index
    %37 = vector.load %arg5[%c3, %c0_21, %c0_22] : memref<9x64x128xbf16, #tpu.memory_space<vmem>>, vector<1x64x128xbf16>
    %38 = vector.shape_cast %37 : vector<1x64x128xbf16> to vector<64x128xbf16>
    %cst_23 = arith.constant dense<0.000000e+00> : vector<80x128xf32>
    %39 = tpu.matmul %36, %38, %cst_23 {dimension_numbers = #tpu.dot_dimension_numbers<[1], [0], [0], [1], [0, 0, 1, 1], [], []>} : vector<80x64xbf16>, vector<64x128xbf16>, vector<80x128xf32> -> vector<80x128xf32>
    %40 = arith.addf %35, %39 : vector<80x128xf32>
    %41 = vector.extract_strided_slice %19 {offsets = [11, 0], sizes = [80, 64], strides = [1, 1]} : vector<102x64xbf16> to vector<80x64xbf16>
    %c4 = arith.constant 4 : index
    %c0_24 = arith.constant 0 : index
    %c0_25 = arith.constant 0 : index
    %42 = vector.load %arg5[%c4, %c0_24, %c0_25] : memref<9x64x128xbf16, #tpu.memory_space<vmem>>, vector<1x64x128xbf16>
    %43 = vector.shape_cast %42 : vector<1x64x128xbf16> to vector<64x128xbf16>
    %cst_26 = arith.constant dense<0.000000e+00> : vector<80x128xf32>
    %44 = tpu.matmul %41, %43, %cst_26 {dimension_numbers = #tpu.dot_dimension_numbers<[1], [0], [0], [1], [0, 0, 1, 1], [], []>} : vector<80x64xbf16>, vector<64x128xbf16>, vector<80x128xf32> -> vector<80x128xf32>
    %45 = arith.addf %40, %44 : vector<80x128xf32>
    %46 = vector.extract_strided_slice %19 {offsets = [12, 0], sizes = [80, 64], strides = [1, 1]} : vector<102x64xbf16> to vector<80x64xbf16>
    %c5 = arith.constant 5 : index
    %c0_27 = arith.constant 0 : index
    %c0_28 = arith.constant 0 : index
    %47 = vector.load %arg5[%c5, %c0_27, %c0_28] : memref<9x64x128xbf16, #tpu.memory_space<vmem>>, vector<1x64x128xbf16>
    %48 = vector.shape_cast %47 : vector<1x64x128xbf16> to vector<64x128xbf16>
    %cst_29 = arith.constant dense<0.000000e+00> : vector<80x128xf32>
    %49 = tpu.matmul %46, %48, %cst_29 {dimension_numbers = #tpu.dot_dimension_numbers<[1], [0], [0], [1], [0, 0, 1, 1], [], []>} : vector<80x64xbf16>, vector<64x128xbf16>, vector<80x128xf32> -> vector<80x128xf32>
    %50 = arith.addf %45, %49 : vector<80x128xf32>
    %51 = vector.extract_strided_slice %19 {offsets = [20, 0], sizes = [80, 64], strides = [1, 1]} : vector<102x64xbf16> to vector<80x64xbf16>
    %c6 = arith.constant 6 : index
    %c0_30 = arith.constant 0 : index
    %c0_31 = arith.constant 0 : index
    %52 = vector.load %arg5[%c6, %c0_30, %c0_31] : memref<9x64x128xbf16, #tpu.memory_space<vmem>>, vector<1x64x128xbf16>
    %53 = vector.shape_cast %52 : vector<1x64x128xbf16> to vector<64x128xbf16>
    %cst_32 = arith.constant dense<0.000000e+00> : vector<80x128xf32>
    %54 = tpu.matmul %51, %53, %cst_32 {dimension_numbers = #tpu.dot_dimension_numbers<[1], [0], [0], [1], [0, 0, 1, 1], [], []>} : vector<80x64xbf16>, vector<64x128xbf16>, vector<80x128xf32> -> vector<80x128xf32>
    %55 = arith.addf %50, %54 : vector<80x128xf32>
    %56 = vector.extract_strided_slice %19 {offsets = [21, 0], sizes = [80, 64], strides = [1, 1]} : vector<102x64xbf16> to vector<80x64xbf16>
    %c7 = arith.constant 7 : index
    %c0_33 = arith.constant 0 : index
    %c0_34 = arith.constant 0 : index
    %57 = vector.load %arg5[%c7, %c0_33, %c0_34] : memref<9x64x128xbf16, #tpu.memory_space<vmem>>, vector<1x64x128xbf16>
    %58 = vector.shape_cast %57 : vector<1x64x128xbf16> to vector<64x128xbf16>
    %cst_35 = arith.constant dense<0.000000e+00> : vector<80x128xf32>
    %59 = tpu.matmul %56, %58, %cst_35 {dimension_numbers = #tpu.dot_dimension_numbers<[1], [0], [0], [1], [0, 0, 1, 1], [], []>} : vector<80x64xbf16>, vector<64x128xbf16>, vector<80x128xf32> -> vector<80x128xf32>
    %60 = arith.addf %55, %59 : vector<80x128xf32>
    %61 = vector.extract_strided_slice %19 {offsets = [22, 0], sizes = [80, 64], strides = [1, 1]} : vector<102x64xbf16> to vector<80x64xbf16>
    %c8 = arith.constant 8 : index
    %c0_36 = arith.constant 0 : index
    %c0_37 = arith.constant 0 : index
    %62 = vector.load %arg5[%c8, %c0_36, %c0_37] : memref<9x64x128xbf16, #tpu.memory_space<vmem>>, vector<1x64x128xbf16>
    %63 = vector.shape_cast %62 : vector<1x64x128xbf16> to vector<64x128xbf16>
    %cst_38 = arith.constant dense<0.000000e+00> : vector<80x128xf32>
    %64 = tpu.matmul %61, %63, %cst_38 {dimension_numbers = #tpu.dot_dimension_numbers<[1], [0], [0], [1], [0, 0, 1, 1], [], []>} : vector<80x64xbf16>, vector<64x128xbf16>, vector<80x128xf32> -> vector<80x128xf32>
    %65 = arith.addf %60, %64 : vector<80x128xf32>
    %c0_39 = arith.constant 0 : index
    %c0_40 = arith.constant 0 : index
    %66 = vector.load %arg6[%c0_39, %c0_40] : memref<1x128xf32, #tpu.memory_space<vmem>>, vector<1x128xf32>
    %67 = vector.broadcast %66 : vector<1x128xf32> to vector<80x128xf32>
    %68 = arith.addf %65, %67 : vector<80x128xf32>
    %cst_41 = arith.constant 0.000000e+00 : f32
    %69 = vector.broadcast %cst_41 : f32 to vector<80x128xf32>
    %70 = arith.maximumf %68, %69 : vector<80x128xf32>
    %71 = vector.extract_strided_slice %70 {offsets = [0, 0], sizes = [69, 128], strides = [1, 1]} : vector<80x128xf32> to vector<69x128xf32>
    %72 = vector.extract_strided_slice %70 {offsets = [1, 0], sizes = [69, 128], strides = [1, 1]} : vector<80x128xf32> to vector<69x128xf32>
    %73 = arith.maximumf %71, %72 : vector<69x128xf32>
    %74 = vector.extract_strided_slice %70 {offsets = [10, 0], sizes = [69, 128], strides = [1, 1]} : vector<80x128xf32> to vector<69x128xf32>
    %75 = vector.extract_strided_slice %70 {offsets = [11, 0], sizes = [69, 128], strides = [1, 1]} : vector<80x128xf32> to vector<69x128xf32>
    %76 = arith.maximumf %74, %75 : vector<69x128xf32>
    %77 = arith.maximumf %73, %76 : vector<69x128xf32>
    %c0_42 = arith.constant 0 : index
    %c0_43 = arith.constant 0 : index
    %78 = vector.load %arg7[%c0_42, %c0_43] : memref<38x69xbf16, #tpu.memory_space<vmem>>, vector<38x69xbf16>
    %79 = arith.truncf %77 : vector<69x128xf32> to vector<69x128xbf16>
    %cst_44 = arith.constant dense<0.000000e+00> : vector<38x128xf32>
    %80 = tpu.matmul %78, %79, %cst_44 {dimension_numbers = #tpu.dot_dimension_numbers<[1], [0], [0], [1], [0, 0, 1, 1], [], []>} : vector<38x69xbf16>, vector<69x128xbf16>, vector<38x128xf32> -> vector<38x128xf32>
    %81 = arith.truncf %80 : vector<38x128xf32> to vector<38x128xbf16>
    %cst_45 = arith.constant 0.000000e+00 : f32
    %82 = vector.broadcast %cst_45 : f32 to vector<24x256xf32>
    %83 = vector.extract_strided_slice %81 {offsets = [0, 0], sizes = [24, 128], strides = [1, 1]} : vector<38x128xbf16> to vector<24x128xbf16>
    %c0_46 = arith.constant 0 : index
    %c0_47 = arith.constant 0 : index
    %c0_48 = arith.constant 0 : index
    %84 = vector.load %arg8[%c0_46, %c0_47, %c0_48] : memref<9x128x256xbf16, #tpu.memory_space<vmem>>, vector<1x128x256xbf16>
    %85 = vector.shape_cast %84 : vector<1x128x256xbf16> to vector<128x256xbf16>
    %cst_49 = arith.constant dense<0.000000e+00> : vector<24x256xf32>
    %86 = tpu.matmul %83, %85, %cst_49 {dimension_numbers = #tpu.dot_dimension_numbers<[1], [0], [0], [1], [0, 0, 1, 1], [], []>} : vector<24x128xbf16>, vector<128x256xbf16>, vector<24x256xf32> -> vector<24x256xf32>
    %87 = arith.addf %82, %86 : vector<24x256xf32>
    %88 = vector.extract_strided_slice %81 {offsets = [1, 0], sizes = [24, 128], strides = [1, 1]} : vector<38x128xbf16> to vector<24x128xbf16>
    %c1_50 = arith.constant 1 : index
    %c0_51 = arith.constant 0 : index
    %c0_52 = arith.constant 0 : index
    %89 = vector.load %arg8[%c1_50, %c0_51, %c0_52] : memref<9x128x256xbf16, #tpu.memory_space<vmem>>, vector<1x128x256xbf16>
    %90 = vector.shape_cast %89 : vector<1x128x256xbf16> to vector<128x256xbf16>
    %cst_53 = arith.constant dense<0.000000e+00> : vector<24x256xf32>
    %91 = tpu.matmul %88, %90, %cst_53 {dimension_numbers = #tpu.dot_dimension_numbers<[1], [0], [0], [1], [0, 0, 1, 1], [], []>} : vector<24x128xbf16>, vector<128x256xbf16>, vector<24x256xf32> -> vector<24x256xf32>
    %92 = arith.addf %87, %91 : vector<24x256xf32>
    %93 = vector.extract_strided_slice %81 {offsets = [2, 0], sizes = [24, 128], strides = [1, 1]} : vector<38x128xbf16> to vector<24x128xbf16>
    %c2_54 = arith.constant 2 : index
    %c0_55 = arith.constant 0 : index
    %c0_56 = arith.constant 0 : index
    %94 = vector.load %arg8[%c2_54, %c0_55, %c0_56] : memref<9x128x256xbf16, #tpu.memory_space<vmem>>, vector<1x128x256xbf16>
    %95 = vector.shape_cast %94 : vector<1x128x256xbf16> to vector<128x256xbf16>
    %cst_57 = arith.constant dense<0.000000e+00> : vector<24x256xf32>
    %96 = tpu.matmul %93, %95, %cst_57 {dimension_numbers = #tpu.dot_dimension_numbers<[1], [0], [0], [1], [0, 0, 1, 1], [], []>} : vector<24x128xbf16>, vector<128x256xbf16>, vector<24x256xf32> -> vector<24x256xf32>
    %97 = arith.addf %92, %96 : vector<24x256xf32>
    %98 = vector.extract_strided_slice %81 {offsets = [6, 0], sizes = [24, 128], strides = [1, 1]} : vector<38x128xbf16> to vector<24x128xbf16>
    %c3_58 = arith.constant 3 : index
    %c0_59 = arith.constant 0 : index
    %c0_60 = arith.constant 0 : index
    %99 = vector.load %arg8[%c3_58, %c0_59, %c0_60] : memref<9x128x256xbf16, #tpu.memory_space<vmem>>, vector<1x128x256xbf16>
    %100 = vector.shape_cast %99 : vector<1x128x256xbf16> to vector<128x256xbf16>
    %cst_61 = arith.constant dense<0.000000e+00> : vector<24x256xf32>
    %101 = tpu.matmul %98, %100, %cst_61 {dimension_numbers = #tpu.dot_dimension_numbers<[1], [0], [0], [1], [0, 0, 1, 1], [], []>} : vector<24x128xbf16>, vector<128x256xbf16>, vector<24x256xf32> -> vector<24x256xf32>
    %102 = arith.addf %97, %101 : vector<24x256xf32>
    %103 = vector.extract_strided_slice %81 {offsets = [7, 0], sizes = [24, 128], strides = [1, 1]} : vector<38x128xbf16> to vector<24x128xbf16>
    %c4_62 = arith.constant 4 : index
    %c0_63 = arith.constant 0 : index
    %c0_64 = arith.constant 0 : index
    %104 = vector.load %arg8[%c4_62, %c0_63, %c0_64] : memref<9x128x256xbf16, #tpu.memory_space<vmem>>, vector<1x128x256xbf16>
    %105 = vector.shape_cast %104 : vector<1x128x256xbf16> to vector<128x256xbf16>
    %cst_65 = arith.constant dense<0.000000e+00> : vector<24x256xf32>
    %106 = tpu.matmul %103, %105, %cst_65 {dimension_numbers = #tpu.dot_dimension_numbers<[1], [0], [0], [1], [0, 0, 1, 1], [], []>} : vector<24x128xbf16>, vector<128x256xbf16>, vector<24x256xf32> -> vector<24x256xf32>
    %107 = arith.addf %102, %106 : vector<24x256xf32>
    %108 = vector.extract_strided_slice %81 {offsets = [8, 0], sizes = [24, 128], strides = [1, 1]} : vector<38x128xbf16> to vector<24x128xbf16>
    %c5_66 = arith.constant 5 : index
    %c0_67 = arith.constant 0 : index
    %c0_68 = arith.constant 0 : index
    %109 = vector.load %arg8[%c5_66, %c0_67, %c0_68] : memref<9x128x256xbf16, #tpu.memory_space<vmem>>, vector<1x128x256xbf16>
    %110 = vector.shape_cast %109 : vector<1x128x256xbf16> to vector<128x256xbf16>
    %cst_69 = arith.constant dense<0.000000e+00> : vector<24x256xf32>
    %111 = tpu.matmul %108, %110, %cst_69 {dimension_numbers = #tpu.dot_dimension_numbers<[1], [0], [0], [1], [0, 0, 1, 1], [], []>} : vector<24x128xbf16>, vector<128x256xbf16>, vector<24x256xf32> -> vector<24x256xf32>
    %112 = arith.addf %107, %111 : vector<24x256xf32>
    %113 = vector.extract_strided_slice %81 {offsets = [12, 0], sizes = [24, 128], strides = [1, 1]} : vector<38x128xbf16> to vector<24x128xbf16>
    %c6_70 = arith.constant 6 : index
    %c0_71 = arith.constant 0 : index
    %c0_72 = arith.constant 0 : index
    %114 = vector.load %arg8[%c6_70, %c0_71, %c0_72] : memref<9x128x256xbf16, #tpu.memory_space<vmem>>, vector<1x128x256xbf16>
    %115 = vector.shape_cast %114 : vector<1x128x256xbf16> to vector<128x256xbf16>
    %cst_73 = arith.constant dense<0.000000e+00> : vector<24x256xf32>
    %116 = tpu.matmul %113, %115, %cst_73 {dimension_numbers = #tpu.dot_dimension_numbers<[1], [0], [0], [1], [0, 0, 1, 1], [], []>} : vector<24x128xbf16>, vector<128x256xbf16>, vector<24x256xf32> -> vector<24x256xf32>
    %117 = arith.addf %112, %116 : vector<24x256xf32>
    %118 = vector.extract_strided_slice %81 {offsets = [13, 0], sizes = [24, 128], strides = [1, 1]} : vector<38x128xbf16> to vector<24x128xbf16>
    %c7_74 = arith.constant 7 : index
    %c0_75 = arith.constant 0 : index
    %c0_76 = arith.constant 0 : index
    %119 = vector.load %arg8[%c7_74, %c0_75, %c0_76] : memref<9x128x256xbf16, #tpu.memory_space<vmem>>, vector<1x128x256xbf16>
    %120 = vector.shape_cast %119 : vector<1x128x256xbf16> to vector<128x256xbf16>
    %cst_77 = arith.constant dense<0.000000e+00> : vector<24x256xf32>
    %121 = tpu.matmul %118, %120, %cst_77 {dimension_numbers = #tpu.dot_dimension_numbers<[1], [0], [0], [1], [0, 0, 1, 1], [], []>} : vector<24x128xbf16>, vector<128x256xbf16>, vector<24x256xf32> -> vector<24x256xf32>
    %122 = arith.addf %117, %121 : vector<24x256xf32>
    %123 = vector.extract_strided_slice %81 {offsets = [14, 0], sizes = [24, 128], strides = [1, 1]} : vector<38x128xbf16> to vector<24x128xbf16>
    %c8_78 = arith.constant 8 : index
    %c0_79 = arith.constant 0 : index
    %c0_80 = arith.constant 0 : index
    %124 = vector.load %arg8[%c8_78, %c0_79, %c0_80] : memref<9x128x256xbf16, #tpu.memory_space<vmem>>, vector<1x128x256xbf16>
    %125 = vector.shape_cast %124 : vector<1x128x256xbf16> to vector<128x256xbf16>
    %cst_81 = arith.constant dense<0.000000e+00> : vector<24x256xf32>
    %126 = tpu.matmul %123, %125, %cst_81 {dimension_numbers = #tpu.dot_dimension_numbers<[1], [0], [0], [1], [0, 0, 1, 1], [], []>} : vector<24x128xbf16>, vector<128x256xbf16>, vector<24x256xf32> -> vector<24x256xf32>
    %127 = arith.addf %122, %126 : vector<24x256xf32>
    %c0_82 = arith.constant 0 : index
    %c0_83 = arith.constant 0 : index
    %128 = vector.load %arg9[%c0_82, %c0_83] : memref<1x256xf32, #tpu.memory_space<vmem>>, vector<1x256xf32>
    %129 = vector.broadcast %128 : vector<1x256xf32> to vector<24x256xf32>
    %130 = arith.addf %127, %129 : vector<24x256xf32>
    %cst_84 = arith.constant 0.000000e+00 : f32
    %131 = vector.broadcast %cst_84 : f32 to vector<24x256xf32>
    %132 = arith.maximumf %130, %131 : vector<24x256xf32>
    %133 = vector.extract_strided_slice %132 {offsets = [0, 0], sizes = [17, 256], strides = [1, 1]} : vector<24x256xf32> to vector<17x256xf32>
    %134 = vector.extract_strided_slice %132 {offsets = [1, 0], sizes = [17, 256], strides = [1, 1]} : vector<24x256xf32> to vector<17x256xf32>
    %135 = arith.maximumf %133, %134 : vector<17x256xf32>
    %136 = vector.extract_strided_slice %132 {offsets = [6, 0], sizes = [17, 256], strides = [1, 1]} : vector<24x256xf32> to vector<17x256xf32>
    %137 = vector.extract_strided_slice %132 {offsets = [7, 0], sizes = [17, 256], strides = [1, 1]} : vector<24x256xf32> to vector<17x256xf32>
    %138 = arith.maximumf %136, %137 : vector<17x256xf32>
    %139 = arith.maximumf %135, %138 : vector<17x256xf32>
    %c0_85 = arith.constant 0 : index
    %c0_86 = arith.constant 0 : index
    %140 = vector.load %arg10[%c0_85, %c0_86] : memref<18x17xbf16, #tpu.memory_space<vmem>>, vector<18x17xbf16>
    %141 = arith.truncf %139 : vector<17x256xf32> to vector<17x256xbf16>
    %cst_87 = arith.constant dense<0.000000e+00> : vector<18x256xf32>
    %142 = tpu.matmul %140, %141, %cst_87 {dimension_numbers = #tpu.dot_dimension_numbers<[1], [0], [0], [1], [0, 0, 1, 1], [], []>} : vector<18x17xbf16>, vector<17x256xbf16>, vector<18x256xf32> -> vector<18x256xf32>
    %143 = arith.truncf %142 : vector<18x256xf32> to vector<18x256xbf16>
    %cst_88 = arith.constant 0.000000e+00 : f32
    %144 = vector.broadcast %cst_88 : f32 to vector<8x512xf32>
    %145 = vector.extract_strided_slice %143 {offsets = [0, 0], sizes = [8, 256], strides = [1, 1]} : vector<18x256xbf16> to vector<8x256xbf16>
    %c0_89 = arith.constant 0 : index
    %c0_90 = arith.constant 0 : index
    %c0_91 = arith.constant 0 : index
    %146 = vector.load %arg11[%c0_89, %c0_90, %c0_91] : memref<9x256x512xbf16, #tpu.memory_space<vmem>>, vector<1x256x512xbf16>
    %147 = vector.shape_cast %146 : vector<1x256x512xbf16> to vector<256x512xbf16>
    %cst_92 = arith.constant dense<0.000000e+00> : vector<8x512xf32>
    %148 = tpu.matmul %145, %147, %cst_92 {dimension_numbers = #tpu.dot_dimension_numbers<[1], [0], [0], [1], [0, 0, 1, 1], [], []>} : vector<8x256xbf16>, vector<256x512xbf16>, vector<8x512xf32> -> vector<8x512xf32>
    %149 = arith.addf %144, %148 : vector<8x512xf32>
    %150 = vector.extract_strided_slice %143 {offsets = [1, 0], sizes = [8, 256], strides = [1, 1]} : vector<18x256xbf16> to vector<8x256xbf16>
    %c1_93 = arith.constant 1 : index
    %c0_94 = arith.constant 0 : index
    %c0_95 = arith.constant 0 : index
    %151 = vector.load %arg11[%c1_93, %c0_94, %c0_95] : memref<9x256x512xbf16, #tpu.memory_space<vmem>>, vector<1x256x512xbf16>
    %152 = vector.shape_cast %151 : vector<1x256x512xbf16> to vector<256x512xbf16>
    %cst_96 = arith.constant dense<0.000000e+00> : vector<8x512xf32>
    %153 = tpu.matmul %150, %152, %cst_96 {dimension_numbers = #tpu.dot_dimension_numbers<[1], [0], [0], [1], [0, 0, 1, 1], [], []>} : vector<8x256xbf16>, vector<256x512xbf16>, vector<8x512xf32> -> vector<8x512xf32>
    %154 = arith.addf %149, %153 : vector<8x512xf32>
    %155 = vector.extract_strided_slice %143 {offsets = [2, 0], sizes = [8, 256], strides = [1, 1]} : vector<18x256xbf16> to vector<8x256xbf16>
    %c2_97 = arith.constant 2 : index
    %c0_98 = arith.constant 0 : index
    %c0_99 = arith.constant 0 : index
    %156 = vector.load %arg11[%c2_97, %c0_98, %c0_99] : memref<9x256x512xbf16, #tpu.memory_space<vmem>>, vector<1x256x512xbf16>
    %157 = vector.shape_cast %156 : vector<1x256x512xbf16> to vector<256x512xbf16>
    %cst_100 = arith.constant dense<0.000000e+00> : vector<8x512xf32>
    %158 = tpu.matmul %155, %157, %cst_100 {dimension_numbers = #tpu.dot_dimension_numbers<[1], [0], [0], [1], [0, 0, 1, 1], [], []>} : vector<8x256xbf16>, vector<256x512xbf16>, vector<8x512xf32> -> vector<8x512xf32>
    %159 = arith.addf %154, %158 : vector<8x512xf32>
    %160 = vector.extract_strided_slice %143 {offsets = [4, 0], sizes = [8, 256], strides = [1, 1]} : vector<18x256xbf16> to vector<8x256xbf16>
    %c3_101 = arith.constant 3 : index
    %c0_102 = arith.constant 0 : index
    %c0_103 = arith.constant 0 : index
    %161 = vector.load %arg11[%c3_101, %c0_102, %c0_103] : memref<9x256x512xbf16, #tpu.memory_space<vmem>>, vector<1x256x512xbf16>
    %162 = vector.shape_cast %161 : vector<1x256x512xbf16> to vector<256x512xbf16>
    %cst_104 = arith.constant dense<0.000000e+00> : vector<8x512xf32>
    %163 = tpu.matmul %160, %162, %cst_104 {dimension_numbers = #tpu.dot_dimension_numbers<[1], [0], [0], [1], [0, 0, 1, 1], [], []>} : vector<8x256xbf16>, vector<256x512xbf16>, vector<8x512xf32> -> vector<8x512xf32>
    %164 = arith.addf %159, %163 : vector<8x512xf32>
    %165 = vector.extract_strided_slice %143 {offsets = [5, 0], sizes = [8, 256], strides = [1, 1]} : vector<18x256xbf16> to vector<8x256xbf16>
    %c4_105 = arith.constant 4 : index
    %c0_106 = arith.constant 0 : index
    %c0_107 = arith.constant 0 : index
    %166 = vector.load %arg11[%c4_105, %c0_106, %c0_107] : memref<9x256x512xbf16, #tpu.memory_space<vmem>>, vector<1x256x512xbf16>
    %167 = vector.shape_cast %166 : vector<1x256x512xbf16> to vector<256x512xbf16>
    %cst_108 = arith.constant dense<0.000000e+00> : vector<8x512xf32>
    %168 = tpu.matmul %165, %167, %cst_108 {dimension_numbers = #tpu.dot_dimension_numbers<[1], [0], [0], [1], [0, 0, 1, 1], [], []>} : vector<8x256xbf16>, vector<256x512xbf16>, vector<8x512xf32> -> vector<8x512xf32>
    %169 = arith.addf %164, %168 : vector<8x512xf32>
    %170 = vector.extract_strided_slice %143 {offsets = [6, 0], sizes = [8, 256], strides = [1, 1]} : vector<18x256xbf16> to vector<8x256xbf16>
    %c5_109 = arith.constant 5 : index
    %c0_110 = arith.constant 0 : index
    %c0_111 = arith.constant 0 : index
    %171 = vector.load %arg11[%c5_109, %c0_110, %c0_111] : memref<9x256x512xbf16, #tpu.memory_space<vmem>>, vector<1x256x512xbf16>
    %172 = vector.shape_cast %171 : vector<1x256x512xbf16> to vector<256x512xbf16>
    %cst_112 = arith.constant dense<0.000000e+00> : vector<8x512xf32>
    %173 = tpu.matmul %170, %172, %cst_112 {dimension_numbers = #tpu.dot_dimension_numbers<[1], [0], [0], [1], [0, 0, 1, 1], [], []>} : vector<8x256xbf16>, vector<256x512xbf16>, vector<8x512xf32> -> vector<8x512xf32>
    %174 = arith.addf %169, %173 : vector<8x512xf32>
    %175 = vector.extract_strided_slice %143 {offsets = [8, 0], sizes = [8, 256], strides = [1, 1]} : vector<18x256xbf16> to vector<8x256xbf16>
    %c6_113 = arith.constant 6 : index
    %c0_114 = arith.constant 0 : index
    %c0_115 = arith.constant 0 : index
    %176 = vector.load %arg11[%c6_113, %c0_114, %c0_115] : memref<9x256x512xbf16, #tpu.memory_space<vmem>>, vector<1x256x512xbf16>
    %177 = vector.shape_cast %176 : vector<1x256x512xbf16> to vector<256x512xbf16>
    %cst_116 = arith.constant dense<0.000000e+00> : vector<8x512xf32>
    %178 = tpu.matmul %175, %177, %cst_116 {dimension_numbers = #tpu.dot_dimension_numbers<[1], [0], [0], [1], [0, 0, 1, 1], [], []>} : vector<8x256xbf16>, vector<256x512xbf16>, vector<8x512xf32> -> vector<8x512xf32>
    %179 = arith.addf %174, %178 : vector<8x512xf32>
    %180 = vector.extract_strided_slice %143 {offsets = [9, 0], sizes = [8, 256], strides = [1, 1]} : vector<18x256xbf16> to vector<8x256xbf16>
    %c7_117 = arith.constant 7 : index
    %c0_118 = arith.constant 0 : index
    %c0_119 = arith.constant 0 : index
    %181 = vector.load %arg11[%c7_117, %c0_118, %c0_119] : memref<9x256x512xbf16, #tpu.memory_space<vmem>>, vector<1x256x512xbf16>
    %182 = vector.shape_cast %181 : vector<1x256x512xbf16> to vector<256x512xbf16>
    %cst_120 = arith.constant dense<0.000000e+00> : vector<8x512xf32>
    %183 = tpu.matmul %180, %182, %cst_120 {dimension_numbers = #tpu.dot_dimension_numbers<[1], [0], [0], [1], [0, 0, 1, 1], [], []>} : vector<8x256xbf16>, vector<256x512xbf16>, vector<8x512xf32> -> vector<8x512xf32>
    %184 = arith.addf %179, %183 : vector<8x512xf32>
    %185 = vector.extract_strided_slice %143 {offsets = [10, 0], sizes = [8, 256], strides = [1, 1]} : vector<18x256xbf16> to vector<8x256xbf16>
    %c8_121 = arith.constant 8 : index
    %c0_122 = arith.constant 0 : index
    %c0_123 = arith.constant 0 : index
    %186 = vector.load %arg11[%c8_121, %c0_122, %c0_123] : memref<9x256x512xbf16, #tpu.memory_space<vmem>>, vector<1x256x512xbf16>
    %187 = vector.shape_cast %186 : vector<1x256x512xbf16> to vector<256x512xbf16>
    %cst_124 = arith.constant dense<0.000000e+00> : vector<8x512xf32>
    %188 = tpu.matmul %185, %187, %cst_124 {dimension_numbers = #tpu.dot_dimension_numbers<[1], [0], [0], [1], [0, 0, 1, 1], [], []>} : vector<8x256xbf16>, vector<256x512xbf16>, vector<8x512xf32> -> vector<8x512xf32>
    %189 = arith.addf %184, %188 : vector<8x512xf32>
    %c0_125 = arith.constant 0 : index
    %c0_126 = arith.constant 0 : index
    %190 = vector.load %arg12[%c0_125, %c0_126] : memref<1x512xf32, #tpu.memory_space<vmem>>, vector<1x512xf32>
    %191 = vector.broadcast %190 : vector<1x512xf32> to vector<8x512xf32>
    %192 = arith.addf %189, %191 : vector<8x512xf32>
    %cst_127 = arith.constant 0.000000e+00 : f32
    %193 = vector.broadcast %cst_127 : f32 to vector<8x512xf32>
    %194 = arith.maximumf %192, %193 : vector<8x512xf32>
    %195 = tpu.iota {dimensions = array<i32: 0>} : vector<8x512xi32>
    %c4_i32 = arith.constant 4 : i32
    %c0_i32 = arith.constant 0 : i32
    %196 = arith.cmpi eq, %c4_i32, %c0_i32 : i32
    %c1_i32 = arith.constant 1 : i32
    %197 = arith.select %196, %c1_i32, %c4_i32 : i32
    %198 = vector.broadcast %197 : i32 to vector<8x512xi32>
    %199 = arith.remsi %195, %198 : vector<8x512xi32>
    %c0_i32_128 = arith.constant 0 : i32
    %200 = vector.broadcast %c0_i32_128 : i32 to vector<8x512xi32>
    %201 = arith.cmpi ne, %199, %200 : vector<8x512xi32>
    %c0_i32_129 = arith.constant 0 : i32
    %202 = vector.broadcast %c0_i32_129 : i32 to vector<8x512xi32>
    %203 = arith.cmpi slt, %199, %202 : vector<8x512xi32>
    %c0_i32_130 = arith.constant 0 : i32
    %204 = arith.cmpi slt, %197, %c0_i32_130 : i32
    %205 = vector.broadcast %204 : i1 to vector<8x512xi1>
    %206 = vector.broadcast %205 : vector<8x512xi1> to vector<8x512xi1>
    %207 = arith.xori %203, %206 : vector<8x512xi1>
    %208 = arith.andi %207, %201 : vector<8x512xi1>
    %209 = vector.broadcast %197 : i32 to vector<8x512xi32>
    %210 = arith.addi %199, %209 : vector<8x512xi32>
    %211 = arith.select %208, %210, %199 : vector<8x512xi1>, vector<8x512xi32>
    %c2_i32 = arith.constant 2 : i32
    %212 = vector.broadcast %c2_i32 : i32 to vector<8x512xi32>
    %213 = arith.cmpi slt, %211, %212 : vector<8x512xi32>
    %cst_131 = arith.constant 0.000000e+00 : f32
    %214 = vector.broadcast %cst_131 : f32 to vector<8x512xf32>
    %215 = arith.select %213, %194, %214 : vector<8x512xi1>, vector<8x512xf32>
    %cst_132 = arith.constant dense<0.000000e+00> : vector<512xf32>
    %216 = vector.multi_reduction <add>, %215, %cst_132 [0] : vector<8x512xf32> to vector<512xf32>
    %217 = vector.shape_cast %216 : vector<512xf32> to vector<1x512xf32>
    %cst_133 = arith.constant 2.500000e-01 : f32
    %218 = vector.broadcast %cst_133 : f32 to vector<1x512xf32>
    %219 = arith.mulf %217, %218 : vector<1x512xf32>
    %220 = arith.truncf %219 : vector<1x512xf32> to vector<1x512xbf16>
    %c0_134 = arith.constant 0 : index
    %c0_135 = arith.constant 0 : index
    %221 = vector.load %arg13[%c0_134, %c0_135] : memref<512x512xbf16, #tpu.memory_space<vmem>>, vector<512x512xbf16>
    %cst_136 = arith.constant dense<0.000000e+00> : vector<1x512xf32>
    %222 = tpu.matmul %220, %221, %cst_136 {dimension_numbers = #tpu.dot_dimension_numbers<[1], [0], [0], [1], [0, 0, 1, 1], [], []>} : vector<1x512xbf16>, vector<512x512xbf16>, vector<1x512xf32> -> vector<1x512xf32>
    %c0_137 = arith.constant 0 : index
    %c0_138 = arith.constant 0 : index
    %223 = vector.load %arg14[%c0_137, %c0_138] : memref<1x512xf32, #tpu.memory_space<vmem>>, vector<1x512xf32>
    %224 = arith.addf %222, %223 : vector<1x512xf32>
    %cst_139 = arith.constant 0.000000e+00 : f32
    %225 = vector.broadcast %cst_139 : f32 to vector<1x512xf32>
    %226 = arith.maximumf %224, %225 : vector<1x512xf32>
    %227 = arith.truncf %226 : vector<1x512xf32> to vector<1x512xbf16>
    %c0_140 = arith.constant 0 : index
    %c0_141 = arith.constant 0 : index
    %228 = vector.load %arg15[%c0_140, %c0_141] : memref<512x128xbf16, #tpu.memory_space<vmem>>, vector<512x128xbf16>
    %cst_142 = arith.constant dense<0.000000e+00> : vector<1x128xf32>
    %229 = tpu.matmul %227, %228, %cst_142 {dimension_numbers = #tpu.dot_dimension_numbers<[1], [0], [0], [1], [0, 0, 1, 1], [], []>} : vector<1x512xbf16>, vector<512x128xbf16>, vector<1x128xf32> -> vector<1x128xf32>
    %c0_143 = arith.constant 0 : index
    %c0_144 = arith.constant 0 : index
    %230 = vector.load %arg16[%c0_143, %c0_144] : memref<1x128xf32, #tpu.memory_space<vmem>>, vector<1x128xf32>
    %231 = arith.addf %229, %230 : vector<1x128xf32>
    %c0_145 = arith.constant 0 : index
    %c0_146 = arith.constant 0 : index
    %c0_147 = arith.constant 0 : index
    %232 = vector.load %arg17[%c0_145, %c0_146, %c0_147] : memref<1x1x128xf32, #tpu.memory_space<vmem>>, vector<1x1x128xf32>
    %233 = vector.shape_cast %232 : vector<1x1x128xf32> to vector<1x128xf32>
    %234 = vector.shape_cast %231 : vector<1x128xf32> to vector<1x1x128xf32>
    tpu.vector_store %arg17[%c0_145, %c0_146, %c0_147], %234 {strides = array<i32>} : memref<1x1x128xf32, #tpu.memory_space<vmem>>, vector<1x1x128xf32>,
    return
  }
  func.func @transform_0(%arg0: i32) -> (i32, i32, i32) {
    %c0_i32 = arith.constant 0 : i32
    %c0_i32_0 = arith.constant 0 : i32
    %c0_i32_1 = arith.constant 0 : i32
    return %arg0, %c0_i32, %c0_i32_0 : i32, i32, i32
  }
  func.func @transform_1(%arg0: i32) -> (i32, i32) {
    %c0_i32 = arith.constant 0 : i32
    %c0_i32_0 = arith.constant 0 : i32
    %c0_i32_1 = arith.constant 0 : i32
    return %c0_i32, %c0_i32_0 : i32, i32
  }
  func.func @transform_2(%arg0: i32) -> (i32, i32) {
    %c0_i32 = arith.constant 0 : i32
    %c0_i32_0 = arith.constant 0 : i32
    %c0_i32_1 = arith.constant 0 : i32
    return %c0_i32, %c0_i32_0 : i32, i32
  }
  func.func @transform_3(%arg0: i32) -> (i32, i32) {
    %c0_i32 = arith.constant 0 : i32
    %c0_i32_0 = arith.constant 0 : i32
    %c0_i32_1 = arith.constant 0 : i32
    return %c0_i32, %c0_i32_0 : i32, i32
  }
  func.func @transform_4(%arg0: i32) -> (i32, i32, i32) {
    %c0_i32 = arith.constant 0 : i32
    %c0_i32_0 = arith.constant 0 : i32
    %c0_i32_1 = arith.constant 0 : i32
    %c0_i32_2 = arith.constant 0 : i32
    return %c0_i32, %c0_i32_0, %c0_i32_1 : i32, i32, i32
  }
  func.func @transform_5(%arg0: i32) -> (i32, i32) {
    %c0_i32 = arith.constant 0 : i32
    %c0_i32_0 = arith.constant 0 : i32
    %c0_i32_1 = arith.constant 0 : i32
    return %c0_i32, %c0_i32_0 : i32, i32
  }
  func.func @transform_6(%arg0: i32) -> (i32, i32) {
    %c0_i32 = arith.constant 0 : i32
    %c0_i32_0 = arith.constant 0 : i32
    %c0_i32_1 = arith.constant 0 : i32
    return %c0_i32, %c0_i32_0 : i32, i32
  }
  func.func @transform_7(%arg0: i32) -> (i32, i32, i32) {
    %c0_i32 = arith.constant 0 : i32
    %c0_i32_0 = arith.constant 0 : i32
    %c0_i32_1 = arith.constant 0 : i32
    %c0_i32_2 = arith.constant 0 : i32
    return %c0_i32, %c0_i32_0, %c0_i32_1 : i32, i32, i32
  }
  func.func @transform_8(%arg0: i32) -> (i32, i32) {
    %c0_i32 = arith.constant 0 : i32
    %c0_i32_0 = arith.constant 0 : i32
    %c0_i32_1 = arith.constant 0 : i32
    return %c0_i32, %c0_i32_0 : i32, i32
  }
  func.func @transform_9(%arg0: i32) -> (i32, i32) {
    %c0_i32 = arith.constant 0 : i32
    %c0_i32_0 = arith.constant 0 : i32
    %c0_i32_1 = arith.constant 0 : i32
    return %c0_i32, %c0_i32_0 : i32, i32
  }
  func.func @transform_10(%arg0: i32) -> (i32, i32, i32) {
    %c0_i32 = arith.constant 0 : i32
    %c0_i32_0 = arith.constant 0 : i32
    %c0_i32_1 = arith.constant 0 : i32
    %c0_i32_2 = arith.constant 0 : i32
    return %c0_i32, %c0_i32_0, %c0_i32_1 : i32, i32, i32
  }
  func.func @transform_11(%arg0: i32) -> (i32, i32) {
    %c0_i32 = arith.constant 0 : i32
    %c0_i32_0 = arith.constant 0 : i32
    %c0_i32_1 = arith.constant 0 : i32
    return %c0_i32, %c0_i32_0 : i32, i32
  }
  func.func @transform_12(%arg0: i32) -> (i32, i32) {
    %c0_i32 = arith.constant 0 : i32
    %c0_i32_0 = arith.constant 0 : i32
    %c0_i32_1 = arith.constant 0 : i32
    return %c0_i32, %c0_i32_0 : i32, i32
  }
  func.func @transform_13(%arg0: i32) -> (i32, i32) {
    %c0_i32 = arith.constant 0 : i32
    %c0_i32_0 = arith.constant 0 : i32
    %c0_i32_1 = arith.constant 0 : i32
    return %c0_i32, %c0_i32_0 : i32, i32
  }
  func.func @transform_14(%arg0: i32) -> (i32, i32) {
    %c0_i32 = arith.constant 0 : i32
    %c0_i32_0 = arith.constant 0 : i32
    %c0_i32_1 = arith.constant 0 : i32
    return %c0_i32, %c0_i32_0 : i32, i32
  }
  func.func @transform_15(%arg0: i32) -> (i32, i32) {
    %c0_i32 = arith.constant 0 : i32
    %c0_i32_0 = arith.constant 0 : i32
    %c0_i32_1 = arith.constant 0 : i32
    return %c0_i32, %c0_i32_0 : i32, i32
  }
  func.func @transform_16(%arg0: i32) -> (i32, i32, i32) {
    %c0_i32 = arith.constant 0 : i32
    %c0_i32_0 = arith.constant 0 : i32
    %c0_i32_1 = arith.constant 0 : i32
    return %arg0, %c0_i32, %c0_i32_0 : i32, i32, i32
  }
}

</mosaic_0001>

<bundles_post_ra>
// kernel: custom_cnn_forward.1
= control target key start
LH: loop header
LB: loop body
LE: loop exit
PB: predicated region body
PF: predicated region fallthrough
CT: control target
= control target key end

     0   :  { %s17184_s0 = inlined_call_operand.vmem [shape: bf16[2,256,27], index: 0, kind: input, shape index: {}]   ;;  %s17185_s1 = inlined_call_operand.hbm [shape: bf16[27,64], index: 1, kind: input, shape index: {}]   ;;  %s17186_s2 = inlined_call_operand.hbm [shape: f32[1,64], index: 2, kind: input, shape index: {}]   ;;  %s17187_s3 = inlined_call_operand.hbm [shape: bf16[102,239], index: 3, kind: input, shape index: {}]   ;;  %s17188_s4 = inlined_call_operand.hbm [shape: bf16[9,64,128], index: 4, kind: input, shape index: {}]   ;;  %s17189_s5 = inlined_call_operand.hbm [shape: f32[1,128], index: 5, kind: input, shape index: {}]   ;;  %s17190_s6 = inlined_call_operand.hbm [shape: bf16[38,69], index: 6, kind: input, shape index: {}]   ;;  %s17191_s7 = inlined_call_operand.hbm [shape: bf16[9,128,256], index: 7, kind: input, shape index: {}]   ;;  %s17192_s8 = inlined_call_operand.hbm [shape: f32[1,256], index: 8, kind: input, shape index: {}]   ;;  %s17193_s9 = inlined_call_operand.hbm [shape: bf16[18,17], index: 9, kind: input, shape index: {}]   ;;  %s17194_s10 = inlined_call_operand.hbm [shape: bf16[9,256,512], index: 10, kind: input, shape index: {}]   ;;  %s17195_s11 = inlined_call_operand.hbm [shape: f32[1,512], index: 11, kind: input, shape index: {}]   ;;  %s17196_s12 = inlined_call_operand.hbm [shape: bf16[512,512], index: 12, kind: input, shape index: {}]   ;;  %s17197_s13 = inlined_call_operand.hbm [shape: f32[1,512], index: 13, kind: input, shape index: {}]   ;;  %s17198_s14 = inlined_call_operand.hbm [shape: bf16[512,128], index: 14, kind: input, shape index: {}]   ;;  %s17199_s15 = inlined_call_operand.hbm [shape: f32[1,128], index: 15, kind: input, shape index: {}]   ;;  %s17200_s16 = inlined_call_operand.hbm [shape: f32[2,1,128], index: 16, kind: output, shape index: {}]  }
   0x1   :  { %17213 = sst [smem:[#allocation43_spill]] %s17184_s0 }
   0x2   :  { %17214 = sst [smem:[#allocation44_spill]] %s17185_s1 }
   0x3   :  { %17215 = sst [smem:[#allocation45_spill]] %s17186_s2 }
   0x4   :  { %17216 = sst [smem:[#allocation46_spill]] %s17188_s4 }
   0x5   :  { %17217 = sst [smem:[#allocation47_spill]] %s17190_s6 }
   0x6   :  { %17218 = sst [smem:[#allocation48_spill]] %s17192_s8 }
   0x7   :  { %17219 = sst [smem:[#allocation49_spill]] %s17194_s10 }
   0x8   :  { %21 = vsyncpa [#allocation3], 0 }
   0x9   :  { %22 = vsyncpa [#allocation6], 0 }
   0xa   :  { %23 = vsyncpa [#allocation9], 0 }
   0xb   :  { %24 = vsyncpa [#allocation12], 0 }
   0xc   :  { %25 = vsyncpa [#allocation15], 0 }
   0xd   :  { %26 = vsyncpa [#allocation18], 0 }
   0xe   :  { %27 = vsyncpa [#allocation21], 0 }
   0xf   :  { %28 = vsyncpa [#allocation24], 0 }
  0x10   :  { %29 = vsyncpa [#allocation4], 0 }
  0x11   :  { %31 = vsyncpa [#allocation4 + $0x1], 0  ;;  %s15964_s21 = smov 0   ;;  %s15966_s22 = smov 0  }
  0x12   :  { %s15968_s23 = smov 0   ;;  %s15970_s24 = smov 0  }
  0x13 LB: > { %17220 = sst [smem:[#allocation36_spill]] %s15842_s21  ;;  %s15985_s25 = sadd.s32 4294967295, %s15854_s24   ;;  %s15854_s24 = sphi %s15970_s24, %s17246_s24   ;;  %s15850_s23 = sphi %s15968_s23, %s17248_s23   ;;  %s15846_s22 = sphi %s15966_s22, %s17250_s22   ;;  %s15842_s21 = sphi %s15964_s21, %s17249_s21  }
  0x14   : > { %17221 = sst [smem:[#allocation37_spill]] %s15850_s23  ;;  %s10251_s26 = sadd.s32 4294967294, %s15854_s24  }
  0x15   : > { %17222 = sst [smem:[#allocation38_spill]] %s15854_s24  ;;  %s15989_s27 = sadd.s32 1, %s15854_s24  }
  0x16   : > { %17223 = sst [smem:[#allocation39_spill]] %s15989_s27  ;;  %s385_s28 = sadd.s32 1, %s15850_s23 }
  0x17   : > { %s382_s29 = ssub.s32 %s15854_s24, %s15989_s27  ;;  %p395_p0 = scmp.ne.s32.totalorder %s15850_s23, %s15846_s22 }
  0x18   : > { %p383_p1 = scmp.eq.s32.totalorder %s382_s29, 0  ;;  %p396_p2 = scmp.eq.s32.totalorder %s15985_s25, 1 }
  0x19   : > { %p401_p3 = scmp.ne.s32.totalorder %s15846_s22, %s15842_s21  ;;  %p402_p4 = scmp.eq.s32.totalorder %s10251_s26, 1 }
  0x1a   : > { %s16000_s30 = scalar_select %p383_p1, %s15850_s23, %s385_s28  }
  0x1b   : > { %p16002_p5 = por %p396_p2, %p395_p0  ;;  %p16006_p6 = por %p402_p4, %p401_p3 }
  0x1c   : > { %17224 = sst [smem:[#allocation40_spill]] %s16000_s30  ;;  %p10252_p7 = scmp.ge.s32.totalorder %s15854_s24, 1 }
  0x1d   : > { %s17225_s0 = scalar_select %p16002_p5, 1, 0 }
  0x1e   : > { %s17227_s17 = scalar_select %p16006_p6, 1, 0 }
  0x1f   : > { %17226 = sst [smem:[#allocation41_spill]] %s17225_s0  ;;  %p409_p8 = scmp.lt.s32.totalorder %s15854_s24, 3 }
  0x20   : > { %17228 = sst [smem:[#allocation42_spill]] %s17227_s17  ;;  %p15222_p9 = scmp.eq.s32.totalorder %s15985_s25, 0 }
  0x21   : > { %p16013_p10 = pnand %p10252_p7, %p409_p8  ;;  %s17230_s2 = sld [smem:[#allocation45_spill]] }
  0x22   : > { %s15856_s28 = smov [#allocation5]   ;;  %s17232_s4 = sld [smem:[#allocation46_spill]] }
  0x23   : > { %p15172_p11 = pneg %p16013_p10  ;;  %s437_s29 = sshll.u32 %s15856_s28, 4  ;;  %s438_s29 = int_to_ptr.vmem [resolvable:$true] %s437_s29 }
  0x24   : > { %s15857_s19 = smov [#allocation8]   ;;  %s17233_s6 = sld [smem:[#allocation47_spill]] }
  0x25   : > { %p16024_p12 = pnand %p15222_p9, %p15172_p11  ;;  %s462_s20 = sshll.u32 %s15857_s19, 4  ;;  %s463_s20 = int_to_ptr.vmem [resolvable:$true] %s462_s20 }
  0x26   : > { %s17209_s24 = smov 64   ;;  %s17211_s0 = smov 4  }
  0x27   : > { %s435_s26 = sshll.u32 %s17230_s2, 4  ;;  %s17234_s8 = sld [smem:[#allocation48_spill]]  ;;  %s436_s26 = int_to_ptr.hbm [resolvable:$true] %s435_s26 }
  0x28   : > { %s460_s17 = sshll.u32 %s17232_s4, 4  ;;  %s15861_s2 = smov [#allocation14]   ;;  %s461_s17 = int_to_ptr.hbm [resolvable:$true] %s460_s17 }
  0x29   : > { %15178 = dma.hbm_to_vmem [thread:$0]  (!%p16024_p12), %s436_s26, 16, %s438_s29, [#allocation6]  }
  0x2a   : > { %s486_s21 = sshll.u32 %s17233_s6, 4  ;;  %s15860_s29 = smov [#allocation11]   ;;  %s487_s21 = int_to_ptr.hbm [resolvable:$true] %s486_s21 }
  0x2b   : > { %15184 = dma.hbm_to_vmem [thread:$0]  (!%p16024_p12), %s461_s17, 4608, %s463_s20, [#allocation9], %s17209_s24, %s17209_s24, %s17211_s0  }
  0x2c   : > { %s488_s19 = sshll.u32 %s15860_s29, 4  ;;  %s517_s28 = sshll.u32 %s15861_s2, 4  ;;  %s489_s19 = int_to_ptr.vmem [resolvable:$true] %s488_s19  ;;  %s518_s28 = int_to_ptr.vmem [resolvable:$true] %s517_s28 }
  0x2d   : > { %s515_s26 = sshll.u32 %s17234_s8, 4  ;;  %s17235_s10 = sld [smem:[#allocation49_spill]]  ;;  %s516_s26 = int_to_ptr.hbm [resolvable:$true] %s515_s26 }
  0x2e   : > { %15190 = dma.hbm_to_vmem [thread:$0]  (!%p16024_p12), %s487_s21, 320, %s489_s19, [#allocation12], %s17209_s24, %s17209_s24, %s17211_s0  }
  0x2f   : > { %15196 = dma.hbm_to_vmem [thread:$0]  (!%p16024_p12), %s516_s26, 32, %s518_s28, [#allocation15]  }
  0x30   : > { %s15862_s20 = smov [#allocation17]   ;;  %s566_s8 = sshll.u32 %s17196_s12, 4  ;;  %s567_s8 = int_to_ptr.hbm [resolvable:$true] %s566_s8 }
  0x31   : > { %s542_s23 = sshll.u32 %s15862_s20, 4  ;;  %s15863_s21 = smov 256   ;;  %s543_s23 = int_to_ptr.vmem [resolvable:$true] %s542_s23 }
  0x32   : > { %s15864_s19 = smov 16   ;;  %s15865_s4 = smov [#allocation20]  }
  0x33   : > { %s540_s17 = sshll.u32 %s17235_s10, 4  ;;  %s568_s6 = sshll.u32 %s15865_s4, 4  ;;  %s541_s17 = int_to_ptr.hbm [resolvable:$true] %s540_s17  ;;  %s569_s6 = int_to_ptr.vmem [resolvable:$true] %s568_s6 }
  0x34   : > { %15202 = dma.hbm_to_vmem [thread:$0]  (!%p16024_p12), %s541_s17, 73728, %s543_s23, [#allocation18], %s15863_s21, %s15863_s21, %s15864_s19  }
  0x35   : > { %s592_s26 = sshll.u32 %s17198_s14, 4  ;;  %s17236_s1 = sld [smem:[#allocation44_spill]]  ;;  %s593_s26 = int_to_ptr.hbm [resolvable:$true] %s592_s26 }
  0x36   : > { %15208 = dma.hbm_to_vmem [thread:$0]  (!%p16024_p12), %s567_s8, 16384, %s569_s6, [#allocation21], %s15863_s21, %s15863_s21, %s15864_s19  }
  0x37   : > { %s15866_s29 = smov [#allocation23]   ;;  %s17237_s17 = smov 4  }
  0x38   : > { %s594_s0 = sshll.u32 %s15866_s29, 4  ;;  %s17238_s23 = smov 64   ;;  %s595_s0 = int_to_ptr.vmem [resolvable:$true] %s594_s0 }
  0x39   : > { %15214 = dma.hbm_to_vmem [thread:$0]  (!%p16024_p12), %s593_s26, 4096, %s595_s0, [#allocation24], %s17238_s23, %s17238_s23, %s17237_s17  }
  0x3a   : > { %s15867_s24 = smov [#allocation2]   ;;  %s446_s8 = sshll.u32 %s17187_s3, 4  ;;  %s447_s8 = int_to_ptr.hbm [resolvable:$true] %s446_s8 }
  0x3b   : > { %s420_s27 = sshll.u32 %s17236_s1, 4  ;;  %s422_s4 = sshll.u32 %s15867_s24, 4  ;;  %s421_s27 = int_to_ptr.hbm [resolvable:$true] %s420_s27  ;;  %s423_s4 = int_to_ptr.vmem [resolvable:$true] %s422_s4 }
  0x3c   : > { %15175 = dma.hbm_to_vmem [thread:$0]  (!%p16024_p12), %s421_s27, 256, %s423_s4, [#allocation3], %s17238_s23, %s17238_s23, %s17237_s17  }
  0x3d   : > { %s15868_s21 = smov [#allocation7]   ;;  %s475_s0 = sshll.u32 %s17189_s5, 4  ;;  %s476_s0 = int_to_ptr.hbm [resolvable:$true] %s475_s0 }
  0x3e   : > { %s448_s19 = sshll.u32 %s15868_s21, 4  ;;  %s15869_s26 = smov 128   ;;  %s449_s19 = int_to_ptr.vmem [resolvable:$true] %s448_s19 }
  0x3f   : > { %s15870_s20 = smov 8   ;;  %s15871_s10 = smov [#allocation10]  }
  0x40   : > { %15181 = dma.hbm_to_vmem [thread:$0]  (!%p16024_p12), %s447_s8, 1664, %s449_s19, [#allocation6], %s15869_s26, %s15869_s26, %s15870_s20  }
  0x41   : > { %s477_s29 = sshll.u32 %s15871_s10, 4  ;;  %s500_s27 = sshll.u32 %s17191_s7, 4  ;;  %s478_s29 = int_to_ptr.vmem [resolvable:$true] %s477_s29  ;;  %s501_s27 = int_to_ptr.hbm [resolvable:$true] %s500_s27 }
  0x42   : > { %15187 = dma.hbm_to_vmem [thread:$0]  (!%p16024_p12), %s476_s0, 16, %s478_s29, [#allocation9]  }
  0x43   : > { %s526_s6 = sshll.u32 %s17193_s9, 4  ;;  %s15872_s28 = smov [#allocation13]   ;;  %s527_s6 = int_to_ptr.hbm [resolvable:$true] %s526_s6 }
  0x44   : > { %s502_s1 = sshll.u32 %s15872_s28, 4  ;;  %s15873_s8 = smov [#allocation16]   ;;  %s503_s1 = int_to_ptr.vmem [resolvable:$true] %s502_s1 }
  0x45   : > { %15193 = dma.hbm_to_vmem [thread:$0]  (!%p16024_p12), %s501_s27, 18432, %s503_s1, [#allocation12], %s15869_s26, %s15869_s26, %s15870_s20  }
  0x46   : > { %s528_s19 = sshll.u32 %s15873_s8, 4  ;;  %s555_s2 = sshll.u32 %s17195_s11, 4  ;;  %s529_s19 = int_to_ptr.vmem [resolvable:$true] %s528_s19  ;;  %s556_s2 = int_to_ptr.hbm [resolvable:$true] %s555_s2 }
  0x47   : > { %15199 = dma.hbm_to_vmem [thread:$0]  (!%p16024_p12), %s527_s6, 192, %s529_s19, [#allocation15], %s17238_s23, %s17238_s23, %s17237_s17  }
  0x48   : > { %s581_s4 = sshll.u32 %s17197_s13, 4  ;;  %s15874_s1 = smov [#allocation19]   ;;  %s582_s4 = int_to_ptr.hbm [resolvable:$true] %s581_s4 }
  0x49   : > { %s557_s26 = sshll.u32 %s15874_s1, 4  ;;  %s15875_s20 = smov [#allocation22]   ;;  %s558_s26 = int_to_ptr.vmem [resolvable:$true] %s557_s26 }
  0x4a   : > { %15205 = dma.hbm_to_vmem [thread:$0]  (!%p16024_p12), %s556_s2, 64, %s558_s26, [#allocation18]  }
  0x4b   : > { %s583_s27 = sshll.u32 %s15875_s20, 4  ;;  %s607_s8 = sshll.u32 %s17199_s15, 4  ;;  %s584_s27 = int_to_ptr.vmem [resolvable:$true] %s583_s27  ;;  %s608_s8 = int_to_ptr.hbm [resolvable:$true] %s607_s8 }
  0x4c   : > { %15211 = dma.hbm_to_vmem [thread:$0]  (!%p16024_p12), %s582_s4, 64, %s584_s27, [#allocation21]  }
  0x4d   : > { %s15876_s17 = smov [#allocation25]   ;;  %630 = sbr.rel (%p16013_p10) target bundleno = 2826 (0xb0a), region = 84 }
  0x4e   : > { %s609_s23 = sshll.u32 %s15876_s17, 4  ;;  %s610_s23 = int_to_ptr.vmem [resolvable:$true] %s609_s23 }
  0x4f   : > { %15217 = dma.hbm_to_vmem [thread:$0]  (!%p16024_p12), %s608_s8, 16, %s610_s23, [#allocation24]  }
  0x52   : > { %15805 = dma.done.wait (%p15222_p9), [#allocation3], 256  }
  0x53   : > { %15807 = vsyncadd (%p15222_p9), [#allocation3], 4294967040 }
  0x54   : > { %15809 = dma.done.wait (%p15222_p9), [#allocation6], 1680  }
  0x55   : > { %15811 = vsyncadd (%p15222_p9), [#allocation6], 4294965616 }
  0x56   : > { %15813 = dma.done.wait (%p15222_p9), [#allocation9], 4624  }
  0x57   : > { %15815 = vsyncadd (%p15222_p9), [#allocation9], 4294962672 }
  0x58   : > { %15817 = dma.done.wait (%p15222_p9), [#allocation12], 18752  }
  0x59   : > { %15819 = vsyncadd (%p15222_p9), [#allocation12], 4294948544 }
  0x5a   : > { %15821 = dma.done.wait (%p15222_p9), [#allocation15], 224  }
  0x5b   : > { %15823 = vsyncadd (%p15222_p9), [#allocation15], 4294967072 }
  0x5c   : > { %15825 = dma.done.wait (%p15222_p9), [#allocation18], 73792  }
  0x5d   : > { %15827 = vsyncadd (%p15222_p9), [#allocation18], 4294893504 }
  0x5e   : > { %15829 = dma.done.wait (%p15222_p9), [#allocation21], 16448  }
  0x5f   : > { %15831 = vsyncadd (%p15222_p9), [#allocation21], 4294950848 }
  0x60   : > { %15833 = dma.done.wait (%p15222_p9), [#allocation24], 4112  }
  0x61   : > { %15835 = vsyncadd (%p15222_p9), [#allocation24], 4294963184  ;;  %vm936_vm0 = vcmask 1044480   ;;  %p750_p13 = scmp.lt.s32.totalorder %s15985_s25, 1  ;;  %vm937_vm1 = vcmask 1045504   ;;  %v15877_v0 = vmov 65535   ;;  %s10047_s4 = scalar_lea.hbm %s17200_s16, %s15985_s25 }
  0x62   : > { %v938_v1 = vsel %vm936_vm0, 4294967295, %v15877_v0  ;;  %v10357_v2 = vld [vmem:[#allocation2 + $0x8] sm:$0xf]  ;;  %v14178_v3 = vld [vmem:[#allocation2 + $0x8] sm:$0x30]  ;;  %v14177_v7 = vld [vmem:[#allocation2] sm:$0xff] }
  0x63   : > { %s751_s30 = scalar_select %p750_p13, %s15985_s25, 1  ;;  %v939_v4 = vsel %vm937_vm1, %v938_v1, 0  ;;  %v10358_v5 = vor.u32 %v14178_v3, %v10357_v2  ;;  %vm887_vm2 = vcmask 220160   ;;  %v16176_v18 = vld [vmem:[#allocation5] ss:$0 sm:$0xff]  ;;  %vm1094_vm3 = vcmask 1046528  }
  0x64   : > { %s17239_s10 = sld [smem:[#allocation43_spill]]  ;;  %vm1366_vm4 = vcmask 1047552   ;;  %vm1344_vm5 = vcmask 908288   ;;  %vm1585_vm6 = vcmask 523264   ;;  %vm1516_vm7 = vsmask.f32 7424 }
  0x65   : > { %s14160_s18 = sshll.u32 %s751_s30, 7  ;;  %v941_v6 = vand.u32 %v10358_v5, %v939_v4  ;;  %vm1927_vm8 = vsmask.f32 6400  ;;  %vm2284_vm9 = vsmask.f32 5376  ;;  %vm2657_vm10 = vcmask 1041408  }
  0x66   : > { %vm2658_vm11 = vcmask 1042432   ;;  %vm2647_vm12 = vcmask 564224   ;;  %vm3292_vm13 = vsmask.f32 4352  ;;  %vm4112_vm14 = vcmask 1040384   ;;  %s748_s2 = sand.u32 1, %s15846_s22  }
  0x67   : > { %949 = vmatpush.bf16.msra.mxu0 %v941_v6  ;;  %vm4105_vm15 = vcmask 138240   ;;  %s749_s26 = scalar_lea.vmem [#allocation26], %s748_s2  ;;  %s10051_s27 = sshll.u32 %s10047_s4, 4  ;;  %s10052_s27 = int_to_ptr.hbm [resolvable:$true] %s10051_s27 }
  0x68   : > { %s10049_s20 = sshll.u32 %s749_s26, 4  ;;  %s10039_s21 = scalar_lea.sflag [#allocation4], %s748_s2  ;;  %s10050_s20 = int_to_ptr.vmem [resolvable:$true] %s10049_s20 }
  0x69   : > { %s15774_s28 = sshra.s32 %s10052_s27, 4  ;;  %s15780_s23 = scalar_lea.hbm %s17200_s16, 2  ;;  %s15775_s28 = int_to_ptr.hbm [resolvable:$true] %s15774_s28 }
  0x6a   : > { %s16157_s24 = scalar_lea.vmem %s17239_s10, %s14160_s18  ;;  %s15776_s8 = scalar_lea.hbm %s15775_s28, 1 }
  0x6b   : > { %v14161_v8 = vld [vmem:[%s16157_s24] sm:$0xff]  ;;  %950 = vmatpush.bf16.msra.mxu0 %v14177_v7  ;;  %v14162_v9 = vld [vmem:[%s16157_s24 + $0x8] sm:$0xff]  ;;  %v14163_v10 = vld [vmem:[%s16157_s24 + $0x10] sm:$0xff]  ;;  %p15777_p0 = scmp.ne.s32.totalorder %s15775_s28, %s15776_s8  ;;  %p15781_p3 = scmp.lt.s32.totalorder %s15775_s28, %s17200_s16 }
  0x6c   : > { %v14164_v11 = vld [vmem:[%s16157_s24 + $0x18] sm:$0xff]  ;;  %v14165_v12 = vld [vmem:[%s16157_s24 + $0x20] sm:$0xff]  ;;  %v14166_v13 = vld [vmem:[%s16157_s24 + $0x28] sm:$0xff]  ;;  %p15782_p4 = scmp.lt.s32.totalorder %s15780_s23, %s15776_s8 }
  0x6d   : > { %v14167_v14 = vld [vmem:[%s16157_s24 + $0x30] sm:$0xff]  ;;  %v14168_v15 = vld [vmem:[%s16157_s24 + $0x38] sm:$0xff]  ;;  %v14169_v16 = vld [vmem:[%s16157_s24 + $0x40] sm:$0xff]  ;;  %p15778_p1 = pnand %p15777_p0, %p16002_p5 }
  0x6e   : > { %10359 = vmatmul.msk.bf16.vlgmr.msra.gmra.mxu0 %vm887_vm2, %v14161_v8  ;;  %v14170_v26 = vld [vmem:[%s16157_s24 + $0x48] sm:$0xff]  ;;  %v14171_v39 = vld [vmem:[%s16157_s24 + $0x50] sm:$0xff]  ;;  %v14172_v55 = vld [vmem:[%s16157_s24 + $0x58] sm:$0xff]  ;;  %p15783_p7 = por %p15782_p4, %p15781_p3 }
  0x6f   : > { %v14173_v8 = vld [vmem:[%s16157_s24 + $0x60] sm:$0xff]  ;;  %p15779_p2 = pneg %p15778_p1 }
  0x71   : > { %p15784_p8 = pnand %p15783_p7, %p15779_p2 }
  0x7e   : > { %10360 = vmatmul.msk.bf16.gmra.mxu0 %vm887_vm2, %v14162_v9 }
  0x8e   : > { %10361 = vmatmul.msk.bf16.gmra.mxu0 %vm887_vm2, %v14163_v10 }
  0x9e   : > { %10362 = vmatmul.msk.bf16.gmra.mxu0 %vm887_vm2, %v14164_v11 }
  0xae   : > { %10363 = vmatmul.msk.bf16.gmra.mxu0 %vm887_vm2, %v14165_v12 }
  0xbe   : > { %10364 = vmatmul.msk.bf16.gmra.mxu0 %vm887_vm2, %v14166_v13 }
  0xce   : > { %10365 = vmatmul.msk.bf16.gmra.mxu0 %vm887_vm2, %v14167_v14 }
  0xde   : > { %10366 = vmatmul.msk.bf16.gmra.mxu0 %vm887_vm2, %v14168_v15 }
  0xeb   : > { %v952_v17 = vpop.f32.mrf.mxu0 }
  0xec   : > { %v953_v19 = vadd.f32 %v16176_v18, %v952_v17 }
  0xee   : > { %10367 = vmatmul.msk.bf16.gmra.mxu0 %vm887_vm2, %v14169_v16  ;;  %v1032_v21 = vmax.f32 %v953_v19, 0.0 }
  0xf0   : > { %v1095_v24 = vrot.slane %v1032_v21, 1 }
  0xf3   : > { %v954_v20 = vpop.f32.mrf.mxu0 }
  0xf4   : > { %v955_v22 = vadd.f32 %v16176_v18, %v954_v20 }
  0xf6   : > { %v1033_v23 = vmax.f32 %v955_v22, 0.0 }
  0xf8   : > { %v1096_v25 = vrot.slane %v1033_v23, 1 }
  0xfa   : > { %v1097_v27 = vsel %vm1094_vm3, %v1095_v24, %v1096_v25 }
  0xfb   : > { %v957_v28 = vpop.f32.mrf.mxu0  ;;  %v1184_v29 = vmax.f32 %v1032_v21, %v1097_v27 }
  0xfc   : > { %v958_v30 = vadd.f32 %v16176_v18, %v957_v28 }
  0xfe   : > { %v1034_v31 = vmax.f32 %v958_v30, 0.0  ;;  %10368 = vmatmul.msk.bf16.gmra.mxu0 %vm887_vm2, %v14170_v26 }
 0x100   : > { %v1098_v32 = vrot.slane %v1034_v31, 1 }
 0x102   : > { %v1099_v33 = vsel %vm1094_vm3, %v1096_v25, %v1098_v32  ;;  %v14174_v25 = vld [vmem:[%s16157_s24 + $0x68] sm:$0xff] }
 0x103   : > { %v959_v34 = vpop.f32.mrf.mxu0  ;;  %v1185_v35 = vmax.f32 %v1033_v23, %v1099_v33 }
 0x104   : > { %v960_v36 = vadd.f32 %v16176_v18, %v959_v34 }
 0x106   : > { %v1035_v37 = vmax.f32 %v960_v36, 0.0 }
 0x108   : > { %v1100_v38 = vrot.slane %v1035_v37, 1 }
 0x10a   : > { %v1101_v40 = vsel %vm1094_vm3, %v1098_v32, %v1100_v38 }
 0x10b   : > { %v962_v41 = vpop.f32.mrf.mxu0  ;;  %v1186_v42 = vmax.f32 %v1034_v31, %v1101_v40 }
 0x10c   : > { %v963_v43 = vadd.f32 %v16176_v18, %v962_v41  ;;  %v14175_v41 = vld [vmem:[%s16157_s24 + $0x70] sm:$0xff] }
 0x10d   : > { %v1226_v44 = vmax.f32 %v1184_v29, %v1186_v42 }
 0x10e   : > { %v1036_v45 = vmax.f32 %v963_v43, 0.0  ;;  %10369 = vmatmul.msk.bf16.gmra.mxu0 %vm887_vm2, %v14171_v39 }
 0x110   : > { %v1102_v46 = vrot.slane %v1036_v45, 1 }
 0x112   : > { %v1103_v47 = vsel %vm1094_vm3, %v1100_v38, %v1102_v46 }
 0x113   : > { %v964_v48 = vpop.f32.mrf.mxu0  ;;  %v1187_v49 = vmax.f32 %v1035_v37, %v1103_v47 }
 0x114   : > { %v965_v50 = vadd.f32 %v16176_v18, %v964_v48 }
 0x115   : > { %v1227_v51 = vmax.f32 %v1185_v35, %v1187_v49 }
 0x116   : > { %v1037_v52 = vmax.f32 %v965_v50, 0.0 }
 0x117   : > { %v16193_v53 = vpack.c.bf16 %v1227_v51, %v1226_v44 }
 0x118   : > { %v1104_v54 = vrot.slane %v1037_v52, 1 }
 0x11a   : > { %v1105_v56 = vsel %vm1094_vm3, %v1102_v46, %v1104_v54 }
 0x11b   : > { %v967_v57 = vpop.f32.mrf.mxu0  ;;  %v1188_v58 = vmax.f32 %v1036_v45, %v1105_v56 }
 0x11c   : > { %v968_v59 = vadd.f32 %v16176_v18, %v967_v57 }
 0x11d   : > { %v1228_v60 = vmax.f32 %v1186_v42, %v1188_v58 }
 0x11e   : > { %v1038_v61 = vmax.f32 %v968_v59, 0.0  ;;  %10370 = vmatmul.msk.bf16.gmra.mxu0 %vm887_vm2, %v14172_v55  ;;  %v14176_v55 = vld [vmem:[%s16157_s24 + $0x78] sm:$0xff] }
 0x120   : > { %v1106_v62 = vrot.slane %v1038_v61, 1 }
 0x122   : > { %v1107_v63 = vsel %vm1094_vm3, %v1104_v54, %v1106_v62 }
 0x123   : > { %v969_v1 = vpop.f32.mrf.mxu0  ;;  %v1189_v2 = vmax.f32 %v1037_v52, %v1107_v63 }
 0x124   : > { %v970_v3 = vadd.f32 %v16176_v18, %v969_v1 }
 0x125   : > { %v1229_v4 = vmax.f32 %v1187_v49, %v1189_v2 }
 0x126   : > { %v1039_v5 = vmax.f32 %v970_v3, 0.0 }
 0x127   : > { %v16201_v6 = vpack.c.bf16 %v1229_v4, %v1228_v60 }
 0x128   : > { %v1108_v7 = vrot.slane %v1039_v5, 1 }
 0x12a   : > { %v1109_v9 = vsel %vm1094_vm3, %v1106_v62, %v1108_v7 }
 0x12b   : > { %v972_v10 = vpop.f32.mrf.mxu0  ;;  %v1190_v11 = vmax.f32 %v1038_v61, %v1109_v9 }
 0x12c   : > { %v973_v12 = vadd.f32 %v16176_v18, %v972_v10 }
 0x12d   : > { %v1230_v13 = vmax.f32 %v1188_v58, %v1190_v11 }
 0x12e   : > { %v1040_v14 = vmax.f32 %v973_v12, 0.0  ;;  %10371 = vmatmul.msk.bf16.gmra.mxu0 %vm887_vm2, %v14173_v8 }
 0x130   : > { %v1110_v15 = vrot.slane %v1040_v14, 1 }
 0x132   : > { %v1111_v16 = vsel %vm1094_vm3, %v1108_v7, %v1110_v15 }
 0x133   : > { %v974_v17 = vpop.f32.mrf.mxu0  ;;  %v1191_v19 = vmax.f32 %v1039_v5, %v1111_v16 }
 0x134   : > { %v975_v20 = vadd.f32 %v16176_v18, %v974_v17 }
 0x135   : > { %v1231_v21 = vmax.f32 %v1189_v2, %v1191_v19 }
 0x136   : > { %v1041_v22 = vmax.f32 %v975_v20, 0.0 }
 0x137   : > { %v16209_v23 = vpack.c.bf16 %v1231_v21, %v1230_v13 }
 0x138   : > { %v1112_v24 = vrot.slane %v1041_v22, 1 }
 0x13a   : > { %v1113_v26 = vsel %vm1094_vm3, %v1110_v15, %v1112_v24 }
 0x13b   : > { %v977_v27 = vpop.f32.mrf.mxu0  ;;  %v1192_v28 = vmax.f32 %v1040_v14, %v1113_v26 }
 0x13c   : > { %v978_v29 = vadd.f32 %v16176_v18, %v977_v27 }
 0x13d   : > { %v1232_v30 = vmax.f32 %v1190_v11, %v1192_v28 }
 0x13e   : > { %v1042_v31 = vmax.f32 %v978_v29, 0.0  ;;  %10372 = vmatmul.msk.bf16.gmra.mxu0 %vm887_vm2, %v14174_v25 }
 0x140   : > { %v1114_v32 = vrot.slane %v1042_v31, 1 }
 0x142   : > { %v1115_v33 = vsel %vm1094_vm3, %v1112_v24, %v1114_v32 }
 0x143   : > { %v979_v34 = vpop.f32.mrf.mxu0  ;;  %v1193_v35 = vmax.f32 %v1041_v22, %v1115_v33 }
 0x144   : > { %v980_v36 = vadd.f32 %v16176_v18, %v979_v34 }
 0x145   : > { %v1233_v37 = vmax.f32 %v1191_v19, %v1193_v35 }
 0x146   : > { %v1043_v38 = vmax.f32 %v980_v36, 0.0 }
 0x147   : > { %v16217_v39 = vpack.c.bf16 %v1233_v37, %v1232_v30 }
 0x148   : > { %v1116_v40 = vrot.slane %v1043_v38, 1 }
 0x14a   : > { %v1117_v42 = vsel %vm1094_vm3, %v1114_v32, %v1116_v40 }
 0x14b   : > { %v982_v43 = vpop.f32.mrf.mxu0  ;;  %v16221_v44 = vmax.f32 %v1042_v31, %v1117_v42 }
 0x14c   : > { %v983_v45 = vadd.f32 %v16176_v18, %v982_v43 }
 0x14d   : > { %v1234_v46 = vmax.f32 %v1192_v28, %v16221_v44 }
 0x14e   : > { %v1044_v47 = vmax.f32 %v983_v45, 0.0  ;;  %10373 = vmatmul.msk.bf16.gmra.mxu0 %vm887_vm2, %v14175_v41 }
 0x150   : > { %v1118_v48 = vrot.slane %v1044_v47, 1 }
 0x152   : > { %v1119_v49 = vsel %vm1094_vm3, %v1116_v40, %v1118_v48 }
 0x153   : > { %v984_v50 = vpop.f32.mrf.mxu0  ;;  %v1195_v51 = vmax.f32 %v1043_v38, %v1119_v49 }
 0x154   : > { %v985_v2 = vadd.f32 %v16176_v18, %v984_v50 }
 0x155   : > { %v1235_v52 = vmax.f32 %v1193_v35, %v1195_v51 }
 0x156   : > { %v1045_v9 = vmax.f32 %v985_v2, 0.0 }
 0x157   : > { %v16227_v54 = vpack.c.bf16 %v1235_v52, %v1234_v46 }
 0x158   : > { %v1120_v16 = vrot.slane %v1045_v9, 1 }
 0x15a   : > { %v1121_v30 = vsel %vm1094_vm3, %v1118_v48, %v1120_v16 }
 0x15b   : > { %v987_v56 = vpop.f32.mrf.mxu0  ;;  %v1196_v36 = vmax.f32 %v1044_v47, %v1121_v30 }
 0x15c   : > { %v988_v63 = vadd.f32 %v16176_v18, %v987_v56 }
 0x15d   : > { %v1236_v48 = vmax.f32 %v16221_v44, %v1196_v36 }
 0x15e   : > { %10374 = vmatmul.msk.bf16.gmra.mxu0 %vm887_vm2, %v14176_v55  ;;  %v1046_v5 = vmax.f32 %v988_v63, 0.0 }
 0x160   : > { %v1122_v13 = vrot.slane %v1046_v5, 1 }
 0x162   : > { %v1123_v24 = vsel %vm1094_vm3, %v1120_v16, %v1122_v13 }
 0x163   : > { %v989_v57 = vpop.f32.mrf.mxu0  ;;  %v1197_v33 = vmax.f32 %v1045_v9, %v1123_v24 }
 0x164   : > { %v990_v60 = vadd.f32 %v16176_v18, %v989_v57 }
 0x165   : > { %v1237_v45 = vmax.f32 %v1195_v51, %v1197_v33 }
 0x166   : > { %v1047_v3 = vmax.f32 %v990_v60, 0.0 }
 0x167   : > { %v1274_v55 = vpack.c.bf16 %v1237_v45, %v1236_v48 }
 0x168   : > { %v1124_v10 = vrot.slane %v1047_v3, 1 }
 0x16a   : > { %v1125_v19 = vsel %vm1094_vm3, %v1122_v13, %v1124_v10 }
 0x16b   : > { %v992_v58 = vpop.f32.mrf.mxu0  ;;  %v1198_v26 = vmax.f32 %v1046_v5, %v1125_v19 }
 0x16c   : > { %v993_v61 = vadd.f32 %v16176_v18, %v992_v58 }
 0x16d   : > { %v1238_v40 = vmax.f32 %v1196_v36, %v1198_v26 }
 0x16e   : > { %v1048_v4 = vmax.f32 %v993_v61, 0.0 }
 0x170   : > { %v1126_v11 = vrot.slane %v1048_v4, 1 }
 0x172   : > { %v1127_v20 = vsel %vm1094_vm3, %v1124_v10, %v1126_v11 }
 0x173   : > { %v994_v59 = vpop.f32.mrf.mxu0  ;;  %v1199_v27 = vmax.f32 %v1047_v3, %v1127_v20 }
 0x174   : > { %v995_v62 = vadd.f32 %v16176_v18, %v994_v59 }
 0x175   : > { %v1239_v37 = vmax.f32 %v1197_v33, %v1199_v27 }
 0x176   : > { %v1049_v1 = vmax.f32 %v995_v62, 0.0 }
 0x177   : > { %v1275_v43 = vpack.c.bf16 %v1239_v37, %v1238_v40 }
 0x178   : > { %v1128_v7 = vrot.slane %v1049_v1, 1 }
 0x17a   : > { %v1129_v15 = vsel %vm1094_vm3, %v1126_v11, %v1128_v7 }
 0x17b   : > { %v997_v8 = vpop.f32.mrf.mxu0  ;;  %v1200_v21 = vmax.f32 %v1048_v4, %v1129_v15 }
 0x17c   : > { %v998_v12 = vadd.f32 %v16176_v18, %v997_v8 }
 0x17d   : > { %v1240_v31 = vmax.f32 %v1198_v26, %v1200_v21 }
 0x17e   : > { %v1050_v14 = vmax.f32 %v998_v12, 0.0 }
 0x180   : > { %v1130_v17 = vrot.slane %v1050_v14, 1 }
 0x182   : > { %v1131_v22 = vsel %vm1094_vm3, %v1128_v7, %v1130_v17 }
 0x183   : > { %v999_v25 = vpop.f32.mrf.mxu0  ;;  %v1201_v28 = vmax.f32 %v1049_v1, %v1131_v22 }
 0x184   : > { %v1000_v29 = vadd.f32 %v16176_v18, %v999_v25 }
 0x185   : > { %v1241_v32 = vmax.f32 %v1199_v27, %v1201_v28 }
 0x186   : > { %v1051_v34 = vmax.f32 %v1000_v29, 0.0 }
 0x187   : > { %v1276_v35 = vpack.c.bf16 %v1241_v32, %v1240_v31 }
 0x188   : > { %v1132_v38 = vrot.slane %v1051_v34, 1 }
 0x189   : > { %1372 = vmatpush.bf16.msra.mxu1 %v1276_v35 }
 0x18a   : > { %v1133_v41 = vsel %vm1094_vm3, %v1130_v17, %v1132_v38 }
 0x18b   : > { %v1002_v42 = vpop.f32.mrf.mxu0  ;;  %v1202_v46 = vmax.f32 %v1050_v14, %v1133_v41 }
 0x18c   : > { %v1003_v49 = vadd.f32 %v16176_v18, %v1002_v42 }
 0x18d   : > { %1373 = vmatpush.bf16.msra.mxu1 %v1275_v43  ;;  %v1242_v50 = vmax.f32 %v1200_v21, %v1202_v46 }
 0x18e   : > { %v1052_v52 = vmax.f32 %v1003_v49, 0.0 }
 0x190   : > { %v1134_v56 = vrot.slane %v1052_v52, 1 }
 0x191   : > { %1374 = vmatpush.bf16.msra.mxu1 %v1274_v55 }
 0x192   : > { %v1135_v47 = vsel %vm1094_vm3, %v1132_v38, %v1134_v56 }
 0x193   : > { %v1004_v57 = vpop.f32.mrf.mxu0  ;;  %v1203_v58 = vmax.f32 %v1051_v34, %v1135_v47 }
 0x194   : > { %v1005_v59 = vadd.f32 %v16176_v18, %v1004_v57 }
 0x195   : > { %1375 = vmatpush.bf16.msra.mxu1 %v16227_v54  ;;  %v1243_v51 = vmax.f32 %v1201_v28, %v1203_v58 }
 0x196   : > { %v1053_v60 = vmax.f32 %v1005_v59, 0.0 }
 0x197   : > { %v16250_v61 = vpack.c.bf16 %v1243_v51, %v1242_v50 }
 0x198   : > { %v1136_v62 = vrot.slane %v1053_v60, 1 }
 0x199   : > { %1376 = vmatpush.bf16.msra.mxu1 %v16217_v39 }
 0x19a   : > { %v1137_v44 = vsel %vm1094_vm3, %v1134_v56, %v1136_v62 }
 0x19b   : > { %v1007_v63 = vpop.f32.mrf.mxu0  ;;  %v1204_v1 = vmax.f32 %v1052_v52, %v1137_v44 }
 0x19c   : > { %v1008_v2 = vadd.f32 %v16176_v18, %v1007_v63 }
 0x19d   : > { %1377 = vmatpush.bf16.msra.mxu1 %v16209_v23  ;;  %v1244_v3 = vmax.f32 %v1202_v46, %v1204_v1 }
 0x19e   : > { %v1054_v4 = vmax.f32 %v1008_v2, 0.0  ;;  %v14180_v2 = vld [vmem:[#allocation7 + $0x4] sm:$0xf0] }
 0x1a0   : > { %v1138_v5 = vrot.slane %v1054_v4, 1 }
 0x1a1   : > { %1378 = vmatpush.bf16.msra.mxu1 %v16201_v6 }
 0x1a2   : > { %v1139_v54 = vsel %vm1094_vm3, %v1136_v62, %v1138_v5 }
 0x1a3   : > { %v1009_v7 = vpop.f32.mrf.mxu0  ;;  %v1205_v8 = vmax.f32 %v1053_v60, %v1139_v54 }
 0x1a4   : > { %v1010_v9 = vadd.f32 %v16176_v18, %v1009_v7 }
 0x1a5   : > { %1379 = vmatpush.bf16.msra.mxu1 %v16193_v53  ;;  %v1245_v39 = vmax.f32 %v1203_v58, %v1205_v8 }
 0x1a6   : > { %v1055_v10 = vmax.f32 %v1010_v9, 0.0 }
 0x1a7   : > { %v16260_v11 = vpack.c.bf16 %v1245_v39, %v1244_v3 }
 0x1a8   : > { %v1140_v12 = vrot.slane %v1055_v10, 1 }
 0x1aa   : > { %v1141_v23 = vsel %vm1094_vm3, %v1138_v5, %v1140_v12 }
 0x1ab   : > { %v1012_v13 = vpop.f32.mrf.mxu0  ;;  %v1206_v14 = vmax.f32 %v1054_v4, %v1141_v23 }
 0x1ac   : > { %v1013_v15 = vadd.f32 %v16176_v18, %v1012_v13 }
 0x1ad   : > { %v1246_v6 = vmax.f32 %v1204_v1, %v1206_v14  ;;  %v10377_v1 = vld [vmem:[#allocation7] sm:$0xf] }
 0x1ae   : > { %v1056_v16 = vmax.f32 %v1013_v15, 0.0  ;;  %v10378_v54 = vor.u32 %v14180_v2, %v10377_v1 }
 0x1b0   : > { %v1142_v17 = vrot.slane %v1056_v16, 1  ;;  %1380 = vmatmul.bf16.vlgmr.msra.gmra.mxu1 %v10378_v54  ;;  %v14198_v54 = vld [vmem:[#allocation8 + $0x38] sm:$0xff] }
 0x1b1   : > { %1605 = vmatpush.bf16.msra.mxu3 %v14198_v54 }
 0x1b2   : > { %v1143_v19 = vsel %vm1094_vm3, %v1140_v12, %v1142_v17 }
 0x1b3   : > { %v1014_v20 = vpop.f32.mrf.mxu0  ;;  %v1207_v21 = vmax.f32 %v1055_v10, %v1143_v19 }
 0x1b4   : > { %v1015_v53 = vadd.f32 %v16176_v18, %v1014_v20 }
 0x1b5   : > { %v1247_v22 = vmax.f32 %v1205_v8, %v1207_v21 }
 0x1b6   : > { %v1057_v24 = vmax.f32 %v1015_v53, 0.0  ;;  %v10385_v53 = vld [vmem:[#allocation7 + $0x10] sm:$0xf] }
 0x1b7   : > { %v16266_v25 = vpack.c.bf16 %v1247_v22, %v1246_v6  ;;  %v14182_v22 = vld [vmem:[#allocation7 + $0x14] sm:$0xf0] }
 0x1b8   : > { %v1144_v26 = vrot.slane %v1057_v24, 1 }
 0x1ba   : > { %v1145_v27 = vsel %vm1094_vm3, %v1142_v17, %v1144_v26 }
 0x1bb   : > { %v1017_v28 = vpop.f32.mrf.mxu0  ;;  %v16269_v29 = vmax.f32 %v1056_v16, %v1145_v27 }
 0x1bc   : > { %v1018_v30 = vadd.f32 %v16176_v18, %v1017_v28  ;;  %v10393_v28 = vld [vmem:[#allocation7 + $0x20] sm:$0xf] }
 0x1bd   : > { %v1248_v31 = vmax.f32 %v1206_v14, %v16269_v29 }
 0x1be   : > { %v1058_v32 = vmax.f32 %v1018_v30, 0.0  ;;  %v14184_v30 = vld [vmem:[#allocation7 + $0x24] sm:$0xf0] }
 0x1c0   : > { %v1146_v33 = vrot.slane %v1058_v32, 1 }
 0x1c2   : > { %v1147_v34 = vsel %vm1094_vm3, %v1144_v26, %v1146_v33  ;;  %v10386_v26 = vor.u32 %v14182_v22, %v10385_v53 }
 0x1c3   : > { %v1019_v35 = vpop.f32.mrf.mxu0  ;;  %v1209_v36 = vmax.f32 %v1057_v24, %v1147_v34 }
 0x1c4   : > { %v1020_v48 = vadd.f32 %v16176_v18, %v1019_v35  ;;  %1385 = vmatmul.bf16.gmra.mxu1 %v10386_v26  ;;  %v14186_v35 = vld [vmem:[#allocation7 + $0x34] sm:$0xf0] }
 0x1c5   : > { %v1249_v37 = vmax.f32 %v1207_v21, %v1209_v36 }
 0x1c6   : > { %v1059_v57 = vmax.f32 %v1020_v48, 0.0  ;;  %v10417_v48 = vld [vmem:[#allocation7 + $0x50] sm:$0xf] }
 0x1c7   : > { %v1280_v38 = vpack.c.bf16 %v1249_v37, %v1248_v31  ;;  %v14179_v31 = vld [vmem:[#allocation7 + $0x4] sm:$0xf]  ;;  %v10387_v37 = vld [vmem:[#allocation7 + $0x18] sm:$0xf0] }
 0x1c8   : > { %v1148_v44 = vrot.slane %v1059_v57, 1 }
 0x1ca   : > { %v1149_v13 = vsel %vm1094_vm3, %v1146_v33, %v1148_v44  ;;  %v10394_v33 = vor.u32 %v14184_v30, %v10393_v28  ;;  %v14223_v30 = vld [vmem:[#allocation8 + $0x100] sm:$0xff] }
 0x1cb   : > { %v1022_v40 = vpop.f32.mrf.mxu0  ;;  %v1210_v16 = vmax.f32 %v1058_v32, %v1149_v13  ;;  %v10379_v32 = vld [vmem:[#allocation7 + $0x8] sm:$0xf0] }
 0x1cc   : > { %v1023_v45 = vadd.f32 %v16176_v18, %v1022_v40  ;;  %v10382_v34 = vor.u32 %v14179_v31, %v10379_v32  ;;  %v14188_v40 = vld [vmem:[#allocation7 + $0x44] sm:$0xf0] }
 0x1cd   : > { %v1250_v24 = vmax.f32 %v16269_v29, %v1210_v16  ;;  %v10401_v29 = vld [vmem:[#allocation7 + $0x30] sm:$0xf] }
 0x1ce   : > { %v1060_v50 = vmax.f32 %v1023_v45, 0.0 }
 0x1d0   : > { %v1150_v58 = vrot.slane %v1060_v50, 1 }
 0x1d2   : > { %v1151_v39 = vsel %vm1094_vm3, %v1148_v44, %v1150_v58 }
 0x1d3   : > { %v1024_v41 = vpop.f32.mrf.mxu0  ;;  %v1211_v15 = vmax.f32 %v1059_v57, %v1151_v39  ;;  %v1268_v57 = vld [vmem:[#allocation7 + $0x60] sm:$0x77] }
 0x1d4   : > { %v1025_v43 = vadd.f32 %v16176_v18, %v1024_v41  ;;  %1390 = vmatmul.bf16.gmra.mxu1 %v10394_v33  ;;  %v14183_v41 = vld [vmem:[#allocation7 + $0x24] sm:$0xf]  ;;  %v1322_v44 = vunpack.c.h.b16 %v1268_v57 }
 0x1d5   : > { %v1251_v21 = vmax.f32 %v1209_v36, %v1211_v15  ;;  %v14181_v36 = vld [vmem:[#allocation7 + $0x14] sm:$0xf]  ;;  %v14206_v39 = vld [vmem:[#allocation8 + $0x78] sm:$0xff] }
 0x1d6   : > { %v1061_v49 = vmax.f32 %v1025_v43, 0.0  ;;  %v1336_v1 = vpack.c.b16 %v1322_v44, %v1322_v44  ;;  %1878 = vmatpush.bf16.msrb.mxu1 %v14206_v39 }
 0x1d7   : > { %v1281_v27 = vpack.c.bf16 %v1251_v21, %v1250_v24  ;;  %v14224_v24 = vld [vmem:[#allocation8 + $0x108] sm:$0xff] }
 0x1d8   : > { %v1152_v56 = vrot.slane %v1061_v49, 1 }
 0x1da   : > { %v1153_v62 = vsel %vm1094_vm3, %v1150_v58, %v1152_v56  ;;  %v1213_v63 = vmax.f32 %v1061_v49, %v1152_v56  ;;  %v1321_v58 = vunpack.c.l.b16 %v1268_v57 }
 0x1db   : > { %v1027_v42 = vpop.f32.mrf.mxu0  ;;  %v1212_v7 = vmax.f32 %v1060_v50, %v1153_v62  ;;  %v14190_v50 = vld [vmem:[#allocation7 + $0x54] sm:$0xf0] }
 0x1dc   : > { %v1028_v46 = vadd.f32 %v16176_v18, %v1027_v42  ;;  %v10395_v42 = vld [vmem:[#allocation7 + $0x28] sm:$0xf0] }
 0x1dd   : > { %v1252_v19 = vmax.f32 %v1210_v16, %v1212_v7  ;;  %v10398_v45 = vor.u32 %v14183_v41, %v10395_v42  ;;  %v14226_v16 = vld [vmem:[#allocation8 + $0x118] sm:$0xff] }
 0x1de   : > { %v1062_v52 = vmax.f32 %v1028_v46, 0.0  ;;  %v10403_v46 = vld [vmem:[#allocation7 + $0x38] sm:$0xf0]  ;;  %2465 = vmatpush.bf16.msrb.mxu0 %v14226_v16 }
 0x1e0   : > { %v1216_v59 = vrot.slane %v1062_v52, 1 }
 0x1e2   : > { %v1217_v5 = vsel %vm1094_vm3, %v1152_v56, %v1216_v59  ;;  %v10411_v56 = vld [vmem:[#allocation7 + $0x48] sm:$0xf0] }
 0x1e3   : > { %v1029_v55 = vpop.f32.mrf.mxu0  ;;  %v1223_v12 = vmax.f32 %v1061_v49, %v1217_v5  ;;  %v14202_v5 = vld [vmem:[#allocation8 + $0x58] sm:$0xff] }
 0x1e4   : > { %v1030_v47 = vadd.f32 %v16176_v18, %v1029_v55  ;;  %v1367_v18 = vsel %vm1094_vm3, 4294967295, %v15877_v0  ;;  %v14187_v55 = vld [vmem:[#allocation7 + $0x44] sm:$0xf] }
 0x1e5   : > { %v1368_v23 = vsel %vm1366_vm4, %v1367_v18, 0  ;;  %v1253_v17 = vmax.f32 %v1211_v15, %v1223_v12  ;;  %v14197_v18 = vld [vmem:[#allocation8 + $0x30] sm:$0xff]  ;;  %v14199_v12 = vld [vmem:[#allocation8 + $0x40] sm:$0xff] }
 0x1e6   : > { %v1063_v51 = vmax.f32 %v1030_v47, 0.0  ;;  %v10414_v47 = vor.u32 %v14187_v55, %v10411_v56  ;;  %1606 = vmatpush.bf16.msra.mxu3 %v14197_v18  ;;  %v14195_v15 = vld [vmem:[#allocation8 + $0x20] sm:$0xff] }
 0x1e7   : > { %v1282_v20 = vpack.c.bf16 %v1253_v17, %v1252_v19  ;;  %v14203_v17 = vld [vmem:[#allocation8 + $0x60] sm:$0xff]  ;;  %v14225_v19 = vld [vmem:[#allocation8 + $0x110] sm:$0xff] }
 0x1e8   : > { %v1218_v60 = vrot.slane %v1063_v51, 1  ;;  %2466 = vmatpush.bf16.msrb.mxu0 %v14225_v19 }
 0x1ea   : > { %v1225_v3 = vmax.f32 %v1063_v51, %v1218_v60  ;;  %v1219_v4 = vsel %vm1094_vm3, %v1216_v59, %v1218_v60  ;;  %v1335_v59 = vpack.c.b16 %v1321_v58, %v1321_v58  ;;  %v14189_v51 = vld [vmem:[#allocation7 + $0x54] sm:$0xf]  ;;  %v10419_v60 = vld [vmem:[#allocation7 + $0x58] sm:$0xf0] }
 0x1eb   : > { %v1224_v8 = vmax.f32 %v1062_v52, %v1219_v4  ;;  %v10418_v52 = vor.u32 %v14190_v50, %v10417_v48  ;;  %v10422_v62 = vor.u32 %v14189_v51, %v10419_v60 }
 0x1ec   : > { %v1255_v9 = vmax.f32 %v1213_v63, %v1225_v3  ;;  %2467 = vmatpush.bf16.msrb.mxu0 %v14224_v24 }
 0x1ed   : > { %v1254_v10 = vmax.f32 %v1212_v7, %v1224_v8  ;;  %v14201_v7 = vld [vmem:[#allocation8 + $0x50] sm:$0xff] }
 0x1ef   : > { %v1283_v14 = vpack.c.bf16 %v1255_v9, %v1254_v10  ;;  %v14200_v9 = vld [vmem:[#allocation8 + $0x48] sm:$0xff] }
 0x1f0   : > { %v14196_v10 = vld [vmem:[#allocation8 + $0x28] sm:$0xff]  ;;  %2468 = vmatpush.bf16.msrb.mxu0 %v14223_v30 }
 0x1f1   : > { %v1370_v6 = vand.u32 %v1368_v23, %v1283_v14  ;;  %1607 = vmatpush.bf16.msra.mxu3 %v14196_v10  ;;  %v14205_v23 = vld [vmem:[#allocation8 + $0x70] sm:$0xff] }
 0x1f2   : > { %1879 = vmatpush.bf16.msrb.mxu1 %v14205_v23 }
 0x1f3   : > { %1416 = vmatpush.bf16.msra.mxu2 %v1370_v6  ;;  %v14204_v6 = vld [vmem:[#allocation8 + $0x68] sm:$0xff] }
 0x1f5   : > { %1608 = vmatpush.bf16.msra.mxu3 %v14195_v15 }
 0x1f6   : > { %1880 = vmatpush.bf16.msrb.mxu1 %v14204_v6 }
 0x1f7   : > { %1417 = vmatpush.bf16.msra.mxu2 %v1282_v20 }
 0x1fa   : > { %1881 = vmatpush.bf16.msrb.mxu1 %v14203_v17 }
 0x1fb   : > { %1418 = vmatpush.bf16.msra.mxu2 %v1281_v27 }
 0x1ff   : > { %1419 = vmatpush.bf16.msra.mxu2 %v1280_v38  ;;  %v10402_v38 = vor.u32 %v14186_v35, %v10401_v29 }
 0x201   : > { %1395 = vmatmul.bf16.gmra.mxu1 %v10402_v38 }
 0x203   : > { %1420 = vmatpush.bf16.msra.mxu2 %v16266_v25  ;;  %v10390_v25 = vor.u32 %v14181_v36, %v10387_v37 }
 0x207   : > { %1421 = vmatpush.bf16.msra.mxu2 %v16260_v11  ;;  %v10409_v11 = vld [vmem:[#allocation7 + $0x40] sm:$0xf] }
 0x208   : > { %v10410_v43 = vor.u32 %v14188_v40, %v10409_v11 }
 0x20b   : > { %1422 = vmatpush.bf16.msra.mxu2 %v16250_v61  ;;  %v14185_v61 = vld [vmem:[#allocation7 + $0x34] sm:$0xf] }
 0x20c   : > { %v10406_v49 = vor.u32 %v14185_v61, %v10403_v46 }
 0x20e   : > { %10423 = vmatmul.msk.bf16.vlgmr.msra.gmra.mxu2 %vm1344_vm5, %v10382_v34 }
 0x20f   : > { %1767 = vmatpush.bf16.msrb.mxu2 %v14202_v5 }
 0x211   : > { %1400 = vmatmul.bf16.gmra.mxu1 %v10410_v43 }
 0x213   : > { %1768 = vmatpush.bf16.msrb.mxu2 %v14201_v7 }
 0x217   : > { %1769 = vmatpush.bf16.msrb.mxu2 %v14200_v9 }
 0x21b   : > { %1770 = vmatpush.bf16.msrb.mxu2 %v14199_v12 }
 0x21e   : > { %10424 = vmatmul.msk.bf16.gmra.mxu2 %vm1344_vm5, %v10390_v25 }
 0x221   : > { %1405 = vmatmul.bf16.gmra.mxu1 %v10418_v52 }
 0x22d   : > { %v1381_v63 = vpop.f32.mrf.mxu1 }
 0x22e   : > { %10425 = vmatmul.msk.bf16.gmra.mxu2 %vm1344_vm5, %v10398_v45 }
 0x231   : > { %1410 = vmatmul.bf16.gmra.mxu1 %v1335_v59 }
 0x235   : > { %v1383_v2 = vpop.f32.mrf.mxu1 }
 0x23e   : > { %10426 = vmatmul.msk.bf16.gmra.mxu2 %vm1344_vm5, %v10406_v49 }
 0x241   : > { %v1386_v3 = vpop.f32.mrf.mxu1 }
 0x249   : > { %v1388_v4 = vpop.f32.mrf.mxu1 }
 0x24e   : > { %10427 = vmatmul.msk.bf16.gmra.mxu2 %vm1344_vm5, %v10414_v47 }
 0x251   : > { %v1391_v8 = vpop.f32.mrf.mxu1 }
 0x259   : > { %v16297_v14 = vpop.f32.mrf.mxu1 }
 0x25e   : > { %10428 = vmatmul.msk.bf16.gmra.mxu2 %vm1344_vm5, %v10422_v62 }
 0x26e   : > { %10429 = vmatmul.msk.bf16.gmra.mxu2 %vm1344_vm5, %v1336_v1 }
 0x27e   : > { %v16299_v21 = vpop.f32.mrf.mxu1 }
 0x286   : > { %v16301_v32 = vpop.f32.mrf.mxu1 }
 0x28e   : > { %v16306_v41 = vpop.f32.mrf.mxu1 }
 0x291   : > { %v1424_v13 = vpop.f32.mrf.mxu2 }
 0x292   : > { %v1425_v22 = vadd.f32 %v1424_v13, %v1381_v63 }
 0x294   : > { %v1458_v27 = vpack.c.bf16 %v1425_v22, %v1425_v22 }
 0x296   : > { %v1499_v33 = vunpack.c.l.b16 %v1458_v27 }
 0x299   : > { %v1426_v20 = vpop.f32.mrf.mxu2 }
 0x29a   : > { %v1427_v53 = vadd.f32 %v1426_v20, %v1383_v2 }
 0x29c   : > { %v1459_v26 = vpack.c.bf16 %v1427_v53, %v1427_v53 }
 0x29e   : > { %v1500_v31 = vunpack.c.l.b16 %v1459_v26 }
 0x2a0   : > { %v16303_v29 = vpack.c.b16 %v1500_v31, %v1499_v33 }
 0x2a1   : > { %v1429_v28 = vpop.f32.mrf.mxu2 }
 0x2a2   : > { %v1430_v34 = vadd.f32 %v1429_v28, %v1386_v3  ;;  %v1520_v38 = vshll.u32 %v16303_v29, 16  ;;  %v1518_v46 = vshrl.u32 %v16303_v29, 16  ;;  %v1713_v48 = vrot.slane %v16303_v29, 1  ;;  %v16319_v3 = vpop.f32.mrf.mxu1 }
 0x2a4   : > { %v1460_v35 = vpack.c.bf16 %v1430_v34, %v1430_v34  ;;  %v1522_v42 = vrot.slane %v1520_v38, 1 }
 0x2a6   : > { %v1501_v11 = vunpack.c.l.b16 %v1460_v35  ;;  %v1523_v55 = vor.u32 %v1522_v42, %v1518_v46 }
 0x2a8   : > { %v1818_v45 = vpack.c.b16 %v1501_v11, %v1500_v31 }
 0x2a9   : > { %v1431_v36 = vpop.f32.mrf.mxu2 }
 0x2aa   : > { %v1432_v37 = vadd.f32 %v1431_v36, %v1388_v4  ;;  %v1929_v51 = vshrl.u32 %v1818_v45, 16  ;;  %v1932_v60 = vshll.u32 %v1818_v45, 16  ;;  %v2074_v54 = vrot.slane %v1818_v45, 2  ;;  %v16329_v22 = vpop.f32.mrf.mxu1 }
 0x2ab   : > { %v1824_v10 = vrot.slane %v1818_v45, 1 }
 0x2ac   : > { %v1461_v25 = vpack.c.bf16 %v1432_v37, %v1432_v37  ;;  %v1931_v4 = vrot.slane %v1929_v51, 1  ;;  %v1934_v5 = vrot.slane %v1932_v60, 2 }
 0x2ae   : > { %v1502_v40 = vunpack.c.l.b16 %v1461_v25  ;;  %v1935_v19 = vor.u32 %v1934_v5, %v1931_v4 }
 0x2b0   : > { %v16308_v43 = vpack.c.b16 %v1502_v40, %v1501_v11 }
 0x2b1   : > { %v1434_v61 = vpop.f32.mrf.mxu2 }
 0x2b2   : > { %v1435_v49 = vadd.f32 %v1434_v61, %v1391_v8  ;;  %v1714_v50 = vrot.slane %v16308_v43, 1  ;;  %v1525_v52 = vshll.u32 %v16308_v43, 16  ;;  %v1529_v56 = vshrl.u32 %v16308_v43, 16  ;;  %v16346_v61 = vpop.f32.mrf.mxu1 }
 0x2b3   : > { %v2411_v26 = vrot.slane %v16308_v43, 3 }
 0x2b4   : > { %v1462_v47 = vpack.c.bf16 %v1435_v49, %v1435_v49  ;;  %v1715_v57 = vsel %vm1094_vm3, %v1713_v48, %v1714_v50  ;;  %v1527_v58 = vrot.slane %v1525_v52, 1  ;;  %v2286_v59 = vrot.slane %v1525_v52, 3 }
 0x2b5   : > { %10488 = vmatmul.msk.bf16.vlgmr.msrb.gmra.mxu2 %vm1585_vm6, %v1715_v57  ;;  %v2285_v62 = vrot.slane %v1529_v56, 2 }
 0x2b6   : > { %v1503_v44 = vunpack.c.l.b16 %v1462_v47  ;;  %v1528_v63 = vsel %vm1516_vm7, %v1523_v55, %v1527_v58  ;;  %v1531_v33 = vor.u32 %v1529_v56, %v1527_v58 }
 0x2b7   : > { %10446 = vmatmul.msk.bf16.vlgmr.msra.gmra.mxu3 %vm1585_vm6, %v1528_v63  ;;  %v2287_v1 = vor.u32 %v2286_v59, %v2285_v62 }
 0x2b8   : > { %v1819_v2 = vpack.c.b16 %v1503_v44, %v1502_v40 }
 0x2b9   : > { %v1436_v7 = vpop.f32.mrf.mxu2 }
 0x2ba   : > { %v1937_v8 = vshrl.u32 %v1819_v2, 16  ;;  %v1940_v18 = vshll.u32 %v1819_v2, 16  ;;  %v2075_v9 = vrot.slane %v1819_v2, 2  ;;  %v1437_v39 = vadd.f32 %v1436_v7, %v16297_v14  ;;  %v16359_v63 = vpop.f32.mrf.mxu1 }
 0x2bb   : > { %v1825_v12 = vrot.slane %v1819_v2, 1 }
 0x2bc   : > { %v1939_v23 = vrot.slane %v1937_v8, 1  ;;  %v1942_v13 = vrot.slane %v1940_v18, 2  ;;  %v1463_v15 = vpack.c.bf16 %v1437_v39, %v1437_v39  ;;  %v16323_v6 = vsel %vm937_vm1, %v2074_v54, %v2075_v9 }
 0x2bd   : > { %v1826_v16 = vsel %vm1094_vm3, %v1824_v10, %v1825_v12 }
 0x2be   : > { %v1504_v17 = vunpack.c.l.b16 %v1463_v15  ;;  %10509 = vmatmul.msk.bf16.vlgmr.msrb.gmra.mxu1 %vm1585_vm6, %v1826_v16  ;;  %v1943_v20 = vor.u32 %v1942_v13, %v1939_v23  ;;  %v14194_v16 = vld [vmem:[#allocation8 + $0x18] sm:$0xff] }
 0x2bf   : > { %1673 = vmatpush.bf16.msrb.mxu3 %v14194_v16 }
 0x2c0   : > { %v16327_v53 = vpack.c.b16 %v1504_v17, %v1503_v44  ;;  %v16332_v14 = vsel %vm1927_vm8, %v1935_v19, %v1943_v20 }
 0x2c1   : > { %v1439_v24 = vpop.f32.mrf.mxu2 }
 0x2c2   : > { %v1440_v27 = vadd.f32 %v1439_v24, %v16299_v21  ;;  %v1716_v28 = vrot.slane %v16327_v53, 1  ;;  %v2412_v30 = vrot.slane %v16327_v53, 3  ;;  %v1533_v31 = vshll.u32 %v16327_v53, 16 }
 0x2c3   : > { %v1537_v34 = vshrl.u32 %v16327_v53, 16 }
 0x2c4   : > { %v1464_v35 = vpack.c.bf16 %v1440_v27, %v1440_v27  ;;  %v1717_v36 = vsel %vm1094_vm3, %v1714_v50, %v1716_v28  ;;  %v2413_v37 = vsel %vm936_vm0, %v2411_v26, %v2412_v30  ;;  %v1535_v38 = vrot.slane %v1533_v31, 1  ;;  %v14213_v26 = vld [vmem:[#allocation8 + $0xb0] sm:$0xff] }
 0x2c5   : > { %10489 = vmatmul.msk.bf16.gmra.mxu2 %vm1585_vm6, %v1717_v36  ;;  %10614 = vmatmul.msk.bf16.vlgmr.msrb.gmra.mxu0 %vm1585_vm6, %v2413_v37  ;;  %v2289_v21 = vrot.slane %v1533_v31, 3  ;;  %v2288_v25 = vrot.slane %v1537_v34, 2  ;;  %v14193_v31 = vld [vmem:[#allocation8 + $0x10] sm:$0xff] }
 0x2c6   : > { %v1505_v11 = vunpack.c.l.b16 %v1464_v35  ;;  %v1536_v40 = vsel %vm1516_vm7, %v1531_v33, %v1535_v38  ;;  %v1539_v7 = vor.u32 %v1537_v34, %v1535_v38  ;;  %1674 = vmatpush.bf16.msrb.mxu3 %v14193_v31 }
 0x2c7   : > { %10447 = vmatmul.msk.bf16.gmra.mxu3 %vm1585_vm6, %v1536_v40  ;;  %v2290_v42 = vor.u32 %v2289_v21, %v2288_v25  ;;  %v14218_v25 = vld [vmem:[#allocation8 + $0xd8] sm:$0xff] }
 0x2c8   : > { %v1820_v45 = vpack.c.b16 %v1505_v11, %v1504_v17  ;;  %2235 = vmatpush.bf16.msra.mxu1 %v14218_v25 }
 0x2c9   : > { %v1441_v46 = vpop.f32.mrf.mxu2  ;;  %v16349_v49 = vsel %vm2284_vm9, %v2287_v1, %v2290_v42 }
 0x2ca   : > { %v1442_v48 = vadd.f32 %v1441_v46, %v16301_v32  ;;  %v1827_v50 = vrot.slane %v1820_v45, 1  ;;  %v2077_v52 = vrot.slane %v1820_v45, 2  ;;  %v1946_v55 = vshrl.u32 %v1820_v45, 16  ;;  %v14217_v46 = vld [vmem:[#allocation8 + $0xd0] sm:$0xff] }
 0x2cb   : > { %v1949_v56 = vshll.u32 %v1820_v45, 16  ;;  %v14211_v45 = vld [vmem:[#allocation8 + $0xa0] sm:$0xff] }
 0x2cc   : > { %v1465_v47 = vpack.c.bf16 %v1442_v48, %v1442_v48  ;;  %v1828_v57 = vsel %vm1094_vm3, %v1825_v12, %v1827_v50  ;;  %v16354_v58 = vsel %vm937_vm1, %v2075_v9, %v2077_v52  ;;  %v1948_v59 = vrot.slane %v1946_v55, 1  ;;  %2236 = vmatpush.bf16.msra.mxu1 %v14217_v46 }
 0x2cd   : > { %v1951_v51 = vrot.slane %v1949_v56, 2 }
 0x2ce   : > { %v1506_v60 = vunpack.c.l.b16 %v1465_v47  ;;  %10510 = vmatmul.msk.bf16.gmra.mxu1 %vm1585_vm6, %v1828_v57 }
 0x2cf   : > { %v1952_v62 = vor.u32 %v1951_v51, %v1948_v59  ;;  %v14191_v51 = vld [vmem:[#allocation8] sm:$0xff] }
 0x2d0   : > { %v16357_v44 = vpack.c.b16 %v1506_v60, %v1505_v11 }
 0x2d1   : > { %v1444_v32 = vpop.f32.mrf.mxu2  ;;  %v16362_v1 = vsel %vm1927_vm8, %v1943_v20, %v1952_v62  ;;  %v1413_v20 = vpop.f32.mrf.mxu1 }
 0x2d2   : > { %v1445_v2 = vadd.f32 %v1444_v32, %v16306_v41  ;;  %v1718_v4 = vrot.slane %v16357_v44, 1  ;;  %v2414_v5 = vrot.slane %v16357_v44, 3  ;;  %v1541_v54 = vshll.u32 %v16357_v44, 16  ;;  %v14214_v41 = vld [vmem:[#allocation8 + $0xb8] sm:$0xff] }
 0x2d3   : > { %v1545_v8 = vshrl.u32 %v16357_v44, 16  ;;  %2128 = vmatpush.bf16.msra.mxu2 %v14214_v41 }
 0x2d4   : > { %v1466_v18 = vpack.c.bf16 %v1445_v2, %v1445_v2  ;;  %v1719_v9 = vsel %vm1094_vm3, %v1716_v28, %v1718_v4  ;;  %v2415_v39 = vsel %vm936_vm0, %v2412_v30, %v2414_v5  ;;  %v1543_v10 = vrot.slane %v1541_v54, 1 }
 0x2d5   : > { %10490 = vmatmul.msk.bf16.gmra.mxu2 %vm1585_vm6, %v1719_v9  ;;  %10615 = vmatmul.msk.bf16.gmra.mxu0 %vm1585_vm6, %v2415_v39  ;;  %v2292_v12 = vrot.slane %v1545_v8, 2  ;;  %v2293_v23 = vrot.slane %v1541_v54, 3 }
 0x2d6   : > { %v1507_v13 = vunpack.c.l.b16 %v1466_v18  ;;  %v1544_v15 = vsel %vm1516_vm7, %v1539_v7, %v1543_v10  ;;  %v14216_v7 = vld [vmem:[#allocation8 + $0xc8] sm:$0xff] }
 0x2d7   : > { %10448 = vmatmul.msk.bf16.gmra.mxu3 %vm1585_vm6, %v1544_v15  ;;  %v2294_v17 = vor.u32 %v2293_v23, %v2292_v12  ;;  %2129 = vmatpush.bf16.msra.mxu2 %v14213_v26 }
 0x2d8   : > { %v16379_v19 = vpack.c.b16 %v1507_v13, %v1506_v60  ;;  %v1547_v60 = vor.u32 %v1545_v8, %v1543_v10  ;;  %2237 = vmatpush.bf16.msra.mxu1 %v14216_v7 }
 0x2d9   : > { %v1446_v24 = vpop.f32.mrf.mxu2  ;;  %v16382_v27 = vsel %vm2284_vm9, %v2290_v42, %v2294_v17  ;;  %v14192_v42 = vld [vmem:[#allocation8 + $0x8] sm:$0xff] }
 0x2da   : > { %v1447_v28 = vadd.f32 %v1446_v24, %v16319_v3  ;;  %v1829_v30 = vrot.slane %v16379_v19, 1  ;;  %v2079_v33 = vrot.slane %v16379_v19, 2  ;;  %v1955_v34 = vshrl.u32 %v16379_v19, 16  ;;  %v14212_v3 = vld [vmem:[#allocation8 + $0xa8] sm:$0xff]  ;;  %1675 = vmatpush.bf16.msrb.mxu3 %v14192_v42 }
 0x2db   : > { %v1958_v35 = vshll.u32 %v16379_v19, 16  ;;  %2130 = vmatpush.bf16.msra.mxu2 %v14212_v3 }
 0x2dc   : > { %v1467_v36 = vpack.c.bf16 %v1447_v28, %v1447_v28  ;;  %v1830_v37 = vsel %vm1094_vm3, %v1827_v50, %v1829_v30  ;;  %v16393_v38 = vsel %vm937_vm1, %v2077_v52, %v2079_v33  ;;  %v1957_v21 = vrot.slane %v1955_v34, 1 }
 0x2dd   : > { %v1960_v11 = vrot.slane %v1958_v35, 2 }
 0x2de   : > { %v1508_v40 = vunpack.c.l.b16 %v1467_v36  ;;  %10511 = vmatmul.msk.bf16.gmra.mxu1 %vm1585_vm6, %v1830_v37  ;;  %1676 = vmatpush.bf16.msrb.mxu3 %v14191_v51 }
 0x2df   : > { %v1961_v48 = vor.u32 %v1960_v11, %v1957_v21  ;;  %2131 = vmatpush.bf16.msra.mxu2 %v14211_v45 }
 0x2e0   : > { %v16396_v55 = vpack.c.b16 %v1508_v40, %v1507_v13 }
 0x2e1   : > { %v1449_v50 = vpop.f32.mrf.mxu2  ;;  %v16399_v52 = vsel %vm1927_vm8, %v1952_v62, %v1961_v48 }
 0x2e2   : > { %v1450_v56 = vadd.f32 %v1449_v50, %v16329_v22  ;;  %v1720_v47 = vrot.slane %v16396_v55, 1  ;;  %v2416_v57 = vrot.slane %v16396_v55, 3  ;;  %v1549_v59 = vshll.u32 %v16396_v55, 16 }
 0x2e3   : > { %v1553_v32 = vshrl.u32 %v16396_v55, 16 }
 0x2e4   : > { %v1468_v2 = vpack.c.bf16 %v1450_v56, %v1450_v56  ;;  %v1721_v62 = vsel %vm1094_vm3, %v1718_v4, %v1720_v47  ;;  %v2417_v22 = vsel %vm936_vm0, %v2414_v5, %v2416_v57  ;;  %v1551_v54 = vrot.slane %v1549_v59, 1  ;;  %v14215_v4 = vld [vmem:[#allocation8 + $0xc0] sm:$0xff] }
 0x2e5   : > { %10491 = vmatmul.msk.bf16.gmra.mxu2 %vm1585_vm6, %v1721_v62  ;;  %10616 = vmatmul.msk.bf16.gmra.mxu0 %vm1585_vm6, %v2417_v22  ;;  %v2296_v8 = vrot.slane %v1553_v32, 2  ;;  %v2297_v18 = vrot.slane %v1549_v59, 3 }
 0x2e6   : > { %v1509_v9 = vunpack.c.l.b16 %v1468_v2  ;;  %v1552_v39 = vsel %vm1516_vm7, %v1547_v60, %v1551_v54  ;;  %2238 = vmatpush.bf16.msra.mxu1 %v14215_v4  ;;  %v1555_v51 = vor.u32 %v1553_v32, %v1551_v54 }
 0x2e7   : > { %10449 = vmatmul.msk.bf16.gmra.mxu3 %vm1585_vm6, %v1552_v39  ;;  %v2298_v10 = vor.u32 %v2297_v18, %v2296_v8 }
 0x2e8   : > { %v1822_v41 = vpack.c.b16 %v1509_v9, %v1508_v40  ;;  %v1515_v23 = vpack.c.b16 %v1509_v9, %v1509_v9 }
 0x2e9   : > { %v1451_v12 = vpop.f32.mrf.mxu2  ;;  %v16417_v5 = vsel %vm2284_vm9, %v2294_v17, %v2298_v10 }
 0x2ea   : > { %v1452_v13 = vadd.f32 %v1451_v12, %v16346_v61  ;;  %v1831_v15 = vrot.slane %v1822_v41, 1  ;;  %v2081_v16 = vrot.slane %v1822_v41, 2  ;;  %v1964_v20 = vshrl.u32 %v1822_v41, 16 }
 0x2eb   : > { %v1967_v24 = vshll.u32 %v1822_v41, 16  ;;  %v1557_v36 = vshll.u32 %v1515_v23, 16  ;;  %v1722_v3 = vrot.slane %v1515_v23, 1 }
 0x2ec   : > { %v1469_v26 = vpack.c.bf16 %v1452_v13, %v1452_v13  ;;  %v1832_v28 = vsel %vm1094_vm3, %v1829_v30, %v1831_v15  ;;  %v16424_v31 = vsel %vm937_vm1, %v2079_v33, %v2081_v16  ;;  %v1966_v34 = vrot.slane %v1964_v20, 1 }
 0x2ed   : > { %v1969_v35 = vrot.slane %v1967_v24, 2  ;;  %v1559_v33 = vrot.slane %v1557_v36, 1  ;;  %v1723_v56 = vsel %vm1094_vm3, %v1720_v47, %v1722_v3 }
 0x2ee   : > { %v1817_v17 = vunpack.c.l.b16 %v1469_v26  ;;  %10512 = vmatmul.msk.bf16.gmra.mxu1 %vm1585_vm6, %v1832_v28 }
 0x2ef   : > { %v1970_v61 = vor.u32 %v1969_v35, %v1966_v34  ;;  %v1560_v62 = vsel %vm1516_vm7, %v1555_v51, %v1559_v33 }
 0x2f0   : > { %v1823_v37 = vpack.c.b16 %v1817_v17, %v1817_v17  ;;  %v16427_v21 = vpack.c.b16 %v1817_v17, %v1509_v9 }
 0x2f1   : > { %v1454_v25 = vpop.f32.mrf.mxu2  ;;  %v16430_v11 = vsel %vm1927_vm8, %v1961_v48, %v1970_v61 }
 0x2f2   : > { %v1455_v19 = vadd.f32 %v1454_v25, %v16359_v63  ;;  %v2418_v30 = vrot.slane %v16427_v21, 3  ;;  %v2083_v40 = vrot.slane %v1823_v37, 2  ;;  %v1973_v42 = vshrl.u32 %v1823_v37, 16 }
 0x2f3   : > { %v1976_v45 = vshll.u32 %v1823_v37, 16  ;;  %v2301_v46 = vshrl.u32 %v16427_v21, 16  ;;  %v2304_v22 = vshll.u32 %v16427_v21, 16  ;;  %v1833_v32 = vrot.slane %v1823_v37, 1 }
 0x2f4   : > { %v1470_v50 = vpack.c.bf16 %v1455_v19, %v1455_v19  ;;  %v2419_v59 = vsel %vm936_vm0, %v2416_v57, %v2418_v30  ;;  %v2084_v63 = vsel %vm937_vm1, %v2081_v16, %v2083_v40  ;;  %v1975_v48 = vrot.slane %v1973_v42, 1  ;;  %v14222_v42 = vld [vmem:[#allocation8 + $0xf8] sm:$0xff] }
 0x2f5   : > { %10492 = vmatmul.msk.bf16.gmra.mxu2 %vm1585_vm6, %v1723_v56  ;;  %10617 = vmatmul.msk.bf16.gmra.mxu0 %vm1585_vm6, %v2419_v59  ;;  %v1978_v60 = vrot.slane %v1976_v45, 2  ;;  %v2303_v47 = vrot.slane %v2301_v46, 2  ;;  %v2306_v57 = vrot.slane %v2304_v22, 3  ;;  %v2188_v4 = vrot.slane %v16427_v21, 2  ;;  %v14207_v21 = vld [vmem:[#allocation8 + $0x80] sm:$0xff] }
 0x2f6   : > { %v2178_v2 = vunpack.c.l.b16 %v1470_v50  ;;  %v1834_v20 = vsel %vm1094_vm3, %v1831_v15, %v1833_v32  ;;  %v2181_v15 = vrot.slane %v16308_v43, 2  ;;  %v14220_v50 = vld [vmem:[#allocation8 + $0xe8] sm:$0xff]  ;;  %v14219_v59 = vld [vmem:[#allocation8 + $0xe0] sm:$0xff] }
 0x2f7   : > { %10450 = vmatmul.msk.bf16.gmra.mxu3 %vm1585_vm6, %v1560_v62  ;;  %v1979_v7 = vor.u32 %v1978_v60, %v1975_v48  ;;  %v2307_v12 = vor.u32 %v2306_v57, %v2303_v47 }
 0x2f8   : > { %v2180_v8 = vpack.c.b16 %v2178_v2, %v2178_v2 }
 0x2f9   : > { %v1456_v54 = vpop.f32.mrf.mxu2  ;;  %v16444_v18 = vsel %vm1927_vm8, %v1970_v61, %v1979_v7  ;;  %v16450_v24 = vsel %vm2284_vm9, %v2298_v10, %v2307_v12  ;;  %v2182_v10 = vrot.slane %v16327_v53, 2  ;;  %v2186_v61 = vrot.slane %v16396_v55, 2 }
 0x2fa   : > { %v2310_v9 = vshrl.u32 %v2180_v8, 16  ;;  %v2313_v39 = vshll.u32 %v2180_v8, 16  ;;  %v2190_v41 = vrot.slane %v2180_v8, 2  ;;  %v2420_v28 = vrot.slane %v2180_v8, 3 }
 0x2fb   : > { %v2183_v17 = vsel %vm937_vm1, %v2181_v15, %v2182_v10 }
 0x2fc   : > { %v2191_v23 = vsel %vm937_vm1, %v2188_v4, %v2190_v41  ;;  %v2312_v13 = vrot.slane %v2310_v9, 2  ;;  %v2315_v16 = vrot.slane %v2313_v39, 3  ;;  %v2421_v35 = vsel %vm936_vm0, %v2418_v30, %v2420_v28 }
 0x2fe   : > { %10513 = vmatmul.msk.bf16.gmra.mxu1 %vm1585_vm6, %v1834_v20  ;;  %v2316_v26 = vor.u32 %v2315_v16, %v2312_v13 }
 0x300   : > { %v16454_v34 = vsel %vm2284_vm9, %v2307_v12, %v2316_v26 }
 0x305   : > { %10551 = vmatmul.msk.bf16.vlgmr.msra.gmra.mxu2 %vm1585_vm6, %v16323_v6  ;;  %10618 = vmatmul.msk.bf16.gmra.mxu0 %vm1585_vm6, %v2421_v35  ;;  %v2184_v6 = vrot.slane %v16357_v44, 2 }
 0x307   : > { %10467 = vmatmul.msk.bf16.vlgmr.msrb.gmra.mxu3 %vm1585_vm6, %v16303_v29  ;;  %v2185_v36 = vsel %vm937_vm1, %v2182_v10, %v2184_v6  ;;  %v14210_v29 = vld [vmem:[#allocation8 + $0x98] sm:$0xff]  ;;  %v2187_v37 = vsel %vm937_vm1, %v2184_v6, %v2186_v61 }
 0x308   : > { %2024 = vmatpush.bf16.msra.mxu3 %v14210_v29 }
 0x30e   : > { %10572 = vmatmul.msk.bf16.vlgmr.msra.gmra.mxu1 %vm1585_vm6, %v2183_v17 }
 0x315   : > { %10552 = vmatmul.msk.bf16.gmra.mxu2 %vm1585_vm6, %v16354_v58  ;;  %v14209_v58 = vld [vmem:[#allocation8 + $0x90] sm:$0xff] }
 0x316   : > { %2025 = vmatpush.bf16.msra.mxu3 %v14209_v58 }
 0x317   : > { %10468 = vmatmul.msk.bf16.gmra.mxu3 %vm1585_vm6, %v16308_v43  ;;  %v14208_v43 = vld [vmem:[#allocation8 + $0x88] sm:$0xff] }
 0x31a   : > { %2026 = vmatpush.bf16.msra.mxu3 %v14208_v43 }
 0x31e   : > { %10573 = vmatmul.msk.bf16.gmra.mxu1 %vm1585_vm6, %v2185_v36  ;;  %2027 = vmatpush.bf16.msra.mxu3 %v14207_v21 }
 0x322   : > { %2361 = vmatpush.bf16.msrb.mxu3 %v14222_v42 }
 0x325   : > { %10553 = vmatmul.msk.bf16.gmra.mxu2 %vm1585_vm6, %v16393_v38  ;;  %v2189_v38 = vsel %vm937_vm1, %v2186_v61, %v2188_v4 }
 0x327   : > { %10469 = vmatmul.msk.bf16.gmra.mxu3 %vm1585_vm6, %v16327_v53 }
 0x32e   : > { %10574 = vmatmul.msk.bf16.gmra.mxu1 %vm1585_vm6, %v2187_v37 }
 0x335   : > { %10554 = vmatmul.msk.bf16.gmra.mxu2 %vm1585_vm6, %v16424_v31 }
 0x337   : > { %10470 = vmatmul.msk.bf16.gmra.mxu3 %vm1585_vm6, %v16357_v44 }
 0x33a   : > { %v1610_v53 = vpop.f32.mrf.mxu3 }
 0x33b   : > { %v1883_v40 = vpop.f32.mrf.mxu1 }
 0x33e   : > { %10575 = vmatmul.msk.bf16.gmra.mxu1 %vm1585_vm6, %v2189_v38 }
 0x342   : > { %v16486_v3 = vpop.f32.mrf.mxu3 }
 0x343   : > { %v16514_v56 = vpop.f32.mrf.mxu1 }
 0x345   : > { %10555 = vmatmul.msk.bf16.gmra.mxu2 %vm1585_vm6, %v2084_v63 }
 0x347   : > { %10471 = vmatmul.msk.bf16.gmra.mxu3 %vm1585_vm6, %v16396_v55  ;;  %v1772_v55 = vpop.f32.mrf.mxu2 }
 0x34a   : > { %v16491_v25 = vpop.f32.mrf.mxu3 }
 0x34b   : > { %v1888_v51 = vpop.f32.mrf.mxu1 }
 0x34e   : > { %10576 = vmatmul.msk.bf16.gmra.mxu1 %vm1585_vm6, %v2191_v23 }
 0x34f   : > { %v16512_v46 = vpop.f32.mrf.mxu2 }
 0x352   : > { %v16494_v31 = vpop.f32.mrf.mxu3 }
 0x353   : > { %v16524_v2 = vpop.f32.mrf.mxu1 }
 0x357   : > { %10530 = vmatmul.msk.bf16.vlgmr.msra.gmra.mxu3 %vm1585_vm6, %v16332_v14  ;;  %v14221_v14 = vld [vmem:[#allocation8 + $0xf0] sm:$0xff] }
 0x358   : > { %2362 = vmatpush.bf16.msrb.mxu3 %v14221_v14 }
 0x35a   : > { %v16498_v44 = vpop.f32.mrf.mxu3 }
 0x35b   : > { %v1893_v7 = vpop.f32.mrf.mxu1 }
 0x35c   : > { %2363 = vmatpush.bf16.msrb.mxu3 %v14220_v50 }
 0x360   : > { %2364 = vmatpush.bf16.msrb.mxu3 %v14219_v59 }
 0x362   : > { %v16500_v19 = vpop.f32.mrf.mxu3 }
 0x367   : > { %10531 = vmatmul.msk.bf16.gmra.mxu3 %vm1585_vm6, %v16362_v1 }
 0x36a   : > { %v16504_v30 = vpop.f32.mrf.mxu3 }
 0x372   : > { %v16506_v33 = vpop.f32.mrf.mxu3 }
 0x377   : > { %10532 = vmatmul.msk.bf16.gmra.mxu3 %vm1585_vm6, %v16399_v52  ;;  %v1777_v52 = vpop.f32.mrf.mxu2 }
 0x37a   : > { %v16510_v45 = vpop.f32.mrf.mxu3 }
 0x37f   : > { %v16520_v48 = vpop.f32.mrf.mxu2 }
 0x382   : > { %v16516_v1 = vpop.f32.mrf.mxu3 }
 0x387   : > { %10533 = vmatmul.msk.bf16.gmra.mxu3 %vm1585_vm6, %v16430_v11  ;;  %v1782_v22 = vpop.f32.mrf.mxu2  ;;  %v16534_v11 = vpop.f32.mrf.mxu1 }
 0x38a   : > { %v1678_v63 = vpop.f32.mrf.mxu3 }
 0x38b   : > { %v1679_v20 = vadd.f32 %v1678_v63, %v1610_v53 }
 0x38f   : > { %v16530_v8 = vpop.f32.mrf.mxu2  ;;  %v1898_v54 = vpop.f32.mrf.mxu1 }
 0x392   : > { %v16522_v60 = vpop.f32.mrf.mxu3 }
 0x397   : > { %10534 = vmatmul.msk.bf16.gmra.mxu3 %vm1585_vm6, %v16444_v18  ;;  %v1787_v32 = vpop.f32.mrf.mxu2  ;;  %v16542_v4 = vpop.f32.mrf.mxu1 }
 0x39a   : > { %v1683_v62 = vpop.f32.mrf.mxu3 }
 0x39b   : > { %v1684_v6 = vadd.f32 %v1683_v62, %v16491_v25 }
 0x39d   : > { %v1799_v61 = vadd.f32 %v1777_v52, %v1684_v6 }
 0x39f   : > { %v16540_v18 = vpop.f32.mrf.mxu2  ;;  %v1903_v23 = vpop.f32.mrf.mxu1  ;;  %v1910_v58 = vadd.f32 %v1888_v51, %v1799_v61 }
 0x3a2   : > { %v16528_v47 = vpop.f32.mrf.mxu3 }
 0x3a7   : > { %10593 = vmatmul.msk.bf16.vlgmr.msrb.gmra.mxu3 %vm1585_vm6, %v16349_v49  ;;  %v1792_v12 = vpop.f32.mrf.mxu2  ;;  %v16550_v16 = vpop.f32.mrf.mxu1 }
 0x3aa   : > { %v1688_v57 = vpop.f32.mrf.mxu3 }
 0x3af   : > { %v16548_v13 = vpop.f32.mrf.mxu2  ;;  %v2240_v10 = vpop.f32.mrf.mxu1 }
 0x3b2   : > { %v16536_v9 = vpop.f32.mrf.mxu3 }
 0x3b7   : > { %10594 = vmatmul.msk.bf16.gmra.mxu3 %vm1585_vm6, %v16382_v27  ;;  %v1797_v27 = vadd.f32 %v1772_v55, %v1679_v20  ;;  %v2133_v28 = vpop.f32.mrf.mxu2  ;;  %v2242_v29 = vpop.f32.mrf.mxu1  ;;  %v1689_v55 = vadd.f32 %v1688_v57, %v16498_v44 }
 0x3b9   : > { %v1908_v35 = vadd.f32 %v1883_v40, %v1797_v27  ;;  %v1801_v42 = vadd.f32 %v1782_v22, %v1689_v55  ;;  %v2470_v22 = vpop.f32.mrf.mxu0 }
 0x3ba   : > { %v1693_v39 = vpop.f32.mrf.mxu3 }
 0x3bb   : > { %v1912_v14 = vadd.f32 %v1893_v7, %v1801_v42  ;;  %v1694_v59 = vadd.f32 %v1693_v39, %v16504_v30  ;;  %v1681_v30 = vadd.f32 %v16522_v60, %v16486_v3 }
 0x3c2   : > { %v16544_v41 = vpop.f32.mrf.mxu3 }
 0x3c7   : > { %10595 = vmatmul.msk.bf16.gmra.mxu3 %vm1585_vm6, %v16417_v5  ;;  %v2135_v5 = vpop.f32.mrf.mxu2 }
 0x3ca   : > { %v1698_v49 = vpop.f32.mrf.mxu3 }
 0x3cb   : > { %v1699_v20 = vadd.f32 %v1698_v49, %v16510_v45 }
 0x3cd   : > { %v1805_v44 = vadd.f32 %v1792_v12, %v1699_v20 }
 0x3cf   : > { %v2138_v21 = vpop.f32.mrf.mxu2  ;;  %v1916_v57 = vadd.f32 %v1903_v23, %v1805_v44 }
 0x3d2   : > { %v16552_v26 = vpop.f32.mrf.mxu3 }
 0x3d7   : > { %10596 = vmatmul.msk.bf16.gmra.mxu3 %vm1585_vm6, %v16450_v24  ;;  %v2245_v24 = vpop.f32.mrf.mxu1  ;;  %v2140_v3 = vpop.f32.mrf.mxu2 }
 0x3da   : > { %v2029_v15 = vpop.f32.mrf.mxu3 }
 0x3db   : > { %v2054_v17 = vadd.f32 %v2029_v15, %v1908_v35 }
 0x3dd   : > { %v2158_v15 = vadd.f32 %v2133_v28, %v2054_v17 }
 0x3df   : > { %v2265_v49 = vadd.f32 %v2240_v10, %v2158_v15  ;;  %v2247_v17 = vpop.f32.mrf.mxu1  ;;  %v2143_v42 = vpop.f32.mrf.mxu2 }
 0x3e2   : > { %v2031_v36 = vpop.f32.mrf.mxu3 }
 0x3e7   : > { %10597 = vmatmul.msk.bf16.gmra.mxu3 %vm1585_vm6, %v16454_v34  ;;  %v1803_v34 = vadd.f32 %v1787_v32, %v1694_v59  ;;  %v1798_v32 = vadd.f32 %v16512_v46, %v1681_v30 }
 0x3e9   : > { %v1914_v51 = vadd.f32 %v1898_v54, %v1803_v34  ;;  %v2472_v54 = vpop.f32.mrf.mxu0  ;;  %v1909_v6 = vadd.f32 %v16514_v56, %v1798_v32 }
 0x3ea   : > { %v2034_v37 = vpop.f32.mrf.mxu3 }
 0x3eb   : > { %v2056_v43 = vadd.f32 %v2034_v37, %v1910_v58  ;;  %v2055_v45 = vadd.f32 %v2031_v36, %v1909_v6  ;;  %v1686_v37 = vadd.f32 %v16528_v47, %v16494_v31 }
 0x3ed   : > { %v2160_v53 = vadd.f32 %v2138_v21, %v2056_v43  ;;  %v2159_v23 = vadd.f32 %v2135_v5, %v2055_v45  ;;  %v16580_v21 = vld [vmem:[#allocation10] ss:$0 sm:$0xff]  ;;  %v1800_v46 = vadd.f32 %v16520_v48, %v1686_v37 }
 0x3ef   : > { %v2267_v38 = vadd.f32 %v2245_v24, %v2160_v53  ;;  %v2266_v60 = vadd.f32 %v2242_v29, %v2159_v23  ;;  %v1911_v36 = vadd.f32 %v16524_v2, %v1800_v46  ;;  %v1691_v2 = vadd.f32 %v16536_v9, %v16500_v19 }
 0x3f1   : > { %v2475_v58 = vpop.f32.mrf.mxu0  ;;  %v1802_v30 = vadd.f32 %v16530_v8, %v1691_v2 }
 0x3f2   : > { %v2036_v40 = vpop.f32.mrf.mxu3 }
 0x3f3   : > { %v2057_v31 = vadd.f32 %v2036_v40, %v1911_v36 }
 0x3f5   : > { %v2161_v34 = vadd.f32 %v2140_v3, %v2057_v31 }
 0x3f7   : > { %v2268_v40 = vadd.f32 %v2247_v17, %v2161_v34 }
 0x3f9   : > { %v2477_v55 = vpop.f32.mrf.mxu0 }
 0x3fa   : > { %v2039_v25 = vpop.f32.mrf.mxu3 }
 0x3fb   : > { %v16560_v50 = vadd.f32 %v2039_v25, %v1912_v14 }
 0x3fd   : > { %v2162_v15 = vadd.f32 %v2143_v42, %v16560_v50 }
 0x402   : > { %v16563_v52 = vpop.f32.mrf.mxu3 }
 0x40a   : > { %v2044_v63 = vpop.f32.mrf.mxu3 }
 0x40b   : > { %v16565_v62 = vadd.f32 %v2044_v63, %v1914_v51  ;;  %v2250_v63 = vpop.f32.mrf.mxu1 }
 0x412   : > { %v16568_v27 = vpop.f32.mrf.mxu3 }
 0x413   : > { %v2252_v9 = vpop.f32.mrf.mxu1 }
 0x41a   : > { %v2049_v7 = vpop.f32.mrf.mxu3 }
 0x41b   : > { %v16570_v35 = vadd.f32 %v2049_v7, %v1916_v57 }
 0x422   : > { %v16574_v39 = vpop.f32.mrf.mxu3 }
 0x42a   : > { %v2366_v61 = vpop.f32.mrf.mxu3 }
 0x42b   : > { %v2391_v12 = vadd.f32 %v2366_v61, %v2265_v49  ;;  %v1913_v61 = vadd.f32 %v16534_v11, %v1802_v30  ;;  %v1696_v11 = vadd.f32 %v16544_v41, %v16506_v33 }
 0x42d   : > { %v2495_v43 = vadd.f32 %v2470_v22, %v2391_v12  ;;  %v2480_v22 = vpop.f32.mrf.mxu0  ;;  %v2059_v12 = vadd.f32 %v16563_v52, %v1913_v61  ;;  %v1804_v31 = vadd.f32 %v16540_v18, %v1696_v11 }
 0x42f   : > { %v2509_v28 = vadd.f32 %v16580_v21, %v2495_v43  ;;  %v1915_v34 = vadd.f32 %v16542_v4, %v1804_v31 }
 0x431   : > { %v2519_v5 = vmax.f32 %v2509_v28, 0.0  ;;  %v2061_v2 = vadd.f32 %v16568_v27, %v1915_v34 }
 0x432   : > { %v2368_v53 = vpop.f32.mrf.mxu3 }
 0x433   : > { %v2392_v56 = vadd.f32 %v2368_v53, %v2266_v60  ;;  %v2538_v25 = vrot.slane %v2519_v5, 1 }
 0x435   : > { %v2496_v10 = vadd.f32 %v2472_v54, %v2392_v56  ;;  %v2145_v54 = vpop.f32.mrf.mxu2  ;;  %v2482_v3 = vpop.f32.mrf.mxu0 }
 0x436   : > { %v2163_v60 = vadd.f32 %v2145_v54, %v2059_v12 }
 0x437   : > { %v2510_v24 = vadd.f32 %v16580_v21, %v2496_v10 }
 0x438   : > { %v2270_v36 = vadd.f32 %v2252_v9, %v2163_v60 }
 0x439   : > { %v2520_v47 = vmax.f32 %v2510_v24, 0.0 }
 0x43a   : > { %v2371_v14 = vpop.f32.mrf.mxu3 }
 0x43b   : > { %v2539_v29 = vrot.slane %v2520_v47, 1  ;;  %v2393_v59 = vadd.f32 %v2371_v14, %v2267_v38 }
 0x43d   : > { %v2497_v48 = vadd.f32 %v2475_v58, %v2393_v59  ;;  %v2540_v51 = vsel %vm1094_vm3, %v2538_v25, %v2539_v29  ;;  %v2269_v58 = vadd.f32 %v2250_v63, %v2162_v15  ;;  %v2148_v46 = vpop.f32.mrf.mxu2  ;;  %v1701_v15 = vadd.f32 %v16552_v26, %v16516_v1 }
 0x43e   : > { %v16587_v20 = vmax.f32 %v2519_v5, %v2540_v51  ;;  %v2255_v5 = vpop.f32.mrf.mxu1  ;;  %v2164_v25 = vadd.f32 %v2148_v46, %v16565_v62 }
 0x43f   : > { %v2511_v44 = vadd.f32 %v16580_v21, %v2497_v48 }
 0x441   : > { %v2521_v57 = vmax.f32 %v2511_v44, 0.0  ;;  %v2271_v44 = vadd.f32 %v2255_v5, %v2164_v25 }
 0x442   : > { %v2373_v7 = vpop.f32.mrf.mxu3 }
 0x443   : > { %v2541_v32 = vrot.slane %v2521_v57, 1  ;;  %v2394_v38 = vadd.f32 %v2373_v7, %v2268_v40 }
 0x445   : > { %v2498_v6 = vadd.f32 %v2477_v55, %v2394_v38  ;;  %v2542_v45 = vsel %vm1094_vm3, %v2539_v29, %v2541_v32  ;;  %v2485_v29 = vpop.f32.mrf.mxu0  ;;  %v2150_v51 = vpop.f32.mrf.mxu2 }
 0x446   : > { %v2565_v49 = vmax.f32 %v2520_v47, %v2542_v45  ;;  %v2257_v7 = vpop.f32.mrf.mxu1  ;;  %v2165_v30 = vadd.f32 %v2150_v51, %v2061_v2 }
 0x447   : > { %v2512_v19 = vadd.f32 %v16580_v21, %v2498_v6 }
 0x448   : > { %v2589_v17 = vrot.slane %v2565_v49, 2 }
 0x449   : > { %v2522_v23 = vmax.f32 %v2512_v19, 0.0  ;;  %v2272_v19 = vadd.f32 %v2257_v7, %v2165_v30 }
 0x44a   : > { %v2376_v37 = vpop.f32.mrf.mxu3 }
 0x44b   : > { %v2543_v8 = vrot.slane %v2522_v23, 1  ;;  %v2395_v43 = vadd.f32 %v2376_v37, %v2269_v58 }
 0x44d   : > { %v2499_v53 = vadd.f32 %v2480_v22, %v2395_v43  ;;  %v2544_v50 = vsel %vm1094_vm3, %v2541_v32, %v2543_v8  ;;  %v2487_v6 = vpop.f32.mrf.mxu0  ;;  %v2153_v9 = vpop.f32.mrf.mxu2 }
 0x44e   : > { %v16599_v28 = vmax.f32 %v2521_v57, %v2544_v50  ;;  %v2166_v43 = vadd.f32 %v2153_v9, %v16570_v35  ;;  %v2260_v26 = vpop.f32.mrf.mxu1 }
 0x44f   : > { %v2513_v56 = vadd.f32 %v16580_v21, %v2499_v53 }
 0x450   : > { %v2590_v52 = vrot.slane %v16599_v28, 2 }
 0x451   : > { %v2523_v10 = vmax.f32 %v2513_v56, 0.0 }
 0x452   : > { %v2378_v24 = vpop.f32.mrf.mxu3  ;;  %v2591_v55 = vsel %vm937_vm1, %v2589_v17, %v2590_v52 }
 0x453   : > { %v2545_v47 = vrot.slane %v2523_v10, 1  ;;  %v2396_v42 = vadd.f32 %v2378_v24, %v2270_v36  ;;  %v2615_v14 = vmax.f32 %v16587_v20, %v2591_v55 }
 0x455   : > { %v2500_v33 = vadd.f32 %v2482_v3, %v2396_v42  ;;  %v2546_v41 = vsel %vm1094_vm3, %v2543_v8, %v2545_v47  ;;  %v2155_v5 = vpop.f32.mrf.mxu2 }
 0x456   : > { %v2567_v59 = vmax.f32 %v2522_v23, %v2546_v41  ;;  %v1806_v23 = vadd.f32 %v16548_v13, %v1701_v15  ;;  %v2273_v13 = vadd.f32 %v2260_v26, %v2166_v43  ;;  %v14243_v43 = vld [vmem:[#allocation13 + $0x74] sm:$0xf]  ;;  %v10744_v26 = vld [vmem:[#allocation13 + $0x60] sm:$0xf] }
 0x457   : > { %v2514_v48 = vadd.f32 %v16580_v21, %v2500_v33 }
 0x458   : > { %v2592_v63 = vrot.slane %v2567_v59, 2  ;;  %v1917_v53 = vadd.f32 %v16550_v16, %v1806_v23 }
 0x459   : > { %v2524_v18 = vmax.f32 %v2514_v48, 0.0 }
 0x45a   : > { %v2381_v57 = vpop.f32.mrf.mxu3  ;;  %v2593_v20 = vsel %vm937_vm1, %v2590_v52, %v2592_v63  ;;  %v2063_v11 = vadd.f32 %v16574_v39, %v1917_v53  ;;  %v2490_v52 = vpop.f32.mrf.mxu0 }
 0x45b   : > { %v2547_v40 = vrot.slane %v2524_v18, 1  ;;  %v2397_v62 = vadd.f32 %v2381_v57, %v2271_v44  ;;  %v2616_v22 = vmax.f32 %v2565_v49, %v2593_v20 }
 0x45c   : > { %v2167_v24 = vadd.f32 %v2155_v5, %v2063_v11  ;;  %v14237_v5 = vld [vmem:[#allocation13 + $0x44] sm:$0xf] }
 0x45d   : > { %v2501_v32 = vadd.f32 %v2485_v29, %v2397_v62  ;;  %v2548_v38 = vsel %vm1094_vm3, %v2545_v47, %v2547_v40  ;;  %v16615_v4 = vpack.c.bf16 %v2616_v22, %v2615_v14  ;;  %v2262_v14 = vpop.f32.mrf.mxu1 }
 0x45e   : > { %v2568_v54 = vmax.f32 %v2523_v10, %v2548_v38  ;;  %v2274_v33 = vadd.f32 %v2262_v14, %v2167_v24  ;;  %v10730_v24 = vld [vmem:[#allocation13 + $0x48] sm:$0xf0] }
 0x45f   : > { %v2515_v27 = vadd.f32 %v16580_v21, %v2501_v32 }
 0x460   : > { %v2594_v45 = vrot.slane %v2568_v54, 2 }
 0x461   : > { %v2525_v61 = vmax.f32 %v2515_v27, 0.0 }
 0x462   : > { %v2383_v12 = vpop.f32.mrf.mxu3  ;;  %v2595_v49 = vsel %vm937_vm1, %v2592_v63, %v2594_v45 }
 0x463   : > { %v2549_v58 = vrot.slane %v2525_v61, 1  ;;  %v2398_v37 = vadd.f32 %v2383_v12, %v2272_v19  ;;  %v2617_v8 = vmax.f32 %v16599_v28, %v2595_v49 }
 0x465   : > { %v2502_v3 = vadd.f32 %v2487_v6, %v2398_v37  ;;  %v2550_v1 = vsel %vm1094_vm3, %v2547_v40, %v2549_v58  ;;  %v14227_v37 = vld [vmem:[#allocation11] sm:$0xff] }
 0x466   : > { %v2569_v60 = vmax.f32 %v2524_v18, %v2550_v1  ;;  %v10754_v1 = vld [vmem:[#allocation13 + $0x78] sm:$0xf0] }
 0x467   : > { %v2516_v50 = vadd.f32 %v16580_v21, %v2502_v3  ;;  %v10757_v53 = vor.u32 %v14243_v43, %v10754_v1  ;;  %v14256_v1 = vld [vmem:[#allocation13 + $0xd4] sm:$0xf0] }
 0x468   : > { %v2596_v46 = vrot.slane %v2569_v60, 2 }
 0x469   : > { %v2526_v56 = vmax.f32 %v2516_v50, 0.0  ;;  %v14241_v50 = vld [vmem:[#allocation13 + $0x64] sm:$0xf]  ;;  %2969 = vmatpush.bf16.msra.mxu0 %v10757_v53  ;;  %v14270_v53 = vld [vmem:[#allocation13 + $0x144] sm:$0xf0] }
 0x46a   : > { %v2386_v17 = vpop.f32.mrf.mxu3  ;;  %v2597_v28 = vsel %vm937_vm1, %v2594_v45, %v2596_v46 }
 0x46b   : > { %v2551_v10 = vrot.slane %v2526_v56, 1  ;;  %v2399_v35 = vadd.f32 %v2386_v17, %v2273_v13  ;;  %v2618_v36 = vmax.f32 %v2567_v59, %v2597_v28  ;;  %v2492_v59 = vpop.f32.mrf.mxu0  ;;  %v10736_v13 = vld [vmem:[#allocation13 + $0x50] sm:$0xf]  ;;  %v10738_v17 = vld [vmem:[#allocation13 + $0x58] sm:$0xf0] }
 0x46d   : > { %v2503_v55 = vadd.f32 %v2490_v52, %v2399_v35  ;;  %v2552_v31 = vsel %vm1094_vm3, %v2549_v58, %v2551_v10  ;;  %v2630_v16 = vpack.c.bf16 %v2618_v36, %v2617_v8  ;;  %v14244_v8 = vld [vmem:[#allocation13 + $0x74] sm:$0xf0]  ;;  %v10728_v35 = vld [vmem:[#allocation13 + $0x40] sm:$0xf]  ;;  %v14238_v36 = vld [vmem:[#allocation13 + $0x44] sm:$0xf0] }
 0x46e   : > { %v2570_v47 = vmax.f32 %v2525_v61, %v2552_v31  ;;  %v14240_v52 = vld [vmem:[#allocation13 + $0x54] sm:$0xf0] }
 0x46f   : > { %v2517_v42 = vadd.f32 %v16580_v21, %v2503_v55  ;;  %v10737_v28 = vor.u32 %v14240_v52, %v10736_v13  ;;  %v10729_v55 = vor.u32 %v14238_v36, %v10728_v35  ;;  %v14228_v31 = vld [vmem:[#allocation11 + $0x8] sm:$0xff]  ;;  %v10882_v52 = vld [vmem:[#allocation13 + $0x1f8] sm:$0xf0]  ;;  %v10784_v35 = vld [vmem:[#allocation13 + $0x130] sm:$0xf] }
 0x470   : > { %v2598_v39 = vrot.slane %v2570_v47, 2  ;;  %v14268_v36 = vld [vmem:[#allocation13 + $0x134] sm:$0xf0] }
 0x471   : > { %v2527_v25 = vmax.f32 %v2517_v42, 0.0 }
 0x472   : > { %v2388_v41 = vpop.f32.mrf.mxu3  ;;  %v2599_v29 = vsel %vm937_vm1, %v2596_v46, %v2598_v39  ;;  %v10746_v46 = vld [vmem:[#allocation13 + $0x68] sm:$0xf0] }
 0x473   : > { %v2553_v34 = vrot.slane %v2527_v25, 1  ;;  %v2400_v48 = vadd.f32 %v2388_v41, %v2274_v33  ;;  %v2619_v51 = vmax.f32 %v2568_v54, %v2599_v29  ;;  %v2659_v54 = vsel %vm2657_vm10, 4294967295, %v15877_v0  ;;  %v10752_v0 = vld [vmem:[#allocation13 + $0x70] sm:$0xf]  ;;  %v14235_v33 = vld [vmem:[#allocation13 + $0x34] sm:$0xf] }
 0x474   : > { %v2660_v45 = vsel %vm2658_vm11, %v2659_v54, 0  ;;  %v10753_v3 = vor.u32 %v14244_v8, %v10752_v0  ;;  %v10722_v29 = vld [vmem:[#allocation13 + $0x38] sm:$0xf0]  ;;  %v14232_v54 = vld [vmem:[#allocation13 + $0x14] sm:$0xf0] }
 0x475   : > { %v2504_v63 = vadd.f32 %v2492_v59, %v2400_v48  ;;  %v2554_v2 = vsel %vm1094_vm3, %v2551_v10, %v2553_v34  ;;  %v2572_v15 = vmax.f32 %v2527_v25, %v2553_v34  ;;  %v14276_v48 = vld [vmem:[#allocation13 + $0x174] sm:$0xf0]  ;;  %v10698_v0 = vld [vmem:[#allocation13 + $0x8] sm:$0xf0] }
 0x476   : > { %v2571_v18 = vmax.f32 %v2526_v56, %v2554_v2  ;;  %2951 = vmatpush.bf16.msra.mxu3 %v10753_v3  ;;  %v10749_v56 = vor.u32 %v14241_v50, %v10746_v46  ;;  %v14234_v2 = vld [vmem:[#allocation13 + $0x24] sm:$0xf0]  ;;  %v10672_v3 = vld [vmem:[#allocation13 + $0xd0] sm:$0xf] }
 0x477   : > { %v2518_v44 = vadd.f32 %v16580_v21, %v2504_v63  ;;  %v10712_v63 = vld [vmem:[#allocation13 + $0x20] sm:$0xf]  ;;  %v10880_v46 = vld [vmem:[#allocation13 + $0x1f0] sm:$0xf] }
 0x478   : > { %v2600_v57 = vrot.slane %v2571_v18, 2  ;;  %2970 = vmatpush.bf16.msra.mxu0 %v10749_v56  ;;  %v14291_v56 = vld [vmem:[#allocation13 + $0x1f4] sm:$0xf] }
 0x479   : > { %v2528_v20 = vmax.f32 %v2518_v44, 0.0  ;;  %v10713_v44 = vor.u32 %v14234_v2, %v10712_v63  ;;  %v10866_v63 = vld [vmem:[#allocation13 + $0x1d8] sm:$0xf0]  ;;  %v10648_v2 = vld [vmem:[#allocation13 + $0xa0] sm:$0xf] }
 0x47a   : > { %v2601_v40 = vsel %vm937_vm1, %v2598_v39, %v2600_v57  ;;  %v10720_v39 = vld [vmem:[#allocation13 + $0x30] sm:$0xf] }
 0x47b   : > { %v2574_v62 = vrot.slane %v2528_v20, 1  ;;  %v2620_v22 = vmax.f32 %v2569_v60, %v2601_v40  ;;  %v14242_v60 = vld [vmem:[#allocation13 + $0x64] sm:$0xf0]  ;;  %v14260_v40 = vld [vmem:[#allocation13 + $0xf4] sm:$0xf0] }
 0x47c   : > { %v10745_v11 = vor.u32 %v14242_v60, %v10744_v26  ;;  %v10792_v26 = vld [vmem:[#allocation13 + $0x140] sm:$0xf]  ;;  %v10673_v60 = vor.u32 %v14256_v1, %v10672_v3  ;;  %v10944_v3 = vld [vmem:[#allocation13 + $0x270] sm:$0xf]  ;;  %v14308_v1 = vld [vmem:[#allocation13 + $0x274] sm:$0xf0] }
 0x47d   : > { %v2575_v7 = vsel %vm1094_vm3, %v2553_v34, %v2574_v62  ;;  %v2579_v30 = vmax.f32 %v2528_v20, %v2574_v62  ;;  %v2631_v32 = vpack.c.bf16 %v2620_v22, %v2619_v51  ;;  %v10816_v34 = vld [vmem:[#allocation13 + $0x170] sm:$0xf]  ;;  %v10725_v51 = vor.u32 %v14235_v33, %v10722_v29 }
 0x47e   : > { %v2578_v38 = vmax.f32 %v2527_v25, %v2575_v7  ;;  %2952 = vmatpush.bf16.msra.mxu3 %v10745_v11  ;;  %v14236_v25 = vld [vmem:[#allocation13 + $0x34] sm:$0xf0]  ;;  %v10817_v59 = vor.u32 %v14276_v48, %v10816_v34  ;;  %v10688_v20 = vld [vmem:[#allocation13 + $0xf0] sm:$0xf]  ;;  %v10808_v7 = vld [vmem:[#allocation13 + $0x160] sm:$0xf]  ;;  %v10793_v50 = vor.u32 %v14270_v53, %v10792_v26  ;;  %v10945_v26 = vor.u32 %v14308_v1, %v10944_v3 }
 0x47f   : > { %v2604_v27 = vrot.slane %v2579_v30, 2  ;;  %v10721_v41 = vor.u32 %v14236_v25, %v10720_v39  ;;  %v10689_v22 = vor.u32 %v14260_v40, %v10688_v20  ;;  %v14274_v30 = vld [vmem:[#allocation13 + $0x164] sm:$0xf0]  ;;  %v14292_v11 = vld [vmem:[#allocation13 + $0x1f4] sm:$0xf0] }
 0x480   : > { %v2602_v6 = vrot.slane %v2578_v38, 2  ;;  %v10704_v38 = vld [vmem:[#allocation13 + $0x10] sm:$0xf]  ;;  %v10881_v13 = vor.u32 %v14292_v11, %v10880_v46  ;;  %v14252_v39 = vld [vmem:[#allocation13 + $0xb4] sm:$0xf0] }
 0x481   : > { %v2623_v21 = vmax.f32 %v2572_v15, %v2604_v27  ;;  %2832 = vmatpush.bf16.msrb.mxu1 %v10689_v22  ;;  %v14231_v15 = vld [vmem:[#allocation13 + $0x14] sm:$0xf]  ;;  %v10776_v25 = vld [vmem:[#allocation13 + $0x120] sm:$0xf]  ;;  %v10864_v34 = vld [vmem:[#allocation13 + $0x1d0] sm:$0xf] }
 0x482   : > { %v2603_v61 = vsel %vm937_vm1, %v2600_v57, %v2602_v6  ;;  %v2605_v19 = vsel %vm937_vm1, %v2602_v6, %v2604_v27  ;;  %2953 = vmatpush.bf16.msra.mxu3 %v10737_v28  ;;  %v10714_v57 = vld [vmem:[#allocation13 + $0x28] sm:$0xf0]  ;;  %v10705_v27 = vor.u32 %v14232_v54, %v10704_v38  ;;  %v10706_v6 = vld [vmem:[#allocation13 + $0x18] sm:$0xf0]  ;;  %v10885_v28 = vor.u32 %v14291_v56, %v10882_v52  ;;  %v14288_v48 = vld [vmem:[#allocation13 + $0x1d4] sm:$0xf0] }
 0x483   : > { %v2633_v9 = vpack.c.bf16 %v2623_v21, %v2623_v21  ;;  %v2621_v12 = vmax.f32 %v2570_v47, %v2603_v61  ;;  %v2622_v49 = vmax.f32 %v2571_v18, %v2605_v19  ;;  %v2628_v47 = vld [vmem:[#allocation11 + $0x10] sm:$0x7]  ;;  %v14233_v18 = vld [vmem:[#allocation13 + $0x24] sm:$0xf]  ;;  %v10680_v21 = vld [vmem:[#allocation13 + $0xe0] sm:$0xf]  ;;  %v10709_v61 = vor.u32 %v14231_v15, %v10706_v6 }
 0x484   : > { %v2643_v42 = vunpack.c.l.b16 %v2628_v47  ;;  %v10717_v62 = vor.u32 %v14233_v18, %v10714_v57  ;;  %v14250_v18 = vld [vmem:[#allocation13 + $0xa4] sm:$0xf0]  ;;  %v10768_v20 = vld [vmem:[#allocation13 + $0x110] sm:$0xf]  ;;  %v14264_v40 = vld [vmem:[#allocation13 + $0x114] sm:$0xf0] }
 0x485   : > { %v2662_v23 = vand.u32 %v2660_v45, %v2633_v9  ;;  %v2632_v58 = vpack.c.bf16 %v2622_v49, %v2621_v12  ;;  %v14258_v45 = vld [vmem:[#allocation13 + $0xe4] sm:$0xf0]  ;;  %v10800_v9 = vld [vmem:[#allocation13 + $0x150] sm:$0xf]  ;;  %v14272_v12 = vld [vmem:[#allocation13 + $0x154] sm:$0xf0]  ;;  %v10649_v57 = vor.u32 %v14250_v18, %v10648_v2  ;;  %v10769_v22 = vor.u32 %v14264_v40, %v10768_v20 }
 0x486   : > { %2954 = vmatpush.bf16.msra.mxu3 %v10729_v55  ;;  %v2646_v14 = vpack.c.b16 %v2643_v42, %v2643_v42  ;;  %v10681_v19 = vor.u32 %v14258_v45, %v10680_v21  ;;  %v10696_v49 = vld [vmem:[#allocation13] sm:$0xf]  ;;  %v14290_v55 = vld [vmem:[#allocation13 + $0x1e4] sm:$0xf0]  ;;  %v10640_v15 = vld [vmem:[#allocation13 + $0x90] sm:$0xf] }
 0x487   : > { %2667 = vmatpush.bf16.msrb.mxu2 %v2662_v23  ;;  %v10801_v23 = vor.u32 %v14272_v12, %v10800_v9  ;;  %v10760_v6 = vld [vmem:[#allocation13 + $0x100] sm:$0xf]  ;;  %v10848_v9 = vld [vmem:[#allocation13 + $0x1b0] sm:$0xf]  ;;  %v14284_v12 = vld [vmem:[#allocation13 + $0x1b4] sm:$0xf0] }
 0x488   : > { %2833 = vmatpush.bf16.msrb.mxu1 %v10681_v19  ;;  %v14282_v53 = vld [vmem:[#allocation13 + $0x1a4] sm:$0xf0]  ;;  %v10842_v56 = vld [vmem:[#allocation13 + $0x1a8] sm:$0xf0]  ;;  %v10690_v52 = vld [vmem:[#allocation13 + $0xf8] sm:$0xf0] }
 0x489   : > { %v14277_v18 = vld [vmem:[#allocation13 + $0x184] sm:$0xf]  ;;  %v10674_v40 = vld [vmem:[#allocation13 + $0xd8] sm:$0xf0]  ;;  %v11002_v3 = vld [vmem:[#allocation13 + $0x2e8] sm:$0xf0] }
 0x48a   : > { %2955 = vmatpush.bf16.msra.mxu3 %v10721_v41  ;;  %v14266_v41 = vld [vmem:[#allocation13 + $0x124] sm:$0xf0]  ;;  %v14251_v1 = vld [vmem:[#allocation13 + $0xb4] sm:$0xf] }
 0x48b   : > { %2668 = vmatpush.bf16.msrb.mxu2 %v2632_v58  ;;  %v14230_v58 = vld [vmem:[#allocation13 + $0x4] sm:$0xf0]  ;;  %v10777_v29 = vor.u32 %v14266_v41, %v10776_v25  ;;  %v14257_v25 = vld [vmem:[#allocation13 + $0xe4] sm:$0xf]  ;;  %v10928_v41 = vld [vmem:[#allocation13 + $0x250] sm:$0xf] }
 0x48c   : > { %v10697_v8 = vor.u32 %v14230_v58, %v10696_v49  ;;  %2834 = vmatpush.bf16.msrb.mxu1 %v10673_v60  ;;  %v14283_v49 = vld [vmem:[#allocation13 + $0x1b4] sm:$0xf]  ;;  %v10850_v58 = vld [vmem:[#allocation13 + $0x1b8] sm:$0xf0]  ;;  %v10840_v60 = vld [vmem:[#allocation13 + $0x1a0] sm:$0xf] }
 0x48d   : > { %v10841_v11 = vor.u32 %v14282_v53, %v10840_v60 }
 0x48e   : > { %2956 = vmatpush.bf16.msra.mxu3 %v10713_v44 }
 0x48f   : > { %2669 = vmatpush.bf16.msrb.mxu2 %v2631_v32  ;;  %v10809_v32 = vor.u32 %v14274_v30, %v10808_v7  ;;  %v14286_v7 = vld [vmem:[#allocation13 + $0x1c4] sm:$0xf0]  ;;  %v14285_v30 = vld [vmem:[#allocation13 + $0x1c4] sm:$0xf] }
 0x492   : > { %2957 = vmatpush.bf16.msra.mxu3 %v10705_v27  ;;  %v14248_v27 = vld [vmem:[#allocation13 + $0x94] sm:$0xf0] }
 0x493   : > { %2670 = vmatpush.bf16.msrb.mxu2 %v2630_v16  ;;  %v10733_v16 = vor.u32 %v14237_v5, %v10730_v24  ;;  %v10872_v5 = vld [vmem:[#allocation13 + $0x1e0] sm:$0xf]  ;;  %v10785_v24 = vor.u32 %v14268_v36, %v10784_v35  ;;  %v10641_v45 = vor.u32 %v14248_v27, %v10640_v15  ;;  %v14306_v36 = vld [vmem:[#allocation13 + $0x264] sm:$0xf0]  ;;  %v14323_v15 = vld [vmem:[#allocation13 + $0x2f4] sm:$0xf] }
 0x494   : > { %v10873_v47 = vor.u32 %v14290_v55, %v10872_v5  ;;  %v10936_v35 = vld [vmem:[#allocation13 + $0x260] sm:$0xf]  ;;  %v10832_v5 = vld [vmem:[#allocation13 + $0x190] sm:$0xf]  ;;  %v14280_v55 = vld [vmem:[#allocation13 + $0x194] sm:$0xf0] }
 0x496   : > { %2958 = vmatpush.bf16.msra.mxu3 %v10697_v8  ;;  %v10853_v8 = vor.u32 %v14283_v49, %v10850_v58  ;;  %v10912_v49 = vld [vmem:[#allocation13 + $0x230] sm:$0xf] }
 0x497   : > { %2671 = vmatpush.bf16.msrb.mxu2 %v16615_v4  ;;  %v14239_v4 = vld [vmem:[#allocation13 + $0x54] sm:$0xf] }
 0x498   : > { %v10741_v10 = vor.u32 %v14239_v4, %v10738_v17  ;;  %v10664_v4 = vld [vmem:[#allocation13 + $0xc0] sm:$0xf]  ;;  %v14254_v17 = vld [vmem:[#allocation13 + $0xc4] sm:$0xf0] }
 0x49a   : > { %10627 = vmatmul.msk.bf16.vlgmr.msrb.gmra.mxu2 %vm2647_vm12, %v14227_v37  ;;  %2971 = vmatpush.bf16.msra.mxu0 %v10741_v10  ;;  %v14229_v37 = vld [vmem:[#allocation13 + $0x4] sm:$0xf]  ;;  %v10665_v10 = vor.u32 %v14254_v17, %v10664_v4 }
 0x49b   : > { %3089 = vmatpush.bf16.msra.mxu2 %v10817_v59  ;;  %v10701_v43 = vor.u32 %v14229_v37, %v10698_v0  ;;  %3233 = vmatpush.bf16.msrb.mxu3 %v10881_v13  ;;  %v10865_v59 = vor.u32 %v14288_v48, %v10864_v34  ;;  %v10632_v37 = vld [vmem:[#allocation13 + $0x80] sm:$0xf]  ;;  %v14246_v0 = vld [vmem:[#allocation13 + $0x84] sm:$0xf0]  ;;  %v14259_v13 = vld [vmem:[#allocation13 + $0xf4] sm:$0xf] }
 0x49c   : > { %2835 = vmatpush.bf16.msrb.mxu1 %v10665_v10  ;;  %v14304_v34 = vld [vmem:[#allocation13 + $0x254] sm:$0xf0]  ;;  %v10824_v48 = vld [vmem:[#allocation13 + $0x180] sm:$0xf] }
 0x49e   : > { %2972 = vmatpush.bf16.msra.mxu0 %v10733_v16  ;;  %v10874_v16 = vld [vmem:[#allocation13 + $0x1e8] sm:$0xf0] }
 0x49f   : > { %3090 = vmatpush.bf16.msra.mxu2 %v10809_v32  ;;  %3234 = vmatpush.bf16.msrb.mxu3 %v10873_v47  ;;  %v10858_v32 = vld [vmem:[#allocation13 + $0x1c8] sm:$0xf0] }
 0x4a0   : > { %v10861_v54 = vor.u32 %v14285_v30, %v10858_v32  ;;  %v14302_v30 = vld [vmem:[#allocation13 + $0x244] sm:$0xf0]  ;;  %v11008_v32 = vld [vmem:[#allocation13 + $0x2f0] sm:$0xf] }
 0x4a2   : > { %2973 = vmatpush.bf16.msra.mxu0 %v10725_v51  ;;  %v14287_v51 = vld [vmem:[#allocation13 + $0x1d4] sm:$0xf] }
 0x4a3   : > { %3091 = vmatpush.bf16.msra.mxu2 %v10801_v23  ;;  %v10869_v44 = vor.u32 %v14287_v51, %v10866_v63  ;;  %3235 = vmatpush.bf16.msrb.mxu3 %v10865_v59  ;;  %v10849_v23 = vor.u32 %v14284_v12, %v10848_v9  ;;  %v14278_v51 = vld [vmem:[#allocation13 + $0x184] sm:$0xf0]  ;;  %v10929_v63 = vor.u32 %v14304_v34, %v10928_v41  ;;  %v10642_v34 = vld [vmem:[#allocation13 + $0x98] sm:$0xf0] }
 0x4a4   : > { %v10825_v2 = vor.u32 %v14278_v51, %v10824_v48 }
 0x4a6   : > { %2974 = vmatpush.bf16.msra.mxu0 %v10717_v62  ;;  %v10856_v62 = vld [vmem:[#allocation13 + $0x1c0] sm:$0xf] }
 0x4a7   : > { %3092 = vmatpush.bf16.msra.mxu2 %v10793_v50  ;;  %v10857_v38 = vor.u32 %v14286_v7, %v10856_v62  ;;  %v14281_v50 = vld [vmem:[#allocation13 + $0x1a4] sm:$0xf] }
 0x4a8   : > { %v10845_v17 = vor.u32 %v14281_v50, %v10842_v56  ;;  %v10992_v56 = vld [vmem:[#allocation13 + $0x2d0] sm:$0xf] }
 0x4a9   : > { %3236 = vmatpush.bf16.msrb.mxu3 %v10857_v38 }
 0x4aa   : > { %10628 = vmatmul.msk.bf16.gmra.mxu2 %vm2647_vm12, %v14228_v31  ;;  %2975 = vmatpush.bf16.msra.mxu0 %v10709_v61  ;;  %v14289_v31 = vld [vmem:[#allocation13 + $0x1e4] sm:$0xf]  ;;  %v14262_v61 = vld [vmem:[#allocation13 + $0x104] sm:$0xf0] }
 0x4ab   : > { %v10877_v42 = vor.u32 %v14289_v31, %v10874_v16  ;;  %3093 = vmatpush.bf16.msra.mxu2 %v10785_v24  ;;  %v10761_v19 = vor.u32 %v14262_v61, %v10760_v6  ;;  %v10937_v24 = vor.u32 %v14306_v36, %v10936_v35  ;;  %v14279_v31 = vld [vmem:[#allocation13 + $0x194] sm:$0xf]  ;;  %v10834_v16 = vld [vmem:[#allocation13 + $0x198] sm:$0xf0]  ;;  %v10666_v61 = vld [vmem:[#allocation13 + $0xc8] sm:$0xf0] }
 0x4ac   : > { %v14249_v35 = vld [vmem:[#allocation13 + $0xa4] sm:$0xf]  ;;  %v10650_v36 = vld [vmem:[#allocation13 + $0xa8] sm:$0xf0] }
 0x4ad   : > { %3237 = vmatpush.bf16.msrb.mxu3 %v10849_v23  ;;  %v14300_v23 = vld [vmem:[#allocation13 + $0x234] sm:$0xf0] }
 0x4ae   : > { %2976 = vmatpush.bf16.msra.mxu0 %v10701_v43  ;;  %v10633_v43 = vor.u32 %v14246_v0, %v10632_v37  ;;  %v10913_v58 = vor.u32 %v14300_v23, %v10912_v49  ;;  %v11000_v37 = vld [vmem:[#allocation13 + $0x2e0] sm:$0xf]  ;;  %v14322_v0 = vld [vmem:[#allocation13 + $0x2e4] sm:$0xf0]  ;;  %v14245_v23 = vld [vmem:[#allocation13 + $0x84] sm:$0xf] }
 0x4af   : > { %3094 = vmatpush.bf16.msra.mxu2 %v10777_v29 }
 0x4b1   : > { %3238 = vmatpush.bf16.msrb.mxu3 %v10841_v11  ;;  %v14298_v11 = vld [vmem:[#allocation13 + $0x224] sm:$0xf0] }
 0x4b2   : > { %3251 = vmatpush.bf16.msrb.mxu0 %v10885_v28  ;;  %v10693_v28 = vor.u32 %v14259_v13, %v10690_v52  ;;  %v14320_v13 = vld [vmem:[#allocation13 + $0x2d4] sm:$0xf0]  ;;  %v14319_v52 = vld [vmem:[#allocation13 + $0x2d4] sm:$0xf] }
 0x4b3   : > { %3095 = vmatpush.bf16.msra.mxu2 %v10769_v22  ;;  %v10920_v22 = vld [vmem:[#allocation13 + $0x240] sm:$0xf] }
 0x4b4   : > { %v10921_v38 = vor.u32 %v14302_v30, %v10920_v22  ;;  %v10888_v30 = vld [vmem:[#allocation13 + $0x200] sm:$0xf] }
 0x4b6   : > { %3252 = vmatpush.bf16.msrb.mxu0 %v10877_v42 }
 0x4b7   : > { %3096 = vmatpush.bf16.msra.mxu2 %v10761_v19 }
 0x4ba   : > { %10629 = vmatmul.msk.bf16.gmra.mxu2 %vm2647_vm12, %v2646_v14  ;;  %v10656_v14 = vld [vmem:[#allocation13 + $0xb0] sm:$0xf]  ;;  %3253 = vmatpush.bf16.msrb.mxu0 %v10869_v44  ;;  %v10826_v44 = vld [vmem:[#allocation13 + $0x188] sm:$0xf0] }
 0x4bb   : > { %v10657_v33 = vor.u32 %v14252_v39, %v10656_v14  ;;  %3382 = vmatpush.bf16.msrb.mxu2 %v10945_v26  ;;  %v10833_v14 = vor.u32 %v14280_v55, %v10832_v5  ;;  %v10837_v39 = vor.u32 %v14279_v31, %v10834_v16  ;;  %v10829_v20 = vor.u32 %v14277_v18, %v10826_v44  ;;  %v10658_v26 = vld [vmem:[#allocation13 + $0xb8] sm:$0xf0]  ;;  %v10896_v5 = vld [vmem:[#allocation13 + $0x210] sm:$0xf]  ;;  %v14296_v31 = vld [vmem:[#allocation13 + $0x214] sm:$0xf0] }
 0x4bc   : > { %v10661_v50 = vor.u32 %v14251_v1, %v10658_v26  ;;  %v10984_v16 = vld [vmem:[#allocation13 + $0x2c0] sm:$0xf]  ;;  %v10897_v48 = vor.u32 %v14296_v31, %v10896_v5  ;;  %v11072_v26 = vld [vmem:[#allocation13 + $0x370] sm:$0xf]  ;;  %v14338_v5 = vld [vmem:[#allocation13 + $0x364] sm:$0xf0] }
 0x4bd   : > { %2836 = vmatpush.bf16.msrb.mxu1 %v10657_v33  ;;  %v10682_v33 = vld [vmem:[#allocation13 + $0xe8] sm:$0xf0]  ;;  %3239 = vmatpush.bf16.msrb.mxu3 %v10833_v14 }
 0x4be   : > { %3254 = vmatpush.bf16.msrb.mxu0 %v10861_v54  ;;  %v10685_v29 = vor.u32 %v14257_v25, %v10682_v33  ;;  %v14324_v54 = vld [vmem:[#allocation13 + $0x2f4] sm:$0xf0]  ;;  %v14317_v25 = vld [vmem:[#allocation13 + $0x2c4] sm:$0xf]  ;;  %v10986_v33 = vld [vmem:[#allocation13 + $0x2c8] sm:$0xf0] }
 0x4bf   : > { %3383 = vmatpush.bf16.msrb.mxu2 %v10937_v24  ;;  %v11009_v6 = vor.u32 %v14324_v54, %v11008_v32  ;;  %v10989_v18 = vor.u32 %v14317_v25, %v10986_v33  ;;  %v10976_v54 = vld [vmem:[#allocation13 + $0x2b0] sm:$0xf]  ;;  %v10962_v33 = vld [vmem:[#allocation13 + $0x298] sm:$0xf0] }
 0x4c1   : > { %2837 = vmatpush.bf16.msrb.mxu1 %v10649_v57  ;;  %v14255_v57 = vld [vmem:[#allocation13 + $0xd4] sm:$0xf]  ;;  %3240 = vmatpush.bf16.msrb.mxu3 %v10825_v2 }
 0x4c2   : > { %3255 = vmatpush.bf16.msrb.mxu0 %v10853_v8  ;;  %v10677_v62 = vor.u32 %v14255_v57, %v10674_v40  ;;  %v14321_v8 = vld [vmem:[#allocation13 + $0x2e4] sm:$0xf] }
 0x4c3   : > { %3384 = vmatpush.bf16.msrb.mxu2 %v10929_v63  ;;  %v11005_v53 = vor.u32 %v14321_v8, %v11002_v3 }
 0x4c5   : > { %2838 = vmatpush.bf16.msrb.mxu1 %v10641_v45  ;;  %v14253_v45 = vld [vmem:[#allocation13 + $0xc4] sm:$0xf] }
 0x4c6   : > { %3256 = vmatpush.bf16.msrb.mxu0 %v10845_v17  ;;  %v10669_v12 = vor.u32 %v14253_v45, %v10666_v61  ;;  %v14315_v61 = vld [vmem:[#allocation13 + $0x2b4] sm:$0xf] }
 0x4c7   : > { %3385 = vmatpush.bf16.msrb.mxu2 %v10921_v38  ;;  %v14294_v38 = vld [vmem:[#allocation13 + $0x204] sm:$0xf0] }
 0x4c9   : > { %2839 = vmatpush.bf16.msrb.mxu1 %v10633_v43  ;;  %v11001_v43 = vor.u32 %v14322_v0, %v11000_v37 }
 0x4ca   : > { %3257 = vmatpush.bf16.msrb.mxu0 %v10837_v39  ;;  %v10653_v39 = vor.u32 %v14249_v35, %v10650_v36  ;;  %v11064_v36 = vld [vmem:[#allocation13 + $0x360] sm:$0xf] }
 0x4cb   : > { %3386 = vmatpush.bf16.msrb.mxu2 %v10913_v58  ;;  %v10634_v58 = vld [vmem:[#allocation13 + $0x88] sm:$0xf0] }
 0x4cd   : > { %2850 = vmatpush.bf16.msra.mxu1 %v10693_v28 }
 0x4ce   : > { %3258 = vmatpush.bf16.msrb.mxu0 %v10829_v20 }
 0x4d1   : > { %2851 = vmatpush.bf16.msra.mxu1 %v10685_v29  ;;  %v14247_v29 = vld [vmem:[#allocation13 + $0x94] sm:$0xf] }
 0x4d2   : > { %v10645_v44 = vor.u32 %v14247_v29, %v10642_v34  ;;  %v14273_v29 = vld [vmem:[#allocation13 + $0x164] sm:$0xf]  ;;  %v10810_v34 = vld [vmem:[#allocation13 + $0x168] sm:$0xf0] }
 0x4d5   : > { %2852 = vmatpush.bf16.msra.mxu1 %v10677_v62 }
 0x4d9   : > { %2853 = vmatpush.bf16.msra.mxu1 %v10669_v12  ;;  %v10889_v12 = vor.u32 %v14294_v38, %v10888_v30  ;;  %v14310_v30 = vld [vmem:[#allocation13 + $0x284] sm:$0xf0]  ;;  %v10954_v38 = vld [vmem:[#allocation13 + $0x288] sm:$0xf0] }
 0x4dd   : > { %2854 = vmatpush.bf16.msra.mxu1 %v10661_v50 }
 0x4e1   : > { %2855 = vmatpush.bf16.msra.mxu1 %v10653_v39  ;;  %v14311_v39 = vld [vmem:[#allocation13 + $0x294] sm:$0xf] }
 0x4e5   : > { %2856 = vmatpush.bf16.msra.mxu1 %v10645_v44  ;;  %v11056_v44 = vld [vmem:[#allocation13 + $0x350] sm:$0xf] }
 0x51d   : > { %v2673_v21 = vpop.f32.mrf.mxu2 }
 0x51e   : > { %v2687_v46 = vpack.c.bf16 %v2673_v21, %v2673_v21  ;;  %v11010_v21 = vld [vmem:[#allocation13 + $0x2f8] sm:$0xf0] }
 0x51f   : > { %v11013_v9 = vor.u32 %v14323_v15, %v11010_v21  ;;  %v14316_v15 = vld [vmem:[#allocation13 + $0x2b4] sm:$0xf0] }
 0x520   : > { %v2729_v47 = vunpack.c.l.b16 %v2687_v46  ;;  %v10904_v46 = vld [vmem:[#allocation13 + $0x220] sm:$0xf]  ;;  %v10977_v49 = vor.u32 %v14316_v15, %v10976_v54  ;;  %v14271_v54 = vld [vmem:[#allocation13 + $0x154] sm:$0xf]  ;;  %v10802_v15 = vld [vmem:[#allocation13 + $0x158] sm:$0xf0] }
 0x521   : > { %v10905_v28 = vor.u32 %v14298_v11, %v10904_v46  ;;  %v10968_v46 = vld [vmem:[#allocation13 + $0x2a0] sm:$0xf]  ;;  %v14314_v11 = vld [vmem:[#allocation13 + $0x2a4] sm:$0xf0] }
 0x523   : > { %3387 = vmatpush.bf16.msrb.mxu2 %v10905_v28  ;;  %v10818_v28 = vld [vmem:[#allocation13 + $0x178] sm:$0xf0] }
 0x525   : > { %v2675_v4 = vpop.f32.mrf.mxu2 }
 0x526   : > { %v2688_v10 = vpack.c.bf16 %v2675_v4, %v2675_v4  ;;  %v10994_v4 = vld [vmem:[#allocation13 + $0x2d8] sm:$0xf0] }
 0x527   : > { %v10997_v55 = vor.u32 %v14319_v52, %v10994_v4  ;;  %3388 = vmatpush.bf16.msrb.mxu2 %v10897_v48  ;;  %v10969_v52 = vor.u32 %v14314_v11, %v10968_v46  ;;  %v10970_v4 = vld [vmem:[#allocation13 + $0x2a8] sm:$0xf0] }
 0x528   : > { %v16644_v42 = vunpack.c.l.b16 %v2688_v10  ;;  %v10993_v10 = vor.u32 %v14320_v13, %v10992_v56  ;;  %v14313_v56 = vld [vmem:[#allocation13 + $0x2a4] sm:$0xf] }
 0x52a   : > { %v16647_v59 = vpack.c.b16 %v16644_v42, %v2729_v47  ;;  %v14318_v47 = vld [vmem:[#allocation13 + $0x2c4] sm:$0xf0] }
 0x52b   : > { %v10985_v51 = vor.u32 %v14318_v47, %v10984_v16  ;;  %3389 = vmatpush.bf16.msrb.mxu2 %v10889_v12  ;;  %v11065_v16 = vor.u32 %v14338_v5, %v11064_v36  ;;  %v14312_v47 = vld [vmem:[#allocation13 + $0x294] sm:$0xf0] }
 0x52c   : > { %2959 = vmatmul.bf16.vlgmr.msra.gmra.mxu3 %v16647_v59  ;;  %2977 = vmatmul.bf16.vlgmr.msra.gmra.mxu0 %v16647_v59  ;;  %v2738_v19 = vshll.u32 %v16647_v59, 16  ;;  %v3004_v40 = vrot.slane %v16647_v59, 1  ;;  %v2736_v22 = vshrl.u32 %v16647_v59, 16 }
 0x52d   : > { %v2678_v7 = vpop.f32.mrf.mxu2  ;;  %3525 = vmatpush.bf16.msra.mxu3 %v11009_v6  ;;  %3543 = vmatpush.bf16.msra.mxu0 %v11013_v9  ;;  %v10978_v9 = vld [vmem:[#allocation13 + $0x2b8] sm:$0xf0] }
 0x52e   : > { %v2689_v27 = vpack.c.bf16 %v2678_v7, %v2678_v7  ;;  %v10981_v1 = vor.u32 %v14315_v61, %v10978_v9  ;;  %v3148_v61 = vrot.slane %v16647_v59, 3  ;;  %v10805_v9 = vor.u32 %v14271_v54, %v10802_v15  ;;  %v14349_v54 = vld [vmem:[#allocation13 + $0x3c4] sm:$0xf]  ;;  %v11114_v15 = vld [vmem:[#allocation13 + $0x3c8] sm:$0xf0] }
 0x52f   : > { %v14326_v59 = vld [vmem:[#allocation13 + $0x304] sm:$0xf0] }
 0x530   : > { %v2731_v60 = vunpack.c.l.b16 %v2689_v27 }
 0x531   : > { %3526 = vmatpush.bf16.msra.mxu3 %v11001_v43  ;;  %3544 = vmatpush.bf16.msra.mxu0 %v11005_v53  ;;  %v10637_v53 = vor.u32 %v14245_v23, %v10634_v58 }
 0x532   : > { %v16653_v14 = vpack.c.b16 %v2731_v60, %v16644_v42  ;;  %v2868_v2 = vpack.c.b16 %v2731_v60, %v2731_v60  ;;  %v2740_v42 = vrot.slane %v2738_v19, 1 }
 0x533   : > { %2857 = vmatpush.bf16.msra.mxu1 %v10637_v53  ;;  %v14355_v53 = vld [vmem:[#allocation13 + $0x3f4] sm:$0xf] }
 0x534   : > { %v3732_v57 = vshrl.u32 %v16653_v14, 16  ;;  %v3735_v20 = vshll.u32 %v16653_v14, 16  ;;  %v2741_v21 = vor.u32 %v2740_v42, %v2736_v22  ;;  %v10965_v42 = vor.u32 %v14311_v39, %v10962_v33  ;;  %v10786_v39 = vld [vmem:[#allocation13 + $0x138] sm:$0xf0] }
 0x535   : > { %v2680_v17 = vpop.f32.mrf.mxu2  ;;  %3527 = vmatpush.bf16.msra.mxu3 %v10993_v10  ;;  %3545 = vmatpush.bf16.msra.mxu0 %v10997_v55  ;;  %v10973_v10 = vor.u32 %v14313_v56, %v10970_v4  ;;  %v14269_v56 = vld [vmem:[#allocation13 + $0x144] sm:$0xf] }
 0x536   : > { %v2690_v24 = vpack.c.bf16 %v2680_v17, %v2680_v17  ;;  %v16681_v37 = vrot.slane %v3732_v57, 2  ;;  %v16683_v0 = vrot.slane %v3735_v20, 3  ;;  %v14275_v17 = vld [vmem:[#allocation13 + $0x174] sm:$0xf]  ;;  %v14336_v57 = vld [vmem:[#allocation13 + $0x354] sm:$0xf0] }
 0x537   : > { %v10821_v35 = vor.u32 %v14275_v17, %v10818_v28  ;;  %v11057_v20 = vor.u32 %v14336_v57, %v11056_v44  ;;  %v11040_v28 = vld [vmem:[#allocation13 + $0x330] sm:$0xf]  ;;  %v14265_v44 = vld [vmem:[#allocation13 + $0x124] sm:$0xf]  ;;  %v10778_v57 = vld [vmem:[#allocation13 + $0x128] sm:$0xf0] }
 0x538   : > { %v16655_v41 = vunpack.c.l.b16 %v2690_v24  ;;  %v10960_v24 = vld [vmem:[#allocation13 + $0x290] sm:$0xf] }
 0x539   : > { %3528 = vmatpush.bf16.msra.mxu3 %v10985_v51  ;;  %3546 = vmatpush.bf16.msra.mxu0 %v10989_v18  ;;  %v10961_v25 = vor.u32 %v14312_v47, %v10960_v24  ;;  %v10813_v18 = vor.u32 %v14273_v29, %v10810_v34  ;;  %v11128_v24 = vld [vmem:[#allocation13 + $0x3e0] sm:$0xf]  ;;  %v14267_v47 = vld [vmem:[#allocation13 + $0x134] sm:$0xf]  ;;  %v14330_v34 = vld [vmem:[#allocation13 + $0x324] sm:$0xf0] }
 0x53a   : > { %v16658_v63 = vpack.c.b16 %v16655_v41, %v2731_v60  ;;  %v14340_v60 = vld [vmem:[#allocation13 + $0x374] sm:$0xf0]  ;;  %v10789_v33 = vor.u32 %v14267_v47, %v10786_v39  ;;  %v11032_v29 = vld [vmem:[#allocation13 + $0x320] sm:$0xf] }
 0x53b   : > { %v11073_v50 = vor.u32 %v14340_v60, %v11072_v26  ;;  %v14356_v60 = vld [vmem:[#allocation13 + $0x3f4] sm:$0xf0] }
 0x53c   : > { %2964 = vmatmul.bf16.gmra.mxu3 %v2868_v2  ;;  %2982 = vmatmul.bf16.gmra.mxu0 %v2868_v2  ;;  %v16666_v62 = vrot.slane %v16658_v63, 1  ;;  %v2743_v7 = vshll.u32 %v16658_v63, 16  ;;  %v16690_v3 = vrot.slane %v16658_v63, 3 }
 0x53d   : > { %v2683_v32 = vpop.f32.mrf.mxu2  ;;  %3529 = vmatpush.bf16.msra.mxu3 %v10977_v49  ;;  %3547 = vmatpush.bf16.msra.mxu0 %v10981_v1  ;;  %v11136_v1 = vld [vmem:[#allocation13 + $0x3f0] sm:$0xf] }
 0x53e   : > { %v2691_v27 = vpack.c.bf16 %v2683_v32, %v2683_v32  ;;  %v16672_v6 = vsel %vm1094_vm3, %v3004_v40, %v16666_v62  ;;  %v16678_v45 = vrot.slane %v2743_v7, 1  ;;  %v10952_v40 = vld [vmem:[#allocation13 + $0x280] sm:$0xf]  ;;  %v14309_v32 = vld [vmem:[#allocation13 + $0x284] sm:$0xf]  ;;  %v3150_v58 = vsel %vm936_vm0, %v3148_v61, %v16690_v3 }
 0x53f   : > { %3097 = vmatmul.bf16.vlgmr.msra.gmra.mxu2 %v16672_v6  ;;  %v10953_v12 = vor.u32 %v14310_v30, %v10952_v40  ;;  %v10957_v49 = vor.u32 %v14309_v32, %v10954_v38  ;;  %v11137_v46 = vor.u32 %v14356_v60, %v11136_v1  ;;  %v3297_v36 = vrot.slane %v2743_v7, 4  ;;  %v14328_v30 = vld [vmem:[#allocation13 + $0x314] sm:$0xf0]  ;;  %v11112_v32 = vld [vmem:[#allocation13 + $0x3c0] sm:$0xf] }
 0x540   : > { %v3585_v8 = vunpack.c.l.b16 %v2691_v27  ;;  %v16687_v43 = vsel %vm1516_vm7, %v2741_v21, %v16678_v45  ;;  %3672 = vmatpush.bf16.msra.mxu2 %v11073_v50  ;;  %v3738_v27 = vor.u32 %v16683_v0, %v16681_v37  ;;  %v11048_v37 = vld [vmem:[#allocation13 + $0x340] sm:$0xf]  ;;  %v14334_v0 = vld [vmem:[#allocation13 + $0x344] sm:$0xf0]  ;;  %v11138_v50 = vld [vmem:[#allocation13 + $0x3f8] sm:$0xf0]  ;;  %v11033_v7 = vor.u32 %v14330_v34, %v11032_v29 }
 0x541   : > { %2840 = vmatmul.bf16.vlgmr.msrb.gmra.mxu1 %v16687_v43  ;;  %3530 = vmatpush.bf16.msra.mxu3 %v10969_v52  ;;  %v11049_v26 = vor.u32 %v14334_v0, %v11048_v37  ;;  %v11141_v11 = vor.u32 %v14355_v53, %v11138_v50  ;;  %v10794_v52 = vld [vmem:[#allocation13 + $0x148] sm:$0xf0]  ;;  %v10781_v40 = vor.u32 %v14265_v44, %v10778_v57  ;;  %v14350_v38 = vld [vmem:[#allocation13 + $0x3c4] sm:$0xf0]  ;;  %v3293_v61 = vrot.slane %v2736_v22, 3 }
 0x542   : > { %v16694_v13 = vpack.c.b16 %v3585_v8, %v16655_v41  ;;  %3107 = vmatpush.bf16.msrb.mxu1 %v10821_v35  ;;  %3548 = vmatpush.bf16.msra.mxu0 %v10973_v10  ;;  %v2747_v8 = vshrl.u32 %v16658_v63, 16  ;;  %v10797_v17 = vor.u32 %v14269_v56, %v10794_v52  ;;  %v14332_v10 = vld [vmem:[#allocation13 + $0x334] sm:$0xf0]  ;;  %v11120_v63 = vld [vmem:[#allocation13 + $0x3d0] sm:$0xf]  ;;  %v11117_v37 = vor.u32 %v14349_v54, %v11114_v15 }
 0x543   : > { %v11041_v5 = vor.u32 %v14332_v10, %v11040_v28  ;;  %v11016_v1 = vld [vmem:[#allocation13 + $0x300] sm:$0xf]  ;;  %v14348_v60 = vld [vmem:[#allocation13 + $0x3b4] sm:$0xf0]  ;;  %v14347_v53 = vld [vmem:[#allocation13 + $0x3b4] sm:$0xf] }
 0x544   : > { %v3740_v55 = vshrl.u32 %v16694_v13, 16  ;;  %v3743_v31 = vshll.u32 %v16694_v13, 16  ;;  %3673 = vmatpush.bf16.msra.mxu2 %v11065_v16  ;;  %v16712_v4 = vor.u32 %v2747_v8, %v16678_v45  ;;  %v3296_v35 = vrot.slane %v2747_v8, 3  ;;  %v11130_v45 = vld [vmem:[#allocation13 + $0x3e8] sm:$0xf0] }
 0x545   : > { %v2685_v48 = vpop.f32.mrf.mxu2  ;;  %3531 = vmatpush.bf16.msra.mxu3 %v10961_v25  ;;  %v11106_v50 = vld [vmem:[#allocation13 + $0x3b8] sm:$0xf0]  ;;  %v14261_v52 = vld [vmem:[#allocation13 + $0x104] sm:$0xf]  ;;  %v11200_v28 = vld [vmem:[#allocation13 + $0x470] sm:$0xf] }
 0x546   : > { %v3742_v51 = vrot.slane %v3740_v55, 2  ;;  %v3745_v2 = vrot.slane %v3743_v31, 3  ;;  %3108 = vmatpush.bf16.msrb.mxu1 %v10813_v18  ;;  %3549 = vmatpush.bf16.msra.mxu0 %v10965_v42  ;;  %v14354_v55 = vld [vmem:[#allocation13 + $0x3e4] sm:$0xf0]  ;;  %v14353_v31 = vld [vmem:[#allocation13 + $0x3e4] sm:$0xf]  ;;  %v16721_v8 = vor.u32 %v3297_v36, %v3296_v35  ;;  %v11109_v56 = vor.u32 %v14347_v53, %v11106_v50 }
 0x547   : > { %v11129_v16 = vor.u32 %v14354_v55, %v11128_v24  ;;  %v11133_v25 = vor.u32 %v14353_v31, %v11130_v45  ;;  %v14352_v48 = vld [vmem:[#allocation13 + $0x3d4] sm:$0xf0]  ;;  %v11096_v36 = vld [vmem:[#allocation13 + $0x3a0] sm:$0xf]  ;;  %v14345_v24 = vld [vmem:[#allocation13 + $0x3a4] sm:$0xf] }
 0x548   : > { %v16700_v21 = vor.u32 %v3745_v2, %v3742_v51  ;;  %3674 = vmatpush.bf16.msra.mxu2 %v11057_v20  ;;  %v14351_v51 = vld [vmem:[#allocation13 + $0x3d4] sm:$0xf]  ;;  %v11122_v2 = vld [vmem:[#allocation13 + $0x3d8] sm:$0xf0]  ;;  %v11121_v42 = vor.u32 %v14352_v48, %v11120_v63  ;;  %v11024_v20 = vld [vmem:[#allocation13 + $0x310] sm:$0xf] }
 0x549   : > { %3532 = vmatpush.bf16.msra.mxu3 %v10953_v12  ;;  %v11125_v18 = vor.u32 %v14351_v51, %v11122_v2  ;;  %v10770_v12 = vld [vmem:[#allocation13 + $0x118] sm:$0xf0]  ;;  %v14372_v10 = vld [vmem:[#allocation13 + $0x474] sm:$0xf0]  ;;  %v11098_v31 = vld [vmem:[#allocation13 + $0x3a8] sm:$0xf0] }
 0x54a   : > { %v16705_v23 = vsel %vm2284_vm9, %v3738_v27, %v16700_v21  ;;  %3109 = vmatpush.bf16.msrb.mxu1 %v10805_v9  ;;  %3550 = vmatpush.bf16.msra.mxu0 %v10957_v49  ;;  %v14263_v27 = vld [vmem:[#allocation13 + $0x114] sm:$0xf]  ;;  %v3294_v9 = vrot.slane %v2738_v19, 4  ;;  %v11025_v49 = vor.u32 %v14328_v30, %v11024_v20  ;;  %v11104_v19 = vld [vmem:[#allocation13 + $0x3b0] sm:$0xf]  ;;  %v11201_v35 = vor.u32 %v14372_v10, %v11200_v28 }
 0x54b   : > { %v10773_v0 = vor.u32 %v14263_v27, %v10770_v12  ;;  %v10946_v45 = vld [vmem:[#allocation13 + $0x278] sm:$0xf0]  ;;  %v11101_v47 = vor.u32 %v14345_v24, %v11098_v31  ;;  %v11088_v29 = vld [vmem:[#allocation13 + $0x390] sm:$0xf]  ;;  %v14344_v63 = vld [vmem:[#allocation13 + $0x394] sm:$0xf0] }
 0x54c   : > { %3241 = vmatmul.bf16.vlgmr.msrb.gmra.mxu3 %v3150_v58  ;;  %3259 = vmatmul.bf16.vlgmr.msrb.gmra.mxu0 %v3150_v58  ;;  %v11113_v58 = vor.u32 %v14350_v38, %v11112_v32  ;;  %v3295_v22 = vor.u32 %v3294_v9, %v3293_v61  ;;  %v14305_v48 = vld [vmem:[#allocation13 + $0x264] sm:$0xf]  ;;  %v10938_v51 = vld [vmem:[#allocation13 + $0x268] sm:$0xf0]  ;;  %v11184_v2 = vld [vmem:[#allocation13 + $0x450] sm:$0xf] }
 0x54d   : > { %3675 = vmatpush.bf16.msra.mxu2 %v11049_v26  ;;  %3830 = vmatpush.bf16.msrb.mxu3 %v11137_v46  ;;  %v11017_v26 = vor.u32 %v14326_v59, %v11016_v1  ;;  %v10941_v44 = vor.u32 %v14305_v48, %v10938_v51  ;;  %v14368_v57 = vld [vmem:[#allocation13 + $0x454] sm:$0xf0]  ;;  %v11080_v20 = vld [vmem:[#allocation13 + $0x380] sm:$0xf]  ;;  %v14341_v32 = vld [vmem:[#allocation13 + $0x384] sm:$0xf] }
 0x54e   : > { %3848 = vmatpush.bf16.msrb.mxu0 %v11141_v11  ;;  %3110 = vmatpush.bf16.msrb.mxu1 %v10797_v17  ;;  %v16726_v46 = vsel %vm3292_vm13, %v3295_v22, %v16721_v8  ;;  %v11105_v11 = vor.u32 %v14348_v60, %v11104_v19  ;;  %v10762_v17 = vld [vmem:[#allocation13 + $0x108] sm:$0xf0]  ;;  %v11185_v30 = vor.u32 %v14368_v57, %v11184_v2  ;;  %v14303_v54 = vld [vmem:[#allocation13 + $0x254] sm:$0xf]  ;;  %v10930_v15 = vld [vmem:[#allocation13 + $0x258] sm:$0xf0] }
 0x54f   : > { %3102 = vmatmul.bf16.gmra.mxu2 %v16666_v62  ;;  %v11082_v38 = vld [vmem:[#allocation13 + $0x388] sm:$0xf0]  ;;  %v10933_v27 = vor.u32 %v14303_v54, %v10930_v15  ;;  %v11176_v12 = vld [vmem:[#allocation13 + $0x440] sm:$0xf]  ;;  %v11168_v1 = vld [vmem:[#allocation13 + $0x430] sm:$0xf] }
 0x550   : > { %v11085_v9 = vor.u32 %v14341_v32, %v11082_v38  ;;  %v14364_v59 = vld [vmem:[#allocation13 + $0x434] sm:$0xf0]  ;;  %v10914_v60 = vld [vmem:[#allocation13 + $0x238] sm:$0xf0]  ;;  %v11160_v53 = vld [vmem:[#allocation13 + $0x420] sm:$0xf] }
 0x551   : > { %2845 = vmatmul.bf16.gmra.mxu1 %v16712_v4  ;;  %3676 = vmatpush.bf16.msra.mxu2 %v11041_v5  ;;  %v14346_v5 = vld [vmem:[#allocation13 + $0x3a4] sm:$0xf0]  ;;  %v11169_v19 = vor.u32 %v14364_v59, %v11168_v1  ;;  %v11152_v28 = vld [vmem:[#allocation13 + $0x410] sm:$0xf]  ;;  %v14360_v10 = vld [vmem:[#allocation13 + $0x414] sm:$0xf0] }
 0x552   : > { %3831 = vmatpush.bf16.msrb.mxu3 %v11129_v16  ;;  %3849 = vmatpush.bf16.msrb.mxu0 %v11133_v25  ;;  %v11097_v55 = vor.u32 %v14346_v5, %v11096_v36  ;;  %v14307_v16 = vld [vmem:[#allocation13 + $0x274] sm:$0xf]  ;;  %v11192_v25 = vld [vmem:[#allocation13 + $0x460] sm:$0xf]  ;;  %v10898_v36 = vld [vmem:[#allocation13 + $0x218] sm:$0xf0]  ;;  %v11153_v5 = vor.u32 %v14360_v10, %v11152_v28 }
 0x553   : > { %3111 = vmatpush.bf16.msrb.mxu1 %v10789_v33  ;;  %v10949_v39 = vor.u32 %v14307_v16, %v10946_v45  ;;  %v14370_v33 = vld [vmem:[#allocation13 + $0x464] sm:$0xf0]  ;;  %v16737_v24 = vrot.slane %v16694_v13, 2  ;;  %v3587_v31 = vrot.slane %v16653_v14, 2  ;;  %v11144_v16 = vld [vmem:[#allocation13 + $0x400] sm:$0xf] }
 0x554   : > { %v11193_v34 = vor.u32 %v14370_v33, %v11192_v25  ;;  %v14358_v45 = vld [vmem:[#allocation13 + $0x404] sm:$0xf0]  ;;  %v10890_v25 = vld [vmem:[#allocation13 + $0x208] sm:$0xf0]  ;;  %v14335_v51 = vld [vmem:[#allocation13 + $0x354] sm:$0xf] }
 0x555   : > { %3677 = vmatpush.bf16.msra.mxu2 %v11033_v7  ;;  %v11090_v7 = vld [vmem:[#allocation13 + $0x398] sm:$0xf0]  ;;  %v16742_v33 = vsel %vm937_vm1, %v3587_v31, %v16737_v24  ;;  %v14331_v57 = vld [vmem:[#allocation13 + $0x334] sm:$0xf]  ;;  %v11034_v32 = vld [vmem:[#allocation13 + $0x328] sm:$0xf0] }
 0x556   : > { %3832 = vmatpush.bf16.msrb.mxu3 %v11121_v42  ;;  %3850 = vmatpush.bf16.msrb.mxu0 %v11125_v18  ;;  %v11089_v42 = vor.u32 %v14344_v63, %v11088_v29  ;;  %v14339_v29 = vld [vmem:[#allocation13 + $0x374] sm:$0xf]  ;;  %v14337_v63 = vld [vmem:[#allocation13 + $0x364] sm:$0xf]  ;;  %v11058_v2 = vld [vmem:[#allocation13 + $0x358] sm:$0xf0] }
 0x557   : > { %3112 = vmatpush.bf16.msrb.mxu1 %v10781_v40  ;;  %v14342_v40 = vld [vmem:[#allocation13 + $0x384] sm:$0xf0]  ;;  %v14327_v54 = vld [vmem:[#allocation13 + $0x314] sm:$0xf]  ;;  %v11026_v15 = vld [vmem:[#allocation13 + $0x318] sm:$0xf0] }
 0x558   : > { %v11081_v61 = vor.u32 %v14342_v40, %v11080_v20  ;;  %v11042_v20 = vld [vmem:[#allocation13 + $0x338] sm:$0xf0]  ;;  %v14367_v1 = vld [vmem:[#allocation13 + $0x454] sm:$0xf] }
 0x559   : > { %3678 = vmatpush.bf16.msra.mxu2 %v11025_v49  ;;  %v14366_v49 = vld [vmem:[#allocation13 + $0x444] sm:$0xf0]  ;;  %v11045_v40 = vor.u32 %v14331_v57, %v11042_v20  ;;  %v11186_v59 = vld [vmem:[#allocation13 + $0x458] sm:$0xf0] }
 0x55a   : > { %3833 = vmatpush.bf16.msrb.mxu3 %v11113_v58  ;;  %3851 = vmatpush.bf16.msrb.mxu0 %v11117_v37  ;;  %v14301_v58 = vld [vmem:[#allocation13 + $0x244] sm:$0xf]  ;;  %v11177_v37 = vor.u32 %v14366_v49, %v11176_v12  ;;  %v11018_v12 = vld [vmem:[#allocation13 + $0x308] sm:$0xf0] }
 0x55b   : > { %3113 = vmatpush.bf16.msrb.mxu1 %v10773_v0  ;;  %v10922_v0 = vld [vmem:[#allocation13 + $0x248] sm:$0xf0] }
 0x55c   : > { %3246 = vmatmul.bf16.gmra.mxu3 %v16690_v3  ;;  %3264 = vmatmul.bf16.gmra.mxu0 %v16690_v3  ;;  %v10765_v3 = vor.u32 %v14261_v52, %v10762_v17  ;;  %v10925_v22 = vor.u32 %v14301_v58, %v10922_v0  ;;  %v10906_v52 = vld [vmem:[#allocation13 + $0x228] sm:$0xf0]  ;;  %v11202_v58 = vld [vmem:[#allocation13 + $0x478] sm:$0xf0] }
 0x55d   : > { %3679 = vmatpush.bf16.msra.mxu2 %v11017_v26  ;;  %v14299_v26 = vld [vmem:[#allocation13 + $0x234] sm:$0xf]  ;;  %v11194_v0 = vld [vmem:[#allocation13 + $0x468] sm:$0xf0] }
 0x55e   : > { %3834 = vmatpush.bf16.msrb.mxu3 %v11105_v11  ;;  %3852 = vmatpush.bf16.msrb.mxu0 %v11109_v56  ;;  %v10917_v50 = vor.u32 %v14299_v26, %v10914_v60  ;;  %v14362_v11 = vld [vmem:[#allocation13 + $0x424] sm:$0xf0]  ;;  %v14297_v56 = vld [vmem:[#allocation13 + $0x224] sm:$0xf] }
 0x55f   : > { %3390 = vmatmul.bf16.vlgmr.msrb.gmra.mxu2 %v16726_v46  ;;  %3114 = vmatpush.bf16.msrb.mxu1 %v10765_v3  ;;  %v11161_v17 = vor.u32 %v14362_v11, %v11160_v53  ;;  %v10909_v3 = vor.u32 %v14297_v56, %v10906_v52  ;;  %v14365_v60 = vld [vmem:[#allocation13 + $0x444] sm:$0xf]  ;;  %v11178_v53 = vld [vmem:[#allocation13 + $0x448] sm:$0xf0]  ;;  %v14363_v11 = vld [vmem:[#allocation13 + $0x434] sm:$0xf] }
 0x560   : > { %v11170_v56 = vld [vmem:[#allocation13 + $0x438] sm:$0xf0] }
 0x561   : > { %2858 = vmatmul.bf16.vlgmr.msra.gmra.mxu1 %v16687_v43  ;;  %3974 = vmatpush.bf16.msrb.mxu2 %v11201_v35  ;;  %v14343_v43 = vld [vmem:[#allocation13 + $0x394] sm:$0xf]  ;;  %v11173_v52 = vor.u32 %v14363_v11, %v11170_v56 }
 0x562   : > { %3835 = vmatpush.bf16.msrb.mxu3 %v11097_v55  ;;  %3853 = vmatpush.bf16.msrb.mxu0 %v11101_v47  ;;  %v11093_v18 = vor.u32 %v14343_v43, %v11090_v7  ;;  %v14295_v35 = vld [vmem:[#allocation13 + $0x214] sm:$0xf]  ;;  %v14293_v47 = vld [vmem:[#allocation13 + $0x204] sm:$0xf]  ;;  %v11066_v7 = vld [vmem:[#allocation13 + $0x368] sm:$0xf0] }
 0x563   : > { %3400 = vmatpush.bf16.msra.mxu1 %v10949_v39  ;;  %v10901_v55 = vor.u32 %v14295_v35, %v10898_v36  ;;  %v11145_v39 = vor.u32 %v14358_v45, %v11144_v16  ;;  %v11069_v48 = vor.u32 %v14337_v63, %v11066_v7  ;;  %v14359_v36 = vld [vmem:[#allocation13 + $0x414] sm:$0xf]  ;;  %v11146_v45 = vld [vmem:[#allocation13 + $0x408] sm:$0xf0] }
 0x565   : > { %3975 = vmatpush.bf16.msrb.mxu2 %v11193_v34  ;;  %v11074_v34 = vld [vmem:[#allocation13 + $0x378] sm:$0xf0] }
 0x566   : > { %3836 = vmatpush.bf16.msrb.mxu3 %v11089_v42  ;;  %3854 = vmatpush.bf16.msrb.mxu0 %v11093_v18  ;;  %v11077_v43 = vor.u32 %v14339_v29, %v11074_v34  ;;  %v11061_v42 = vor.u32 %v14335_v51, %v11058_v2  ;;  %v14333_v18 = vld [vmem:[#allocation13 + $0x344] sm:$0xf] }
 0x567   : > { %3401 = vmatpush.bf16.msra.mxu1 %v10941_v44  ;;  %v11050_v44 = vld [vmem:[#allocation13 + $0x348] sm:$0xf0] }
 0x569   : > { %3976 = vmatpush.bf16.msrb.mxu2 %v11185_v30  ;;  %v14329_v30 = vld [vmem:[#allocation13 + $0x324] sm:$0xf] }
 0x56a   : > { %3837 = vmatpush.bf16.msrb.mxu3 %v11081_v61  ;;  %3855 = vmatpush.bf16.msrb.mxu0 %v11085_v9  ;;  %v11037_v38 = vor.u32 %v14329_v30, %v11034_v32  ;;  %v14325_v9 = vld [vmem:[#allocation13 + $0x304] sm:$0xf] }
 0x56b   : > { %3402 = vmatpush.bf16.msra.mxu1 %v10933_v27  ;;  %v16751_v27 = vrot.slane %v16694_v13, 3  ;;  %v11021_v49 = vor.u32 %v14325_v9, %v11018_v12  ;;  %v14371_v13 = vld [vmem:[#allocation13 + $0x474] sm:$0xf] }
 0x56c   : > { %3533 = vmatmul.bf16.vlgmr.msra.gmra.mxu3 %v16653_v14  ;;  %3551 = vmatmul.bf16.vlgmr.msra.gmra.mxu0 %v16653_v14 }
 0x56d   : > { %3977 = vmatpush.bf16.msrb.mxu2 %v11177_v37  ;;  %v11205_v37 = vor.u32 %v14371_v13, %v11202_v58 }
 0x56f   : > { %3395 = vmatmul.bf16.gmra.mxu2 %v16721_v8  ;;  %3403 = vmatpush.bf16.msra.mxu1 %v10925_v22 }
 0x571   : > { %2863 = vmatmul.bf16.gmra.mxu1 %v16712_v4  ;;  %3978 = vmatpush.bf16.msrb.mxu2 %v11169_v19  ;;  %v3442_v4 = vpack.c.b16 %v16655_v41, %v16655_v41  ;;  %v10893_v41 = vor.u32 %v14293_v47, %v10890_v25  ;;  %v11189_v19 = vor.u32 %v14367_v1, %v11186_v59 }
 0x573   : > { %3404 = vmatpush.bf16.msra.mxu1 %v10917_v50 }
 0x575   : > { %3979 = vmatpush.bf16.msrb.mxu2 %v11161_v17  ;;  %v14361_v17 = vld [vmem:[#allocation13 + $0x424] sm:$0xf] }
 0x577   : > { %3405 = vmatpush.bf16.msra.mxu1 %v10909_v3  ;;  %v11162_v3 = vld [vmem:[#allocation13 + $0x428] sm:$0xf0] }
 0x578   : > { %v11165_v10 = vor.u32 %v14361_v17, %v11162_v3 }
 0x579   : > { %3980 = vmatpush.bf16.msrb.mxu2 %v11153_v5  ;;  %v11154_v5 = vld [vmem:[#allocation13 + $0x418] sm:$0xf0] }
 0x57b   : > { %3406 = vmatpush.bf16.msra.mxu1 %v10901_v55 }
 0x57c   : > { %3538 = vmatmul.bf16.gmra.mxu3 %v3442_v4  ;;  %3556 = vmatmul.bf16.gmra.mxu0 %v3442_v4  ;;  %v11157_v4 = vor.u32 %v14359_v36, %v11154_v5 }
 0x57d   : > { %3981 = vmatpush.bf16.msrb.mxu2 %v11145_v39 }
 0x57f   : > { %3680 = vmatmul.bf16.vlgmr.msra.gmra.mxu2 %v16742_v33  ;;  %3407 = vmatpush.bf16.msra.mxu1 %v10893_v41 }
 0x581   : > { %3115 = vmatmul.bf16.vlgmr.msrb.gmra.mxu1 %v16672_v6  ;;  %v11053_v6 = vor.u32 %v14333_v18, %v11050_v44 }
 0x583   : > { %3690 = vmatpush.bf16.msrb.mxu1 %v11077_v43 }
 0x587   : > { %3691 = vmatpush.bf16.msrb.mxu1 %v11069_v48 }
 0x58b   : > { %3692 = vmatpush.bf16.msrb.mxu1 %v11061_v42 }
 0x58c   : > { %3838 = vmatmul.bf16.vlgmr.msrb.gmra.mxu3 %v16705_v23  ;;  %3856 = vmatmul.bf16.vlgmr.msrb.gmra.mxu0 %v16705_v23  ;;  %v11029_v23 = vor.u32 %v14327_v54, %v11026_v15 }
 0x58f   : > { %3685 = vmatmul.bf16.gmra.mxu2 %v16737_v24  ;;  %3693 = vmatpush.bf16.msrb.mxu1 %v11053_v6 }
 0x591   : > { %3120 = vmatmul.bf16.gmra.mxu1 %v16666_v62  ;;  %v3889_v62 = vrot.slane %v16653_v14, 3 }
 0x593   : > { %3694 = vmatpush.bf16.msrb.mxu1 %v11045_v40  ;;  %v16758_v61 = vsel %vm936_vm0, %v3889_v62, %v16751_v27 }
 0x597   : > { %3695 = vmatpush.bf16.msrb.mxu1 %v11037_v38 }
 0x59b   : > { %3696 = vmatpush.bf16.msrb.mxu1 %v11029_v23 }
 0x59c   : > { %3843 = vmatmul.bf16.gmra.mxu3 %v16700_v21  ;;  %3861 = vmatmul.bf16.gmra.mxu0 %v16700_v21  ;;  %v14369_v21 = vld [vmem:[#allocation13 + $0x464] sm:$0xf] }
 0x59d   : > { %v11197_v14 = vor.u32 %v14369_v21, %v11194_v0 }
 0x59f   : > { %3982 = vmatmul.bf16.vlgmr.msrb.gmra.mxu2 %v16758_v61  ;;  %3697 = vmatpush.bf16.msrb.mxu1 %v11021_v49 }
 0x5a1   : > { %3408 = vmatmul.bf16.vlgmr.msra.gmra.mxu1 %v16726_v46  ;;  %v11181_v46 = vor.u32 %v14365_v60, %v11178_v53 }
 0x5a3   : > { %3992 = vmatpush.bf16.msra.mxu1 %v11205_v37 }
 0x5a7   : > { %3993 = vmatpush.bf16.msra.mxu1 %v11197_v14 }
 0x5a9   : > { %v2978_v22 = vpop.f32.mrf.mxu0 }
 0x5ab   : > { %3994 = vmatpush.bf16.msra.mxu1 %v11189_v19 }
 0x5af   : > { %v2960_v26 = vpop.f32.mrf.mxu3  ;;  %3987 = vmatmul.bf16.gmra.mxu2 %v16751_v27  ;;  %3995 = vmatpush.bf16.msra.mxu1 %v11181_v46 }
 0x5b1   : > { %v16763_v50 = vpop.f32.mrf.mxu0  ;;  %3413 = vmatmul.bf16.gmra.mxu1 %v16721_v8  ;;  %v14357_v8 = vld [vmem:[#allocation13 + $0x404] sm:$0xf] }
 0x5b2   : > { %v11149_v47 = vor.u32 %v14357_v8, %v11146_v45 }
 0x5b3   : > { %3996 = vmatpush.bf16.msra.mxu1 %v11173_v52 }
 0x5b7   : > { %v16766_v28 = vpop.f32.mrf.mxu3  ;;  %3997 = vmatpush.bf16.msra.mxu1 %v11165_v10 }
 0x5b9   : > { %v2983_v35 = vpop.f32.mrf.mxu0 }
 0x5bb   : > { %3998 = vmatpush.bf16.msra.mxu1 %v11157_v4 }
 0x5be   : > { %v2841_v55 = vpop.f32.mrf.mxu1 }
 0x5bf   : > { %v2961_v31 = vadd.f32 %v2960_v26, %v2841_v55  ;;  %v2965_v16 = vpop.f32.mrf.mxu3  ;;  %3999 = vmatpush.bf16.msra.mxu1 %v11149_v47 }
 0x5c1   : > { %v2985_v39 = vpop.f32.mrf.mxu0  ;;  %3698 = vmatmul.bf16.vlgmr.msrb.gmra.mxu1 %v16742_v33 }
 0x5c2   : > { %v3098_v25 = vpop.f32.mrf.mxu2 }
 0x5c3   : > { %v3125_v41 = vadd.f32 %v3098_v25, %v2961_v31 }
 0x5c6   : > { %v2843_v29 = vpop.f32.mrf.mxu1 }
 0x5c7   : > { %v2967_v34 = vpop.f32.mrf.mxu3  ;;  %v2963_v8 = vadd.f32 %v16766_v28, %v2843_v29 }
 0x5c9   : > { %v3260_v63 = vpop.f32.mrf.mxu0 }
 0x5ca   : > { %v3100_v43 = vpop.f32.mrf.mxu2 }
 0x5cb   : > { %v3127_v47 = vadd.f32 %v3100_v43, %v2963_v8 }
 0x5ce   : > { %v2846_v7 = vpop.f32.mrf.mxu1 }
 0x5cf   : > { %v2966_v48 = vadd.f32 %v2965_v16, %v2846_v7  ;;  %v3242_v51 = vpop.f32.mrf.mxu3 }
 0x5d0   : > { %v3269_v2 = vadd.f32 %v3242_v51, %v3125_v41 }
 0x5d1   : > { %v16769_v42 = vpop.f32.mrf.mxu0  ;;  %3703 = vmatmul.bf16.gmra.mxu1 %v16737_v24 }
 0x5d2   : > { %v3103_v18 = vpop.f32.mrf.mxu2 }
 0x5d3   : > { %v3129_v44 = vadd.f32 %v3103_v18, %v2966_v48  ;;  %v16787_v18 = vld [vmem:[#allocation14] sm:$0x3] }
 0x5d4   : > { %v4018_v28 = vperm.slane %v16787_v18, 0 }
 0x5d6   : > { %v2848_v6 = vpop.f32.mrf.mxu1 }
 0x5d7   : > { %v3244_v57 = vpop.f32.mrf.mxu3 }
 0x5d8   : > { %v3271_v41 = vadd.f32 %v3244_v57, %v3127_v47 }
 0x5d9   : > { %v3265_v33 = vpop.f32.mrf.mxu0 }
 0x5da   : > { %v3105_v20 = vpop.f32.mrf.mxu2 }
 0x5de   : > { %v2859_v40 = vpop.f32.mrf.mxu1 }
 0x5df   : > { %v2979_v30 = vadd.f32 %v2978_v22, %v2859_v40  ;;  %v3247_v32 = vpop.f32.mrf.mxu3 }
 0x5e0   : > { %v3273_v38 = vadd.f32 %v3247_v32, %v3129_v44 }
 0x5e1   : > { %v3267_v54 = vpop.f32.mrf.mxu0  ;;  %4000 = vmatmul.bf16.vlgmr.msra.gmra.mxu1 %v16758_v61 }
 0x5e2   : > { %v3391_v15 = vpop.f32.mrf.mxu2 }
 0x5e3   : > { %v3418_v23 = vadd.f32 %v3391_v15, %v3269_v2 }
 0x5e6   : > { %v16773_v62 = vpop.f32.mrf.mxu1 }
 0x5e7   : > { %v3249_v9 = vpop.f32.mrf.mxu3 }
 0x5e9   : > { %v3552_v12 = vpop.f32.mrf.mxu0 }
 0x5ea   : > { %v3393_v24 = vpop.f32.mrf.mxu2 }
 0x5eb   : > { %v3420_v48 = vadd.f32 %v3393_v24, %v3271_v41 }
 0x5ee   : > { %v2864_v49 = vpop.f32.mrf.mxu1 }
 0x5ef   : > { %v2984_v13 = vadd.f32 %v2983_v35, %v2864_v49  ;;  %v3534_v58 = vpop.f32.mrf.mxu3 }
 0x5f0   : > { %v3561_v37 = vadd.f32 %v3534_v58, %v3418_v23 }
 0x5f1   : > { %v16775_v21 = vpop.f32.mrf.mxu0  ;;  %4005 = vmatmul.bf16.gmra.mxu1 %v16751_v27 }
 0x5f2   : > { %v3396_v0 = vpop.f32.mrf.mxu2 }
 0x5f3   : > { %v3422_v43 = vadd.f32 %v3396_v0, %v3273_v38 }
 0x5f6   : > { %v2866_v14 = vpop.f32.mrf.mxu1 }
 0x5f7   : > { %v3536_v22 = vpop.f32.mrf.mxu3 }
 0x5f8   : > { %v3563_v51 = vadd.f32 %v3536_v22, %v3420_v48 }
 0x5f9   : > { %v3557_v1 = vpop.f32.mrf.mxu0 }
 0x5fa   : > { %v3398_v61 = vpop.f32.mrf.mxu2 }
 0x5fe   : > { %v3116_v59 = vpop.f32.mrf.mxu1 }
 0x5ff   : > { %v3126_v19 = vadd.f32 %v3116_v59, %v2979_v30  ;;  %v3539_v26 = vpop.f32.mrf.mxu3 }
 0x600   : > { %v3565_v57 = vadd.f32 %v3539_v26, %v3422_v43  ;;  %v4019_v43 = vperm.slane %v16787_v18, 1 }
 0x601   : > { %v3559_v60 = vpop.f32.mrf.mxu0  ;;  %v3270_v53 = vadd.f32 %v3260_v63, %v3126_v19 }
 0x602   : > { %v3681_v46 = vpop.f32.mrf.mxu2 }
 0x603   : > { %v3708_v2 = vadd.f32 %v3681_v46, %v3561_v37 }
 0x606   : > { %v16778_v11 = vpop.f32.mrf.mxu1 }
 0x607   : > { %v3541_v56 = vpop.f32.mrf.mxu3 }
 0x609   : > { %v16780_v52 = vpop.f32.mrf.mxu0 }
 0x60a   : > { %v3683_v17 = vpop.f32.mrf.mxu2 }
 0x60b   : > { %v3710_v6 = vadd.f32 %v3683_v17, %v3563_v51 }
 0x60e   : > { %v3121_v3 = vpop.f32.mrf.mxu1 }
 0x60f   : > { %v3130_v10 = vadd.f32 %v3121_v3, %v2984_v13  ;;  %v3839_v27 = vpop.f32.mrf.mxu3 }
 0x611   : > { %v16782_v35 = vpop.f32.mrf.mxu0  ;;  %v3274_v36 = vadd.f32 %v3265_v33, %v3130_v10  ;;  %v3866_v33 = vadd.f32 %v3839_v27, %v3708_v2  ;;  %v2981_v2 = vadd.f32 %v16763_v50, %v16773_v62 }
 0x612   : > { %v3686_v5 = vpop.f32.mrf.mxu2 }
 0x613   : > { %v3712_v9 = vadd.f32 %v3686_v5, %v3565_v57 }
 0x616   : > { %v3123_v4 = vpop.f32.mrf.mxu1 }
 0x617   : > { %v3841_v55 = vpop.f32.mrf.mxu3  ;;  %v15878_v4 = vmov 0  }
 0x618   : > { %v3868_v40 = vadd.f32 %v3841_v55, %v3710_v6  ;;  %v16792_v55 = vsel %vm4112_vm14, 65535, %v15878_v4  ;;  %v3128_v6 = vadd.f32 %v16778_v11, %v2981_v2  ;;  %v11296_v2 = vld [vmem:[#allocation17 + $0x2a0] sm:$0xf] }
 0x619   : > { %v16784_v31 = vpop.f32.mrf.mxu0 }
 0x61a   : > { %v3688_v16 = vpop.f32.mrf.mxu2 }
 0x61e   : > { %v3409_v45 = vpop.f32.mrf.mxu1 }
 0x61f   : > { %v3419_v39 = vadd.f32 %v3409_v45, %v3270_v53  ;;  %v3844_v25 = vpop.f32.mrf.mxu3 }
 0x620   : > { %v3870_v49 = vadd.f32 %v3844_v25, %v3712_v9 }
 0x621   : > { %v3864_v34 = vpop.f32.mrf.mxu0  ;;  %v3562_v63 = vadd.f32 %v3552_v12, %v3419_v39 }
 0x622   : > { %v3983_v7 = vpop.f32.mrf.mxu2 }
 0x623   : > { %v4010_v30 = vadd.f32 %v3983_v7, %v3866_v33 }
 0x625   : > { %v4022_v54 = vadd.f32 %v4018_v28, %v4010_v30 }
 0x626   : > { %v3411_v44 = vpop.f32.mrf.mxu1 }
 0x627   : > { %v3846_v20 = vpop.f32.mrf.mxu3  ;;  %v4028_v13 = vmax.f32 %v4022_v54, 0.0 }
 0x628   : > { %v3272_v20 = vadd.f32 %v16769_v42, %v3128_v6  ;;  %v14460_v6 = vld [vmem:[#allocation17 + $0x2ac] sm:$0xf0] }
 0x629   : > { %v4040_v61 = vrot.slane %v4028_v13, 1 }
 0x62a   : > { %v3985_v29 = vpop.f32.mrf.mxu2 }
 0x62b   : > { %v4012_v32 = vadd.f32 %v3985_v29, %v3868_v40  ;;  %v3421_v40 = vadd.f32 %v3411_v44, %v3272_v20 }
 0x62d   : > { %v4024_v15 = vadd.f32 %v4018_v28, %v4012_v32  ;;  %v4092_v32 = vld [vmem:[#allocation16 + $0x8] sm:$0x1] }
 0x62e   : > { %v3414_v23 = vpop.f32.mrf.mxu1  ;;  %v4102_v57 = vunpack.c.l.b16 %v4092_v32  ;;  %v11408_v32 = vld [vmem:[#allocation17 + $0x380] sm:$0xf] }
 0x62f   : > { %v4030_v12 = vmax.f32 %v4024_v15, 0.0  ;;  %v3423_v24 = vadd.f32 %v3414_v23, %v3274_v36 }
 0x630   : > { %v16810_v15 = vpack.c.b16 %v4102_v57, %v4102_v57  ;;  %v14454_v57 = vld [vmem:[#allocation17 + $0x284] sm:$0xf] }
 0x631   : > { %v3566_v58 = vadd.f32 %v3557_v1, %v3423_v24  ;;  %v4041_v14 = vrot.slane %v4030_v12, 1 }
 0x632   : > { %v3988_v37 = vpop.f32.mrf.mxu2 }
 0x633   : > { %v4014_v22 = vadd.f32 %v3988_v37, %v3870_v49  ;;  %v4042_v38 = vsel %vm1094_vm3, %v4040_v61, %v4041_v14 }
 0x634   : > { %v4056_v53 = vmax.f32 %v4028_v13, %v4042_v38 }
 0x635   : > { %v4026_v59 = vadd.f32 %v4018_v28, %v4014_v22  ;;  %v3564_v28 = vadd.f32 %v16775_v21, %v3421_v40 }
 0x636   : > { %v3416_v19 = vpop.f32.mrf.mxu1  ;;  %v4068_v1 = vrot.slane %v4056_v53, 6 }
 0x637   : > { %v4032_v60 = vmax.f32 %v4026_v59, 0.0  ;;  %v11328_v59 = vld [vmem:[#allocation17 + $0x2e0] sm:$0xf]  ;;  %v14468_v19 = vld [vmem:[#allocation17 + $0x2ec] sm:$0xf0] }
 0x639   : > { %v4046_v0 = vrot.slane %v4032_v60, 1 }
 0x63a   : > { %v3990_v26 = vpop.f32.mrf.mxu2 }
 0x63b   : > { %v4060_v46 = vmax.f32 %v4032_v60, %v4046_v0  ;;  %v4047_v56 = vsel %vm1094_vm3, %v4041_v14, %v4046_v0  ;;  %v11456_v60 = vld [vmem:[#allocation17 + $0x3e0] sm:$0xf]  ;;  %v11329_v0 = vor.u32 %v14468_v19, %v11328_v59  ;;  %v14500_v26 = vld [vmem:[#allocation17 + $0x3ec] sm:$0xf0] }
 0x63c   : > { %v4058_v17 = vmax.f32 %v4030_v12, %v4047_v56  ;;  %v11248_v19 = vld [vmem:[#allocation17 + $0x240] sm:$0xf] }
 0x63d   : > { %v4074_v3 = vrot.slane %v4060_v46, 6  ;;  %4633 = vmatpush.bf16.msra.mxu2 %v11329_v0  ;;  %v11376_v0 = vld [vmem:[#allocation17 + $0x340] sm:$0xf] }
 0x63e   : > { %v3699_v10 = vpop.f32.mrf.mxu1  ;;  %v4069_v27 = vrot.slane %v4058_v17, 6 }
 0x63f   : > { %v4088_v36 = vmax.f32 %v4060_v46, %v4074_v3  ;;  %v3709_v5 = vadd.f32 %v3699_v10, %v3562_v63 }
 0x640   : > { %v4070_v16 = vsel %vm2657_vm10, %v4068_v1, %v4069_v27  ;;  %v4075_v8 = vsel %vm2657_vm10, %v4069_v27, %v4074_v3  ;;  %v11330_v3 = vld [vmem:[#allocation17 + $0x2f0] sm:$0xf0]  ;;  %v11312_v27 = vld [vmem:[#allocation17 + $0x2c0] sm:$0xf] }
 0x641   : > { %v4095_v45 = vpack.c.bf16 %v4088_v36, %v4088_v36  ;;  %v4084_v47 = vmax.f32 %v4056_v53, %v4070_v16  ;;  %v4086_v39 = vmax.f32 %v4058_v17, %v4075_v8  ;;  %v3867_v25 = vadd.f32 %v16780_v52, %v3709_v5  ;;  %v16803_v52 = vld [vmem:[#allocation16] sm:$0xff]  ;;  %v14466_v53 = vld [vmem:[#allocation17 + $0x2e4] sm:$0xf]  ;;  %v14464_v36 = vld [vmem:[#allocation17 + $0x2cc] sm:$0xf0] }
 0x642   : > { %v11457_v17 = vor.u32 %v14500_v26, %v11456_v60  ;;  %v11333_v1 = vor.u32 %v14466_v53, %v11330_v3  ;;  %v11313_v16 = vor.u32 %v14464_v36, %v11312_v27  ;;  %v11440_v8 = vld [vmem:[#allocation17 + $0x3c0] sm:$0xf]  ;;  %v14448_v60 = vld [vmem:[#allocation17 + $0x24c] sm:$0xf0]  ;;  %v11410_v3 = vld [vmem:[#allocation17 + $0x390] sm:$0xf0] }
 0x643   : > { %v4116_v41 = vand.u32 %v16792_v55, %v4095_v45  ;;  %v4093_v34 = vpack.c.bf16 %v4086_v39, %v4084_v47  ;;  %v14496_v45 = vld [vmem:[#allocation17 + $0x3cc] sm:$0xf0]  ;;  %v14462_v47 = vld [vmem:[#allocation17 + $0x2c4] sm:$0xf]  ;;  %v11232_v27 = vld [vmem:[#allocation17 + $0x220] sm:$0xf] }
 0x644   : > { %4646 = vmatpush.bf16.msrb.mxu1 %v11457_v17  ;;  %4634 = vmatpush.bf16.msra.mxu2 %v11313_v16  ;;  %v14480_v26 = vld [vmem:[#allocation17 + $0x34c] sm:$0xf0]  ;;  %v14486_v17 = vld [vmem:[#allocation17 + $0x384] sm:$0xf] }
 0x645   : > { %4127 = vmatpush.bf16.msra.mxu3 %v4116_v41  ;;  %v11413_v16 = vor.u32 %v14486_v17, %v11410_v3  ;;  %v11432_v17 = vld [vmem:[#allocation17 + $0x3a8] sm:$0xf] }
 0x646   : > { %v3701_v7 = vpop.f32.mrf.mxu1 }
 0x647   : > { %v3711_v29 = vadd.f32 %v3701_v7, %v3564_v28  ;;  %v11458_v7 = vld [vmem:[#allocation17 + $0x3f0] sm:$0xf0]  ;;  %v14492_v28 = vld [vmem:[#allocation17 + $0x3ac] sm:$0xf0] }
 0x649   : > { %4128 = vmatpush.bf16.msra.mxu3 %v4093_v34  ;;  %v3869_v50 = vadd.f32 %v16782_v35, %v3711_v29  ;;  %v14498_v34 = vld [vmem:[#allocation17 + $0x3e4] sm:$0xf] }
 0x64a   : > { %v14458_v29 = vld [vmem:[#allocation17 + $0x2a4] sm:$0xf] }
 0x64c   : > { %11210 = vmatmul.msk.bf16.vlgmr.msra.gmra.mxu3 %vm4105_vm15, %v16803_v52 }
 0x64d   : > { %4659 = vmatpush.bf16.msrb.mxu3 %v11333_v1  ;;  %v11377_v1 = vor.u32 %v14480_v26, %v11376_v0 }
 0x64e   : > { %v3704_v48 = vpop.f32.mrf.mxu1 }
 0x64f   : > { %v3713_v63 = vadd.f32 %v3704_v48, %v3566_v58  ;;  %v11441_v48 = vor.u32 %v14496_v45, %v11440_v8  ;;  %v14442_v8 = vld [vmem:[#allocation17 + $0x224] sm:$0xf]  ;;  %v11234_v45 = vld [vmem:[#allocation17 + $0x230] sm:$0xf0] }
 0x651   : > { %v3871_v51 = vadd.f32 %v16784_v31, %v3713_v63  ;;  %v11314_v63 = vld [vmem:[#allocation17 + $0x2d0] sm:$0xf0]  ;;  %4647 = vmatpush.bf16.msrb.mxu1 %v11441_v48  ;;  %v11237_v48 = vor.u32 %v14442_v8, %v11234_v45  ;;  %v14457_v45 = vld [vmem:[#allocation17 + $0x294] sm:$0xf0] }
 0x656   : > { %v3706_v33 = vpop.f32.mrf.mxu1 }
 0x657   : > { %v11424_v33 = vld [vmem:[#allocation17 + $0x3a0] sm:$0xf] }
 0x65c   : > { %11211 = vmatmul.msk.bf16.gmra.mxu3 %vm4105_vm15, %v16810_v15 }
 0x65e   : > { %v4001_v30 = vpop.f32.mrf.mxu1 }
 0x65f   : > { %v4011_v31 = vadd.f32 %v4001_v30, %v3867_v25  ;;  %v11297_v30 = vor.u32 %v14460_v6, %v11296_v2  ;;  %v14438_v6 = vld [vmem:[#allocation17 + $0x204] sm:$0xf] }
 0x661   : > { %v4023_v42 = vadd.f32 %v4019_v43, %v4011_v31  ;;  %v11298_v31 = vld [vmem:[#allocation17 + $0x2b0] sm:$0xf0]  ;;  %4635 = vmatpush.bf16.msra.mxu2 %v11297_v30 }
 0x663   : > { %v4029_v23 = vmax.f32 %v4023_v42, 0.0  ;;  %v14488_v42 = vld [vmem:[#allocation17 + $0x38c] sm:$0xf0] }
 0x665   : > { %v4043_v24 = vrot.slane %v4029_v23, 1 }
 0x666   : > { %v4003_v62 = vpop.f32.mrf.mxu1 }
 0x667   : > { %v4013_v11 = vadd.f32 %v4003_v62, %v3869_v50  ;;  %v11280_v50 = vld [vmem:[#allocation17 + $0x280] sm:$0xf]  ;;  %v11301_v62 = vor.u32 %v14458_v29, %v11298_v31 }
 0x669   : > { %v4025_v44 = vadd.f32 %v4019_v43, %v4013_v11  ;;  %v14456_v11 = vld [vmem:[#allocation17 + $0x28c] sm:$0xf0] }
 0x66b   : > { %v4031_v54 = vmax.f32 %v4025_v44, 0.0  ;;  %v11461_v44 = vor.u32 %v14498_v34, %v11458_v7  ;;  %v11216_v34 = vld [vmem:[#allocation17 + $0x200] sm:$0xf]  ;;  %v14440_v7 = vld [vmem:[#allocation17 + $0x20c] sm:$0xf0] }
 0x66c   : > { %v11217_v30 = vor.u32 %v14440_v7, %v11216_v34  ;;  %v14455_v34 = vld [vmem:[#allocation17 + $0x28c] sm:$0xf]  ;;  %v11290_v7 = vld [vmem:[#allocation17 + $0x298] sm:$0xf0] }
 0x66d   : > { %v4044_v9 = vrot.slane %v4031_v54, 1 }
 0x66e   : > { %v4006_v21 = vpop.f32.mrf.mxu1 }
 0x66f   : > { %v4015_v12 = vadd.f32 %v4006_v21, %v3871_v51  ;;  %v4045_v35 = vsel %vm1094_vm3, %v4043_v24, %v4044_v9  ;;  %v11317_v51 = vor.u32 %v14462_v47, %v11314_v63  ;;  %v11281_v21 = vor.u32 %v14456_v11, %v11280_v50  ;;  %v14452_v24 = vld [vmem:[#allocation17 + $0x26c] sm:$0xf0]  ;;  %v14482_v47 = vld [vmem:[#allocation17 + $0x364] sm:$0xf]  ;;  %v11344_v63 = vld [vmem:[#allocation17 + $0x300] sm:$0xf] }
 0x670   : > { %v4057_v37 = vmax.f32 %v4029_v23, %v4045_v35  ;;  %v14494_v23 = vld [vmem:[#allocation17 + $0x3c4] sm:$0xf]  ;;  %v14484_v35 = vld [vmem:[#allocation17 + $0x36c] sm:$0xf0]  ;;  %v11362_v50 = vld [vmem:[#allocation17 + $0x330] sm:$0xf0] }
 0x671   : > { %v4027_v18 = vadd.f32 %v4019_v43, %v4015_v12  ;;  %v11425_v43 = vor.u32 %v14492_v28, %v11424_v33  ;;  %4660 = vmatpush.bf16.msrb.mxu3 %v11317_v51  ;;  %v11264_v12 = vld [vmem:[#allocation17 + $0x260] sm:$0xf]  ;;  %4636 = vmatpush.bf16.msra.mxu2 %v11281_v21  ;;  %v14472_v51 = vld [vmem:[#allocation17 + $0x30c] sm:$0xf0]  ;;  %v11218_v33 = vld [vmem:[#allocation17 + $0x210] sm:$0xf0] }
 0x672   : > { %v4071_v46 = vrot.slane %v4057_v37, 6  ;;  %v11345_v28 = vor.u32 %v14472_v51, %v11344_v63  ;;  %v11221_v29 = vor.u32 %v14438_v6, %v11218_v33  ;;  %v14470_v11 = vld [vmem:[#allocation17 + $0x304] sm:$0xf]  ;;  %v14467_v21 = vld [vmem:[#allocation17 + $0x2ec] sm:$0xf]  ;;  %v11293_v63 = vor.u32 %v14455_v34, %v11290_v7 }
 0x673   : > { %v4033_v49 = vmax.f32 %v4027_v18, 0.0  ;;  %4648 = vmatpush.bf16.msrb.mxu1 %v11425_v43  ;;  %v14474_v43 = vld [vmem:[#allocation17 + $0x324] sm:$0xf]  ;;  %v11418_v51 = vld [vmem:[#allocation17 + $0x398] sm:$0xf0] }
 0x674   : > { %v11272_v6 = vld [vmem:[#allocation17 + $0x268] sm:$0xf]  ;;  %v14453_v33 = vld [vmem:[#allocation17 + $0x274] sm:$0xf0] }
 0x675   : > { %v4048_v13 = vrot.slane %v4033_v49, 1  ;;  %4661 = vmatpush.bf16.msrb.mxu3 %v11301_v62  ;;  %v11365_v62 = vor.u32 %v14474_v43, %v11362_v50 }
 0x676   : > { %v4008_v58 = vpop.f32.mrf.mxu1 }
 0x677   : > { %v4061_v14 = vmax.f32 %v4033_v49, %v4048_v13  ;;  %v4049_v22 = vsel %vm1094_vm3, %v4044_v9, %v4048_v13  ;;  %v11409_v9 = vor.u32 %v14488_v42, %v11408_v32  ;;  %v11392_v49 = vld [vmem:[#allocation17 + $0x360] sm:$0xf]  ;;  %v14450_v58 = vld [vmem:[#allocation17 + $0x264] sm:$0xf]  ;;  %v11346_v32 = vld [vmem:[#allocation17 + $0x310] sm:$0xf0] }
 0x678   : > { %v4059_v61 = vmax.f32 %v4031_v54, %v4049_v22  ;;  %v11282_v54 = vld [vmem:[#allocation17 + $0x290] sm:$0xf0]  ;;  %v11393_v59 = vor.u32 %v14484_v35, %v11392_v49  ;;  %v11349_v42 = vor.u32 %v14470_v11, %v11346_v32  ;;  %v11320_v49 = vld [vmem:[#allocation17 + $0x2c8] sm:$0xf]  ;;  %v11402_v11 = vld [vmem:[#allocation17 + $0x378] sm:$0xf0] }
 0x679   : > { %v4076_v38 = vrot.slane %v4061_v14, 6  ;;  %v11285_v18 = vor.u32 %v14454_v57, %v11282_v54  ;;  %v11426_v22 = vld [vmem:[#allocation17 + $0x3b0] sm:$0xf0]  ;;  %4649 = vmatpush.bf16.msrb.mxu1 %v11409_v9  ;;  %v14469_v57 = vld [vmem:[#allocation17 + $0x2f4] sm:$0xf0] }
 0x67a   : > { %v4072_v56 = vrot.slane %v4059_v61, 6  ;;  %v11464_v54 = vld [vmem:[#allocation17 + $0x3e8] sm:$0xf]  ;;  %v11338_v9 = vld [vmem:[#allocation17 + $0x2f8] sm:$0xf0] }
 0x67b   : > { %v4089_v10 = vmax.f32 %v4061_v14, %v4076_v38  ;;  %v14490_v14 = vld [vmem:[#allocation17 + $0x3a4] sm:$0xf]  ;;  %4662 = vmatpush.bf16.msrb.mxu3 %v11285_v18  ;;  %v14499_v18 = vld [vmem:[#allocation17 + $0x3ec] sm:$0xf]  ;;  %v11256_v32 = vld [vmem:[#allocation17 + $0x248] sm:$0xf] }
 0x67c   : > { %v4073_v5 = vsel %vm2657_vm10, %v4071_v46, %v4072_v56  ;;  %v4077_v4 = vsel %vm2657_vm10, %v4072_v56, %v4076_v38  ;;  %v11429_v53 = vor.u32 %v14490_v14, %v11426_v22  ;;  %v14446_v46 = vld [vmem:[#allocation17 + $0x244] sm:$0xf]  ;;  %v11250_v56 = vld [vmem:[#allocation17 + $0x250] sm:$0xf0] }
 0x67d   : > { %v4096_v39 = vpack.c.bf16 %v4089_v10, %v4089_v10  ;;  %v4085_v25 = vmax.f32 %v4057_v37, %v4073_v5  ;;  %v4087_v41 = vmax.f32 %v4059_v61, %v4077_v4  ;;  %v11266_v37 = vld [vmem:[#allocation17 + $0x270] sm:$0xf0]  ;;  %v11265_v61 = vor.u32 %v14452_v24, %v11264_v12  ;;  %4650 = vmatpush.bf16.msrb.mxu1 %v11393_v59  ;;  %v11360_v5 = vld [vmem:[#allocation17 + $0x320] sm:$0xf]  ;;  %v14476_v4 = vld [vmem:[#allocation17 + $0x32c] sm:$0xf0] }
 0x67e   : > { %v11269_v38 = vor.u32 %v14450_v58, %v11266_v37  ;;  %v11249_v10 = vor.u32 %v14448_v60, %v11248_v19  ;;  %v11253_v36 = vor.u32 %v14446_v46, %v11250_v56  ;;  %v11341_v24 = vor.u32 %v14467_v21, %v11338_v9  ;;  %v11448_v58 = vld [vmem:[#allocation17 + $0x3c8] sm:$0xf]  ;;  %v14497_v37 = vld [vmem:[#allocation17 + $0x3d4] sm:$0xf0]  ;;  %v11322_v59 = vld [vmem:[#allocation17 + $0x2d8] sm:$0xf0] }
 0x67f   : > { %v4119_v20 = vand.u32 %v16792_v55, %v4096_v39  ;;  %v4094_v40 = vpack.c.bf16 %v4087_v41, %v4085_v25  ;;  %v11442_v55 = vld [vmem:[#allocation17 + $0x3d0] sm:$0xf0]  ;;  %4637 = vmatpush.bf16.msra.mxu2 %v11265_v61  ;;  %v11361_v41 = vor.u32 %v14476_v4, %v11360_v5  ;;  %v11449_v22 = vor.u32 %v14497_v37, %v11448_v58  ;;  %v14463_v61 = vld [vmem:[#allocation17 + $0x2cc] sm:$0xf]  ;;  %v11304_v46 = vld [vmem:[#allocation17 + $0x2a8] sm:$0xf] }
 0x680   : > { %v11445_v13 = vor.u32 %v14494_v23, %v11442_v55  ;;  %4663 = vmatpush.bf16.msrb.mxu3 %v11269_v38  ;;  %v11394_v39 = vld [vmem:[#allocation17 + $0x370] sm:$0xf0]  ;;  %v14501_v55 = vld [vmem:[#allocation17 + $0x3f4] sm:$0xf0]  ;;  %v14495_v19 = vld [vmem:[#allocation17 + $0x3cc] sm:$0xf]  ;;  %v11325_v60 = vor.u32 %v14463_v61, %v11322_v59 }
 0x681   : > { %4145 = vmatpush.bf16.msra.mxu0 %v4119_v20  ;;  %4651 = vmatpush.bf16.msrb.mxu1 %v11377_v1  ;;  %v11397_v2 = vor.u32 %v14482_v47, %v11394_v39  ;;  %v14478_v20 = vld [vmem:[#allocation17 + $0x344] sm:$0xf]  ;;  %v11465_v12 = vor.u32 %v14501_v55, %v11464_v54  ;;  %v11450_v38 = vld [vmem:[#allocation17 + $0x3d8] sm:$0xf0]  ;;  %v14461_v56 = vld [vmem:[#allocation17 + $0x2b4] sm:$0xf0] }
 0x682   : > { %v11453_v0 = vor.u32 %v14495_v19, %v11450_v38  ;;  %v11305_v3 = vor.u32 %v14461_v56, %v11304_v46  ;;  %v14459_v1 = vld [vmem:[#allocation17 + $0x2ac] sm:$0xf]  ;;  %v11434_v4 = vld [vmem:[#allocation17 + $0x3b8] sm:$0xf0]  ;;  %v11416_v47 = vld [vmem:[#allocation17 + $0x388] sm:$0xf] }
 0x683   : > { %4638 = vmatpush.bf16.msra.mxu2 %v11249_v10  ;;  %v14493_v10 = vld [vmem:[#allocation17 + $0x3b4] sm:$0xf0]  ;;  %v14491_v5 = vld [vmem:[#allocation17 + $0x3ac] sm:$0xf]  ;;  %v11258_v9 = vld [vmem:[#allocation17 + $0x258] sm:$0xf0] }
 0x684   : > { %4664 = vmatpush.bf16.msrb.mxu3 %v11253_v36  ;;  %v11437_v8 = vor.u32 %v14491_v5, %v11434_v4  ;;  %v14489_v39 = vld [vmem:[#allocation17 + $0x394] sm:$0xf0]  ;;  %v14447_v21 = vld [vmem:[#allocation17 + $0x24c] sm:$0xf]  ;;  %v11368_v58 = vld [vmem:[#allocation17 + $0x328] sm:$0xf] }
 0x685   : > { %4146 = vmatpush.bf16.msra.mxu0 %v4094_v40  ;;  %v11378_v40 = vld [vmem:[#allocation17 + $0x350] sm:$0xf0]  ;;  %4652 = vmatpush.bf16.msrb.mxu1 %v11361_v41  ;;  %v11417_v41 = vor.u32 %v14489_v39, %v11416_v47  ;;  %v14481_v54 = vld [vmem:[#allocation17 + $0x354] sm:$0xf0]  ;;  %v11242_v61 = vld [vmem:[#allocation17 + $0x238] sm:$0xf0] }
 0x686   : > { %v11381_v31 = vor.u32 %v14478_v20, %v11378_v40  ;;  %v11400_v20 = vld [vmem:[#allocation17 + $0x368] sm:$0xf]  ;;  %v11370_v38 = vld [vmem:[#allocation17 + $0x338] sm:$0xf0]  ;;  %v14441_v56 = vld [vmem:[#allocation17 + $0x214] sm:$0xf0] }
 0x687   : > { %v11224_v46 = vld [vmem:[#allocation17 + $0x208] sm:$0xf]  ;;  %v14471_v5 = vld [vmem:[#allocation17 + $0x30c] sm:$0xf]  ;;  %v11354_v4 = vld [vmem:[#allocation17 + $0x318] sm:$0xf0] }
 0x688   : > { %11212 = vmatmul.msk.bf16.vlgmr.msra.gmra.mxu0 %vm4105_vm15, %v16803_v52  ;;  %v14444_v52 = vld [vmem:[#allocation17 + $0x22c] sm:$0xf0]  ;;  %4665 = vmatpush.bf16.msrb.mxu3 %v11237_v48  ;;  %v14487_v48 = vld [vmem:[#allocation17 + $0x38c] sm:$0xf] }
 0x689   : > { %4672 = vmatpush.bf16.msrb.mxu0 %v11461_v44  ;;  %v11233_v25 = vor.u32 %v14444_v52, %v11232_v27  ;;  %4653 = vmatpush.bf16.msrb.mxu1 %v11345_v28  ;;  %v11336_v44 = vld [vmem:[#allocation17 + $0x2e8] sm:$0xf]  ;;  %v11306_v27 = vld [vmem:[#allocation17 + $0x2b8] sm:$0xf0]  ;;  %v11433_v52 = vor.u32 %v14493_v10, %v11432_v17  ;;  %v14485_v28 = vld [vmem:[#allocation17 + $0x374] sm:$0xf0] }
 0x68a   : > { %v11337_v23 = vor.u32 %v14469_v57, %v11336_v44  ;;  %v11309_v36 = vor.u32 %v14459_v1, %v11306_v27  ;;  %v11401_v43 = vor.u32 %v14485_v28, %v11400_v20  ;;  %v14449_v44 = vld [vmem:[#allocation17 + $0x254] sm:$0xf0]  ;;  %v11384_v57 = vld [vmem:[#allocation17 + $0x348] sm:$0xf]  ;;  %v14439_v1 = vld [vmem:[#allocation17 + $0x20c] sm:$0xf] }
 0x68b   : > { %4639 = vmatpush.bf16.msra.mxu2 %v11233_v25  ;;  %v11385_v55 = vor.u32 %v14481_v54, %v11384_v57  ;;  %v11352_v17 = vld [vmem:[#allocation17 + $0x308] sm:$0xf]  ;;  %v14473_v10 = vld [vmem:[#allocation17 + $0x314] sm:$0xf0]  ;;  %v11226_v27 = vld [vmem:[#allocation17 + $0x218] sm:$0xf0] }
 0x68c   : > { %4666 = vmatpush.bf16.msrb.mxu3 %v11221_v29  ;;  %v14451_v29 = vld [vmem:[#allocation17 + $0x26c] sm:$0xf]  ;;  %v14402_v20 = vld [vmem:[#allocation17 + $0xe4] sm:$0xf] }
 0x68d   : > { %4673 = vmatpush.bf16.msrb.mxu0 %v11445_v13  ;;  %v14465_v13 = vld [vmem:[#allocation17 + $0x2d4] sm:$0xf0]  ;;  %4698 = vmatpush.bf16.msra.mxu1 %v11465_v12  ;;  %v14479_v12 = vld [vmem:[#allocation17 + $0x34c] sm:$0xf] }
 0x68e   : > { %v11321_v14 = vor.u32 %v14465_v13, %v11320_v49  ;;  %v14445_v13 = vld [vmem:[#allocation17 + $0x234] sm:$0xf0] }
 0x68f   : > { %4640 = vmatpush.bf16.msra.mxu2 %v11217_v30  ;;  %v11273_v30 = vor.u32 %v14453_v33, %v11272_v6  ;;  %v14436_v33 = vld [vmem:[#allocation17 + $0x1ec] sm:$0xf0] }
 0x690   : > { %4711 = vmatpush.bf16.msra.mxu3 %v11341_v24  ;;  %v11261_v24 = vor.u32 %v14447_v21, %v11258_v9  ;;  %v14400_v21 = vld [vmem:[#allocation17 + $0xcc] sm:$0xf0] }
 0x691   : > { %4674 = vmatpush.bf16.msrb.mxu0 %v11429_v53  ;;  %4699 = vmatpush.bf16.msra.mxu1 %v11449_v22  ;;  %v14443_v22 = vld [vmem:[#allocation17 + $0x22c] sm:$0xf] }
 0x692   : > { %v11245_v19 = vor.u32 %v14443_v22, %v11242_v61  ;;  %v11552_v61 = vld [vmem:[#allocation17 + $0xa0] sm:$0xf] }
 0x693   : > { %4685 = vmatpush.bf16.msrb.mxu2 %v11337_v23  ;;  %v11257_v23 = vor.u32 %v14449_v44, %v11256_v32  ;;  %v11714_v32 = vld [vmem:[#allocation17 + $0x1f0] sm:$0xf0] }
 0x694   : > { %4712 = vmatpush.bf16.msra.mxu3 %v11325_v60  ;;  %v14475_v60 = vld [vmem:[#allocation17 + $0x32c] sm:$0xf] }
 0x695   : > { %4675 = vmatpush.bf16.msrb.mxu0 %v11413_v16  ;;  %v11288_v16 = vld [vmem:[#allocation17 + $0x288] sm:$0xf]  ;;  %4700 = vmatpush.bf16.msra.mxu1 %v11433_v52  ;;  %v11353_v52 = vor.u32 %v14473_v10, %v11352_v17  ;;  %v11554_v17 = vld [vmem:[#allocation17 + $0xb0] sm:$0xf0] }
 0x696   : > { %v11289_v25 = vor.u32 %v14457_v45, %v11288_v16  ;;  %v11357_v16 = vor.u32 %v14471_v5, %v11354_v4  ;;  %v11682_v10 = vld [vmem:[#allocation17 + $0x1b0] sm:$0xf0] }
 0x697   : > { %4686 = vmatpush.bf16.msrb.mxu2 %v11321_v14  ;;  %v14477_v14 = vld [vmem:[#allocation17 + $0x334] sm:$0xf0] }
 0x698   : > { %11213 = vmatmul.msk.bf16.gmra.mxu0 %vm4105_vm15, %v16810_v15  ;;  %v11466_v15 = vld [vmem:[#allocation17 + $0x3f8] sm:$0xf0]  ;;  %4713 = vmatpush.bf16.msra.mxu3 %v11309_v36  ;;  %v11369_v59 = vor.u32 %v14477_v14, %v11368_v58  ;;  %v11229_v36 = vor.u32 %v14439_v1, %v11226_v27  ;;  %v14430_v58 = vld [vmem:[#allocation17 + $0x1c4] sm:$0xf] }
 0x699   : > { %4676 = vmatpush.bf16.msrb.mxu0 %v11397_v2  ;;  %v11469_v35 = vor.u32 %v14499_v18, %v11466_v15  ;;  %v11421_v2 = vor.u32 %v14487_v48, %v11418_v51  ;;  %4701 = vmatpush.bf16.msra.mxu1 %v11417_v41  ;;  %v11386_v18 = vld [vmem:[#allocation17 + $0x358] sm:$0xf0]  ;;  %v14404_v51 = vld [vmem:[#allocation17 + $0xec] sm:$0xf0] }
 0x69a   : > { %v11389_v15 = vor.u32 %v14479_v12, %v11386_v18  ;;  %v14432_v18 = vld [vmem:[#allocation17 + $0x1cc] sm:$0xf0] }
 0x69b   : > { %4687 = vmatpush.bf16.msrb.mxu2 %v11305_v3  ;;  %v11225_v3 = vor.u32 %v14441_v56, %v11224_v46  ;;  %v14394_v46 = vld [vmem:[#allocation17 + $0xa4] sm:$0xf] }
 0x69c   : > { %4714 = vmatpush.bf16.msra.mxu3 %v11293_v63  ;;  %v11557_v5 = vor.u32 %v14394_v46, %v11554_v17  ;;  %v14412_v46 = vld [vmem:[#allocation17 + $0x12c] sm:$0xf0]  ;;  %v11490_v17 = vld [vmem:[#allocation17 + $0x30] sm:$0xf0] }
 0x69d   : > { %4677 = vmatpush.bf16.msrb.mxu0 %v11381_v31  ;;  %v11274_v31 = vld [vmem:[#allocation17 + $0x278] sm:$0xf0]  ;;  %4702 = vmatpush.bf16.msra.mxu1 %v11401_v43 }
 0x69e   : > { %v11277_v50 = vor.u32 %v14451_v29, %v11274_v31  ;;  %v11586_v29 = vld [vmem:[#allocation17 + $0xf0] sm:$0xf0]  ;;  %v14434_v31 = vld [vmem:[#allocation17 + $0x1e4] sm:$0xf] }
 0x69f   : > { %4688 = vmatpush.bf16.msrb.mxu2 %v11289_v25  ;;  %v11589_v9 = vor.u32 %v14402_v20, %v11586_v29  ;;  %v11717_v12 = vor.u32 %v14434_v31, %v11714_v32  ;;  %v14388_v20 = vld [vmem:[#allocation17 + $0x6c] sm:$0xf0]  ;;  %v14386_v32 = vld [vmem:[#allocation17 + $0x64] sm:$0xf] }
 0x6a0   : > { %4715 = vmatpush.bf16.msra.mxu3 %v11277_v50 }
 0x6a1   : > { %4678 = vmatpush.bf16.msrb.mxu0 %v11365_v62  ;;  %v14483_v62 = vld [vmem:[#allocation17 + $0x36c] sm:$0xf]  ;;  %4703 = vmatpush.bf16.msra.mxu1 %v11385_v55  ;;  %v11568_v55 = vld [vmem:[#allocation17 + $0xc0] sm:$0xf] }
 0x6a2   : > { %v11569_v14 = vor.u32 %v14400_v21, %v11568_v55  ;;  %v11650_v55 = vld [vmem:[#allocation17 + $0x170] sm:$0xf0] }
 0x6a3   : > { %4689 = vmatpush.bf16.msrb.mxu2 %v11273_v30 }
 0x6a4   : > { %4716 = vmatpush.bf16.msra.mxu3 %v11261_v24  ;;  %v11696_v24 = vld [vmem:[#allocation17 + $0x1c0] sm:$0xf] }
 0x6a5   : > { %4679 = vmatpush.bf16.msrb.mxu0 %v11349_v42  ;;  %v11405_v42 = vor.u32 %v14483_v62, %v11402_v11  ;;  %4704 = vmatpush.bf16.msra.mxu1 %v11369_v59  ;;  %v11697_v22 = vor.u32 %v14432_v18, %v11696_v24  ;;  %v14396_v59 = vld [vmem:[#allocation17 + $0xac] sm:$0xf0] }
 0x6a6   : > { %v11553_v1 = vor.u32 %v14396_v59, %v11552_v61  ;;  %v14384_v24 = vld [vmem:[#allocation17 + $0x4c] sm:$0xf0]  ;;  %v11488_v59 = vld [vmem:[#allocation17 + $0x20] sm:$0xf] }
 0x6a7   : > { %4690 = vmatpush.bf16.msrb.mxu2 %v11257_v23 }
 0x6a8   : > { %4717 = vmatpush.bf16.msra.mxu3 %v11245_v19 }
 0x6a9   : > { %4724 = vmatpush.bf16.msra.mxu0 %v11469_v35  ;;  %v11240_v35 = vld [vmem:[#allocation17 + $0x228] sm:$0xf]  ;;  %4705 = vmatpush.bf16.msra.mxu1 %v11353_v52  ;;  %v11536_v52 = vld [vmem:[#allocation17 + $0x80] sm:$0xf] }
 0x6aa   : > { %v11241_v37 = vor.u32 %v14445_v13, %v11240_v35  ;;  %v11570_v13 = vld [vmem:[#allocation17 + $0xd0] sm:$0xf0] }
 0x6ac   : > { %4691 = vmatpush.bf16.msrb.mxu2 %v11241_v37  ;;  %4718 = vmatpush.bf16.msra.mxu3 %v11229_v36  ;;  %v11698_v37 = vld [vmem:[#allocation17 + $0x1d0] sm:$0xf0]  ;;  %v14392_v36 = vld [vmem:[#allocation17 + $0x8c] sm:$0xf0] }
 0x6ad   : > { %4725 = vmatpush.bf16.msra.mxu0 %v11453_v0  ;;  %v11373_v0 = vor.u32 %v14475_v60, %v11370_v38  ;;  %v11701_v60 = vor.u32 %v14430_v58, %v11698_v37  ;;  %v11680_v38 = vld [vmem:[#allocation17 + $0x1a0] sm:$0xf]  ;;  %v11506_v58 = vld [vmem:[#allocation17 + $0x50] sm:$0xf0]  ;;  %v14414_v37 = vld [vmem:[#allocation17 + $0x144] sm:$0xf] }
 0x6b0   : > { %4692 = vmatpush.bf16.msrb.mxu2 %v11225_v3  ;;  %v14426_v3 = vld [vmem:[#allocation17 + $0x1a4] sm:$0xf] }
 0x6b1   : > { %4726 = vmatpush.bf16.msra.mxu0 %v11437_v8  ;;  %v11685_v4 = vor.u32 %v14426_v3, %v11682_v10  ;;  %v14410_v3 = vld [vmem:[#allocation17 + $0x124] sm:$0xf]  ;;  %v11618_v10 = vld [vmem:[#allocation17 + $0x130] sm:$0xf0] }
 0x6b5   : > { %4727 = vmatpush.bf16.msra.mxu0 %v11421_v2  ;;  %v11712_v2 = vld [vmem:[#allocation17 + $0x1e0] sm:$0xf] }
 0x6b6   : > { %v11713_v44 = vor.u32 %v14436_v33, %v11712_v2  ;;  %v11537_v2 = vor.u32 %v14392_v36, %v11536_v52  ;;  %v11600_v52 = vld [vmem:[#allocation17 + $0x100] sm:$0xf]  ;;  %v14408_v36 = vld [vmem:[#allocation17 + $0x10c] sm:$0xf0] }
 0x6b9   : > { %4728 = vmatpush.bf16.msra.mxu0 %v11405_v42 }
 0x6bd   : > { %4729 = vmatpush.bf16.msra.mxu0 %v11389_v15  ;;  %v14398_v15 = vld [vmem:[#allocation17 + $0xc4] sm:$0xf] }
 0x6be   : > { %v11573_v19 = vor.u32 %v14398_v15, %v11570_v13  ;;  %v11632_v15 = vld [vmem:[#allocation17 + $0x140] sm:$0xf]  ;;  %v14416_v13 = vld [vmem:[#allocation17 + $0x14c] sm:$0xf0] }
 0x6bf   : > { %v11633_v61 = vor.u32 %v14416_v13, %v11632_v15 }
 0x6c1   : > { %4730 = vmatpush.bf16.msra.mxu0 %v11373_v0  ;;  %v14428_v0 = vld [vmem:[#allocation17 + $0x1ac] sm:$0xf0] }
 0x6c2   : > { %v11681_v27 = vor.u32 %v14428_v0, %v11680_v38  ;;  %v11616_v0 = vld [vmem:[#allocation17 + $0x120] sm:$0xf] }
 0x6c5   : > { %4731 = vmatpush.bf16.msra.mxu0 %v11357_v16  ;;  %v11664_v16 = vld [vmem:[#allocation17 + $0x180] sm:$0xf] }
 0x6cf   : > { %v16823_v26 = vpop.f32.mrf.mxu3 }
 0x6d7   : > { %v16825_v53 = vpop.f32.mrf.mxu3 }
 0x6df   : > { %v16827_v40 = vpop.f32.mrf.mxu3 }
 0x6e7   : > { %v4137_v49 = vpop.f32.mrf.mxu3 }
 0x705   : > { %v4148_v8 = vpop.f32.mrf.mxu0 }
 0x706   : > { %v4157_v45 = vpack.c.bf16 %v4148_v8, %v16823_v26  ;;  %v11584_v26 = vld [vmem:[#allocation17 + $0xe0] sm:$0xf]  ;;  %v14424_v8 = vld [vmem:[#allocation17 + $0x18c] sm:$0xf0] }
 0x707   : > { %v11585_v42 = vor.u32 %v14404_v51, %v11584_v26  ;;  %v11666_v26 = vld [vmem:[#allocation17 + $0x190] sm:$0xf0]  ;;  %v11520_v51 = vld [vmem:[#allocation17 + $0x60] sm:$0xf]  ;;  %v11665_v33 = vor.u32 %v14424_v8, %v11664_v16  ;;  %v14374_v16 = vld [vmem:[#allocation17 + $0x4] sm:$0xf] }
 0x708   : > { %v16831_v25 = vunpack.c.l.b16 %v4157_v45  ;;  %v16833_v41 = vunpack.c.h.b16 %v4157_v45  ;;  %v14390_v45 = vld [vmem:[#allocation17 + $0x84] sm:$0xf]  ;;  %v11474_v8 = vld [vmem:[#allocation17 + $0x10] sm:$0xf0] }
 0x70a   : > { %v16892_v15 = vpack.c.b16 %v16831_v25, %v16831_v25  ;;  %v16896_v13 = vpack.c.b16 %v16833_v41, %v16833_v41 }
 0x70d   : > { %v4150_v47 = vpop.f32.mrf.mxu0 }
 0x70e   : > { %v4158_v39 = vpack.c.bf16 %v4150_v47, %v16825_v53  ;;  %v11538_v47 = vld [vmem:[#allocation17 + $0x90] sm:$0xf0] }
 0x710   : > { %v16835_v34 = vunpack.c.l.b16 %v4158_v39  ;;  %v16837_v7 = vunpack.c.h.b16 %v4158_v39  ;;  %v14422_v39 = vld [vmem:[#allocation17 + $0x184] sm:$0xf] }
 0x712   : > { %v16841_v48 = vpack.c.b16 %v16835_v34, %v16831_v25  ;;  %v16845_v63 = vpack.c.b16 %v16837_v7, %v16833_v41  ;;  %v14395_v25 = vld [vmem:[#allocation17 + $0xac] sm:$0xf] }
 0x713   : > { %v14427_v41 = vld [vmem:[#allocation17 + $0x1ac] sm:$0xf] }
 0x714   : > { %v4300_v53 = vshll.u32 %v16841_v48, 16  ;;  %v4307_v6 = vshll.u32 %v16845_v63, 16  ;;  %v4298_v28 = vshrl.u32 %v16841_v48, 16  ;;  %v4305_v62 = vshrl.u32 %v16845_v63, 16 }
 0x715   : > { %v4153_v30 = vpop.f32.mrf.mxu0 }
 0x716   : > { %v4159_v43 = vpack.c.bf16 %v4153_v30, %v16827_v40  ;;  %v4302_v50 = vrot.slane %v4300_v53, 1  ;;  %v4309_v11 = vrot.slane %v4307_v6, 1  ;;  %v11648_v30 = vld [vmem:[#allocation17 + $0x160] sm:$0xf]  ;;  %v6224_v29 = vrot.slane %v4298_v28, 2 }
 0x717   : > { %v6225_v31 = vrot.slane %v4300_v53, 3  ;;  %v11521_v53 = vor.u32 %v14388_v20, %v11520_v51  ;;  %v11720_v51 = vld [vmem:[#allocation17 + $0x1e8] sm:$0xf] }
 0x718   : > { %v7720_v57 = vunpack.c.l.b16 %v4159_v43  ;;  %v7721_v54 = vunpack.c.h.b16 %v4159_v43  ;;  %v16858_v23 = vor.u32 %v4302_v50, %v4298_v28  ;;  %v16862_v40 = vor.u32 %v4309_v11, %v4305_v62  ;;  %v14420_v11 = vld [vmem:[#allocation17 + $0x16c] sm:$0xf0] }
 0x719   : > { %v11541_v43 = vor.u32 %v14390_v45, %v11538_v47  ;;  %v11669_v50 = vor.u32 %v14422_v39, %v11666_v26  ;;  %v16882_v21 = vor.u32 %v6225_v31, %v6224_v29  ;;  %v14406_v45 = vld [vmem:[#allocation17 + $0x104] sm:$0xf]  ;;  %v11602_v47 = vld [vmem:[#allocation17 + $0x110] sm:$0xf0]  ;;  %v11592_v39 = vld [vmem:[#allocation17 + $0xe8] sm:$0xf] }
 0x71a   : > { %v16865_v49 = vpack.c.b16 %v7720_v57, %v16835_v34  ;;  %v16868_v35 = vpack.c.b16 %v7721_v54, %v16837_v7  ;;  %4641 = vmatmul.bf16.vlgmr.msra.gmra.mxu2 %v16858_v23  ;;  %4654 = vmatmul.bf16.vlgmr.msrb.gmra.mxu1 %v16862_v40  ;;  %v11522_v57 = vld [vmem:[#allocation17 + $0x70] sm:$0xf0]  ;;  %v14418_v54 = vld [vmem:[#allocation17 + $0x164] sm:$0xf]  ;;  %v14405_v26 = vld [vmem:[#allocation17 + $0xf4] sm:$0xf0] }
 0x71b   : > { %4667 = vmatmul.bf16.vlgmr.msrb.gmra.mxu3 %v16858_v23  ;;  %4680 = vmatmul.bf16.vlgmr.msrb.gmra.mxu0 %v16862_v40  ;;  %v11525_v18 = vor.u32 %v14386_v32, %v11522_v57  ;;  %v11594_v29 = vld [vmem:[#allocation17 + $0xf8] sm:$0xf0]  ;;  %v14435_v31 = vld [vmem:[#allocation17 + $0x1ec] sm:$0xf]  ;;  %v11593_v32 = vor.u32 %v14405_v26, %v11592_v39  ;;  %v14401_v57 = vld [vmem:[#allocation17 + $0xd4] sm:$0xf0] }
 0x71c   : > { %5061 = vmatpush.bf16.msra.mxu2 %v11585_v42  ;;  %5074 = vmatpush.bf16.msrb.mxu1 %v11713_v44  ;;  %v6227_v42 = vrot.slane %v4305_v62, 2  ;;  %v6228_v44 = vrot.slane %v4307_v6, 3  ;;  %v11653_v62 = vor.u32 %v14418_v54, %v11650_v55  ;;  %v14382_v6 = vld [vmem:[#allocation17 + $0x44] sm:$0xf]  ;;  %v11656_v39 = vld [vmem:[#allocation17 + $0x168] sm:$0xf] }
 0x71d   : > { %5087 = vmatpush.bf16.msrb.mxu3 %v11589_v9  ;;  %5100 = vmatpush.bf16.msrb.mxu0 %v11717_v12  ;;  %v4155_v56 = vpop.f32.mrf.mxu0  ;;  %v11649_v9 = vor.u32 %v14420_v11, %v11648_v30  ;;  %v11504_v12 = vld [vmem:[#allocation17 + $0x40] sm:$0xf]  ;;  %v11601_v30 = vor.u32 %v14408_v36, %v11600_v52  ;;  %v11605_v11 = vor.u32 %v14406_v45, %v11602_v47  ;;  %v14423_v52 = vld [vmem:[#allocation17 + $0x18c] sm:$0xf]  ;;  %v11674_v36 = vld [vmem:[#allocation17 + $0x198] sm:$0xf0] }
 0x71e   : > { %v16884_v28 = vor.u32 %v6228_v44, %v6227_v42  ;;  %v14378_v56 = vld [vmem:[#allocation17 + $0x24] sm:$0xf]  ;;  %v11576_v44 = vld [vmem:[#allocation17 + $0xc8] sm:$0xf]  ;;  %v11677_v47 = vor.u32 %v14423_v52, %v11674_v36  ;;  %v14421_v26 = vld [vmem:[#allocation17 + $0x174] sm:$0xf0] }
 0x71f   : > { %v14530_v52 = vld [vmem:[#allocation17 + $0x4e4] sm:$0xf] }
 0x720   : > { %5062 = vmatpush.bf16.msra.mxu2 %v11569_v14  ;;  %5075 = vmatpush.bf16.msrb.mxu1 %v11697_v22  ;;  %v11634_v14 = vld [vmem:[#allocation17 + $0x150] sm:$0xf0]  ;;  %v11505_v22 = vor.u32 %v14384_v24, %v11504_v12  ;;  %v14399_v12 = vld [vmem:[#allocation17 + $0xcc] sm:$0xf]  ;;  %v11578_v24 = vld [vmem:[#allocation17 + $0xd8] sm:$0xf0] }
 0x721   : > { %5088 = vmatpush.bf16.msrb.mxu3 %v11573_v19  ;;  %5101 = vmatpush.bf16.msrb.mxu0 %v11701_v60  ;;  %v14380_v19 = vld [vmem:[#allocation17 + $0x2c] sm:$0xf0]  ;;  %v11509_v60 = vor.u32 %v14382_v6, %v11506_v58  ;;  %v11637_v38 = vor.u32 %v14414_v37, %v11634_v14  ;;  %v11577_v6 = vor.u32 %v14401_v57, %v11576_v44  ;;  %v11560_v37 = vld [vmem:[#allocation17 + $0xa8] sm:$0xf]  ;;  %v14397_v14 = vld [vmem:[#allocation17 + $0xb4] sm:$0xf0] }
 0x722   : > { %v14383_v44 = vld [vmem:[#allocation17 + $0x4c] sm:$0xf]  ;;  %v11514_v57 = vld [vmem:[#allocation17 + $0x58] sm:$0xf0] }
 0x724   : > { %5063 = vmatpush.bf16.msra.mxu2 %v11553_v1  ;;  %5076 = vmatpush.bf16.msrb.mxu1 %v11681_v27  ;;  %v11472_v1 = vld [vmem:[#allocation17] sm:$0xf]  ;;  %v14376_v27 = vld [vmem:[#allocation17 + $0xc] sm:$0xf0] }
 0x725   : > { %5089 = vmatpush.bf16.msrb.mxu3 %v11557_v5  ;;  %5102 = vmatpush.bf16.msrb.mxu0 %v11685_v4  ;;  %v11493_v5 = vor.u32 %v14378_v56, %v11490_v17  ;;  %v11621_v4 = vor.u32 %v14410_v3, %v11618_v10  ;;  %v11473_v20 = vor.u32 %v14376_v27, %v11472_v1  ;;  %v11544_v56 = vld [vmem:[#allocation17 + $0x88] sm:$0xf]  ;;  %v14393_v17 = vld [vmem:[#allocation17 + $0x94] sm:$0xf0]  ;;  %v11546_v27 = vld [vmem:[#allocation17 + $0x98] sm:$0xf0] }
 0x726   : > { %v11672_v1 = vld [vmem:[#allocation17 + $0x188] sm:$0xf] }
 0x728   : > { %5064 = vmatpush.bf16.msra.mxu2 %v11537_v2  ;;  %5077 = vmatpush.bf16.msrb.mxu1 %v11665_v33  ;;  %v14437_v2 = vld [vmem:[#allocation17 + $0x1f4] sm:$0xf0]  ;;  %v14403_v33 = vld [vmem:[#allocation17 + $0xec] sm:$0xf] }
 0x729   : > { %5090 = vmatpush.bf16.msrb.mxu3 %v11541_v43  ;;  %5103 = vmatpush.bf16.msrb.mxu0 %v11669_v50  ;;  %v11722_v43 = vld [vmem:[#allocation17 + $0x1f8] sm:$0xf0]  ;;  %v11477_v50 = vor.u32 %v14374_v16, %v11474_v8  ;;  %v11721_v42 = vor.u32 %v14437_v2, %v11720_v51  ;;  %v11597_v54 = vor.u32 %v14403_v33, %v11594_v29  ;;  %v11528_v16 = vld [vmem:[#allocation17 + $0x68] sm:$0xf]  ;;  %v14389_v8 = vld [vmem:[#allocation17 + $0x74] sm:$0xf0] }
 0x72a   : > { %4693 = vmatmul.bf16.vlgmr.msrb.gmra.mxu2 %v16858_v23  ;;  %4706 = vmatmul.bf16.vlgmr.msra.gmra.mxu1 %v16862_v40  ;;  %v11725_v55 = vor.u32 %v14435_v31, %v11722_v43  ;;  %v14387_v51 = vld [vmem:[#allocation17 + $0x6c] sm:$0xf]  ;;  %v11530_v2 = vld [vmem:[#allocation17 + $0x78] sm:$0xf0]  ;;  %v11657_v29 = vor.u32 %v14421_v26, %v11656_v39  ;;  %v11512_v31 = vld [vmem:[#allocation17 + $0x48] sm:$0xf] }
 0x72b   : > { %4719 = vmatmul.bf16.vlgmr.msra.gmra.mxu3 %v16858_v23  ;;  %4732 = vmatmul.bf16.vlgmr.msra.gmra.mxu0 %v16862_v40  ;;  %v11489_v23 = vor.u32 %v14380_v19, %v11488_v59  ;;  %v11617_v40 = vor.u32 %v14412_v46, %v11616_v0  ;;  %v11688_v59 = vld [vmem:[#allocation17 + $0x1a8] sm:$0xf]  ;;  %v14429_v19 = vld [vmem:[#allocation17 + $0x1b4] sm:$0xf0]  ;;  %v11561_v0 = vor.u32 %v14397_v14, %v11560_v37  ;;  %v14419_v33 = vld [vmem:[#allocation17 + $0x16c] sm:$0xf] }
 0x72c   : > { %5065 = vmatpush.bf16.msra.mxu2 %v11521_v53  ;;  %5078 = vmatpush.bf16.msrb.mxu1 %v11649_v9  ;;  %v11704_v53 = vld [vmem:[#allocation17 + $0x1c8] sm:$0xf]  ;;  %v14433_v9 = vld [vmem:[#allocation17 + $0x1d4] sm:$0xf0]  ;;  %v11689_v46 = vor.u32 %v14429_v19, %v11688_v59  ;;  %v14379_v37 = vld [vmem:[#allocation17 + $0x2c] sm:$0xf] }
 0x72d   : > { %5091 = vmatpush.bf16.msrb.mxu3 %v11525_v18  ;;  %5104 = vmatpush.bf16.msrb.mxu0 %v11653_v62  ;;  %v14431_v18 = vld [vmem:[#allocation17 + $0x1cc] sm:$0xf]  ;;  %v11706_v62 = vld [vmem:[#allocation17 + $0x1d8] sm:$0xf0]  ;;  %v11705_v58 = vor.u32 %v14433_v9, %v11704_v53  ;;  %v14385_v43 = vld [vmem:[#allocation17 + $0x54] sm:$0xf0] }
 0x72e   : > { %v11513_v53 = vor.u32 %v14385_v43, %v11512_v31  ;;  %v11498_v14 = vld [vmem:[#allocation17 + $0x38] sm:$0xf0]  ;;  %v11480_v59 = vld [vmem:[#allocation17 + $0x8] sm:$0xf]  ;;  %v14526_v31 = vld [vmem:[#allocation17 + $0x4c4] sm:$0xf] }
 0x72f   : > { %v11826_v43 = vld [vmem:[#allocation17 + $0x4d0] sm:$0xf0] }
 0x730   : > { %5066 = vmatpush.bf16.msra.mxu2 %v11505_v22  ;;  %5079 = vmatpush.bf16.msrb.mxu1 %v11633_v61  ;;  %v11581_v22 = vor.u32 %v14399_v12, %v11578_v24  ;;  %v11709_v61 = vor.u32 %v14431_v18, %v11706_v62  ;;  %v11496_v12 = vld [vmem:[#allocation17 + $0x28] sm:$0xf]  ;;  %v14381_v24 = vld [vmem:[#allocation17 + $0x34] sm:$0xf0]  ;;  %v11517_v18 = vor.u32 %v14383_v44, %v11514_v57  ;;  %v11808_v44 = vld [vmem:[#allocation17 + $0x4a0] sm:$0xf] }
 0x731   : > { %5092 = vmatpush.bf16.msrb.mxu3 %v11509_v60  ;;  %5105 = vmatpush.bf16.msrb.mxu0 %v11637_v38  ;;  %v11562_v60 = vld [vmem:[#allocation17 + $0xb8] sm:$0xf0]  ;;  %v11497_v19 = vor.u32 %v14381_v24, %v11496_v12  ;;  %v14524_v57 = vld [vmem:[#allocation17 + $0x4ac] sm:$0xf0]  ;;  %v14522_v12 = vld [vmem:[#allocation17 + $0x4a4] sm:$0xf] }
 0x732   : > { %v11690_v38 = vld [vmem:[#allocation17 + $0x1b8] sm:$0xf0]  ;;  %v11565_v3 = vor.u32 %v14395_v25, %v11562_v60  ;;  %v14377_v60 = vld [vmem:[#allocation17 + $0x14] sm:$0xf0]  ;;  %v11810_v24 = vld [vmem:[#allocation17 + $0x4b0] sm:$0xf0] }
 0x733   : > { %v11693_v10 = vor.u32 %v14427_v41, %v11690_v38  ;;  %v11608_v41 = vld [vmem:[#allocation17 + $0x108] sm:$0xf]  ;;  %v14409_v38 = vld [vmem:[#allocation17 + $0x114] sm:$0xf0]  ;;  %v11481_v36 = vor.u32 %v14377_v60, %v11480_v59  ;;  %v11920_v59 = vld [vmem:[#allocation17 + $0x580] sm:$0xf] }
 0x734   : > { %5067 = vmatpush.bf16.msra.mxu2 %v11489_v23  ;;  %5080 = vmatpush.bf16.msrb.mxu1 %v11617_v40  ;;  %v14425_v23 = vld [vmem:[#allocation17 + $0x194] sm:$0xf0]  ;;  %v14391_v40 = vld [vmem:[#allocation17 + $0x8c] sm:$0xf]  ;;  %v11794_v60 = vld [vmem:[#allocation17 + $0x490] sm:$0xf0] }
 0x735   : > { %5093 = vmatpush.bf16.msrb.mxu3 %v11493_v5  ;;  %5106 = vmatpush.bf16.msrb.mxu0 %v11621_v4  ;;  %v11545_v5 = vor.u32 %v14393_v17, %v11544_v56  ;;  %v11673_v4 = vor.u32 %v14425_v23, %v11672_v1  ;;  %v11549_v45 = vor.u32 %v14391_v40, %v11546_v27  ;;  %v14375_v56 = vld [vmem:[#allocation17 + $0xc] sm:$0xf]  ;;  %v11482_v17 = vld [vmem:[#allocation17 + $0x18] sm:$0xf0]  ;;  %v11840_v1 = vld [vmem:[#allocation17 + $0x4e0] sm:$0xf] }
 0x736   : > { %v14532_v23 = vld [vmem:[#allocation17 + $0x4ec] sm:$0xf0]  ;;  %v11968_v40 = vld [vmem:[#allocation17 + $0x5e0] sm:$0xf] }
 0x737   : > { %v14564_v27 = vld [vmem:[#allocation17 + $0x5ec] sm:$0xf0]  ;;  %v11841_v39 = vor.u32 %v14532_v23, %v11840_v1  ;;  %v14514_v1 = vld [vmem:[#allocation17 + $0x464] sm:$0xf]  ;;  %v11778_v23 = vld [vmem:[#allocation17 + $0x470] sm:$0xf0] }
 0x738   : > { %5068 = vmatpush.bf16.msra.mxu2 %v11473_v20  ;;  %5081 = vmatpush.bf16.msrb.mxu1 %v11601_v30  ;;  %v11658_v20 = vld [vmem:[#allocation17 + $0x178] sm:$0xf0]  ;;  %v11529_v30 = vor.u32 %v14389_v8, %v11528_v16  ;;  %v14562_v16 = vld [vmem:[#allocation17 + $0x5e4] sm:$0xf]  ;;  %v11970_v8 = vld [vmem:[#allocation17 + $0x5f0] sm:$0xf0]  ;;  %v11969_v26 = vor.u32 %v14564_v27, %v11968_v40 }
 0x739   : > { %5094 = vmatpush.bf16.msrb.mxu3 %v11477_v50  ;;  %5107 = vmatpush.bf16.msrb.mxu0 %v11605_v11  ;;  %v11533_v50 = vor.u32 %v14387_v51, %v11530_v2  ;;  %v11661_v11 = vor.u32 %v14419_v33, %v11658_v20  ;;  %v11824_v51 = vld [vmem:[#allocation17 + $0x4c0] sm:$0xf]  ;;  %v14528_v2 = vld [vmem:[#allocation17 + $0x4cc] sm:$0xf0]  ;;  %v11973_v20 = vor.u32 %v14562_v16, %v11970_v8  ;;  %v14546_v40 = vld [vmem:[#allocation17 + $0x564] sm:$0xf] }
 0x73a   : > { %v11906_v27 = vld [vmem:[#allocation17 + $0x570] sm:$0xf0]  ;;  %v11781_v16 = vor.u32 %v14514_v1, %v11778_v23 }
 0x73b   : > { %5069 = vmatmul.bf16.vlgmr.msra.gmra.mxu2 %v16892_v15  ;;  %5082 = vmatmul.bf16.vlgmr.msrb.gmra.mxu1 %v16896_v13  ;;  %v11909_v8 = vor.u32 %v14546_v40, %v11906_v27  ;;  %v11960_v40 = vld [vmem:[#allocation17 + $0x5c8] sm:$0xf]  ;;  %v14561_v27 = vld [vmem:[#allocation17 + $0x5d4] sm:$0xf0] }
 0x73c   : > { %5113 = vmatpush.bf16.msrb.mxu2 %v11593_v32  ;;  %5126 = vmatpush.bf16.msra.mxu1 %v11721_v42  ;;  %v11640_v32 = vld [vmem:[#allocation17 + $0x148] sm:$0xf]  ;;  %v14417_v42 = vld [vmem:[#allocation17 + $0x154] sm:$0xf0] }
 0x73d   : > { %5139 = vmatpush.bf16.msra.mxu3 %v11597_v54  ;;  %5152 = vmatpush.bf16.msra.mxu0 %v11725_v55  ;;  %v14415_v54 = vld [vmem:[#allocation17 + $0x14c] sm:$0xf]  ;;  %v11642_v55 = vld [vmem:[#allocation17 + $0x158] sm:$0xf0]  ;;  %v11641_v9 = vor.u32 %v14417_v42, %v11640_v32  ;;  %v11825_v32 = vor.u32 %v14528_v2, %v11824_v51  ;;  %v14542_v51 = vld [vmem:[#allocation17 + $0x544] sm:$0xf] }
 0x73e   : > { %5095 = vmatmul.bf16.vlgmr.msrb.gmra.mxu3 %v16892_v15  ;;  %5108 = vmatmul.bf16.vlgmr.msrb.gmra.mxu0 %v16896_v13  ;;  %v11645_v62 = vor.u32 %v14415_v54, %v11642_v55  ;;  %v11829_v54 = vor.u32 %v14526_v31, %v11826_v43  ;;  %v11890_v2 = vld [vmem:[#allocation17 + $0x550] sm:$0xf0] }
 0x73f   : > { %v11893_v43 = vor.u32 %v14542_v51, %v11890_v2 }
 0x740   : > { %5114 = vmatpush.bf16.msrb.mxu2 %v11577_v6  ;;  %5127 = vmatpush.bf16.msra.mxu1 %v11705_v58  ;;  %v11624_v6 = vld [vmem:[#allocation17 + $0x128] sm:$0xf]  ;;  %v14413_v58 = vld [vmem:[#allocation17 + $0x134] sm:$0xf0] }
 0x741   : > { %5140 = vmatpush.bf16.msra.mxu3 %v11581_v22  ;;  %5153 = vmatpush.bf16.msra.mxu0 %v11709_v61  ;;  %v14411_v22 = vld [vmem:[#allocation17 + $0x12c] sm:$0xf]  ;;  %v11626_v61 = vld [vmem:[#allocation17 + $0x138] sm:$0xf0]  ;;  %v11625_v25 = vor.u32 %v14413_v58, %v11624_v6  ;;  %v11809_v6 = vor.u32 %v14524_v57, %v11808_v44  ;;  %v14538_v44 = vld [vmem:[#allocation17 + $0x524] sm:$0xf] }
 0x742   : > { %v11874_v57 = vld [vmem:[#allocation17 + $0x530] sm:$0xf0] }
 0x744   : > { %5115 = vmatpush.bf16.msrb.mxu2 %v11561_v0  ;;  %5128 = vmatpush.bf16.msra.mxu1 %v11689_v46  ;;  %v11501_v0 = vor.u32 %v14379_v37, %v11498_v14  ;;  %v11629_v46 = vor.u32 %v14411_v22, %v11626_v61  ;;  %v11792_v37 = vld [vmem:[#allocation17 + $0x480] sm:$0xf]  ;;  %v14520_v14 = vld [vmem:[#allocation17 + $0x48c] sm:$0xf0]  ;;  %v11813_v22 = vor.u32 %v14522_v12, %v11810_v24 }
 0x745   : > { %5141 = vmatpush.bf16.msra.mxu3 %v11565_v3  ;;  %5154 = vmatpush.bf16.msra.mxu0 %v11693_v10  ;;  %v14407_v3 = vld [vmem:[#allocation17 + $0x10c] sm:$0xf]  ;;  %v11610_v10 = vld [vmem:[#allocation17 + $0x118] sm:$0xf0]  ;;  %v11856_v12 = vld [vmem:[#allocation17 + $0x500] sm:$0xf] }
 0x746   : > { %v14536_v24 = vld [vmem:[#allocation17 + $0x50c] sm:$0xf0] }
 0x748   : > { %5116 = vmatpush.bf16.msrb.mxu2 %v11545_v5  ;;  %5129 = vmatpush.bf16.msra.mxu1 %v11673_v4  ;;  %v11609_v5 = vor.u32 %v14409_v38, %v11608_v41  ;;  %v11842_v4 = vld [vmem:[#allocation17 + $0x4f0] sm:$0xf0]  ;;  %v14550_v41 = vld [vmem:[#allocation17 + $0x584] sm:$0xf] }
 0x749   : > { %5142 = vmatpush.bf16.msra.mxu3 %v11549_v45  ;;  %5155 = vmatpush.bf16.msra.mxu0 %v11677_v47  ;;  %v11485_v45 = vor.u32 %v14375_v56, %v11482_v17  ;;  %v11613_v47 = vor.u32 %v14407_v3, %v11610_v10  ;;  %v11845_v33 = vor.u32 %v14530_v52, %v11842_v4  ;;  %v11922_v38 = vld [vmem:[#allocation17 + $0x590] sm:$0xf0]  ;;  %v11904_v3 = vld [vmem:[#allocation17 + $0x560] sm:$0xf]  ;;  %v14548_v10 = vld [vmem:[#allocation17 + $0x56c] sm:$0xf0] }
 0x74a   : > { %v11925_v17 = vor.u32 %v14550_v41, %v11922_v38  ;;  %v14512_v4 = vld [vmem:[#allocation17 + $0x44c] sm:$0xf0]  ;;  %v11857_v41 = vor.u32 %v14536_v24, %v11856_v12  ;;  %v11850_v38 = vld [vmem:[#allocation17 + $0x4f8] sm:$0xf0]  ;;  %v14551_v12 = vld [vmem:[#allocation17 + $0x58c] sm:$0xf] }
 0x74b   : > { %v11930_v24 = vld [vmem:[#allocation17 + $0x598] sm:$0xf0] }
 0x74c   : > { %5117 = vmatpush.bf16.msrb.mxu2 %v11529_v30  ;;  %5130 = vmatpush.bf16.msra.mxu1 %v11657_v29  ;;  %v11952_v30 = vld [vmem:[#allocation17 + $0x5c0] sm:$0xf]  ;;  %v14560_v29 = vld [vmem:[#allocation17 + $0x5cc] sm:$0xf0] }
 0x74d   : > { %5143 = vmatpush.bf16.msra.mxu3 %v11533_v50  ;;  %5156 = vmatpush.bf16.msra.mxu0 %v11661_v11  ;;  %v14558_v50 = vld [vmem:[#allocation17 + $0x5c4] sm:$0xf]  ;;  %v11954_v11 = vld [vmem:[#allocation17 + $0x5d0] sm:$0xf0]  ;;  %v11953_v42 = vor.u32 %v14560_v29, %v11952_v30  ;;  %v11744_v30 = vld [vmem:[#allocation17 + $0x420] sm:$0xf] }
 0x74e   : > { %v11957_v55 = vor.u32 %v14558_v50, %v11954_v11  ;;  %v14508_v29 = vld [vmem:[#allocation17 + $0x42c] sm:$0xf0]  ;;  %v11872_v50 = vld [vmem:[#allocation17 + $0x520] sm:$0xf] }
 0x74f   : > { %v14540_v11 = vld [vmem:[#allocation17 + $0x52c] sm:$0xf0] }
 0x750   : > { %5118 = vmatpush.bf16.msrb.mxu2 %v11513_v53  ;;  %5131 = vmatpush.bf16.msra.mxu1 %v11641_v9  ;;  %v11936_v53 = vld [vmem:[#allocation17 + $0x5a0] sm:$0xf]  ;;  %v14556_v9 = vld [vmem:[#allocation17 + $0x5ac] sm:$0xf0] }
 0x751   : > { %5144 = vmatpush.bf16.msra.mxu3 %v11517_v18  ;;  %5157 = vmatpush.bf16.msra.mxu0 %v11645_v62  ;;  %v14554_v18 = vld [vmem:[#allocation17 + $0x5a4] sm:$0xf]  ;;  %v11938_v62 = vld [vmem:[#allocation17 + $0x5b0] sm:$0xf0]  ;;  %v11937_v58 = vor.u32 %v14556_v9, %v11936_v53  ;;  %v11873_v53 = vor.u32 %v14540_v11, %v11872_v50  ;;  %v14504_v9 = vld [vmem:[#allocation17 + $0x40c] sm:$0xf0] }
 0x752   : > { %v11941_v61 = vor.u32 %v14554_v18, %v11938_v62  ;;  %v11877_v62 = vor.u32 %v14538_v44, %v11874_v57 }
 0x754   : > { %5119 = vmatpush.bf16.msrb.mxu2 %v11497_v19  ;;  %5132 = vmatpush.bf16.msra.mxu1 %v11625_v25  ;;  %v14552_v19 = vld [vmem:[#allocation17 + $0x58c] sm:$0xf0]  ;;  %v14518_v25 = vld [vmem:[#allocation17 + $0x484] sm:$0xf] }
 0x755   : > { %5145 = vmatpush.bf16.msra.mxu3 %v11501_v0  ;;  %5158 = vmatpush.bf16.msra.mxu0 %v11629_v46  ;;  %v11776_v0 = vld [vmem:[#allocation17 + $0x460] sm:$0xf]  ;;  %v14516_v46 = vld [vmem:[#allocation17 + $0x46c] sm:$0xf0]  ;;  %v11797_v56 = vor.u32 %v14518_v25, %v11794_v60  ;;  %v14531_v25 = vld [vmem:[#allocation17 + $0x4ec] sm:$0xf] }
 0x756   : > { %v11777_v52 = vor.u32 %v14516_v46, %v11776_v0  ;;  %v11853_v1 = vor.u32 %v14531_v25, %v11850_v38  ;;  %v14547_v25 = vld [vmem:[#allocation17 + $0x56c] sm:$0xf] }
 0x758   : > { %5120 = vmatpush.bf16.msrb.mxu2 %v11481_v36  ;;  %5133 = vmatpush.bf16.msra.mxu1 %v11609_v5  ;;  %v11905_v36 = vor.u32 %v14548_v10, %v11904_v3  ;;  %v11760_v5 = vld [vmem:[#allocation17 + $0x440] sm:$0xf]  ;;  %v11832_v3 = vld [vmem:[#allocation17 + $0x4c8] sm:$0xf]  ;;  %v14529_v10 = vld [vmem:[#allocation17 + $0x4d4] sm:$0xf0] }
 0x759   : > { %5146 = vmatpush.bf16.msra.mxu3 %v11485_v45  ;;  %5159 = vmatpush.bf16.msra.mxu0 %v11613_v47  ;;  %v11888_v45 = vld [vmem:[#allocation17 + $0x540] sm:$0xf]  ;;  %v14544_v47 = vld [vmem:[#allocation17 + $0x54c] sm:$0xf0] }
 0x75b   : > { %5121 = vmatmul.bf16.vlgmr.msrb.gmra.mxu2 %v16892_v15  ;;  %5134 = vmatmul.bf16.vlgmr.msra.gmra.mxu1 %v16896_v13 }
 0x75c   : > { %5554 = vmatpush.bf16.msra.mxu2 %v11841_v39  ;;  %5567 = vmatpush.bf16.msrb.mxu1 %v11969_v26  ;;  %v14510_v39 = vld [vmem:[#allocation17 + $0x444] sm:$0xf]  ;;  %v11762_v26 = vld [vmem:[#allocation17 + $0x450] sm:$0xf0] }
 0x75d   : > { %5580 = vmatpush.bf16.msrb.mxu3 %v11845_v33  ;;  %5593 = vmatpush.bf16.msrb.mxu0 %v11973_v20  ;;  %v11761_v33 = vor.u32 %v14512_v4, %v11760_v5  ;;  %v11889_v20 = vor.u32 %v14544_v47, %v11888_v45  ;;  %v11765_v31 = vor.u32 %v14510_v39, %v11762_v26  ;;  %v14559_v5 = vld [vmem:[#allocation17 + $0x5cc] sm:$0xf]  ;;  %v11962_v4 = vld [vmem:[#allocation17 + $0x5d8] sm:$0xf0]  ;;  %v11816_v39 = vld [vmem:[#allocation17 + $0x4a8] sm:$0xf] }
 0x75e   : > { %5147 = vmatmul.bf16.vlgmr.msra.gmra.mxu3 %v16892_v15  ;;  %5160 = vmatmul.bf16.vlgmr.msra.gmra.mxu0 %v16896_v13  ;;  %v11793_v15 = vor.u32 %v14520_v14, %v11792_v37  ;;  %v11921_v13 = vor.u32 %v14552_v19, %v11920_v59  ;;  %v14534_v37 = vld [vmem:[#allocation17 + $0x504] sm:$0xf]  ;;  %v11858_v14 = vld [vmem:[#allocation17 + $0x510] sm:$0xf0]  ;;  %v11976_v59 = vld [vmem:[#allocation17 + $0x5e8] sm:$0xf]  ;;  %v11833_v45 = vor.u32 %v14529_v10, %v11832_v3 }
 0x75f   : > { %v14565_v19 = vld [vmem:[#allocation17 + $0x5f4] sm:$0xf0]  ;;  %v11861_v46 = vor.u32 %v14534_v37, %v11858_v14  ;;  %v11961_v47 = vor.u32 %v14561_v27, %v11960_v40  ;;  %v11965_v2 = vor.u32 %v14559_v5, %v11962_v4  ;;  %v11933_v14 = vor.u32 %v14551_v12, %v11930_v24  ;;  %v14511_v3 = vld [vmem:[#allocation17 + $0x44c] sm:$0xf]  ;;  %v11770_v10 = vld [vmem:[#allocation17 + $0x458] sm:$0xf0] }
 0x760   : > { %5555 = vmatpush.bf16.msra.mxu2 %v11825_v32  ;;  %5568 = vmatpush.bf16.msrb.mxu1 %v11953_v42  ;;  %v14506_v32 = vld [vmem:[#allocation17 + $0x424] sm:$0xf]  ;;  %v11746_v42 = vld [vmem:[#allocation17 + $0x430] sm:$0xf0]  ;;  %v14525_v26 = vld [vmem:[#allocation17 + $0x4b4] sm:$0xf0]  ;;  %v11773_v5 = vor.u32 %v14511_v3, %v11770_v10 }
 0x761   : > { %5581 = vmatpush.bf16.msrb.mxu3 %v11829_v54  ;;  %5594 = vmatpush.bf16.msrb.mxu0 %v11957_v55  ;;  %v11728_v54 = vld [vmem:[#allocation17 + $0x400] sm:$0xf]  ;;  %v11745_v55 = vor.u32 %v14508_v29, %v11744_v30  ;;  %v11749_v18 = vor.u32 %v14506_v32, %v11746_v42  ;;  %v14523_v30 = vld [vmem:[#allocation17 + $0x4ac] sm:$0xf]  ;;  %v11818_v29 = vld [vmem:[#allocation17 + $0x4b8] sm:$0xf0]  ;;  %v11817_v50 = vor.u32 %v14525_v26, %v11816_v39 }
 0x762   : > { %v11729_v60 = vor.u32 %v14504_v9, %v11728_v54  ;;  %v11800_v32 = vld [vmem:[#allocation17 + $0x488] sm:$0xf]  ;;  %v14521_v42 = vld [vmem:[#allocation17 + $0x494] sm:$0xf0]  ;;  %v11821_v44 = vor.u32 %v14523_v30, %v11818_v29  ;;  %v11802_v9 = vld [vmem:[#allocation17 + $0x498] sm:$0xf0] }
 0x763   : > { %v11928_v54 = vld [vmem:[#allocation17 + $0x588] sm:$0xf]  ;;  %v14507_v39 = vld [vmem:[#allocation17 + $0x42c] sm:$0xf]  ;;  %v11754_v26 = vld [vmem:[#allocation17 + $0x438] sm:$0xf0] }
 0x764   : > { %5556 = vmatpush.bf16.msra.mxu2 %v11809_v6  ;;  %5569 = vmatpush.bf16.msrb.mxu1 %v11937_v58  ;;  %v14502_v6 = vld [vmem:[#allocation17 + $0x404] sm:$0xf]  ;;  %v11730_v58 = vld [vmem:[#allocation17 + $0x410] sm:$0xf0]  ;;  %v14505_v29 = vld [vmem:[#allocation17 + $0x414] sm:$0xf0] }
 0x765   : > { %5582 = vmatpush.bf16.msrb.mxu3 %v11813_v22  ;;  %5595 = vmatpush.bf16.msrb.mxu0 %v11941_v61  ;;  %v11848_v22 = vld [vmem:[#allocation17 + $0x4e8] sm:$0xf]  ;;  %v14533_v61 = vld [vmem:[#allocation17 + $0x4f4] sm:$0xf0]  ;;  %v11733_v0 = vor.u32 %v14502_v6, %v11730_v58  ;;  %v14594_v12 = vld [vmem:[#allocation17 + $0x6e4] sm:$0xf] }
 0x766   : > { %v11784_v6 = vld [vmem:[#allocation17 + $0x468] sm:$0xf]  ;;  %v14517_v58 = vld [vmem:[#allocation17 + $0x474] sm:$0xf0]  ;;  %v12064_v3 = vld [vmem:[#allocation17 + $0x6a0] sm:$0xf] }
 0x767   : > { %v14588_v10 = vld [vmem:[#allocation17 + $0x6ac] sm:$0xf0] }
 0x768   : > { %5557 = vmatpush.bf16.msra.mxu2 %v11793_v15  ;;  %5570 = vmatpush.bf16.msrb.mxu1 %v11921_v13  ;;  %v14563_v15 = vld [vmem:[#allocation17 + $0x5ec] sm:$0xf]  ;;  %v11978_v13 = vld [vmem:[#allocation17 + $0x5f8] sm:$0xf0] }
 0x769   : > { %5583 = vmatpush.bf16.msrb.mxu3 %v11797_v56  ;;  %5596 = vmatpush.bf16.msrb.mxu0 %v11925_v17  ;;  %v11849_v56 = vor.u32 %v14533_v61, %v11848_v22  ;;  %v11977_v17 = vor.u32 %v14565_v19, %v11976_v59  ;;  %v11981_v23 = vor.u32 %v14563_v15, %v11978_v13  ;;  %v11912_v22 = vld [vmem:[#allocation17 + $0x568] sm:$0xf]  ;;  %v14549_v61 = vld [vmem:[#allocation17 + $0x574] sm:$0xf0]  ;;  %v14515_v59 = vld [vmem:[#allocation17 + $0x46c] sm:$0xf] }
 0x76a   : > { %v11786_v19 = vld [vmem:[#allocation17 + $0x478] sm:$0xf0]  ;;  %v11913_v38 = vor.u32 %v14549_v61, %v11912_v22  ;;  %v11768_v15 = vld [vmem:[#allocation17 + $0x448] sm:$0xf]  ;;  %v14513_v13 = vld [vmem:[#allocation17 + $0x454] sm:$0xf0] }
 0x76b   : > { %v11769_v40 = vor.u32 %v14513_v13, %v11768_v15  ;;  %v14590_v15 = vld [vmem:[#allocation17 + $0x6c4] sm:$0xf]  ;;  %v12082_v13 = vld [vmem:[#allocation17 + $0x6d0] sm:$0xf0] }
 0x76c   : > { %5558 = vmatpush.bf16.msra.mxu2 %v11777_v52  ;;  %5571 = vmatpush.bf16.msrb.mxu1 %v11905_v36  ;;  %v14527_v52 = vld [vmem:[#allocation17 + $0x4cc] sm:$0xf]  ;;  %v11834_v36 = vld [vmem:[#allocation17 + $0x4d8] sm:$0xf0] }
 0x76d   : > { %5584 = vmatpush.bf16.msrb.mxu3 %v11781_v16  ;;  %5597 = vmatpush.bf16.msrb.mxu0 %v11909_v8  ;;  %v16907_v16 = vrot.slane %v16841_v48, 1  ;;  %v16910_v8 = vrot.slane %v16845_v63, 1  ;;  %v11837_v51 = vor.u32 %v14527_v52, %v11834_v36  ;;  %v11752_v52 = vld [vmem:[#allocation17 + $0x428] sm:$0xf]  ;;  %v14509_v36 = vld [vmem:[#allocation17 + $0x434] sm:$0xf0] }
 0x770   : > { %5559 = vmatpush.bf16.msra.mxu2 %v11761_v33  ;;  %5572 = vmatpush.bf16.msrb.mxu1 %v11889_v20  ;;  %v11944_v33 = vld [vmem:[#allocation17 + $0x5a8] sm:$0xf]  ;;  %v14557_v20 = vld [vmem:[#allocation17 + $0x5b4] sm:$0xf0] }
 0x771   : > { %5585 = vmatpush.bf16.msrb.mxu3 %v11765_v31  ;;  %5598 = vmatpush.bf16.msrb.mxu0 %v11893_v43  ;;  %v14555_v31 = vld [vmem:[#allocation17 + $0x5ac] sm:$0xf]  ;;  %v11946_v43 = vld [vmem:[#allocation17 + $0x5b8] sm:$0xf0]  ;;  %v11945_v11 = vor.u32 %v14557_v20, %v11944_v33  ;;  %v11736_v33 = vld [vmem:[#allocation17 + $0x408] sm:$0xf]  ;;  %v11753_v20 = vor.u32 %v14509_v36, %v11752_v52 }
 0x772   : > { %v11949_v57 = vor.u32 %v14555_v31, %v11946_v43  ;;  %v11864_v31 = vld [vmem:[#allocation17 + $0x508] sm:$0xf]  ;;  %v14537_v43 = vld [vmem:[#allocation17 + $0x514] sm:$0xf0]  ;;  %v11737_v24 = vor.u32 %v14505_v29, %v11736_v33  ;;  %v14586_v52 = vld [vmem:[#allocation17 + $0x6a4] sm:$0xf] }
 0x773   : > { %v12066_v36 = vld [vmem:[#allocation17 + $0x6b0] sm:$0xf0]  ;;  %v14616_v29 = vld [vmem:[#allocation17 + $0x78c] sm:$0xf0] }
 0x774   : > { %5560 = vmatpush.bf16.msra.mxu2 %v11745_v55  ;;  %5573 = vmatpush.bf16.msrb.mxu1 %v11873_v53  ;;  %v14553_v55 = vld [vmem:[#allocation17 + $0x594] sm:$0xf0]  ;;  %v14519_v53 = vld [vmem:[#allocation17 + $0x48c] sm:$0xf]  ;;  %v12069_v33 = vor.u32 %v14586_v52, %v12066_v36  ;;  %v14604_v52 = vld [vmem:[#allocation17 + $0x72c] sm:$0xf0] }
 0x775   : > { %5586 = vmatpush.bf16.msrb.mxu3 %v11749_v18  ;;  %5599 = vmatpush.bf16.msrb.mxu0 %v11877_v62  ;;  %v11801_v18 = vor.u32 %v14521_v42, %v11800_v32  ;;  %v11929_v62 = vor.u32 %v14553_v55, %v11928_v54  ;;  %v11805_v37 = vor.u32 %v14519_v53, %v11802_v9  ;;  %v14503_v32 = vld [vmem:[#allocation17 + $0x40c] sm:$0xf]  ;;  %v11738_v42 = vld [vmem:[#allocation17 + $0x418] sm:$0xf0]  ;;  %v12096_v54 = vld [vmem:[#allocation17 + $0x6e0] sm:$0xf] }
 0x776   : > { %v14596_v55 = vld [vmem:[#allocation17 + $0x6ec] sm:$0xf0]  ;;  %v12224_v53 = vld [vmem:[#allocation17 + $0x7e0] sm:$0xf]  ;;  %v14570_v36 = vld [vmem:[#allocation17 + $0x624] sm:$0xf] }
 0x777   : > { %v14628_v9 = vld [vmem:[#allocation17 + $0x7ec] sm:$0xf0]  ;;  %v12097_v22 = vor.u32 %v14596_v55, %v12096_v54  ;;  %v12160_v55 = vld [vmem:[#allocation17 + $0x760] sm:$0xf] }
 0x778   : > { %5561 = vmatpush.bf16.msra.mxu2 %v11729_v60  ;;  %5574 = vmatpush.bf16.msrb.mxu1 %v11857_v41  ;;  %v11914_v60 = vld [vmem:[#allocation17 + $0x578] sm:$0xf0]  ;;  %v11785_v41 = vor.u32 %v14517_v58, %v11784_v6  ;;  %v14626_v6 = vld [vmem:[#allocation17 + $0x7e4] sm:$0xf]  ;;  %v12226_v58 = vld [vmem:[#allocation17 + $0x7f0] sm:$0xf0]  ;;  %v12225_v61 = vor.u32 %v14628_v9, %v12224_v53 }
 0x779   : > { %5587 = vmatpush.bf16.msrb.mxu3 %v11733_v0  ;;  %5600 = vmatpush.bf16.msrb.mxu0 %v11861_v46  ;;  %v11789_v0 = vor.u32 %v14515_v59, %v11786_v19  ;;  %v11917_v46 = vor.u32 %v14547_v25, %v11914_v60  ;;  %v12080_v59 = vld [vmem:[#allocation17 + $0x6c0] sm:$0xf]  ;;  %v14592_v19 = vld [vmem:[#allocation17 + $0x6cc] sm:$0xf0]  ;;  %v12229_v60 = vor.u32 %v14626_v6, %v12226_v58  ;;  %v14578_v9 = vld [vmem:[#allocation17 + $0x664] sm:$0xf] }
 0x77a   : > { %v14612_v53 = vld [vmem:[#allocation17 + $0x76c] sm:$0xf0]  ;;  %v12162_v6 = vld [vmem:[#allocation17 + $0x770] sm:$0xf0] }
 0x77b   : > { %5562 = vmatmul.bf16.vlgmr.msra.gmra.mxu2 %v16907_v16  ;;  %5575 = vmatmul.bf16.vlgmr.msrb.gmra.mxu1 %v16910_v8 }
 0x77c   : > { %5606 = vmatpush.bf16.msrb.mxu2 %v11849_v56  ;;  %5619 = vmatpush.bf16.msra.mxu1 %v11977_v17  ;;  %v11896_v56 = vld [vmem:[#allocation17 + $0x548] sm:$0xf]  ;;  %v14545_v17 = vld [vmem:[#allocation17 + $0x554] sm:$0xf0] }
 0x77d   : > { %5632 = vmatpush.bf16.msra.mxu3 %v11853_v1  ;;  %5645 = vmatpush.bf16.msra.mxu0 %v11981_v23  ;;  %v14543_v1 = vld [vmem:[#allocation17 + $0x54c] sm:$0xf]  ;;  %v11898_v23 = vld [vmem:[#allocation17 + $0x558] sm:$0xf0]  ;;  %v11897_v27 = vor.u32 %v14545_v17, %v11896_v56  ;;  %v12081_v56 = vor.u32 %v14592_v19, %v12080_v59  ;;  %v12016_v59 = vld [vmem:[#allocation17 + $0x640] sm:$0xf] }
 0x77e   : > { %5588 = vmatmul.bf16.vlgmr.msrb.gmra.mxu3 %v16907_v16  ;;  %5601 = vmatmul.bf16.vlgmr.msrb.gmra.mxu0 %v16910_v8  ;;  %v11901_v4 = vor.u32 %v14543_v1, %v11898_v23  ;;  %v12085_v1 = vor.u32 %v14590_v15, %v12082_v13  ;;  %v14576_v19 = vld [vmem:[#allocation17 + $0x64c] sm:$0xf0]  ;;  %v14574_v15 = vld [vmem:[#allocation17 + $0x644] sm:$0xf]  ;;  %v12018_v13 = vld [vmem:[#allocation17 + $0x650] sm:$0xf0] }
 0x780   : > { %5607 = vmatpush.bf16.msrb.mxu2 %v11833_v45  ;;  %5620 = vmatpush.bf16.msra.mxu1 %v11961_v47  ;;  %v11880_v45 = vld [vmem:[#allocation17 + $0x528] sm:$0xf]  ;;  %v14541_v47 = vld [vmem:[#allocation17 + $0x534] sm:$0xf0] }
 0x781   : > { %5633 = vmatpush.bf16.msra.mxu3 %v11837_v51  ;;  %5646 = vmatpush.bf16.msra.mxu0 %v11965_v2  ;;  %v14539_v51 = vld [vmem:[#allocation17 + $0x52c] sm:$0xf]  ;;  %v11882_v2 = vld [vmem:[#allocation17 + $0x538] sm:$0xf0]  ;;  %v11881_v30 = vor.u32 %v14541_v47, %v11880_v45  ;;  %v12065_v47 = vor.u32 %v14588_v10, %v12064_v3  ;;  %v12000_v3 = vld [vmem:[#allocation17 + $0x620] sm:$0xf] }
 0x782   : > { %v14572_v10 = vld [vmem:[#allocation17 + $0x62c] sm:$0xf0] }
 0x784   : > { %5608 = vmatpush.bf16.msrb.mxu2 %v11817_v50  ;;  %5621 = vmatpush.bf16.msra.mxu1 %v11945_v11  ;;  %v11757_v50 = vor.u32 %v14507_v39, %v11754_v26  ;;  %v11885_v11 = vor.u32 %v14539_v51, %v11882_v2  ;;  %v12048_v51 = vld [vmem:[#allocation17 + $0x680] sm:$0xf]  ;;  %v14584_v2 = vld [vmem:[#allocation17 + $0x68c] sm:$0xf0] }
 0x785   : > { %5634 = vmatpush.bf16.msra.mxu3 %v11821_v44  ;;  %5647 = vmatpush.bf16.msra.mxu0 %v11949_v57  ;;  %v14535_v44 = vld [vmem:[#allocation17 + $0x50c] sm:$0xf]  ;;  %v11866_v57 = vld [vmem:[#allocation17 + $0x518] sm:$0xf0] }
 0x788   : > { %5609 = vmatpush.bf16.msrb.mxu2 %v11801_v18  ;;  %5622 = vmatpush.bf16.msra.mxu1 %v11929_v62  ;;  %v11865_v18 = vor.u32 %v14537_v43, %v11864_v31  ;;  %v12098_v62 = vld [vmem:[#allocation17 + $0x6f0] sm:$0xf0]  ;;  %v14582_v31 = vld [vmem:[#allocation17 + $0x684] sm:$0xf] }
 0x789   : > { %5635 = vmatpush.bf16.msra.mxu3 %v11805_v37  ;;  %5648 = vmatpush.bf16.msra.mxu0 %v11933_v14  ;;  %v11741_v37 = vor.u32 %v14503_v32, %v11738_v42  ;;  %v11869_v14 = vor.u32 %v14535_v44, %v11866_v57  ;;  %v12101_v25 = vor.u32 %v14594_v12, %v12098_v62  ;;  %v12050_v43 = vld [vmem:[#allocation17 + $0x690] sm:$0xf0]  ;;  %v12032_v32 = vld [vmem:[#allocation17 + $0x660] sm:$0xf]  ;;  %v14580_v42 = vld [vmem:[#allocation17 + $0x66c] sm:$0xf0] }
 0x78a   : > { %v12053_v44 = vor.u32 %v14582_v31, %v12050_v43  ;;  %v14610_v62 = vld [vmem:[#allocation17 + $0x764] sm:$0xf] }
 0x78c   : > { %5610 = vmatpush.bf16.msrb.mxu2 %v11785_v41  ;;  %5623 = vmatpush.bf16.msra.mxu1 %v11913_v38  ;;  %v12208_v41 = vld [vmem:[#allocation17 + $0x7c0] sm:$0xf]  ;;  %v14624_v38 = vld [vmem:[#allocation17 + $0x7cc] sm:$0xf0] }
 0x78d   : > { %5636 = vmatpush.bf16.msra.mxu3 %v11789_v0  ;;  %5649 = vmatpush.bf16.msra.mxu0 %v11917_v46  ;;  %v14622_v0 = vld [vmem:[#allocation17 + $0x7c4] sm:$0xf]  ;;  %v12210_v46 = vld [vmem:[#allocation17 + $0x7d0] sm:$0xf0]  ;;  %v12209_v17 = vor.u32 %v14624_v38, %v12208_v41  ;;  %v12144_v41 = vld [vmem:[#allocation17 + $0x740] sm:$0xf] }
 0x78e   : > { %v12213_v23 = vor.u32 %v14622_v0, %v12210_v46  ;;  %v14608_v38 = vld [vmem:[#allocation17 + $0x74c] sm:$0xf0]  ;;  %v14606_v0 = vld [vmem:[#allocation17 + $0x744] sm:$0xf]  ;;  %v12146_v46 = vld [vmem:[#allocation17 + $0x750] sm:$0xf0] }
 0x790   : > { %5611 = vmatpush.bf16.msrb.mxu2 %v11769_v40  ;;  %5624 = vmatpush.bf16.msra.mxu1 %v11897_v27  ;;  %v12192_v40 = vld [vmem:[#allocation17 + $0x7a0] sm:$0xf]  ;;  %v14620_v27 = vld [vmem:[#allocation17 + $0x7ac] sm:$0xf0] }
 0x791   : > { %5637 = vmatpush.bf16.msra.mxu3 %v11773_v5  ;;  %5650 = vmatpush.bf16.msra.mxu0 %v11901_v4  ;;  %v14618_v5 = vld [vmem:[#allocation17 + $0x7a4] sm:$0xf]  ;;  %v12194_v4 = vld [vmem:[#allocation17 + $0x7b0] sm:$0xf0]  ;;  %v12193_v39 = vor.u32 %v14620_v27, %v12192_v40  ;;  %v12128_v27 = vld [vmem:[#allocation17 + $0x720] sm:$0xf] }
 0x794   : > { %5612 = vmatpush.bf16.msrb.mxu2 %v11753_v20  ;;  %5625 = vmatpush.bf16.msra.mxu1 %v11881_v30  ;;  %v12197_v20 = vor.u32 %v14618_v5, %v12194_v4  ;;  %v12176_v30 = vld [vmem:[#allocation17 + $0x780] sm:$0xf]  ;;  %v12002_v4 = vld [vmem:[#allocation17 + $0x630] sm:$0xf0] }
 0x795   : > { %5638 = vmatpush.bf16.msra.mxu3 %v11757_v50  ;;  %5651 = vmatpush.bf16.msra.mxu0 %v11885_v11  ;;  %v14614_v50 = vld [vmem:[#allocation17 + $0x784] sm:$0xf]  ;;  %v12177_v11 = vor.u32 %v14616_v29, %v12176_v30  ;;  %v12112_v30 = vld [vmem:[#allocation17 + $0x700] sm:$0xf]  ;;  %v14600_v29 = vld [vmem:[#allocation17 + $0x70c] sm:$0xf0]  ;;  %v12005_v31 = vor.u32 %v14570_v36, %v12002_v4 }
 0x796   : > { %v14589_v36 = vld [vmem:[#allocation17 + $0x6b4] sm:$0xf0] }
 0x797   : > { %v4655_v45 = vpop.f32.mrf.mxu1 }
 0x798   : > { %5613 = vmatpush.bf16.msrb.mxu2 %v11737_v24  ;;  %5626 = vmatpush.bf16.msra.mxu1 %v11865_v18  ;;  %v4681_v26 = vpop.f32.mrf.mxu0  ;;  %v12034_v18 = vld [vmem:[#allocation17 + $0x670] sm:$0xf0] }
 0x799   : > { %5639 = vmatpush.bf16.msra.mxu3 %v11741_v37  ;;  %5652 = vmatpush.bf16.msra.mxu0 %v11869_v14  ;;  %v12033_v14 = vor.u32 %v14580_v42, %v12032_v32  ;;  %v12104_v32 = vld [vmem:[#allocation17 + $0x6e8] sm:$0xf]  ;;  %v14597_v42 = vld [vmem:[#allocation17 + $0x6f4] sm:$0xf0] }
 0x79b   : > { %5614 = vmatmul.bf16.vlgmr.msrb.gmra.mxu2 %v16907_v16  ;;  %5627 = vmatmul.bf16.vlgmr.msra.gmra.mxu1 %v16910_v8 }
 0x79c   : > { %6051 = vmatpush.bf16.msra.mxu2 %v12097_v22  ;;  %6064 = vmatpush.bf16.msrb.mxu1 %v12225_v61  ;;  %v12161_v22 = vor.u32 %v14612_v53, %v12160_v55  ;;  %v12113_v53 = vor.u32 %v14600_v29, %v12112_v30 }
 0x79d   : > { %6077 = vmatpush.bf16.msrb.mxu3 %v12101_v25  ;;  %6090 = vmatpush.bf16.msrb.mxu0 %v12229_v60  ;;  %v4642_v54 = vpop.f32.mrf.mxu2  ;;  %v12037_v25 = vor.u32 %v14578_v9, %v12034_v18  ;;  %v12165_v60 = vor.u32 %v14610_v62, %v12162_v6  ;;  %v12106_v9 = vld [vmem:[#allocation17 + $0x6f8] sm:$0xf0] }
 0x79e   : > { %5640 = vmatmul.bf16.vlgmr.msra.gmra.mxu3 %v16907_v16  ;;  %5653 = vmatmul.bf16.vlgmr.msra.gmra.mxu0 %v16910_v8  ;;  %v12178_v16 = vld [vmem:[#allocation17 + $0x790] sm:$0xf0]  ;;  %v12049_v8 = vor.u32 %v14584_v2, %v12048_v51  ;;  %v16920_v12 = vadd.f32 %v4655_v45, %v4642_v54  ;;  %v4668_v24 = vpop.f32.mrf.mxu3  ;;  %v14602_v45 = vld [vmem:[#allocation17 + $0x724] sm:$0xf]  ;;  %v12001_v51 = vor.u32 %v14572_v10, %v12000_v3  ;;  %v14595_v54 = vld [vmem:[#allocation17 + $0x6ec] sm:$0xf] }
 0x79f   : > { %v12181_v57 = vor.u32 %v14614_v50, %v12178_v16  ;;  %v16922_v58 = vadd.f32 %v4681_v26, %v4668_v24  ;;  %v4657_v37 = vpop.f32.mrf.mxu1  ;;  %v11984_v26 = vld [vmem:[#allocation17 + $0x600] sm:$0xf]  ;;  %v12129_v2 = vor.u32 %v14604_v52, %v12128_v27  ;;  %v14566_v50 = vld [vmem:[#allocation17 + $0x604] sm:$0xf]  ;;  %v11986_v16 = vld [vmem:[#allocation17 + $0x610] sm:$0xf0] }
 0x7a0   : > { %6052 = vmatpush.bf16.msra.mxu2 %v12081_v56  ;;  %6065 = vmatpush.bf16.msrb.mxu1 %v12209_v17  ;;  %v4683_v61 = vpop.f32.mrf.mxu0  ;;  %v12017_v56 = vor.u32 %v14576_v19, %v12016_v59  ;;  %v12145_v17 = vor.u32 %v14608_v38, %v12144_v41  ;;  %v14627_v24 = vld [vmem:[#allocation17 + $0x7ec] sm:$0xf]  ;;  %v12234_v18 = vld [vmem:[#allocation17 + $0x7f8] sm:$0xf0]  ;;  %v11989_v62 = vor.u32 %v14566_v50, %v11986_v16  ;;  %v12088_v19 = vld [vmem:[#allocation17 + $0x6c8] sm:$0xf] }
 0x7a1   : > { %6078 = vmatpush.bf16.msrb.mxu3 %v12085_v1  ;;  %6091 = vmatpush.bf16.msrb.mxu0 %v12213_v23  ;;  %v12021_v1 = vor.u32 %v14574_v15, %v12018_v13  ;;  %v12149_v23 = vor.u32 %v14606_v0, %v12146_v46  ;;  %v12237_v41 = vor.u32 %v14627_v24, %v12234_v18  ;;  %v12216_v13 = vld [vmem:[#allocation17 + $0x7c8] sm:$0xf]  ;;  %v14625_v0 = vld [vmem:[#allocation17 + $0x7d4] sm:$0xf0]  ;;  %v14591_v46 = vld [vmem:[#allocation17 + $0x6cc] sm:$0xf] }
 0x7a2   : > { %v14623_v3 = vld [vmem:[#allocation17 + $0x7cc] sm:$0xf]  ;;  %v12218_v10 = vld [vmem:[#allocation17 + $0x7d8] sm:$0xf0]  ;;  %v12217_v27 = vor.u32 %v14625_v0, %v12216_v13  ;;  %v12072_v52 = vld [vmem:[#allocation17 + $0x6a8] sm:$0xf] }
 0x7a3   : > { %v12221_v4 = vor.u32 %v14623_v3, %v12218_v10  ;;  %v12040_v24 = vld [vmem:[#allocation17 + $0x668] sm:$0xf]  ;;  %v14581_v18 = vld [vmem:[#allocation17 + $0x674] sm:$0xf0]  ;;  %v14575_v10 = vld [vmem:[#allocation17 + $0x64c] sm:$0xf] }
 0x7a4   : > { %6053 = vmatpush.bf16.msra.mxu2 %v12065_v47  ;;  %6066 = vmatpush.bf16.msrb.mxu1 %v12193_v39  ;;  %v12130_v47 = vld [vmem:[#allocation17 + $0x730] sm:$0xf0]  ;;  %v14577_v13 = vld [vmem:[#allocation17 + $0x654] sm:$0xf0] }
 0x7a5   : > { %6079 = vmatpush.bf16.msrb.mxu3 %v12069_v33  ;;  %6092 = vmatpush.bf16.msrb.mxu0 %v12197_v20  ;;  %v4644_v40 = vpop.f32.mrf.mxu2  ;;  %v14568_v20 = vld [vmem:[#allocation17 + $0x60c] sm:$0xf0]  ;;  %v12133_v43 = vor.u32 %v14602_v45, %v12130_v47  ;;  %v12200_v45 = vld [vmem:[#allocation17 + $0x7a8] sm:$0xf]  ;;  %v14621_v47 = vld [vmem:[#allocation17 + $0x7b4] sm:$0xf0] }
 0x7a6   : > { %v4670_v5 = vpop.f32.mrf.mxu3  ;;  %v11985_v55 = vor.u32 %v14568_v20, %v11984_v26  ;;  %v12074_v26 = vld [vmem:[#allocation17 + $0x6b8] sm:$0xf0]  ;;  %v12073_v20 = vor.u32 %v14589_v36, %v12072_v52  ;;  %v12201_v30 = vor.u32 %v14621_v47, %v12200_v45  ;;  %v14609_v3 = vld [vmem:[#allocation17 + $0x754] sm:$0xf0]  ;;  %v14607_v36 = vld [vmem:[#allocation17 + $0x74c] sm:$0xf] }
 0x7a7   : > { %v4707_v39 = vpop.f32.mrf.mxu1  ;;  %v12026_v52 = vld [vmem:[#allocation17 + $0x658] sm:$0xf0] }
 0x7a8   : > { %6054 = vmatpush.bf16.msra.mxu2 %v12049_v8  ;;  %6067 = vmatpush.bf16.msrb.mxu1 %v12177_v11  ;;  %v4733_v33 = vpop.f32.mrf.mxu0  ;;  %v14598_v8 = vld [vmem:[#allocation17 + $0x704] sm:$0xf]  ;;  %v12114_v11 = vld [vmem:[#allocation17 + $0x710] sm:$0xf0] }
 0x7a9   : > { %6080 = vmatpush.bf16.msrb.mxu3 %v12053_v44  ;;  %6093 = vmatpush.bf16.msrb.mxu0 %v12181_v57  ;;  %v12232_v44 = vld [vmem:[#allocation17 + $0x7e8] sm:$0xf]  ;;  %v14629_v57 = vld [vmem:[#allocation17 + $0x7f4] sm:$0xf0]  ;;  %v12117_v6 = vor.u32 %v14598_v8, %v12114_v11 }
 0x7aa   : > { %v12184_v8 = vld [vmem:[#allocation17 + $0x788] sm:$0xf]  ;;  %v14617_v11 = vld [vmem:[#allocation17 + $0x794] sm:$0xf0] }
 0x7ac   : > { %6055 = vmatpush.bf16.msra.mxu2 %v12033_v14  ;;  %6068 = vmatpush.bf16.msrb.mxu1 %v12161_v22  ;;  %v12105_v14 = vor.u32 %v14597_v42, %v12104_v32  ;;  %v12233_v22 = vor.u32 %v14629_v57, %v12232_v44  ;;  %v14583_v32 = vld [vmem:[#allocation17 + $0x68c] sm:$0xf]  ;;  %v12058_v42 = vld [vmem:[#allocation17 + $0x698] sm:$0xf0] }
 0x7ad   : > { %6081 = vmatpush.bf16.msrb.mxu3 %v12037_v25  ;;  %6094 = vmatpush.bf16.msrb.mxu0 %v12165_v60  ;;  %v4694_v37 = vpop.f32.mrf.mxu2  ;;  %v14593_v25 = vld [vmem:[#allocation17 + $0x6d4] sm:$0xf0]  ;;  %v12109_v60 = vor.u32 %v14595_v54, %v12106_v9  ;;  %v14615_v44 = vld [vmem:[#allocation17 + $0x78c] sm:$0xf]  ;;  %v12186_v57 = vld [vmem:[#allocation17 + $0x798] sm:$0xf0]  ;;  %v12185_v9 = vor.u32 %v14617_v11, %v12184_v8 }
 0x7ae   : > { %v16924_v61 = vadd.f32 %v4707_v39, %v4694_v37  ;;  %v4720_v59 = vpop.f32.mrf.mxu3  ;;  %v12089_v40 = vor.u32 %v14593_v25, %v12088_v19  ;;  %v14587_v39 = vld [vmem:[#allocation17 + $0x6ac] sm:$0xf]  ;;  %v12168_v37 = vld [vmem:[#allocation17 + $0x768] sm:$0xf]  ;;  %v12170_v25 = vld [vmem:[#allocation17 + $0x778] sm:$0xf0] }
 0x7af   : > { %v16926_v38 = vadd.f32 %v4733_v33, %v4720_v59  ;;  %v4709_v15 = vpop.f32.mrf.mxu1  ;;  %v12077_v50 = vor.u32 %v14587_v39, %v12074_v26  ;;  %v12042_v59 = vld [vmem:[#allocation17 + $0x678] sm:$0xf0]  ;;  %v14611_v19 = vld [vmem:[#allocation17 + $0x76c] sm:$0xf]  ;;  %v11992_v8 = vld [vmem:[#allocation17 + $0x608] sm:$0xf] }
 0x7b0   : > { %6056 = vmatpush.bf16.msra.mxu2 %v12017_v56  ;;  %6069 = vmatpush.bf16.msrb.mxu1 %v12145_v17  ;;  %v4735_v56 = vpop.f32.mrf.mxu0  ;;  %v12090_v17 = vld [vmem:[#allocation17 + $0x6d8] sm:$0xf0]  ;;  %v12024_v15 = vld [vmem:[#allocation17 + $0x648] sm:$0xf] }
 0x7b1   : > { %6082 = vmatpush.bf16.msrb.mxu3 %v12021_v1  ;;  %6095 = vmatpush.bf16.msrb.mxu0 %v12149_v23  ;;  %v16929_v1 = vrot.slane %v16841_v48, 2  ;;  %v16932_v23 = vrot.slane %v16845_v63, 2  ;;  %v12093_v5 = vor.u32 %v14591_v46, %v12090_v17  ;;  %v12173_v46 = vor.u32 %v14611_v19, %v12170_v25  ;;  %v12152_v17 = vld [vmem:[#allocation17 + $0x748] sm:$0xf]  ;;  %v14658_v19 = vld [vmem:[#allocation17 + $0x8e4] sm:$0xf] }
 0x7b2   : > { %v12025_v26 = vor.u32 %v14577_v13, %v12024_v15  ;;  %v14690_v15 = vld [vmem:[#allocation17 + $0x9e4] sm:$0xf]  ;;  %v12482_v13 = vld [vmem:[#allocation17 + $0x9f0] sm:$0xf0] }
 0x7b4   : > { %6057 = vmatpush.bf16.msra.mxu2 %v12001_v51  ;;  %6070 = vmatpush.bf16.msrb.mxu1 %v12129_v2  ;;  %v14619_v51 = vld [vmem:[#allocation17 + $0x7ac] sm:$0xf]  ;;  %v12202_v2 = vld [vmem:[#allocation17 + $0x7b8] sm:$0xf0] }
 0x7b5   : > { %6083 = vmatpush.bf16.msrb.mxu3 %v12005_v31  ;;  %6096 = vmatpush.bf16.msrb.mxu0 %v12133_v43  ;;  %v4696_v33 = vpop.f32.mrf.mxu2  ;;  %v12056_v31 = vld [vmem:[#allocation17 + $0x688] sm:$0xf]  ;;  %v14585_v43 = vld [vmem:[#allocation17 + $0x694] sm:$0xf0]  ;;  %v12205_v16 = vor.u32 %v14619_v51, %v12202_v2  ;;  %v12153_v51 = vor.u32 %v14609_v3, %v12152_v17  ;;  %v12336_v3 = vld [vmem:[#allocation17 + $0x8c0] sm:$0xf] }
 0x7b6   : > { %v4722_v29 = vpop.f32.mrf.mxu3  ;;  %v12008_v2 = vld [vmem:[#allocation17 + $0x628] sm:$0xf]  ;;  %v14573_v33 = vld [vmem:[#allocation17 + $0x634] sm:$0xf0] }
 0x7b7   : > { %v12136_v29 = vld [vmem:[#allocation17 + $0x728] sm:$0xf]  ;;  %v12009_v11 = vor.u32 %v14573_v33, %v12008_v2  ;;  %v12320_v2 = vld [vmem:[#allocation17 + $0x8a0] sm:$0xf]  ;;  %v14652_v33 = vld [vmem:[#allocation17 + $0x8ac] sm:$0xf0] }
 0x7b8   : > { %6058 = vmatpush.bf16.msra.mxu2 %v11985_v55  ;;  %6071 = vmatpush.bf16.msrb.mxu1 %v12113_v53  ;;  %v5083_v54 = vpop.f32.mrf.mxu1  ;;  %v12057_v53 = vor.u32 %v14585_v43, %v12056_v31  ;;  %v14605_v31 = vld [vmem:[#allocation17 + $0x734] sm:$0xf0]  ;;  %v14571_v43 = vld [vmem:[#allocation17 + $0x62c] sm:$0xf] }
 0x7b9   : > { %6084 = vmatpush.bf16.msrb.mxu3 %v11989_v62  ;;  %6097 = vmatpush.bf16.msrb.mxu0 %v12117_v6  ;;  %v12061_v62 = vor.u32 %v14583_v32, %v12058_v42  ;;  %v12189_v6 = vor.u32 %v14615_v44, %v12186_v57  ;;  %v12137_v32 = vor.u32 %v14605_v31, %v12136_v29  ;;  %v14569_v42 = vld [vmem:[#allocation17 + $0x614] sm:$0xf0]  ;;  %v12120_v44 = vld [vmem:[#allocation17 + $0x708] sm:$0xf]  ;;  %v12448_v29 = vld [vmem:[#allocation17 + $0x9a0] sm:$0xf] }
 0x7ba   : > { %v14601_v57 = vld [vmem:[#allocation17 + $0x714] sm:$0xf0]  ;;  %v11993_v25 = vor.u32 %v14569_v42, %v11992_v8  ;;  %v14684_v31 = vld [vmem:[#allocation17 + $0x9ac] sm:$0xf0]  ;;  %v12321_v8 = vor.u32 %v14652_v33, %v12320_v2 }
 0x7bb   : > { %6059 = vmatmul.bf16.vlgmr.msra.gmra.mxu2 %v16929_v1  ;;  %6072 = vmatmul.bf16.vlgmr.msrb.gmra.mxu1 %v16932_v23  ;;  %v5109_v55 = vpop.f32.mrf.mxu0  ;;  %v14648_v42 = vld [vmem:[#allocation17 + $0x88c] sm:$0xf0] }
 0x7bc   : > { %6103 = vmatpush.bf16.msrb.mxu2 %v12105_v14  ;;  %6116 = vmatpush.bf16.msra.mxu1 %v12233_v22  ;;  %v14613_v14 = vld [vmem:[#allocation17 + $0x774] sm:$0xf0]  ;;  %v14579_v22 = vld [vmem:[#allocation17 + $0x66c] sm:$0xf] }
 0x7bd   : > { %6129 = vmatpush.bf16.msra.mxu3 %v12109_v60  ;;  %6142 = vmatpush.bf16.msra.mxu0 %v12237_v41  ;;  %v12041_v60 = vor.u32 %v14581_v18, %v12040_v24  ;;  %v12169_v41 = vor.u32 %v14613_v14, %v12168_v37  ;;  %v12045_v0 = vor.u32 %v14579_v22, %v12042_v59  ;;  %v11994_v24 = vld [vmem:[#allocation17 + $0x618] sm:$0xf0]  ;;  %v14599_v18 = vld [vmem:[#allocation17 + $0x70c] sm:$0xf]  ;;  %v12352_v37 = vld [vmem:[#allocation17 + $0x8e0] sm:$0xf] }
 0x7be   : > { %6085 = vmatmul.bf16.vlgmr.msrb.gmra.mxu3 %v16929_v1  ;;  %6098 = vmatmul.bf16.vlgmr.msrb.gmra.mxu0 %v16932_v23  ;;  %v5070_v56 = vpop.f32.mrf.mxu2  ;;  %v14660_v14 = vld [vmem:[#allocation17 + $0x8ec] sm:$0xf0]  ;;  %v12480_v22 = vld [vmem:[#allocation17 + $0x9e0] sm:$0xf] }
 0x7bf   : > { %v14692_v59 = vld [vmem:[#allocation17 + $0x9ec] sm:$0xf0] }
 0x7c0   : > { %6104 = vmatpush.bf16.msrb.mxu2 %v12089_v40  ;;  %6117 = vmatpush.bf16.msra.mxu1 %v12217_v27  ;;  %v5071_v40 = vadd.f32 %v5070_v56, %v16920_v12  ;;  %v5085_v45 = vpop.f32.mrf.mxu1  ;;  %v12029_v12 = vor.u32 %v14575_v10, %v12026_v52  ;;  %v12353_v56 = vor.u32 %v14660_v14, %v12352_v37  ;;  %v14656_v10 = vld [vmem:[#allocation17 + $0x8cc] sm:$0xf0]  ;;  %v12464_v52 = vld [vmem:[#allocation17 + $0x9c0] sm:$0xf] }
 0x7c1   : > { %6130 = vmatpush.bf16.msra.mxu3 %v12093_v5  ;;  %6143 = vmatpush.bf16.msra.mxu0 %v12221_v4  ;;  %v5096_v27 = vpop.f32.mrf.mxu3  ;;  %v12154_v5 = vld [vmem:[#allocation17 + $0x758] sm:$0xf0]  ;;  %v12481_v17 = vor.u32 %v14692_v59, %v12480_v22  ;;  %v14686_v45 = vld [vmem:[#allocation17 + $0x9c4] sm:$0xf]  ;;  %v12288_v37 = vld [vmem:[#allocation17 + $0x860] sm:$0xf] }
 0x7c2   : > { %v5097_v4 = vadd.f32 %v5096_v27, %v16922_v58  ;;  %v16940_v47 = vadd.f32 %v5083_v54, %v5071_v40  ;;  %v12010_v58 = vld [vmem:[#allocation17 + $0x638] sm:$0xf0]  ;;  %v12485_v27 = vor.u32 %v14690_v15, %v12482_v13  ;;  %v14644_v14 = vld [vmem:[#allocation17 + $0x86c] sm:$0xf0]  ;;  %v14674_v15 = vld [vmem:[#allocation17 + $0x964] sm:$0xf] }
 0x7c3   : > { %v5111_v39 = vpop.f32.mrf.mxu0  ;;  %v12013_v54 = vor.u32 %v14571_v43, %v12010_v58  ;;  %v14650_v43 = vld [vmem:[#allocation17 + $0x8a4] sm:$0xf]  ;;  %v12322_v58 = vld [vmem:[#allocation17 + $0x8b0] sm:$0xf0] }
 0x7c4   : > { %6105 = vmatpush.bf16.msrb.mxu2 %v12073_v20  ;;  %6118 = vmatpush.bf16.msra.mxu1 %v12201_v30  ;;  %v16942_v20 = vadd.f32 %v5109_v55, %v5097_v4  ;;  %v12157_v30 = vor.u32 %v14607_v36, %v12154_v5  ;;  %v14688_v36 = vld [vmem:[#allocation17 + $0x9cc] sm:$0xf0]  ;;  %v14654_v5 = vld [vmem:[#allocation17 + $0x8c4] sm:$0xf]  ;;  %v12338_v4 = vld [vmem:[#allocation17 + $0x8d0] sm:$0xf0] }
 0x7c5   : > { %6131 = vmatpush.bf16.msra.mxu3 %v12077_v50  ;;  %6144 = vmatpush.bf16.msra.mxu0 %v12205_v16  ;;  %v14603_v50 = vld [vmem:[#allocation17 + $0x72c] sm:$0xf]  ;;  %v12138_v16 = vld [vmem:[#allocation17 + $0x738] sm:$0xf0]  ;;  %v12466_v39 = vld [vmem:[#allocation17 + $0x9d0] sm:$0xf0] }
 0x7c6   : > { %v12141_v55 = vor.u32 %v14603_v50, %v12138_v16  ;;  %v14682_v50 = vld [vmem:[#allocation17 + $0x9a4] sm:$0xf]  ;;  %v12450_v16 = vld [vmem:[#allocation17 + $0x9b0] sm:$0xf0] }
 0x7c7   : > { %v12418_v13 = vld [vmem:[#allocation17 + $0x970] sm:$0xf0] }
 0x7c8   : > { %6106 = vmatpush.bf16.msrb.mxu2 %v12057_v53  ;;  %6119 = vmatpush.bf16.msra.mxu1 %v12185_v9  ;;  %v5072_v53 = vpop.f32.mrf.mxu2  ;;  %v14567_v9 = vld [vmem:[#allocation17 + $0x60c] sm:$0xf] }
 0x7c9   : > { %6132 = vmatpush.bf16.msra.mxu3 %v12061_v62  ;;  %6145 = vmatpush.bf16.msra.mxu0 %v12189_v6  ;;  %v5098_v62 = vpop.f32.mrf.mxu3  ;;  %v12122_v6 = vld [vmem:[#allocation17 + $0x718] sm:$0xf0]  ;;  %v14646_v53 = vld [vmem:[#allocation17 + $0x884] sm:$0xf] }
 0x7cc   : > { %6107 = vmatpush.bf16.msrb.mxu2 %v12041_v60  ;;  %6120 = vmatpush.bf16.msra.mxu1 %v12169_v41  ;;  %v12121_v60 = vor.u32 %v14601_v57, %v12120_v44  ;;  %v12354_v41 = vld [vmem:[#allocation17 + $0x8f0] sm:$0xf0]  ;;  %v12325_v44 = vor.u32 %v14650_v43, %v12322_v58  ;;  %v12453_v57 = vor.u32 %v14682_v50, %v12450_v16  ;;  %v14636_v43 = vld [vmem:[#allocation17 + $0x82c] sm:$0xf0]  ;;  %v12384_v16 = vld [vmem:[#allocation17 + $0x920] sm:$0xf] }
 0x7cd   : > { %6133 = vmatpush.bf16.msra.mxu3 %v12045_v0  ;;  %6146 = vmatpush.bf16.msra.mxu0 %v12173_v46  ;;  %v11997_v0 = vor.u32 %v14567_v9, %v11994_v24  ;;  %v12125_v46 = vor.u32 %v14599_v18, %v12122_v6  ;;  %v12357_v40 = vor.u32 %v14658_v19, %v12354_v41  ;;  %v12306_v9 = vld [vmem:[#allocation17 + $0x890] sm:$0xf0]  ;;  %v14678_v24 = vld [vmem:[#allocation17 + $0x984] sm:$0xf]  ;;  %v12416_v19 = vld [vmem:[#allocation17 + $0x960] sm:$0xf] }
 0x7ce   : > { %v12434_v18 = vld [vmem:[#allocation17 + $0x990] sm:$0xf0]  ;;  %v12309_v22 = vor.u32 %v14646_v53, %v12306_v9  ;;  %v12368_v53 = vld [vmem:[#allocation17 + $0x900] sm:$0xf]  ;;  %v14664_v9 = vld [vmem:[#allocation17 + $0x90c] sm:$0xf0] }
 0x7cf   : > { %v12437_v59 = vor.u32 %v14678_v24, %v12434_v18  ;;  %v12290_v41 = vld [vmem:[#allocation17 + $0x870] sm:$0xf0] }
 0x7d0   : > { %6108 = vmatpush.bf16.msrb.mxu2 %v12025_v26  ;;  %6121 = vmatpush.bf16.msra.mxu1 %v12153_v51  ;;  %v12337_v26 = vor.u32 %v14656_v10, %v12336_v3  ;;  %v12465_v51 = vor.u32 %v14688_v36, %v12464_v52  ;;  %v12421_v10 = vor.u32 %v14674_v15, %v12418_v13  ;;  %v14672_v52 = vld [vmem:[#allocation17 + $0x94c] sm:$0xf0]  ;;  %v14638_v36 = vld [vmem:[#allocation17 + $0x844] sm:$0xf]  ;;  %v12362_v13 = vld [vmem:[#allocation17 + $0x8f8] sm:$0xf0] }
 0x7d1   : > { %6134 = vmatpush.bf16.msra.mxu3 %v12029_v12  ;;  %6147 = vmatpush.bf16.msra.mxu0 %v12157_v30  ;;  %v12341_v12 = vor.u32 %v14654_v5, %v12338_v4  ;;  %v12469_v30 = vor.u32 %v14686_v45, %v12466_v39  ;;  %v12274_v45 = vld [vmem:[#allocation17 + $0x850] sm:$0xf0]  ;;  %v14670_v39 = vld [vmem:[#allocation17 + $0x944] sm:$0xf]  ;;  %v12369_v15 = vor.u32 %v14664_v9, %v12368_v53  ;;  %v12440_v53 = vld [vmem:[#allocation17 + $0x988] sm:$0xf] }
 0x7d2   : > { %v14681_v9 = vld [vmem:[#allocation17 + $0x994] sm:$0xf0] }
 0x7d4   : > { %6109 = vmatpush.bf16.msrb.mxu2 %v12009_v11  ;;  %6122 = vmatpush.bf16.msra.mxu1 %v12137_v32  ;;  %v12449_v11 = vor.u32 %v14684_v31, %v12448_v29  ;;  %v12304_v32 = vld [vmem:[#allocation17 + $0x880] sm:$0xf] }
 0x7d5   : > { %6135 = vmatpush.bf16.msra.mxu3 %v12013_v54  ;;  %6148 = vmatpush.bf16.msra.mxu0 %v12141_v55  ;;  %v12432_v54 = vld [vmem:[#allocation17 + $0x980] sm:$0xf]  ;;  %v14680_v55 = vld [vmem:[#allocation17 + $0x98c] sm:$0xf0] }
 0x7d6   : > { %v12433_v6 = vor.u32 %v14680_v55, %v12432_v54  ;;  %v12256_v31 = vld [vmem:[#allocation17 + $0x820] sm:$0xf]  ;;  %v14632_v55 = vld [vmem:[#allocation17 + $0x80c] sm:$0xf0] }
 0x7d8   : > { %6110 = vmatpush.bf16.msrb.mxu2 %v11993_v25  ;;  %6123 = vmatpush.bf16.msra.mxu1 %v12121_v60  ;;  %v5135_v62 = vpop.f32.mrf.mxu1  ;;  %v14676_v25 = vld [vmem:[#allocation17 + $0x96c] sm:$0xf0]  ;;  %v14642_v60 = vld [vmem:[#allocation17 + $0x864] sm:$0xf] }
 0x7d9   : > { %6136 = vmatpush.bf16.msra.mxu3 %v11997_v0  ;;  %6149 = vmatpush.bf16.msra.mxu0 %v12125_v46  ;;  %v12289_v0 = vor.u32 %v14644_v14, %v12288_v37  ;;  %v12417_v46 = vor.u32 %v14676_v25, %v12416_v19  ;;  %v12293_v3 = vor.u32 %v14642_v60, %v12290_v41  ;;  %v12370_v14 = vld [vmem:[#allocation17 + $0x910] sm:$0xf0]  ;;  %v12488_v19 = vld [vmem:[#allocation17 + $0x9e8] sm:$0xf]  ;;  %v14693_v25 = vld [vmem:[#allocation17 + $0x9f4] sm:$0xf0] }
 0x7da   : > { %v14659_v60 = vld [vmem:[#allocation17 + $0x8ec] sm:$0xf] }
 0x7db   : > { %6111 = vmatmul.bf16.vlgmr.msrb.gmra.mxu2 %v16929_v1  ;;  %6124 = vmatmul.bf16.vlgmr.msra.gmra.mxu1 %v16932_v23 }
 0x7dc   : > { %6552 = vmatpush.bf16.msra.mxu2 %v12353_v56  ;;  %6565 = vmatpush.bf16.msrb.mxu1 %v12481_v17  ;;  %v12272_v56 = vld [vmem:[#allocation17 + $0x840] sm:$0xf]  ;;  %v14640_v17 = vld [vmem:[#allocation17 + $0x84c] sm:$0xf0] }
 0x7dd   : > { %6578 = vmatpush.bf16.msrb.mxu3 %v12357_v40  ;;  %6591 = vmatpush.bf16.msrb.mxu0 %v12485_v27  ;;  %v12400_v27 = vld [vmem:[#allocation17 + $0x940] sm:$0xf] }
 0x7de   : > { %6137 = vmatmul.bf16.vlgmr.msra.gmra.mxu3 %v16929_v1  ;;  %6150 = vmatmul.bf16.vlgmr.msra.gmra.mxu0 %v16932_v23  ;;  %v5161_v1 = vpop.f32.mrf.mxu0  ;;  %v12305_v23 = vor.u32 %v14648_v42, %v12304_v32  ;;  %v5122_v40 = vpop.f32.mrf.mxu2  ;;  %v12401_v29 = vor.u32 %v14672_v52, %v12400_v27  ;;  %v14666_v32 = vld [vmem:[#allocation17 + $0x924] sm:$0xf]  ;;  %v12386_v42 = vld [vmem:[#allocation17 + $0x930] sm:$0xf0]  ;;  %v14657_v27 = vld [vmem:[#allocation17 + $0x8d4] sm:$0xf0]  ;;  %v12365_v52 = vor.u32 %v14659_v60, %v12362_v13 }
 0x7df   : > { %v5123_v5 = vadd.f32 %v5122_v40, %v16924_v61  ;;  %v12277_v61 = vor.u32 %v14638_v36, %v12274_v45  ;;  %v12389_v18 = vor.u32 %v14666_v32, %v12386_v42  ;;  %v12344_v40 = vld [vmem:[#allocation17 + $0x8c8] sm:$0xf]  ;;  %v14655_v45 = vld [vmem:[#allocation17 + $0x8cc] sm:$0xf]  ;;  %v12298_v13 = vld [vmem:[#allocation17 + $0x878] sm:$0xf0] }
 0x7e0   : > { %6553 = vmatpush.bf16.msra.mxu2 %v12337_v26  ;;  %6566 = vmatpush.bf16.msrb.mxu1 %v12465_v51  ;;  %v12402_v26 = vld [vmem:[#allocation17 + $0x950] sm:$0xf0]  ;;  %v5137_v2 = vpop.f32.mrf.mxu1  ;;  %v12424_v60 = vld [vmem:[#allocation17 + $0x968] sm:$0xf] }
 0x7e1   : > { %6579 = vmatpush.bf16.msrb.mxu3 %v12341_v12  ;;  %6592 = vmatpush.bf16.msrb.mxu0 %v12469_v30  ;;  %v5148_v4 = vpop.f32.mrf.mxu3  ;;  %v16950_v33 = vadd.f32 %v5135_v62, %v5123_v5  ;;  %v12273_v30 = vor.u32 %v14640_v17, %v12272_v56  ;;  %v12405_v50 = vor.u32 %v14670_v39, %v12402_v26  ;;  %v12472_v5 = vld [vmem:[#allocation17 + $0x9c8] sm:$0xf]  ;;  %v12346_v39 = vld [vmem:[#allocation17 + $0x8d8] sm:$0xf0]  ;;  %v14687_v26 = vld [vmem:[#allocation17 + $0x9cc] sm:$0xf] }
 0x7e2   : > { %v5149_v51 = vadd.f32 %v5148_v4, %v16926_v38  ;;  %v12258_v38 = vld [vmem:[#allocation17 + $0x830] sm:$0xf0]  ;;  %v14689_v4 = vld [vmem:[#allocation17 + $0x9d4] sm:$0xf0]  ;;  %v12345_v2 = vor.u32 %v14657_v27, %v12344_v40 }
 0x7e4   : > { %6554 = vmatpush.bf16.msra.mxu2 %v12321_v8  ;;  %6567 = vmatpush.bf16.msrb.mxu1 %v12449_v11  ;;  %v16952_v58 = vadd.f32 %v5161_v1, %v5149_v51  ;;  %v14668_v8 = vld [vmem:[#allocation17 + $0x92c] sm:$0xf0]  ;;  %v14634_v11 = vld [vmem:[#allocation17 + $0x824] sm:$0xf]  ;;  %v12474_v51 = vld [vmem:[#allocation17 + $0x9d8] sm:$0xf0] }
 0x7e5   : > { %6580 = vmatpush.bf16.msrb.mxu3 %v12325_v44  ;;  %6593 = vmatpush.bf16.msrb.mxu0 %v12453_v57  ;;  %v12240_v44 = vld [vmem:[#allocation17 + $0x800] sm:$0xf]  ;;  %v12257_v57 = vor.u32 %v14636_v43, %v12256_v31  ;;  %v12385_v54 = vor.u32 %v14668_v8, %v12384_v16  ;;  %v12261_v24 = vor.u32 %v14634_v11, %v12258_v38  ;;  %v14630_v1 = vld [vmem:[#allocation17 + $0x804] sm:$0xf]  ;;  %v14651_v16 = vld [vmem:[#allocation17 + $0x8ac] sm:$0xf] }
 0x7e6   : > { %v5163_v12 = vpop.f32.mrf.mxu0  ;;  %v5124_v62 = vpop.f32.mrf.mxu2  ;;  %v12241_v41 = vor.u32 %v14632_v55, %v12240_v44  ;;  %v12349_v31 = vor.u32 %v14655_v45, %v12346_v39  ;;  %v12477_v43 = vor.u32 %v14687_v26, %v12474_v51  ;;  %v12330_v8 = vld [vmem:[#allocation17 + $0x8b8] sm:$0xf0]  ;;  %v14683_v11 = vld [vmem:[#allocation17 + $0x9ac] sm:$0xf]  ;;  %v12312_v44 = vld [vmem:[#allocation17 + $0x888] sm:$0xf] }
 0x7e7   : > { %v12473_v12 = vor.u32 %v14689_v4, %v12472_v5  ;;  %v12458_v38 = vld [vmem:[#allocation17 + $0x9b8] sm:$0xf0]  ;;  %v14679_v62 = vld [vmem:[#allocation17 + $0x98c] sm:$0xf]  ;;  %v14673_v5 = vld [vmem:[#allocation17 + $0x954] sm:$0xf0] }
 0x7e8   : > { %6555 = vmatpush.bf16.msra.mxu2 %v12305_v23  ;;  %6568 = vmatpush.bf16.msrb.mxu1 %v12433_v6  ;;  %v12242_v23 = vld [vmem:[#allocation17 + $0x810] sm:$0xf0]  ;;  %v14662_v6 = vld [vmem:[#allocation17 + $0x904] sm:$0xf]  ;;  %v12461_v55 = vor.u32 %v14683_v11, %v12458_v38  ;;  %v14639_v4 = vld [vmem:[#allocation17 + $0x84c] sm:$0xf] }
 0x7e9   : > { %6581 = vmatpush.bf16.msrb.mxu3 %v12309_v22  ;;  %6594 = vmatpush.bf16.msrb.mxu0 %v12437_v59  ;;  %v5150_v37 = vpop.f32.mrf.mxu3  ;;  %v12360_v22 = vld [vmem:[#allocation17 + $0x8e8] sm:$0xf]  ;;  %v14661_v59 = vld [vmem:[#allocation17 + $0x8f4] sm:$0xf0]  ;;  %v12245_v56 = vor.u32 %v14630_v1, %v12242_v23  ;;  %v12373_v17 = vor.u32 %v14662_v6, %v12370_v14  ;;  %v12442_v1 = vld [vmem:[#allocation17 + $0x998] sm:$0xf0]  ;;  %v12441_v14 = vor.u32 %v14681_v9, %v12440_v53 }
 0x7ea   : > { %v12282_v26 = vld [vmem:[#allocation17 + $0x858] sm:$0xf0]  ;;  %v14671_v51 = vld [vmem:[#allocation17 + $0x94c] sm:$0xf] }
 0x7eb   : > { %v12285_v11 = vor.u32 %v14639_v4, %v12282_v26  ;;  %v14718_v26 = vld [vmem:[#allocation17 + $0xac4] sm:$0xf] }
 0x7ec   : > { %6556 = vmatpush.bf16.msra.mxu2 %v12289_v0  ;;  %6569 = vmatpush.bf16.msrb.mxu1 %v12417_v46  ;;  %v14691_v0 = vld [vmem:[#allocation17 + $0x9ec] sm:$0xf]  ;;  %v12490_v46 = vld [vmem:[#allocation17 + $0x9f8] sm:$0xf0] }
 0x7ed   : > { %6582 = vmatpush.bf16.msrb.mxu3 %v12293_v3  ;;  %6595 = vmatpush.bf16.msrb.mxu0 %v12421_v10  ;;  %v12361_v3 = vor.u32 %v14661_v59, %v12360_v22  ;;  %v12489_v10 = vor.u32 %v14693_v25, %v12488_v19  ;;  %v12493_v36 = vor.u32 %v14691_v0, %v12490_v46  ;;  %v12296_v22 = vld [vmem:[#allocation17 + $0x868] sm:$0xf]  ;;  %v14645_v59 = vld [vmem:[#allocation17 + $0x874] sm:$0xf0]  ;;  %v14675_v0 = vld [vmem:[#allocation17 + $0x96c] sm:$0xf] }
 0x7ee   : > { %v12445_v25 = vor.u32 %v14679_v62, %v12442_v1  ;;  %v12426_v46 = vld [vmem:[#allocation17 + $0x978] sm:$0xf0]  ;;  %v14665_v62 = vld [vmem:[#allocation17 + $0x914] sm:$0xf0] }
 0x7ef   : > { %v12429_v27 = vor.u32 %v14675_v0, %v12426_v46  ;;  %v12610_v46 = vld [vmem:[#allocation17 + $0xaf0] sm:$0xf0] }
 0x7f0   : > { %6557 = vmatpush.bf16.msra.mxu2 %v12273_v30  ;;  %6570 = vmatpush.bf16.msrb.mxu1 %v12401_v29  ;;  %v12328_v30 = vld [vmem:[#allocation17 + $0x8a8] sm:$0xf]  ;;  %v14653_v29 = vld [vmem:[#allocation17 + $0x8b4] sm:$0xf0] }
 0x7f1   : > { %6583 = vmatpush.bf16.msrb.mxu3 %v12277_v61  ;;  %6596 = vmatpush.bf16.msrb.mxu0 %v12405_v50  ;;  %v12456_v61 = vld [vmem:[#allocation17 + $0x9a8] sm:$0xf]  ;;  %v14685_v50 = vld [vmem:[#allocation17 + $0x9b4] sm:$0xf0]  ;;  %v12329_v32 = vor.u32 %v14653_v29, %v12328_v30 }
 0x7f2   : > { %v12457_v42 = vor.u32 %v14685_v50, %v12456_v61  ;;  %v12264_v50 = vld [vmem:[#allocation17 + $0x828] sm:$0xf] }
 0x7f4   : > { %6558 = vmatpush.bf16.msra.mxu2 %v12257_v57  ;;  %6571 = vmatpush.bf16.msrb.mxu1 %v12385_v54  ;;  %v14649_v57 = vld [vmem:[#allocation17 + $0x894] sm:$0xf0]  ;;  %v12333_v54 = vor.u32 %v14651_v16, %v12330_v8 }
 0x7f5   : > { %6584 = vmatpush.bf16.msrb.mxu3 %v12261_v24  ;;  %6597 = vmatpush.bf16.msrb.mxu0 %v12389_v18  ;;  %v14647_v24 = vld [vmem:[#allocation17 + $0x88c] sm:$0xf]  ;;  %v12314_v18 = vld [vmem:[#allocation17 + $0x898] sm:$0xf0]  ;;  %v12313_v37 = vor.u32 %v14649_v57, %v12312_v44  ;;  %v14637_v16 = vld [vmem:[#allocation17 + $0x834] sm:$0xf0] }
 0x7f6   : > { %v12317_v19 = vor.u32 %v14647_v24, %v12314_v18  ;;  %v14635_v44 = vld [vmem:[#allocation17 + $0x82c] sm:$0xf]  ;;  %v12266_v57 = vld [vmem:[#allocation17 + $0x838] sm:$0xf0]  ;;  %v12265_v53 = vor.u32 %v14637_v16, %v12264_v50  ;;  %v14633_v24 = vld [vmem:[#allocation17 + $0x814] sm:$0xf0] }
 0x7f7   : > { %v12376_v18 = vld [vmem:[#allocation17 + $0x908] sm:$0xf] }
 0x7f8   : > { %6559 = vmatpush.bf16.msra.mxu2 %v12241_v41  ;;  %6572 = vmatpush.bf16.msrb.mxu1 %v12369_v15  ;;  %v5576_v23 = vpop.f32.mrf.mxu1  ;;  %v14677_v41 = vld [vmem:[#allocation17 + $0x974] sm:$0xf0]  ;;  %v14643_v15 = vld [vmem:[#allocation17 + $0x86c] sm:$0xf]  ;;  %v12377_v0 = vor.u32 %v14665_v62, %v12376_v18  ;;  %v12688_v18 = vld [vmem:[#allocation17 + $0xb80] sm:$0xf] }
 0x7f9   : > { %6585 = vmatpush.bf16.msrb.mxu3 %v12245_v56  ;;  %6598 = vmatpush.bf16.msrb.mxu0 %v12373_v17  ;;  %v12297_v56 = vor.u32 %v14645_v59, %v12296_v22  ;;  %v12425_v17 = vor.u32 %v14677_v41, %v12424_v60  ;;  %v12301_v40 = vor.u32 %v14643_v15, %v12298_v13  ;;  %v12378_v59 = vld [vmem:[#allocation17 + $0x918] sm:$0xf0]  ;;  %v12736_v60 = vld [vmem:[#allocation17 + $0xbe0] sm:$0xf]  ;;  %v14756_v41 = vld [vmem:[#allocation17 + $0xbec] sm:$0xf0] }
 0x7fa   : > { %v14722_v15 = vld [vmem:[#allocation17 + $0xae4] sm:$0xf]  ;;  %v14744_v62 = vld [vmem:[#allocation17 + $0xb8c] sm:$0xf0] }
 0x7fb   : > { %6560 = vmatmul.bf16.vlgmr.msra.gmra.mxu2 %v16882_v21  ;;  %6573 = vmatmul.bf16.vlgmr.msrb.gmra.mxu1 %v16884_v28  ;;  %v5602_v6 = vpop.f32.mrf.mxu0 }
 0x7fc   : > { %6604 = vmatpush.bf16.msrb.mxu2 %v12361_v3  ;;  %6617 = vmatpush.bf16.msra.mxu1 %v12489_v10  ;;  %v12280_v3 = vld [vmem:[#allocation17 + $0x848] sm:$0xf]  ;;  %v14641_v10 = vld [vmem:[#allocation17 + $0x854] sm:$0xf0] }
 0x7fd   : > { %6630 = vmatpush.bf16.msra.mxu3 %v12365_v52  ;;  %6643 = vmatpush.bf16.msra.mxu0 %v12493_v36  ;;  %v12408_v36 = vld [vmem:[#allocation17 + $0x948] sm:$0xf] }
 0x7fe   : > { %6586 = vmatmul.bf16.vlgmr.msrb.gmra.mxu3 %v16882_v21  ;;  %6599 = vmatmul.bf16.vlgmr.msrb.gmra.mxu0 %v16884_v28  ;;  %v5563_v52 = vpop.f32.mrf.mxu2  ;;  %v12409_v61 = vor.u32 %v14673_v5, %v12408_v36  ;;  %v14720_v36 = vld [vmem:[#allocation17 + $0xacc] sm:$0xf0]  ;;  %v12613_v5 = vor.u32 %v14722_v15, %v12610_v46  ;;  %v14706_v15 = vld [vmem:[#allocation17 + $0xa64] sm:$0xf]  ;;  %v12674_v46 = vld [vmem:[#allocation17 + $0xb70] sm:$0xf0] }
 0x7ff   : > { %v5577_v45 = vadd.f32 %v5576_v23, %v5563_v52  ;;  %v12592_v52 = vld [vmem:[#allocation17 + $0xac0] sm:$0xf] }
 0x800   : > { %6605 = vmatpush.bf16.msrb.mxu2 %v12345_v2  ;;  %6618 = vmatpush.bf16.msra.mxu1 %v12473_v12  ;;  %v12410_v2 = vld [vmem:[#allocation17 + $0x958] sm:$0xf0]  ;;  %v5578_v30 = vpop.f32.mrf.mxu1 }
 0x801   : > { %6631 = vmatpush.bf16.msra.mxu3 %v12349_v31  ;;  %6644 = vmatpush.bf16.msra.mxu0 %v12477_v43  ;;  %v5589_v39 = vpop.f32.mrf.mxu3  ;;  %v16959_v29 = vadd.f32 %v5577_v45, %v16940_v47  ;;  %v12281_v43 = vor.u32 %v14641_v10, %v12280_v3  ;;  %v12413_v38 = vor.u32 %v14671_v51, %v12410_v2  ;;  %v12248_v47 = vld [vmem:[#allocation17 + $0x808] sm:$0xf]  ;;  %v12720_v45 = vld [vmem:[#allocation17 + $0xbc0] sm:$0xf]  ;;  %v12594_v51 = vld [vmem:[#allocation17 + $0xad0] sm:$0xf0] }
 0x802   : > { %v5603_v12 = vadd.f32 %v5602_v6, %v5589_v39  ;;  %v14631_v6 = vld [vmem:[#allocation17 + $0x80c] sm:$0xf]  ;;  %v12249_v13 = vor.u32 %v14633_v24, %v12248_v47  ;;  %v14752_v39 = vld [vmem:[#allocation17 + $0xbcc] sm:$0xf0]  ;;  %v14750_v2 = vld [vmem:[#allocation17 + $0xbc4] sm:$0xf]  ;;  %v12593_v30 = vor.u32 %v14720_v36, %v12592_v52  ;;  %v12597_v50 = vor.u32 %v14718_v26, %v12594_v51 }
 0x803   : > { %v5604_v31 = vpop.f32.mrf.mxu0  ;;  %v12560_v47 = vld [vmem:[#allocation17 + $0xa80] sm:$0xf]  ;;  %v12530_v26 = vld [vmem:[#allocation17 + $0xa50] sm:$0xf0]  ;;  %v14734_v51 = vld [vmem:[#allocation17 + $0xb44] sm:$0xf] }
 0x804   : > { %6606 = vmatpush.bf16.msrb.mxu2 %v12329_v32  ;;  %6619 = vmatpush.bf16.msra.mxu1 %v12457_v42  ;;  %v16962_v8 = vadd.f32 %v5603_v12, %v16942_v20  ;;  %v12392_v32 = vld [vmem:[#allocation17 + $0x928] sm:$0xf]  ;;  %v14669_v42 = vld [vmem:[#allocation17 + $0x934] sm:$0xf0]  ;;  %v12269_v20 = vor.u32 %v14635_v44, %v12266_v57  ;;  %v12722_v12 = vld [vmem:[#allocation17 + $0xbd0] sm:$0xf0]  ;;  %v12721_v31 = vor.u32 %v14752_v39, %v12720_v45 }
 0x805   : > { %6632 = vmatpush.bf16.msra.mxu3 %v12333_v54  ;;  %6645 = vmatpush.bf16.msra.mxu0 %v12461_v55  ;;  %v14667_v54 = vld [vmem:[#allocation17 + $0x92c] sm:$0xf]  ;;  %v12394_v55 = vld [vmem:[#allocation17 + $0x938] sm:$0xf0]  ;;  %v12393_v9 = vor.u32 %v14669_v42, %v12392_v32  ;;  %v12725_v16 = vor.u32 %v14750_v2, %v12722_v12  ;;  %v14714_v32 = vld [vmem:[#allocation17 + $0xaa4] sm:$0xf] }
 0x806   : > { %v12397_v1 = vor.u32 %v14667_v54, %v12394_v55  ;;  %v5565_v23 = vpop.f32.mrf.mxu2  ;;  %v12578_v42 = vld [vmem:[#allocation17 + $0xab0] sm:$0xf0]  ;;  %v14746_v44 = vld [vmem:[#allocation17 + $0xba4] sm:$0xf]  ;;  %v12656_v36 = vld [vmem:[#allocation17 + $0xb40] sm:$0xf] }
 0x807   : > { %v12706_v57 = vld [vmem:[#allocation17 + $0xbb0] sm:$0xf0]  ;;  %v14742_v23 = vld [vmem:[#allocation17 + $0xb84] sm:$0xf] }
 0x808   : > { %6607 = vmatpush.bf16.msrb.mxu2 %v12313_v37  ;;  %6620 = vmatpush.bf16.msra.mxu1 %v12441_v14  ;;  %v12250_v37 = vld [vmem:[#allocation17 + $0x818] sm:$0xf0]  ;;  %v14663_v14 = vld [vmem:[#allocation17 + $0x90c] sm:$0xf]  ;;  %v12709_v24 = vor.u32 %v14746_v44, %v12706_v57  ;;  %v12658_v2 = vld [vmem:[#allocation17 + $0xb50] sm:$0xf0] }
 0x809   : > { %6633 = vmatpush.bf16.msra.mxu3 %v12317_v19  ;;  %6646 = vmatpush.bf16.msra.mxu0 %v12445_v25  ;;  %v5591_v22 = vpop.f32.mrf.mxu3  ;;  %v12608_v19 = vld [vmem:[#allocation17 + $0xae0] sm:$0xf]  ;;  %v14724_v25 = vld [vmem:[#allocation17 + $0xaec] sm:$0xf0]  ;;  %v12253_v3 = vor.u32 %v14631_v6, %v12250_v37  ;;  %v12381_v10 = vor.u32 %v14663_v14, %v12378_v59  ;;  %v12690_v6 = vld [vmem:[#allocation17 + $0xb90] sm:$0xf0]  ;;  %v12689_v14 = vor.u32 %v14744_v62, %v12688_v18 }
 0x80a   : > { %v12544_v22 = vld [vmem:[#allocation17 + $0xa60] sm:$0xf]  ;;  %v14708_v59 = vld [vmem:[#allocation17 + $0xa6c] sm:$0xf0] }
 0x80b   : > { %v12640_v44 = vld [vmem:[#allocation17 + $0xb20] sm:$0xf]  ;;  %v14732_v57 = vld [vmem:[#allocation17 + $0xb2c] sm:$0xf0] }
 0x80c   : > { %6608 = vmatpush.bf16.msrb.mxu2 %v12297_v56  ;;  %6621 = vmatpush.bf16.msra.mxu1 %v12425_v17  ;;  %v14754_v56 = vld [vmem:[#allocation17 + $0xbe4] sm:$0xf]  ;;  %v12738_v17 = vld [vmem:[#allocation17 + $0xbf0] sm:$0xf0]  ;;  %v14696_v18 = vld [vmem:[#allocation17 + $0xa0c] sm:$0xf0] }
 0x80d   : > { %6634 = vmatpush.bf16.msra.mxu3 %v12301_v40  ;;  %6647 = vmatpush.bf16.msra.mxu0 %v12429_v27  ;;  %v12609_v40 = vor.u32 %v14724_v25, %v12608_v19  ;;  %v12737_v27 = vor.u32 %v14756_v41, %v12736_v60  ;;  %v12741_v4 = vor.u32 %v14754_v56, %v12738_v17  ;;  %v12672_v60 = vld [vmem:[#allocation17 + $0xb60] sm:$0xf]  ;;  %v14740_v41 = vld [vmem:[#allocation17 + $0xb6c] sm:$0xf0] }
 0x80e   : > { %v12693_v25 = vor.u32 %v14742_v23, %v12690_v6  ;;  %v12545_v56 = vor.u32 %v14708_v59, %v12544_v22  ;;  %v12673_v17 = vor.u32 %v14740_v41, %v12672_v60  ;;  %v12624_v62 = vld [vmem:[#allocation17 + $0xb00] sm:$0xf]  ;;  %v14694_v6 = vld [vmem:[#allocation17 + $0xa04] sm:$0xf]  ;;  %v12616_v22 = vld [vmem:[#allocation17 + $0xae8] sm:$0xf] }
 0x80f   : > { %v14725_v59 = vld [vmem:[#allocation17 + $0xaf4] sm:$0xf0]  ;;  %v14723_v60 = vld [vmem:[#allocation17 + $0xaec] sm:$0xf] }
 0x810   : > { %6609 = vmatpush.bf16.msrb.mxu2 %v12281_v43  ;;  %6622 = vmatpush.bf16.msra.mxu1 %v12409_v61  ;;  %v12576_v43 = vld [vmem:[#allocation17 + $0xaa0] sm:$0xf]  ;;  %v14716_v61 = vld [vmem:[#allocation17 + $0xaac] sm:$0xf0] }
 0x811   : > { %6635 = vmatpush.bf16.msra.mxu3 %v12285_v11  ;;  %6648 = vmatpush.bf16.msra.mxu0 %v12413_v38  ;;  %v12704_v11 = vld [vmem:[#allocation17 + $0xba0] sm:$0xf]  ;;  %v14748_v38 = vld [vmem:[#allocation17 + $0xbac] sm:$0xf0]  ;;  %v12577_v54 = vor.u32 %v14716_v61, %v12576_v43 }
 0x812   : > { %v12705_v55 = vor.u32 %v14748_v38, %v12704_v11  ;;  %v14700_v11 = vld [vmem:[#allocation17 + $0xa2c] sm:$0xf0] }
 0x814   : > { %6610 = vmatpush.bf16.msrb.mxu2 %v12265_v53  ;;  %6623 = vmatpush.bf16.msra.mxu1 %v12393_v9  ;;  %v14712_v53 = vld [vmem:[#allocation17 + $0xa8c] sm:$0xf0]  ;;  %v12581_v9 = vor.u32 %v14714_v32, %v12578_v42  ;;  %v12661_v42 = vor.u32 %v14734_v51, %v12658_v2  ;;  %v12730_v51 = vld [vmem:[#allocation17 + $0xbd8] sm:$0xf0]  ;;  %v16975_v2 = vrot.slane %v16841_v48, 3 }
 0x815   : > { %6636 = vmatpush.bf16.msra.mxu3 %v12269_v20  ;;  %6649 = vmatpush.bf16.msra.mxu0 %v12397_v1  ;;  %v14710_v20 = vld [vmem:[#allocation17 + $0xa84] sm:$0xf]  ;;  %v12562_v1 = vld [vmem:[#allocation17 + $0xa90] sm:$0xf0]  ;;  %v12586_v48 = vld [vmem:[#allocation17 + $0xab8] sm:$0xf0] }
 0x816   : > { %v12565_v19 = vor.u32 %v14710_v20, %v12562_v1  ;;  %v14728_v20 = vld [vmem:[#allocation17 + $0xb0c] sm:$0xf0] }
 0x818   : > { %6611 = vmatpush.bf16.msrb.mxu2 %v12249_v13  ;;  %6624 = vmatpush.bf16.msra.mxu1 %v12377_v0  ;;  %v5628_v37 = vpop.f32.mrf.mxu1  ;;  %v12546_v13 = vld [vmem:[#allocation17 + $0xa70] sm:$0xf0]  ;;  %v14738_v0 = vld [vmem:[#allocation17 + $0xb64] sm:$0xf] }
 0x819   : > { %6637 = vmatpush.bf16.msra.mxu3 %v12253_v3  ;;  %6650 = vmatpush.bf16.msra.mxu0 %v12381_v10  ;;  %v12528_v3 = vld [vmem:[#allocation17 + $0xa40] sm:$0xf]  ;;  %v14704_v10 = vld [vmem:[#allocation17 + $0xa4c] sm:$0xf0] }
 0x81a   : > { %v12529_v61 = vor.u32 %v14704_v10, %v12528_v3  ;;  %v12617_v3 = vor.u32 %v14725_v59, %v12616_v22 }
 0x81b   : > { %6612 = vmatmul.bf16.vlgmr.msrb.gmra.mxu2 %v16882_v21  ;;  %6625 = vmatmul.bf16.vlgmr.msra.gmra.mxu1 %v16884_v28 }
 0x81c   : > { %7049 = vmatpush.bf16.msra.mxu2 %v12609_v40  ;;  %7062 = vmatpush.bf16.msrb.mxu1 %v12737_v27  ;;  %v12549_v40 = vor.u32 %v14706_v15, %v12546_v13  ;;  %v12677_v27 = vor.u32 %v14738_v0, %v12674_v46  ;;  %v12625_v15 = vor.u32 %v14728_v20, %v12624_v62  ;;  %v12618_v13 = vld [vmem:[#allocation17 + $0xaf8] sm:$0xf0]  ;;  %v14755_v0 = vld [vmem:[#allocation17 + $0xbec] sm:$0xf] }
 0x81d   : > { %7075 = vmatpush.bf16.msrb.mxu3 %v12613_v5  ;;  %7088 = vmatpush.bf16.msrb.mxu0 %v12741_v4  ;;  %v14736_v5 = vld [vmem:[#allocation17 + $0xb4c] sm:$0xf0]  ;;  %v14702_v4 = vld [vmem:[#allocation17 + $0xa44] sm:$0xf]  ;;  %v12746_v46 = vld [vmem:[#allocation17 + $0xbf8] sm:$0xf0] }
 0x81e   : > { %6638 = vmatmul.bf16.vlgmr.msra.gmra.mxu3 %v16882_v21  ;;  %6651 = vmatmul.bf16.vlgmr.msra.gmra.mxu0 %v16884_v28  ;;  %v5654_v21 = vpop.f32.mrf.mxu0  ;;  %v12561_v28 = vor.u32 %v14712_v53, %v12560_v47  ;;  %v5615_v52 = vpop.f32.mrf.mxu2  ;;  %v12533_v32 = vor.u32 %v14702_v4, %v12530_v26  ;;  %v14730_v47 = vld [vmem:[#allocation17 + $0xb24] sm:$0xf]  ;;  %v12642_v53 = vld [vmem:[#allocation17 + $0xb30] sm:$0xf0]  ;;  %v14753_v4 = vld [vmem:[#allocation17 + $0xbd4] sm:$0xf0] }
 0x81f   : > { %v5629_v45 = vadd.f32 %v5628_v37, %v5615_v52  ;;  %v12645_v1 = vor.u32 %v14730_v47, %v12642_v53  ;;  %v12498_v37 = vld [vmem:[#allocation17 + $0xa10] sm:$0xf0]  ;;  %v12621_v52 = vor.u32 %v14723_v60, %v12618_v13  ;;  %v14751_v26 = vld [vmem:[#allocation17 + $0xbcc] sm:$0xf]  ;;  %v12568_v47 = vld [vmem:[#allocation17 + $0xa88] sm:$0xf] }
 0x820   : > { %7050 = vmatpush.bf16.msra.mxu2 %v12593_v30  ;;  %7063 = vmatpush.bf16.msrb.mxu1 %v12721_v31  ;;  %v5630_v30 = vpop.f32.mrf.mxu1  ;;  %v14713_v53 = vld [vmem:[#allocation17 + $0xa94] sm:$0xf0]  ;;  %v14711_v62 = vld [vmem:[#allocation17 + $0xa8c] sm:$0xf]  ;;  %v12570_v20 = vld [vmem:[#allocation17 + $0xa98] sm:$0xf0] }
 0x821   : > { %7076 = vmatpush.bf16.msrb.mxu3 %v12597_v50  ;;  %7089 = vmatpush.bf16.msrb.mxu0 %v12725_v16  ;;  %v5641_v39 = vpop.f32.mrf.mxu3  ;;  %v16969_v31 = vadd.f32 %v5629_v45, %v16950_v33  ;;  %v12657_v50 = vor.u32 %v14736_v5, %v12656_v36  ;;  %v12512_v16 = vld [vmem:[#allocation17 + $0xa20] sm:$0xf]  ;;  %v12749_v36 = vor.u32 %v14755_v0, %v12746_v46  ;;  %v12728_v5 = vld [vmem:[#allocation17 + $0xbc8] sm:$0xf]  ;;  %v14719_v45 = vld [vmem:[#allocation17 + $0xacc] sm:$0xf] }
 0x822   : > { %v5655_v12 = vadd.f32 %v5654_v21, %v5641_v39  ;;  %v12496_v33 = vld [vmem:[#allocation17 + $0xa00] sm:$0xf]  ;;  %v14726_v21 = vld [vmem:[#allocation17 + $0xb04] sm:$0xf]  ;;  %v12602_v39 = vld [vmem:[#allocation17 + $0xad8] sm:$0xf0]  ;;  %v12573_v22 = vor.u32 %v14711_v62, %v12570_v20 }
 0x823   : > { %v12497_v41 = vor.u32 %v14696_v18, %v12496_v33  ;;  %v14745_v18 = vld [vmem:[#allocation17 + $0xb94] sm:$0xf0]  ;;  %v14707_v60 = vld [vmem:[#allocation17 + $0xa6c] sm:$0xf]  ;;  %v12682_v13 = vld [vmem:[#allocation17 + $0xb78] sm:$0xf0] }
 0x824   : > { %7051 = vmatpush.bf16.msra.mxu2 %v12577_v54  ;;  %7064 = vmatpush.bf16.msrb.mxu1 %v12705_v55  ;;  %v16972_v38 = vadd.f32 %v5655_v12, %v16952_v58  ;;  %v14698_v54 = vld [vmem:[#allocation17 + $0xa24] sm:$0xf]  ;;  %v12514_v55 = vld [vmem:[#allocation17 + $0xa30] sm:$0xf0]  ;;  %v16978_v12 = vrot.slane %v16845_v63, 3 }
 0x825   : > { %7077 = vmatpush.bf16.msrb.mxu3 %v12581_v9  ;;  %7090 = vmatpush.bf16.msrb.mxu0 %v12709_v24  ;;  %v12513_v9 = vor.u32 %v14700_v11, %v12512_v16  ;;  %v12641_v24 = vor.u32 %v14732_v57, %v12640_v44  ;;  %v12517_v58 = vor.u32 %v14698_v54, %v12514_v55  ;;  %v14715_v44 = vld [vmem:[#allocation17 + $0xaac] sm:$0xf]  ;;  %v12714_v54 = vld [vmem:[#allocation17 + $0xbb8] sm:$0xf0]  ;;  %v14729_v62 = vld [vmem:[#allocation17 + $0xb14] sm:$0xf0] }
 0x826   : > { %v5656_v43 = vpop.f32.mrf.mxu0  ;;  %v5617_v23 = vpop.f32.mrf.mxu2  ;;  %v12605_v16 = vor.u32 %v14719_v45, %v12602_v39  ;;  %v12733_v11 = vor.u32 %v14751_v26, %v12730_v51  ;;  %v14747_v57 = vld [vmem:[#allocation17 + $0xbac] sm:$0xf]  ;;  %v12589_v33 = vor.u32 %v14715_v44, %v12586_v48  ;;  %v12538_v45 = vld [vmem:[#allocation17 + $0xa58] sm:$0xf0] }
 0x827   : > { %v12729_v43 = vor.u32 %v14753_v4, %v12728_v5  ;;  %v14735_v39 = vld [vmem:[#allocation17 + $0xb4c] sm:$0xf]  ;;  %v12666_v26 = vld [vmem:[#allocation17 + $0xb58] sm:$0xf0] }
 0x828   : > { %7052 = vmatpush.bf16.msra.mxu2 %v12561_v28  ;;  %7065 = vmatpush.bf16.msrb.mxu1 %v12689_v14  ;;  %v12626_v14 = vld [vmem:[#allocation17 + $0xb10] sm:$0xf0]  ;;  %v12669_v48 = vor.u32 %v14735_v39, %v12666_v26 }
 0x829   : > { %7078 = vmatpush.bf16.msrb.mxu3 %v12565_v19  ;;  %7091 = vmatpush.bf16.msrb.mxu0 %v12693_v25  ;;  %v5643_v28 = vpop.f32.mrf.mxu3  ;;  %v12744_v19 = vld [vmem:[#allocation17 + $0xbe8] sm:$0xf]  ;;  %v14757_v25 = vld [vmem:[#allocation17 + $0xbf4] sm:$0xf0]  ;;  %v12978_v39 = vld [vmem:[#allocation17 + $0xdd0] sm:$0xf0] }
 0x82a   : > { %v12745_v10 = vor.u32 %v14757_v25, %v12744_v19  ;;  %v12552_v28 = vld [vmem:[#allocation17 + $0xa68] sm:$0xf]  ;;  %v14741_v25 = vld [vmem:[#allocation17 + $0xb74] sm:$0xf0] }
 0x82b   : > { %v12680_v19 = vld [vmem:[#allocation17 + $0xb68] sm:$0xf] }
 0x82c   : > { %7053 = vmatpush.bf16.msra.mxu2 %v12545_v56  ;;  %7066 = vmatpush.bf16.msrb.mxu1 %v12673_v17  ;;  %v12501_v56 = vor.u32 %v14694_v6, %v12498_v37  ;;  %v12629_v17 = vor.u32 %v14726_v21, %v12626_v14  ;;  %v12569_v37 = vor.u32 %v14713_v53, %v12568_v47  ;;  %v14709_v14 = vld [vmem:[#allocation17 + $0xa74] sm:$0xf0]  ;;  %v14731_v47 = vld [vmem:[#allocation17 + $0xb2c] sm:$0xf]  ;;  %v12650_v53 = vld [vmem:[#allocation17 + $0xb38] sm:$0xf0] }
 0x82d   : > { %7079 = vmatpush.bf16.msrb.mxu3 %v12549_v40  ;;  %7092 = vmatpush.bf16.msrb.mxu0 %v12677_v27  ;;  %v12600_v40 = vld [vmem:[#allocation17 + $0xac8] sm:$0xf]  ;;  %v14721_v27 = vld [vmem:[#allocation17 + $0xad4] sm:$0xf0]  ;;  %v12553_v0 = vor.u32 %v14709_v14, %v12552_v28  ;;  %v12681_v46 = vor.u32 %v14741_v25, %v12680_v19  ;;  %v12653_v20 = vor.u32 %v14731_v47, %v12650_v53  ;;  %v12864_v28 = vld [vmem:[#allocation17 + $0xce0] sm:$0xf] }
 0x82e   : > { %v12601_v30 = vor.u32 %v14721_v27, %v12600_v40  ;;  %v12664_v27 = vld [vmem:[#allocation17 + $0xb48] sm:$0xf]  ;;  %v14788_v14 = vld [vmem:[#allocation17 + $0xcec] sm:$0xf0]  ;;  %v14786_v19 = vld [vmem:[#allocation17 + $0xce4] sm:$0xf] }
 0x82f   : > { %v12816_v47 = vld [vmem:[#allocation17 + $0xc80] sm:$0xf]  ;;  %v14776_v53 = vld [vmem:[#allocation17 + $0xc8c] sm:$0xf0] }
 0x830   : > { %7054 = vmatpush.bf16.msra.mxu2 %v12529_v61  ;;  %7067 = vmatpush.bf16.msrb.mxu1 %v12657_v50  ;;  %v12584_v61 = vld [vmem:[#allocation17 + $0xaa8] sm:$0xf]  ;;  %v14717_v50 = vld [vmem:[#allocation17 + $0xab4] sm:$0xf0] }
 0x831   : > { %7080 = vmatpush.bf16.msrb.mxu3 %v12533_v32  ;;  %7093 = vmatpush.bf16.msrb.mxu0 %v12661_v42  ;;  %v12712_v32 = vld [vmem:[#allocation17 + $0xba8] sm:$0xf]  ;;  %v14749_v42 = vld [vmem:[#allocation17 + $0xbb4] sm:$0xf0]  ;;  %v12585_v63 = vor.u32 %v14717_v50, %v12584_v61 }
 0x832   : > { %v12713_v55 = vor.u32 %v14749_v42, %v12712_v32  ;;  %v14701_v32 = vld [vmem:[#allocation17 + $0xa34] sm:$0xf0] }
 0x834   : > { %7055 = vmatpush.bf16.msra.mxu2 %v12513_v9  ;;  %7068 = vmatpush.bf16.msrb.mxu1 %v12641_v24  ;;  %v12717_v9 = vor.u32 %v14747_v57, %v12714_v54  ;;  %v12696_v24 = vld [vmem:[#allocation17 + $0xb88] sm:$0xf]  ;;  %v14733_v54 = vld [vmem:[#allocation17 + $0xb34] sm:$0xf0] }
 0x835   : > { %7081 = vmatpush.bf16.msrb.mxu3 %v12517_v58  ;;  %7094 = vmatpush.bf16.msrb.mxu0 %v12645_v1  ;;  %v14743_v58 = vld [vmem:[#allocation17 + $0xb8c] sm:$0xf]  ;;  %v12698_v1 = vld [vmem:[#allocation17 + $0xb98] sm:$0xf0]  ;;  %v12697_v21 = vor.u32 %v14745_v18, %v12696_v24  ;;  %v12648_v57 = vld [vmem:[#allocation17 + $0xb28] sm:$0xf] }
 0x836   : > { %v12701_v59 = vor.u32 %v14743_v58, %v12698_v1  ;;  %v14697_v24 = vld [vmem:[#allocation17 + $0xa14] sm:$0xf0]  ;;  %v12632_v18 = vld [vmem:[#allocation17 + $0xb08] sm:$0xf]  ;;  %v14695_v1 = vld [vmem:[#allocation17 + $0xa0c] sm:$0xf] }
 0x838   : > { %7056 = vmatpush.bf16.msra.mxu2 %v12497_v41  ;;  %7069 = vmatpush.bf16.msrb.mxu1 %v12625_v15  ;;  %v6073_v23 = vpop.f32.mrf.mxu1  ;;  %v12554_v41 = vld [vmem:[#allocation17 + $0xa78] sm:$0xf0]  ;;  %v14739_v15 = vld [vmem:[#allocation17 + $0xb6c] sm:$0xf] }
 0x839   : > { %7082 = vmatpush.bf16.msrb.mxu3 %v12501_v56  ;;  %7095 = vmatpush.bf16.msrb.mxu0 %v12629_v17  ;;  %v12536_v56 = vld [vmem:[#allocation17 + $0xa48] sm:$0xf]  ;;  %v14705_v17 = vld [vmem:[#allocation17 + $0xa54] sm:$0xf0] }
 0x83a   : > { %v12537_v50 = vor.u32 %v14705_v17, %v12536_v56  ;;  %v12865_v56 = vor.u32 %v14788_v14, %v12864_v28  ;;  %v12928_v28 = vld [vmem:[#allocation17 + $0xd60] sm:$0xf]  ;;  %v14804_v14 = vld [vmem:[#allocation17 + $0xd6c] sm:$0xf0] }
 0x83b   : > { %7057 = vmatmul.bf16.vlgmr.msra.gmra.mxu2 %v16975_v2  ;;  %7070 = vmatmul.bf16.vlgmr.msrb.gmra.mxu1 %v16978_v12  ;;  %v6099_v6 = vpop.f32.mrf.mxu0 }
 0x83c   : > { %7101 = vmatpush.bf16.msrb.mxu2 %v12617_v3  ;;  %7114 = vmatpush.bf16.msra.mxu1 %v12745_v10  ;;  %v12557_v3 = vor.u32 %v14707_v60, %v12554_v41  ;;  %v12685_v10 = vor.u32 %v14739_v15, %v12682_v13  ;;  %v12633_v60 = vor.u32 %v14729_v62, %v12632_v18  ;;  %v12866_v41 = vld [vmem:[#allocation17 + $0xcf0] sm:$0xf0]  ;;  %v14818_v15 = vld [vmem:[#allocation17 + $0xde4] sm:$0xf] }
 0x83d   : > { %7127 = vmatpush.bf16.msra.mxu3 %v12621_v52  ;;  %7140 = vmatpush.bf16.msra.mxu0 %v12749_v36  ;;  %v14737_v52 = vld [vmem:[#allocation17 + $0xb54] sm:$0xf0]  ;;  %v14703_v36 = vld [vmem:[#allocation17 + $0xa4c] sm:$0xf]  ;;  %v12994_v13 = vld [vmem:[#allocation17 + $0xdf0] sm:$0xf0] }
 0x83e   : > { %7083 = vmatmul.bf16.vlgmr.msrb.gmra.mxu3 %v16975_v2  ;;  %7096 = vmatmul.bf16.vlgmr.msrb.gmra.mxu0 %v16978_v12  ;;  %v6060_v40 = vpop.f32.mrf.mxu2  ;;  %v12541_v44 = vor.u32 %v14703_v36, %v12538_v45  ;;  %v14816_v36 = vld [vmem:[#allocation17 + $0xdcc] sm:$0xf0]  ;;  %v14814_v45 = vld [vmem:[#allocation17 + $0xdc4] sm:$0xf]  ;;  %v12818_v62 = vld [vmem:[#allocation17 + $0xc90] sm:$0xf0] }
 0x83f   : > { %v6074_v5 = vadd.f32 %v6073_v23, %v6060_v40  ;;  %v12506_v23 = vld [vmem:[#allocation17 + $0xa18] sm:$0xf0]  ;;  %v12869_v40 = vor.u32 %v14786_v19, %v12866_v41  ;;  %v14774_v18 = vld [vmem:[#allocation17 + $0xc84] sm:$0xf]  ;;  %v12929_v41 = vor.u32 %v14804_v14, %v12928_v28 }
 0x840   : > { %7102 = vmatpush.bf16.msrb.mxu2 %v12601_v30  ;;  %7115 = vmatpush.bf16.msra.mxu1 %v12729_v43  ;;  %v6075_v30 = vpop.f32.mrf.mxu1  ;;  %v14802_v19 = vld [vmem:[#allocation17 + $0xd64] sm:$0xf]  ;;  %v12874_v14 = vld [vmem:[#allocation17 + $0xcf8] sm:$0xf0] }
 0x841   : > { %7128 = vmatpush.bf16.msra.mxu3 %v12605_v16  ;;  %7141 = vmatpush.bf16.msra.mxu0 %v12733_v11  ;;  %v6086_v4 = vpop.f32.mrf.mxu3  ;;  %v16985_v43 = vadd.f32 %v6074_v5, %v16959_v29  ;;  %v12665_v16 = vor.u32 %v14737_v52, %v12664_v27  ;;  %v12520_v11 = vld [vmem:[#allocation17 + $0xa28] sm:$0xf]  ;;  %v12997_v27 = vor.u32 %v14818_v15, %v12994_v13  ;;  %v12976_v52 = vld [vmem:[#allocation17 + $0xdc0] sm:$0xf]  ;;  %v14782_v5 = vld [vmem:[#allocation17 + $0xcc4] sm:$0xf] }
 0x842   : > { %v6100_v51 = vadd.f32 %v6099_v6, %v6086_v4  ;;  %v12504_v29 = vld [vmem:[#allocation17 + $0xa08] sm:$0xf]  ;;  %v14727_v6 = vld [vmem:[#allocation17 + $0xb0c] sm:$0xf]  ;;  %v12850_v4 = vld [vmem:[#allocation17 + $0xcd0] sm:$0xf0] }
 0x843   : > { %v6101_v61 = vpop.f32.mrf.mxu0  ;;  %v12505_v25 = vor.u32 %v14697_v24, %v12504_v29  ;;  %v12832_v30 = vld [vmem:[#allocation17 + $0xca0] sm:$0xf]  ;;  %v14808_v24 = vld [vmem:[#allocation17 + $0xd8c] sm:$0xf0] }
 0x844   : > { %7103 = vmatpush.bf16.msrb.mxu2 %v12585_v63  ;;  %7116 = vmatpush.bf16.msra.mxu1 %v12713_v55  ;;  %v16988_v42 = vadd.f32 %v6100_v51, %v16962_v8  ;;  %v14699_v63 = vld [vmem:[#allocation17 + $0xa2c] sm:$0xf]  ;;  %v12522_v55 = vld [vmem:[#allocation17 + $0xa38] sm:$0xf0]  ;;  %v12977_v51 = vor.u32 %v14816_v36, %v12976_v52  ;;  %v14780_v61 = vld [vmem:[#allocation17 + $0xcac] sm:$0xf0] }
 0x845   : > { %7129 = vmatpush.bf16.msra.mxu3 %v12589_v33  ;;  %7142 = vmatpush.bf16.msra.mxu0 %v12717_v9  ;;  %v12521_v33 = vor.u32 %v14701_v32, %v12520_v11  ;;  %v12649_v9 = vor.u32 %v14733_v54, %v12648_v57  ;;  %v12525_v8 = vor.u32 %v14699_v63, %v12522_v55  ;;  %v12960_v11 = vld [vmem:[#allocation17 + $0xda0] sm:$0xf]  ;;  %v14812_v32 = vld [vmem:[#allocation17 + $0xdac] sm:$0xf0]  ;;  %v14810_v57 = vld [vmem:[#allocation17 + $0xda4] sm:$0xf] }
 0x846   : > { %v6062_v58 = vpop.f32.mrf.mxu2  ;;  %v12962_v54 = vld [vmem:[#allocation17 + $0xdb0] sm:$0xf0]  ;;  %v12833_v63 = vor.u32 %v14780_v61, %v12832_v30  ;;  %v12961_v55 = vor.u32 %v14812_v32, %v12960_v11  ;;  %v12784_v15 = vld [vmem:[#allocation17 + $0xc40] sm:$0xf]  ;;  %v14768_v13 = vld [vmem:[#allocation17 + $0xc4c] sm:$0xf0] }
 0x847   : > { %v12786_v52 = vld [vmem:[#allocation17 + $0xc50] sm:$0xf0]  ;;  %v14798_v36 = vld [vmem:[#allocation17 + $0xd44] sm:$0xf]  ;;  %v12768_v61 = vld [vmem:[#allocation17 + $0xc20] sm:$0xf] }
 0x848   : > { %7104 = vmatpush.bf16.msrb.mxu2 %v12569_v37  ;;  %7117 = vmatpush.bf16.msra.mxu1 %v12697_v21  ;;  %v12634_v21 = vld [vmem:[#allocation17 + $0xb18] sm:$0xf0] }
 0x849   : > { %7130 = vmatpush.bf16.msra.mxu3 %v12573_v22  ;;  %7143 = vmatpush.bf16.msra.mxu0 %v12701_v59  ;;  %v6088_v37 = vpop.f32.mrf.mxu3  ;;  %v12992_v22 = vld [vmem:[#allocation17 + $0xde0] sm:$0xf]  ;;  %v14820_v59 = vld [vmem:[#allocation17 + $0xdec] sm:$0xf0] }
 0x84a   : > { %v12993_v17 = vor.u32 %v14820_v59, %v12992_v22  ;;  %v12821_v37 = vor.u32 %v14774_v18, %v12818_v62  ;;  %v14770_v22 = vld [vmem:[#allocation17 + $0xc64] sm:$0xf]  ;;  %v12802_v59 = vld [vmem:[#allocation17 + $0xc70] sm:$0xf0] }
 0x84b   : > { %v14758_v62 = vld [vmem:[#allocation17 + $0xc04] sm:$0xf] }
 0x84c   : > { %7105 = vmatpush.bf16.msrb.mxu2 %v12553_v0  ;;  %7118 = vmatpush.bf16.msra.mxu1 %v12681_v46  ;;  %v12509_v0 = vor.u32 %v14695_v1, %v12506_v23  ;;  %v12637_v46 = vor.u32 %v14727_v6, %v12634_v21  ;;  %v12800_v23 = vld [vmem:[#allocation17 + $0xc60] sm:$0xf]  ;;  %v14772_v6 = vld [vmem:[#allocation17 + $0xc6c] sm:$0xf0] }
 0x84d   : > { %7131 = vmatpush.bf16.msra.mxu3 %v12557_v3  ;;  %7144 = vmatpush.bf16.msra.mxu0 %v12685_v10  ;;  %v12848_v3 = vld [vmem:[#allocation17 + $0xcc0] sm:$0xf]  ;;  %v14784_v10 = vld [vmem:[#allocation17 + $0xccc] sm:$0xf0] }
 0x84e   : > { %v12849_v26 = vor.u32 %v14784_v10, %v12848_v3  ;;  %v14800_v3 = vld [vmem:[#allocation17 + $0xd4c] sm:$0xf0]  ;;  %v14766_v10 = vld [vmem:[#allocation17 + $0xc44] sm:$0xf] }
 0x84f   : > { %v12789_v11 = vor.u32 %v14766_v10, %v12786_v52  ;;  %v12858_v10 = vld [vmem:[#allocation17 + $0xcd8] sm:$0xf0]  ;;  %v17002_v52 = vpack.c.b16 %v16835_v34, %v16835_v34  ;;  %v14779_v34 = vld [vmem:[#allocation17 + $0xcac] sm:$0xf] }
 0x850   : > { %7106 = vmatpush.bf16.msrb.mxu2 %v12537_v50  ;;  %7119 = vmatpush.bf16.msra.mxu1 %v12665_v16  ;;  %v12853_v50 = vor.u32 %v14782_v5, %v12850_v4  ;;  %v12981_v16 = vor.u32 %v14814_v45, %v12978_v39  ;;  %v12914_v5 = vld [vmem:[#allocation17 + $0xd50] sm:$0xf0] }
 0x851   : > { %7132 = vmatpush.bf16.msra.mxu3 %v12541_v44  ;;  %7145 = vmatpush.bf16.msra.mxu0 %v12669_v48  ;;  %v14778_v44 = vld [vmem:[#allocation17 + $0xca4] sm:$0xf]  ;;  %v12834_v48 = vld [vmem:[#allocation17 + $0xcb0] sm:$0xf0]  ;;  %v12917_v32 = vor.u32 %v14798_v36, %v12914_v5  ;;  %v17006_v36 = vpack.c.b16 %v16837_v7, %v16837_v7  ;;  %v14811_v7 = vld [vmem:[#allocation17 + $0xdac] sm:$0xf] }
 0x852   : > { %v12837_v29 = vor.u32 %v14778_v44, %v12834_v48  ;;  %v12896_v44 = vld [vmem:[#allocation17 + $0xd20] sm:$0xf]  ;;  %v14796_v48 = vld [vmem:[#allocation17 + $0xd2c] sm:$0xf0] }
 0x854   : > { %7107 = vmatpush.bf16.msrb.mxu2 %v12521_v33  ;;  %7120 = vmatpush.bf16.msra.mxu1 %v12649_v9  ;;  %v12965_v33 = vor.u32 %v14810_v57, %v12962_v54  ;;  %v12944_v9 = vld [vmem:[#allocation17 + $0xd80] sm:$0xf]  ;;  %v14762_v57 = vld [vmem:[#allocation17 + $0xc24] sm:$0xf]  ;;  %v12770_v54 = vld [vmem:[#allocation17 + $0xc30] sm:$0xf0] }
 0x855   : > { %7133 = vmatpush.bf16.msra.mxu3 %v12525_v8  ;;  %7146 = vmatpush.bf16.msra.mxu0 %v12653_v20  ;;  %v14806_v8 = vld [vmem:[#allocation17 + $0xd84] sm:$0xf]  ;;  %v12946_v20 = vld [vmem:[#allocation17 + $0xd90] sm:$0xf0]  ;;  %v12945_v1 = vor.u32 %v14808_v24, %v12944_v9  ;;  %v14792_v9 = vld [vmem:[#allocation17 + $0xd0c] sm:$0xf0] }
 0x856   : > { %v12949_v21 = vor.u32 %v14806_v8, %v12946_v20  ;;  %v12754_v8 = vld [vmem:[#allocation17 + $0xc10] sm:$0xf0]  ;;  %v14790_v20 = vld [vmem:[#allocation17 + $0xd04] sm:$0xf] }
 0x858   : > { %7108 = vmatpush.bf16.msrb.mxu2 %v12505_v25  ;;  %7121 = vmatpush.bf16.msra.mxu1 %v12633_v60  ;;  %v6125_v58 = vpop.f32.mrf.mxu1  ;;  %v12930_v25 = vld [vmem:[#allocation17 + $0xd70] sm:$0xf0]  ;;  %v12801_v60 = vor.u32 %v14772_v6, %v12800_v23  ;;  %v13000_v23 = vld [vmem:[#allocation17 + $0xde8] sm:$0xf]  ;;  %v14821_v6 = vld [vmem:[#allocation17 + $0xdf4] sm:$0xf0] }
 0x859   : > { %7134 = vmatpush.bf16.msra.mxu3 %v12509_v0  ;;  %7147 = vmatpush.bf16.msra.mxu0 %v12637_v46  ;;  %v12805_v0 = vor.u32 %v14770_v22, %v12802_v59  ;;  %v12933_v46 = vor.u32 %v14802_v19, %v12930_v25  ;;  %v14819_v22 = vld [vmem:[#allocation17 + $0xdec] sm:$0xf]  ;;  %v13002_v59 = vld [vmem:[#allocation17 + $0xdf8] sm:$0xf0]  ;;  %v12757_v19 = vor.u32 %v14758_v62, %v12754_v8  ;;  %v12808_v8 = vld [vmem:[#allocation17 + $0xc68] sm:$0xf] }
 0x85b   : > { %7109 = vmatmul.bf16.vlgmr.msrb.gmra.mxu2 %v16975_v2  ;;  %7122 = vmatmul.bf16.vlgmr.msra.gmra.mxu1 %v16978_v12 }
 0x85c   : > { %7546 = vmatpush.bf16.msra.mxu2 %v12865_v56  ;;  %7559 = vmatpush.bf16.msrb.mxu1 %v12993_v17  ;;  %v12912_v17 = vld [vmem:[#allocation17 + $0xd40] sm:$0xf] }
 0x85d   : > { %7572 = vmatpush.bf16.msrb.mxu3 %v12869_v40  ;;  %7585 = vmatpush.bf16.msrb.mxu0 %v12997_v27  ;;  %v12913_v30 = vor.u32 %v14800_v3, %v12912_v17  ;;  %v14817_v17 = vld [vmem:[#allocation17 + $0xdd4] sm:$0xf0]  ;;  %v14783_v3 = vld [vmem:[#allocation17 + $0xccc] sm:$0xf] }
 0x85e   : > { %7135 = vmatmul.bf16.vlgmr.msra.gmra.mxu3 %v16975_v2  ;;  %7148 = vmatmul.bf16.vlgmr.msra.gmra.mxu0 %v16978_v12  ;;  %v6151_v2 = vpop.f32.mrf.mxu0  ;;  %v12817_v12 = vor.u32 %v14776_v53, %v12816_v47  ;;  %v6112_v56 = vpop.f32.mrf.mxu2  ;;  %v12897_v53 = vor.u32 %v14796_v48, %v12896_v44 }
 0x85f   : > { %v6126_v40 = vadd.f32 %v6125_v58, %v6112_v56  ;;  %v12984_v56 = vld [vmem:[#allocation17 + $0xdc8] sm:$0xf] }
 0x860   : > { %7547 = vmatpush.bf16.msra.mxu2 %v12849_v26  ;;  %7560 = vmatpush.bf16.msrb.mxu1 %v12977_v51  ;;  %v6127_v45 = vpop.f32.mrf.mxu1  ;;  %v12785_v51 = vor.u32 %v14768_v13, %v12784_v15  ;;  %v12856_v15 = vld [vmem:[#allocation17 + $0xcc8] sm:$0xf]  ;;  %v14785_v13 = vld [vmem:[#allocation17 + $0xcd4] sm:$0xf0] }
 0x861   : > { %7573 = vmatpush.bf16.msrb.mxu3 %v12853_v50  ;;  %7586 = vmatpush.bf16.msrb.mxu0 %v12981_v16  ;;  %v6138_v27 = vpop.f32.mrf.mxu3  ;;  %v16995_v39 = vadd.f32 %v6126_v40, %v16969_v31  ;;  %v14764_v50 = vld [vmem:[#allocation17 + $0xc2c] sm:$0xf0]  ;;  %v12752_v31 = vld [vmem:[#allocation17 + $0xc00] sm:$0xf]  ;;  %v14815_v40 = vld [vmem:[#allocation17 + $0xdcc] sm:$0xf]  ;;  %v12857_v5 = vor.u32 %v14785_v13, %v12856_v15 }
 0x862   : > { %v6152_v4 = vadd.f32 %v6151_v2, %v6138_v27  ;;  %v12769_v47 = vor.u32 %v14764_v50, %v12768_v61  ;;  %v12882_v2 = vld [vmem:[#allocation17 + $0xd10] sm:$0xf0]  ;;  %v12986_v27 = vld [vmem:[#allocation17 + $0xdd8] sm:$0xf0]  ;;  %v12840_v45 = vld [vmem:[#allocation17 + $0xca8] sm:$0xf] }
 0x863   : > { %v12885_v25 = vor.u32 %v14790_v20, %v12882_v2  ;;  %v12968_v61 = vld [vmem:[#allocation17 + $0xda8] sm:$0xf]  ;;  %v14813_v50 = vld [vmem:[#allocation17 + $0xdb4] sm:$0xf0]  ;;  %v14767_v13 = vld [vmem:[#allocation17 + $0xc4c] sm:$0xf] }
 0x864   : > { %7548 = vmatpush.bf16.msra.mxu2 %v12833_v63  ;;  %7561 = vmatpush.bf16.msrb.mxu1 %v12961_v55  ;;  %v16998_v16 = vadd.f32 %v6152_v4, %v16972_v38  ;;  %v14794_v63 = vld [vmem:[#allocation17 + $0xd24] sm:$0xf]  ;;  %v12898_v55 = vld [vmem:[#allocation17 + $0xd30] sm:$0xf0]  ;;  %v12773_v38 = vor.u32 %v14762_v57, %v12770_v54  ;;  %v12985_v4 = vor.u32 %v14817_v17, %v12984_v56  ;;  %v12824_v57 = vld [vmem:[#allocation17 + $0xc88] sm:$0xf] }
 0x865   : > { %7574 = vmatpush.bf16.msrb.mxu3 %v12837_v29  ;;  %7587 = vmatpush.bf16.msrb.mxu0 %v12965_v33  ;;  %v14760_v29 = vld [vmem:[#allocation17 + $0xc0c] sm:$0xf0]  ;;  %v12880_v33 = vld [vmem:[#allocation17 + $0xd00] sm:$0xf]  ;;  %v12901_v24 = vor.u32 %v14794_v63, %v12898_v55  ;;  %v12969_v48 = vor.u32 %v14813_v50, %v12968_v61  ;;  %v14777_v54 = vld [vmem:[#allocation17 + $0xc94] sm:$0xf0] }
 0x866   : > { %v6153_v26 = vpop.f32.mrf.mxu0  ;;  %v6114_v18 = vpop.f32.mrf.mxu2  ;;  %v12881_v28 = vor.u32 %v14792_v9, %v12880_v33  ;;  %v14807_v33 = vld [vmem:[#allocation17 + $0xd8c] sm:$0xf]  ;;  %v12954_v9 = vld [vmem:[#allocation17 + $0xd98] sm:$0xf0]  ;;  %v14773_v20 = vld [vmem:[#allocation17 + $0xc74] sm:$0xf0] }
 0x867   : > { %v14781_v26 = vld [vmem:[#allocation17 + $0xcb4] sm:$0xf0]  ;;  %v12825_v18 = vor.u32 %v14777_v54, %v12824_v57  ;;  %v12957_v2 = vor.u32 %v14807_v33, %v12954_v9  ;;  %v12794_v56 = vld [vmem:[#allocation17 + $0xc58] sm:$0xf0]  ;;  %v14799_v17 = vld [vmem:[#allocation17 + $0xd4c] sm:$0xf] }
 0x868   : > { %7549 = vmatpush.bf16.msra.mxu2 %v12817_v12  ;;  %7562 = vmatpush.bf16.msrb.mxu1 %v12945_v1  ;;  %v12872_v12 = vld [vmem:[#allocation17 + $0xce8] sm:$0xf]  ;;  %v14789_v1 = vld [vmem:[#allocation17 + $0xcf4] sm:$0xf0]  ;;  %v12841_v44 = vor.u32 %v14781_v26, %v12840_v45  ;;  %v12797_v61 = vor.u32 %v14767_v13, %v12794_v56  ;;  %v12762_v33 = vld [vmem:[#allocation17 + $0xc18] sm:$0xf0] }
 0x869   : > { %7575 = vmatpush.bf16.msrb.mxu3 %v12821_v37  ;;  %7588 = vmatpush.bf16.msrb.mxu0 %v12949_v21  ;;  %v6140_v58 = vpop.f32.mrf.mxu3  ;;  %v14787_v37 = vld [vmem:[#allocation17 + $0xcec] sm:$0xf]  ;;  %v12753_v21 = vor.u32 %v14760_v29, %v12752_v31  ;;  %v12952_v31 = vld [vmem:[#allocation17 + $0xd88] sm:$0xf]  ;;  %v12826_v29 = vld [vmem:[#allocation17 + $0xc98] sm:$0xf0] }
 0x86a   : > { %v14801_v15 = vld [vmem:[#allocation17 + $0xd54] sm:$0xf0]  ;;  %v12776_v26 = vld [vmem:[#allocation17 + $0xc28] sm:$0xf]  ;;  %v14791_v9 = vld [vmem:[#allocation17 + $0xd0c] sm:$0xf] }
 0x86b   : > { %v13106_v13 = vld [vmem:[#allocation17 + $0xed0] sm:$0xf0] }
 0x86c   : > { %7550 = vmatpush.bf16.msra.mxu2 %v12801_v60  ;;  %7563 = vmatpush.bf16.msrb.mxu1 %v12929_v41  ;;  %v12873_v60 = vor.u32 %v14789_v1, %v12872_v12  ;;  %v13001_v41 = vor.u32 %v14821_v6, %v13000_v23  ;;  %v12936_v12 = vld [vmem:[#allocation17 + $0xd68] sm:$0xf]  ;;  %v14805_v1 = vld [vmem:[#allocation17 + $0xd74] sm:$0xf0]  ;;  %v14771_v23 = vld [vmem:[#allocation17 + $0xc6c] sm:$0xf] }
 0x86d   : > { %7576 = vmatpush.bf16.msrb.mxu3 %v12805_v0  ;;  %7589 = vmatpush.bf16.msrb.mxu0 %v12933_v46  ;;  %v12877_v0 = vor.u32 %v14787_v37, %v12874_v14  ;;  %v13005_v46 = vor.u32 %v14819_v22, %v13002_v59  ;;  %v12810_v6 = vld [vmem:[#allocation17 + $0xc78] sm:$0xf0]  ;;  %v14803_v37 = vld [vmem:[#allocation17 + $0xd6c] sm:$0xf]  ;;  %v12937_v14 = vor.u32 %v14805_v1, %v12936_v12  ;;  %v12792_v22 = vld [vmem:[#allocation17 + $0xc48] sm:$0xf] }
 0x86e   : > { %v14769_v59 = vld [vmem:[#allocation17 + $0xc54] sm:$0xf0]  ;;  %v13122_v1 = vld [vmem:[#allocation17 + $0xef0] sm:$0xf0] }
 0x870   : > { %7551 = vmatpush.bf16.msra.mxu2 %v12785_v51  ;;  %7564 = vmatpush.bf16.msrb.mxu1 %v12913_v30  ;;  %v12861_v51 = vor.u32 %v14783_v3, %v12858_v10  ;;  %v12989_v30 = vor.u32 %v14815_v40, %v12986_v27  ;;  %v12922_v3 = vld [vmem:[#allocation17 + $0xd58] sm:$0xf0] }
 0x871   : > { %7577 = vmatpush.bf16.msrb.mxu3 %v12789_v11  ;;  %7590 = vmatpush.bf16.msrb.mxu0 %v12917_v32  ;;  %v12842_v11 = vld [vmem:[#allocation17 + $0xcb8] sm:$0xf0]  ;;  %v12925_v50 = vor.u32 %v14799_v17, %v12922_v3  ;;  %v13088_v3 = vld [vmem:[#allocation17 + $0xea0] sm:$0xf] }
 0x872   : > { %v12970_v32 = vld [vmem:[#allocation17 + $0xdb8] sm:$0xf0]  ;;  %v12845_v63 = vor.u32 %v14779_v34, %v12842_v11  ;;  %v12904_v34 = vld [vmem:[#allocation17 + $0xd28] sm:$0xf]  ;;  %v14797_v11 = vld [vmem:[#allocation17 + $0xd34] sm:$0xf0] }
 0x873   : > { %v12973_v55 = vor.u32 %v14811_v7, %v12970_v32  ;;  %v14763_v7 = vld [vmem:[#allocation17 + $0xc2c] sm:$0xf]  ;;  %v12778_v32 = vld [vmem:[#allocation17 + $0xc38] sm:$0xf0]  ;;  %v12905_v54 = vor.u32 %v14797_v11, %v12904_v34 }
 0x874   : > { %7552 = vmatpush.bf16.msra.mxu2 %v12769_v47  ;;  %7565 = vmatpush.bf16.msrb.mxu1 %v12897_v53  ;;  %v14809_v47 = vld [vmem:[#allocation17 + $0xd94] sm:$0xf0]  ;;  %v14775_v53 = vld [vmem:[#allocation17 + $0xc8c] sm:$0xf] }
 0x875   : > { %7578 = vmatpush.bf16.msrb.mxu3 %v12773_v38  ;;  %7591 = vmatpush.bf16.msrb.mxu0 %v12901_v24  ;;  %v12953_v62 = vor.u32 %v14809_v47, %v12952_v31  ;;  %v12829_v58 = vor.u32 %v14775_v53, %v12826_v29  ;;  %v14793_v31 = vld [vmem:[#allocation17 + $0xd14] sm:$0xf0]  ;;  %v14759_v29 = vld [vmem:[#allocation17 + $0xc0c] sm:$0xf] }
 0x878   : > { %7553 = vmatpush.bf16.msra.mxu2 %v12753_v21  ;;  %7566 = vmatpush.bf16.msrb.mxu1 %v12881_v28  ;;  %v6574_v38 = vpop.f32.mrf.mxu1  ;;  %v12938_v21 = vld [vmem:[#allocation17 + $0xd78] sm:$0xf0]  ;;  %v12809_v28 = vor.u32 %v14773_v20, %v12808_v8  ;;  %v13248_v8 = vld [vmem:[#allocation17 + $0xfe0] sm:$0xf]  ;;  %v14884_v20 = vld [vmem:[#allocation17 + $0xfec] sm:$0xf0] }
 0x879   : > { %7579 = vmatpush.bf16.msrb.mxu3 %v12757_v19  ;;  %7592 = vmatpush.bf16.msrb.mxu0 %v12885_v25  ;;  %v12813_v19 = vor.u32 %v14771_v23, %v12810_v6  ;;  %v12941_v25 = vor.u32 %v14803_v37, %v12938_v21  ;;  %v14882_v23 = vld [vmem:[#allocation17 + $0xfe4] sm:$0xf]  ;;  %v13250_v6 = vld [vmem:[#allocation17 + $0xff0] sm:$0xf0]  ;;  %v12765_v37 = vor.u32 %v14759_v29, %v12762_v33  ;;  %v14836_v29 = vld [vmem:[#allocation17 + $0xe6c] sm:$0xf0] }
 0x87b   : > { %7554 = vmatmul.bf16.vlgmr.msra.gmra.mxu2 %v17002_v52  ;;  %7567 = vmatmul.bf16.vlgmr.msrb.gmra.mxu1 %v17006_v36  ;;  %v6600_v24 = vpop.f32.mrf.mxu0 }
 0x87c   : > { %7598 = vmatpush.bf16.msrb.mxu2 %v12873_v60  ;;  %7611 = vmatpush.bf16.msra.mxu1 %v13001_v41  ;;  %v12920_v41 = vld [vmem:[#allocation17 + $0xd48] sm:$0xf] }
 0x87d   : > { %7624 = vmatpush.bf16.msra.mxu3 %v12877_v0  ;;  %7637 = vmatpush.bf16.msra.mxu0 %v13005_v46  ;;  %v12921_v45 = vor.u32 %v14801_v15, %v12920_v41  ;;  %v14880_v41 = vld [vmem:[#allocation17 + $0xfcc] sm:$0xf0]  ;;  %v14846_v15 = vld [vmem:[#allocation17 + $0xec4] sm:$0xf] }
 0x87e   : > { %7580 = vmatmul.bf16.vlgmr.msrb.gmra.mxu3 %v17002_v52  ;;  %7593 = vmatmul.bf16.vlgmr.msrb.gmra.mxu0 %v17006_v36  ;;  %v6561_v60 = vpop.f32.mrf.mxu2 }
 0x87f   : > { %v6575_v0 = vadd.f32 %v6574_v38, %v6561_v60  ;;  %v13232_v60 = vld [vmem:[#allocation17 + $0xfc0] sm:$0xf] }
 0x880   : > { %7599 = vmatpush.bf16.msrb.mxu2 %v12857_v5  ;;  %7612 = vmatpush.bf16.msra.mxu1 %v12985_v4  ;;  %v6576_v40 = vpop.f32.mrf.mxu1  ;;  %v12793_v4 = vor.u32 %v14769_v59, %v12792_v22  ;;  %v13104_v22 = vld [vmem:[#allocation17 + $0xec0] sm:$0xf]  ;;  %v14848_v59 = vld [vmem:[#allocation17 + $0xecc] sm:$0xf0]  ;;  %v13233_v17 = vor.u32 %v14880_v41, %v13232_v60  ;;  %v13170_v60 = vld [vmem:[#allocation17 + $0xf50] sm:$0xf0] }
 0x881   : > { %7625 = vmatpush.bf16.msra.mxu3 %v12861_v51  ;;  %7638 = vmatpush.bf16.msra.mxu0 %v12989_v30  ;;  %v6587_v46 = vpop.f32.mrf.mxu3  ;;  %v17013_v27 = vadd.f32 %v6575_v0, %v16985_v43  ;;  %v14765_v51 = vld [vmem:[#allocation17 + $0xc34] sm:$0xf0]  ;;  %v12760_v43 = vld [vmem:[#allocation17 + $0xc08] sm:$0xf]  ;;  %v14878_v0 = vld [vmem:[#allocation17 + $0xfc4] sm:$0xf]  ;;  %v13105_v56 = vor.u32 %v14848_v59, %v13104_v22  ;;  %v13109_v40 = vor.u32 %v14846_v15, %v13106_v13 }
 0x882   : > { %v6601_v10 = vadd.f32 %v6600_v24, %v6587_v46  ;;  %v12777_v57 = vor.u32 %v14765_v51, %v12776_v26  ;;  %v12890_v24 = vld [vmem:[#allocation17 + $0xd18] sm:$0xf0]  ;;  %v13234_v46 = vld [vmem:[#allocation17 + $0xfd0] sm:$0xf0]  ;;  %v14842_v26 = vld [vmem:[#allocation17 + $0xea4] sm:$0xf] }
 0x883   : > { %v6602_v5 = vpop.f32.mrf.mxu0  ;;  %v12893_v21 = vor.u32 %v14791_v9, %v12890_v24  ;;  %v13090_v51 = vld [vmem:[#allocation17 + $0xeb0] sm:$0xf0]  ;;  %v14868_v24 = vld [vmem:[#allocation17 + $0xf6c] sm:$0xf0] }
 0x884   : > { %7600 = vmatpush.bf16.msrb.mxu2 %v12841_v44  ;;  %7613 = vmatpush.bf16.msra.mxu1 %v12969_v48  ;;  %v17016_v30 = vadd.f32 %v6601_v10, %v16988_v42  ;;  %v14795_v44 = vld [vmem:[#allocation17 + $0xd2c] sm:$0xf]  ;;  %v12906_v48 = vld [vmem:[#allocation17 + $0xd38] sm:$0xf0]  ;;  %v12781_v42 = vor.u32 %v14763_v7, %v12778_v32  ;;  %v14844_v10 = vld [vmem:[#allocation17 + $0xeac] sm:$0xf0]  ;;  %v13237_v5 = vor.u32 %v14878_v0, %v13234_v46 }
 0x885   : > { %7626 = vmatpush.bf16.msra.mxu3 %v12845_v63  ;;  %7639 = vmatpush.bf16.msra.mxu0 %v12973_v55  ;;  %v14761_v63 = vld [vmem:[#allocation17 + $0xc14] sm:$0xf0]  ;;  %v12888_v55 = vld [vmem:[#allocation17 + $0xd08] sm:$0xf]  ;;  %v12909_v47 = vor.u32 %v14795_v44, %v12906_v48  ;;  %v13089_v34 = vor.u32 %v14844_v10, %v13088_v3  ;;  %v13072_v7 = vld [vmem:[#allocation17 + $0xe80] sm:$0xf]  ;;  %v13093_v44 = vor.u32 %v14842_v26, %v13090_v51 }
 0x886   : > { %v6563_v53 = vpop.f32.mrf.mxu2  ;;  %v12889_v12 = vor.u32 %v14793_v31, %v12888_v55  ;;  %v14840_v32 = vld [vmem:[#allocation17 + $0xe8c] sm:$0xf0]  ;;  %v14870_v55 = vld [vmem:[#allocation17 + $0xf84] sm:$0xf]  ;;  %v13202_v31 = vld [vmem:[#allocation17 + $0xf90] sm:$0xf0] }
 0x887   : > { %v13056_v53 = vld [vmem:[#allocation17 + $0xe60] sm:$0xf]  ;;  %v13205_v9 = vor.u32 %v14870_v55, %v13202_v31  ;;  %v14828_v3 = vld [vmem:[#allocation17 + $0xe2c] sm:$0xf0]  ;;  %v14826_v26 = vld [vmem:[#allocation17 + $0xe24] sm:$0xf] }
 0x888   : > { %7601 = vmatpush.bf16.msrb.mxu2 %v12825_v18  ;;  %7614 = vmatpush.bf16.msra.mxu1 %v12953_v62  ;;  %v13120_v18 = vld [vmem:[#allocation17 + $0xee0] sm:$0xf]  ;;  %v14852_v62 = vld [vmem:[#allocation17 + $0xeec] sm:$0xf0]  ;;  %v13026_v51 = vld [vmem:[#allocation17 + $0xe30] sm:$0xf0] }
 0x889   : > { %7627 = vmatpush.bf16.msra.mxu3 %v12829_v58  ;;  %7640 = vmatpush.bf16.msra.mxu0 %v12957_v2  ;;  %v6589_v38 = vpop.f32.mrf.mxu3  ;;  %v14850_v58 = vld [vmem:[#allocation17 + $0xee4] sm:$0xf]  ;;  %v12761_v2 = vor.u32 %v14761_v63, %v12760_v43  ;;  %v13200_v43 = vld [vmem:[#allocation17 + $0xf80] sm:$0xf]  ;;  %v13074_v63 = vld [vmem:[#allocation17 + $0xe90] sm:$0xf0] }
 0x88a   : > { %v13184_v38 = vld [vmem:[#allocation17 + $0xf60] sm:$0xf]  ;;  %v13010_v55 = vld [vmem:[#allocation17 + $0xe10] sm:$0xf0]  ;;  %v14854_v31 = vld [vmem:[#allocation17 + $0xf04] sm:$0xf] }
 0x88c   : > { %7602 = vmatpush.bf16.msrb.mxu2 %v12809_v28  ;;  %7615 = vmatpush.bf16.msra.mxu1 %v12937_v14  ;;  %v13121_v28 = vor.u32 %v14852_v62, %v13120_v18  ;;  %v13249_v14 = vor.u32 %v14884_v20, %v13248_v8  ;;  %v14834_v18 = vld [vmem:[#allocation17 + $0xe64] sm:$0xf]  ;;  %v13058_v62 = vld [vmem:[#allocation17 + $0xe70] sm:$0xf0] }
 0x88d   : > { %7628 = vmatpush.bf16.msra.mxu3 %v12813_v19  ;;  %7641 = vmatpush.bf16.msra.mxu0 %v12941_v25  ;;  %v13125_v19 = vor.u32 %v14850_v58, %v13122_v1  ;;  %v13253_v25 = vor.u32 %v14882_v23, %v13250_v6  ;;  %v14866_v8 = vld [vmem:[#allocation17 + $0xf64] sm:$0xf]  ;;  %v13186_v20 = vld [vmem:[#allocation17 + $0xf70] sm:$0xf0]  ;;  %v13057_v58 = vor.u32 %v14836_v29, %v13056_v53  ;;  %v14832_v1 = vld [vmem:[#allocation17 + $0xe4c] sm:$0xf0] }
 0x88e   : > { %v13061_v23 = vor.u32 %v14834_v18, %v13058_v62  ;;  %v13189_v6 = vor.u32 %v14866_v8, %v13186_v20  ;;  %v13256_v53 = vld [vmem:[#allocation17 + $0xfe8] sm:$0xf]  ;;  %v14885_v29 = vld [vmem:[#allocation17 + $0xff4] sm:$0xf0]  ;;  %v14883_v18 = vld [vmem:[#allocation17 + $0xfec] sm:$0xf] }
 0x88f   : > { %v13258_v62 = vld [vmem:[#allocation17 + $0xff8] sm:$0xf0]  ;;  %v7725_v8 = vshrl.u32 %v16865_v49, 16 }
 0x890   : > { %7603 = vmatpush.bf16.msrb.mxu2 %v12793_v4  ;;  %7616 = vmatpush.bf16.msra.mxu1 %v12921_v45  ;;  %v13216_v4 = vld [vmem:[#allocation17 + $0xfa0] sm:$0xf]  ;;  %v14876_v45 = vld [vmem:[#allocation17 + $0xfac] sm:$0xf0] }
 0x891   : > { %7629 = vmatpush.bf16.msra.mxu3 %v12797_v61  ;;  %7642 = vmatpush.bf16.msra.mxu0 %v12925_v50  ;;  %v14874_v61 = vld [vmem:[#allocation17 + $0xfa4] sm:$0xf]  ;;  %v13218_v50 = vld [vmem:[#allocation17 + $0xfb0] sm:$0xf0]  ;;  %v13217_v11 = vor.u32 %v14876_v45, %v13216_v4  ;;  %v13152_v4 = vld [vmem:[#allocation17 + $0xf20] sm:$0xf] }
 0x892   : > { %v13221_v48 = vor.u32 %v14874_v61, %v13218_v50  ;;  %v14860_v45 = vld [vmem:[#allocation17 + $0xf2c] sm:$0xf0]  ;;  %v14858_v61 = vld [vmem:[#allocation17 + $0xf24] sm:$0xf]  ;;  %v13154_v50 = vld [vmem:[#allocation17 + $0xf30] sm:$0xf0] }
 0x894   : > { %7604 = vmatpush.bf16.msrb.mxu2 %v12777_v57  ;;  %7617 = vmatpush.bf16.msra.mxu1 %v12905_v54  ;;  %v14872_v57 = vld [vmem:[#allocation17 + $0xf8c] sm:$0xf0]  ;;  %v14838_v54 = vld [vmem:[#allocation17 + $0xe84] sm:$0xf] }
 0x895   : > { %7630 = vmatpush.bf16.msra.mxu3 %v12781_v42  ;;  %7643 = vmatpush.bf16.msra.mxu0 %v12909_v47  ;;  %v13201_v47 = vor.u32 %v14872_v57, %v13200_v43  ;;  %v13077_v33 = vor.u32 %v14838_v54, %v13074_v63  ;;  %v13029_v43 = vor.u32 %v14826_v26, %v13026_v51  ;;  %v14822_v63 = vld [vmem:[#allocation17 + $0xe04] sm:$0xf]  ;;  %v14843_v26 = vld [vmem:[#allocation17 + $0xeac] sm:$0xf]  ;;  %v13098_v51 = vld [vmem:[#allocation17 + $0xeb8] sm:$0xf0] }
 0x896   : > { %v13157_v57 = vor.u32 %v14858_v61, %v13154_v50  ;;  %v14875_v61 = vld [vmem:[#allocation17 + $0xfac] sm:$0xf]  ;;  %v13226_v50 = vld [vmem:[#allocation17 + $0xfb8] sm:$0xf0] }
 0x898   : > { %7605 = vmatpush.bf16.msrb.mxu2 %v12761_v2  ;;  %7618 = vmatpush.bf16.msra.mxu1 %v12889_v12  ;;  %v6626_v42 = vpop.f32.mrf.mxu1  ;;  %v13185_v2 = vor.u32 %v14868_v24, %v13184_v38  ;;  %v13040_v12 = vld [vmem:[#allocation17 + $0xe40] sm:$0xf]  ;;  %v13130_v24 = vld [vmem:[#allocation17 + $0xef8] sm:$0xf0] }
 0x899   : > { %7631 = vmatpush.bf16.msra.mxu3 %v12765_v37  ;;  %7644 = vmatpush.bf16.msra.mxu0 %v12893_v21  ;;  %v13168_v21 = vld [vmem:[#allocation17 + $0xf40] sm:$0xf]  ;;  %v13041_v46 = vor.u32 %v14832_v1, %v13040_v12  ;;  %v7732_v12 = vshrl.u32 %v16868_v35, 16 }
 0x89b   : > { %7606 = vmatmul.bf16.vlgmr.msrb.gmra.mxu2 %v17002_v52  ;;  %7619 = vmatmul.bf16.vlgmr.msra.gmra.mxu1 %v17006_v36 }
 0x89c   : > { %8060 = vmatpush.bf16.msra.mxu2 %v13121_v28  ;;  %8073 = vmatpush.bf16.msrb.mxu1 %v13249_v14  ;;  %v14864_v28 = vld [vmem:[#allocation17 + $0xf4c] sm:$0xf0]  ;;  %v14830_v14 = vld [vmem:[#allocation17 + $0xe44] sm:$0xf] }
 0x89d   : > { %8086 = vmatpush.bf16.msrb.mxu3 %v13125_v19  ;;  %8099 = vmatpush.bf16.msrb.mxu0 %v13253_v25  ;;  %v13042_v19 = vld [vmem:[#allocation17 + $0xe50] sm:$0xf0]  ;;  %v14862_v25 = vld [vmem:[#allocation17 + $0xf44] sm:$0xf] }
 0x89e   : > { %7632 = vmatmul.bf16.vlgmr.msra.gmra.mxu3 %v17002_v52  ;;  %7645 = vmatmul.bf16.vlgmr.msra.gmra.mxu0 %v17006_v36  ;;  %v6652_v52 = vpop.f32.mrf.mxu0  ;;  %v13073_v36 = vor.u32 %v14840_v32, %v13072_v7  ;;  %v6613_v37 = vpop.f32.mrf.mxu2  ;;  %v13153_v32 = vor.u32 %v14860_v45, %v13152_v4  ;;  %v13224_v4 = vld [vmem:[#allocation17 + $0xfa8] sm:$0xf]  ;;  %v14877_v45 = vld [vmem:[#allocation17 + $0xfb4] sm:$0xf0] }
 0x89f   : > { %v6627_v22 = vadd.f32 %v6626_v42, %v6613_v37  ;;  %v13112_v37 = vld [vmem:[#allocation17 + $0xec8] sm:$0xf] }
 0x8a0   : > { %8061 = vmatpush.bf16.msra.mxu2 %v13105_v56  ;;  %8074 = vmatpush.bf16.msrb.mxu1 %v13233_v17  ;;  %v6628_v15 = vpop.f32.mrf.mxu1  ;;  %v13169_v56 = vor.u32 %v14864_v28, %v13168_v21  ;;  %v13024_v17 = vld [vmem:[#allocation17 + $0xe20] sm:$0xf]  ;;  %v14849_v21 = vld [vmem:[#allocation17 + $0xed4] sm:$0xf0] }
 0x8a1   : > { %8087 = vmatpush.bf16.msrb.mxu3 %v13109_v40  ;;  %8100 = vmatpush.bf16.msrb.mxu0 %v13237_v5  ;;  %v6639_v59 = vpop.f32.mrf.mxu3  ;;  %v17023_v13 = vadd.f32 %v6627_v22, %v16995_v39  ;;  %v13045_v40 = vor.u32 %v14830_v14, %v13042_v19  ;;  %v13173_v5 = vor.u32 %v14862_v25, %v13170_v60  ;;  %v7727_v39 = vshll.u32 %v16865_v49, 16  ;;  %v13240_v22 = vld [vmem:[#allocation17 + $0xfc8] sm:$0xf]  ;;  %v14847_v19 = vld [vmem:[#allocation17 + $0xecc] sm:$0xf] }
 0x8a2   : > { %v6653_v41 = vadd.f32 %v6652_v52, %v6639_v59  ;;  %v13025_v7 = vor.u32 %v14828_v3, %v13024_v17  ;;  %v13138_v52 = vld [vmem:[#allocation17 + $0xf10] sm:$0xf0]  ;;  %v13261_v14 = vor.u32 %v14883_v18, %v13258_v62  ;;  %v14881_v59 = vld [vmem:[#allocation17 + $0xfd4] sm:$0xf0]  ;;  %v13114_v25 = vld [vmem:[#allocation17 + $0xed8] sm:$0xf0] }
 0x8a3   : > { %v7729_v20 = vrot.slane %v7727_v39, 1  ;;  %v14879_v60 = vld [vmem:[#allocation17 + $0xfcc] sm:$0xf]  ;;  %v13096_v17 = vld [vmem:[#allocation17 + $0xea8] sm:$0xf] }
 0x8a4   : > { %8062 = vmatpush.bf16.msra.mxu2 %v13089_v34  ;;  %8075 = vmatpush.bf16.msrb.mxu1 %v13217_v11  ;;  %v17026_v10 = vadd.f32 %v6653_v41, %v16998_v16  ;;  %v7734_v34 = vshll.u32 %v16868_v35, 16  ;;  %v13008_v11 = vld [vmem:[#allocation17 + $0xe00] sm:$0xf]  ;;  %v13242_v41 = vld [vmem:[#allocation17 + $0xfd8] sm:$0xf0] }
 0x8a5   : > { %8088 = vmatpush.bf16.msrb.mxu3 %v13093_v44  ;;  %8101 = vmatpush.bf16.msrb.mxu0 %v13221_v48  ;;  %v14824_v44 = vld [vmem:[#allocation17 + $0xe0c] sm:$0xf0]  ;;  %v13136_v16 = vld [vmem:[#allocation17 + $0xf00] sm:$0xf]  ;;  %v17032_v15 = vor.u32 %v7729_v20, %v7725_v8  ;;  %v14845_v3 = vld [vmem:[#allocation17 + $0xeb4] sm:$0xf0] }
 0x8a6   : > { %v6654_v0 = vpop.f32.mrf.mxu0  ;;  %v14856_v48 = vld [vmem:[#allocation17 + $0xf0c] sm:$0xf0]  ;;  %v6615_v54 = vpop.f32.mrf.mxu2  ;;  %v7736_v1 = vrot.slane %v7734_v34, 1  ;;  %v13097_v39 = vor.u32 %v14845_v3, %v13096_v17  ;;  %v13225_v34 = vor.u32 %v14877_v45, %v13224_v4  ;;  %v14867_v18 = vld [vmem:[#allocation17 + $0xf6c] sm:$0xf] }
 0x8a7   : > { %v13137_v38 = vor.u32 %v14856_v48, %v13136_v16  ;;  %v13208_v16 = vld [vmem:[#allocation17 + $0xf88] sm:$0xf]  ;;  %v14873_v48 = vld [vmem:[#allocation17 + $0xf94] sm:$0xf0]  ;;  %v14871_v54 = vld [vmem:[#allocation17 + $0xf8c] sm:$0xf] }
 0x8a8   : > { %8063 = vmatpush.bf16.msra.mxu2 %v13073_v36  ;;  %8076 = vmatpush.bf16.msrb.mxu1 %v13201_v47  ;;  %v13128_v36 = vld [vmem:[#allocation17 + $0xee8] sm:$0xf]  ;;  %v14853_v47 = vld [vmem:[#allocation17 + $0xef4] sm:$0xf0]  ;;  %v17034_v0 = vor.u32 %v7736_v1, %v7732_v12  ;;  %v13194_v62 = vld [vmem:[#allocation17 + $0xf78] sm:$0xf0] }
 0x8a9   : > { %8089 = vmatpush.bf16.msrb.mxu3 %v13077_v33  ;;  %8102 = vmatpush.bf16.msrb.mxu0 %v13205_v9  ;;  %v6641_v42 = vpop.f32.mrf.mxu3  ;;  %v14851_v33 = vld [vmem:[#allocation17 + $0xeec] sm:$0xf]  ;;  %v13009_v9 = vor.u32 %v14824_v44, %v13008_v11  ;;  %v13080_v11 = vld [vmem:[#allocation17 + $0xe88] sm:$0xf]  ;;  %v13229_v44 = vor.u32 %v14875_v61, %v13226_v50  ;;  %v13197_v1 = vor.u32 %v14867_v18, %v13194_v62  ;;  %v13034_v50 = vld [vmem:[#allocation17 + $0xe38] sm:$0xf0] }
 0x8aa   : > { %v13133_v28 = vor.u32 %v14851_v33, %v13130_v24  ;;  %v13192_v33 = vld [vmem:[#allocation17 + $0xf68] sm:$0xf]  ;;  %v13066_v24 = vld [vmem:[#allocation17 + $0xe78] sm:$0xf0]  ;;  %v14827_v61 = vld [vmem:[#allocation17 + $0xe2c] sm:$0xf] }
 0x8ab   : > { %v13032_v3 = vld [vmem:[#allocation17 + $0xe28] sm:$0xf] }
 0x8ac   : > { %8064 = vmatpush.bf16.msra.mxu2 %v13057_v58  ;;  %8077 = vmatpush.bf16.msrb.mxu1 %v13185_v2  ;;  %v13013_v58 = vor.u32 %v14822_v63, %v13010_v55  ;;  %v13141_v2 = vor.u32 %v14854_v31, %v13138_v52  ;;  %v13210_v63 = vld [vmem:[#allocation17 + $0xf98] sm:$0xf0]  ;;  %v13209_v52 = vor.u32 %v14873_v48, %v13208_v16  ;;  %v14857_v16 = vld [vmem:[#allocation17 + $0xf14] sm:$0xf0] }
 0x8ad   : > { %8090 = vmatpush.bf16.msrb.mxu3 %v13061_v23  ;;  %8103 = vmatpush.bf16.msrb.mxu0 %v13189_v6  ;;  %v13129_v23 = vor.u32 %v14853_v47, %v13128_v36  ;;  %v13257_v6 = vor.u32 %v14885_v29, %v13256_v53  ;;  %v13064_v36 = vld [vmem:[#allocation17 + $0xe68] sm:$0xf]  ;;  %v14837_v47 = vld [vmem:[#allocation17 + $0xe74] sm:$0xf0]  ;;  %v13213_v29 = vor.u32 %v14871_v54, %v13210_v63  ;;  %v13018_v54 = vld [vmem:[#allocation17 + $0xe18] sm:$0xf0] }
 0x8ae   : > { %v13065_v8 = vor.u32 %v14837_v47, %v13064_v36  ;;  %v14855_v63 = vld [vmem:[#allocation17 + $0xf0c] sm:$0xf]  ;;  %v13504_v36 = vld [vmem:[#allocation17 + $0x11e0] sm:$0xf]  ;;  %v14948_v47 = vld [vmem:[#allocation17 + $0x11ec] sm:$0xf0] }
 0x8b0   : > { %8065 = vmatpush.bf16.msra.mxu2 %v13041_v46  ;;  %8078 = vmatpush.bf16.msrb.mxu1 %v13169_v56  ;;  %v13113_v46 = vor.u32 %v14849_v21, %v13112_v37  ;;  %v13241_v56 = vor.u32 %v14881_v59, %v13240_v22  ;;  %v14865_v37 = vld [vmem:[#allocation17 + $0xf54] sm:$0xf0]  ;;  %v14831_v21 = vld [vmem:[#allocation17 + $0xe4c] sm:$0xf]  ;;  %v13050_v22 = vld [vmem:[#allocation17 + $0xe58] sm:$0xf0] }
 0x8b1   : > { %8091 = vmatpush.bf16.msrb.mxu3 %v13045_v40  ;;  %8104 = vmatpush.bf16.msrb.mxu0 %v13173_v5  ;;  %v13117_v40 = vor.u32 %v14847_v19, %v13114_v25  ;;  %v13245_v5 = vor.u32 %v14879_v60, %v13242_v41  ;;  %v14863_v59 = vld [vmem:[#allocation17 + $0xf4c] sm:$0xf]  ;;  %v13178_v19 = vld [vmem:[#allocation17 + $0xf58] sm:$0xf0]  ;;  %v13053_v4 = vor.u32 %v14831_v21, %v13050_v22  ;;  %v13362_v21 = vld [vmem:[#allocation17 + $0x10d0] sm:$0xf0] }
 0x8b2   : > { %v13181_v45 = vor.u32 %v14863_v59, %v13178_v19  ;;  %v13344_v19 = vld [vmem:[#allocation17 + $0x10a0] sm:$0xf] }
 0x8b4   : > { %8066 = vmatpush.bf16.msra.mxu2 %v13025_v7  ;;  %8079 = vmatpush.bf16.msrb.mxu1 %v13153_v32  ;;  %v14841_v7 = vld [vmem:[#allocation17 + $0xe94] sm:$0xf0]  ;;  %v13101_v32 = vor.u32 %v14843_v26, %v13098_v51  ;;  %v13160_v26 = vld [vmem:[#allocation17 + $0xf28] sm:$0xf] }
 0x8b5   : > { %8092 = vmatpush.bf16.msrb.mxu3 %v13029_v43  ;;  %8105 = vmatpush.bf16.msrb.mxu0 %v13157_v57  ;;  %v14839_v43 = vld [vmem:[#allocation17 + $0xe8c] sm:$0xf]  ;;  %v13082_v57 = vld [vmem:[#allocation17 + $0xe98] sm:$0xf0]  ;;  %v13081_v42 = vor.u32 %v14841_v7, %v13080_v11  ;;  %v14861_v51 = vld [vmem:[#allocation17 + $0xf34] sm:$0xf0] }
 0x8b6   : > { %v13085_v53 = vor.u32 %v14839_v43, %v13082_v57  ;;  %v13161_v7 = vor.u32 %v14861_v51, %v13160_v26  ;;  %v14823_v57 = vld [vmem:[#allocation17 + $0xe0c] sm:$0xf] }
 0x8b7   : > { %v13021_v18 = vor.u32 %v14823_v57, %v13018_v54  ;;  %v14900_v57 = vld [vmem:[#allocation17 + $0x106c] sm:$0xf0] }
 0x8b8   : > { %8067 = vmatpush.bf16.msra.mxu2 %v13009_v9  ;;  %8080 = vmatpush.bf16.msrb.mxu1 %v13137_v38  ;;  %v7071_v55 = vpop.f32.mrf.mxu1  ;;  %v14869_v9 = vld [vmem:[#allocation17 + $0xf74] sm:$0xf0]  ;;  %v14835_v38 = vld [vmem:[#allocation17 + $0xe6c] sm:$0xf] }
 0x8b9   : > { %8093 = vmatpush.bf16.msrb.mxu3 %v13013_v58  ;;  %8106 = vmatpush.bf16.msrb.mxu0 %v13141_v2  ;;  %v13193_v20 = vor.u32 %v14869_v9, %v13192_v33  ;;  %v13048_v58 = vld [vmem:[#allocation17 + $0xe48] sm:$0xf]  ;;  %v14833_v2 = vld [vmem:[#allocation17 + $0xe54] sm:$0xf0]  ;;  %v13069_v12 = vor.u32 %v14835_v38, %v13066_v24  ;;  %v13378_v9 = vld [vmem:[#allocation17 + $0x10f0] sm:$0xf0] }
 0x8ba   : > { %v14946_v38 = vld [vmem:[#allocation17 + $0x11e4] sm:$0xf]  ;;  %v13506_v24 = vld [vmem:[#allocation17 + $0x11f0] sm:$0xf0] }
 0x8bb   : > { %8068 = vmatmul.bf16.vlgmr.msra.gmra.mxu2 %v17032_v15  ;;  %8081 = vmatmul.bf16.vlgmr.msrb.gmra.mxu1 %v17034_v0  ;;  %v7097_v31 = vpop.f32.mrf.mxu0 }
 0x8bc   : > { %8112 = vmatpush.bf16.msrb.mxu2 %v13129_v23  ;;  %8125 = vmatpush.bf16.msra.mxu1 %v13257_v6  ;;  %v13176_v6 = vld [vmem:[#allocation17 + $0xf48] sm:$0xf] }
 0x8bd   : > { %8138 = vmatpush.bf16.msra.mxu3 %v13133_v28  ;;  %8151 = vmatpush.bf16.msra.mxu0 %v13261_v14  ;;  %v13177_v17 = vor.u32 %v14865_v37, %v13176_v6  ;;  %v14944_v6 = vld [vmem:[#allocation17 + $0x11cc] sm:$0xf0]  ;;  %v14910_v37 = vld [vmem:[#allocation17 + $0x10c4] sm:$0xf] }
 0x8be   : > { %8094 = vmatmul.bf16.vlgmr.msrb.gmra.mxu3 %v17032_v15  ;;  %8107 = vmatmul.bf16.vlgmr.msrb.gmra.mxu0 %v17034_v0  ;;  %v7058_v23 = vpop.f32.mrf.mxu2 }
 0x8bf   : > { %v7072_v28 = vadd.f32 %v7071_v55, %v7058_v23  ;;  %v13488_v23 = vld [vmem:[#allocation17 + $0x11c0] sm:$0xf] }
 0x8c0   : > { %8113 = vmatpush.bf16.msrb.mxu2 %v13113_v46  ;;  %8126 = vmatpush.bf16.msra.mxu1 %v13241_v56  ;;  %v7073_v60 = vpop.f32.mrf.mxu1  ;;  %v13049_v56 = vor.u32 %v14833_v2, %v13048_v58  ;;  %v13360_v58 = vld [vmem:[#allocation17 + $0x10c0] sm:$0xf]  ;;  %v14912_v2 = vld [vmem:[#allocation17 + $0x10cc] sm:$0xf0]  ;;  %v13489_v59 = vor.u32 %v14944_v6, %v13488_v23  ;;  %v13426_v23 = vld [vmem:[#allocation17 + $0x1150] sm:$0xf0] }
 0x8c1   : > { %8139 = vmatpush.bf16.msra.mxu3 %v13117_v40  ;;  %8152 = vmatpush.bf16.msra.mxu0 %v13245_v5  ;;  %v7084_v14 = vpop.f32.mrf.mxu3  ;;  %v17041_v41 = vadd.f32 %v7072_v28, %v17013_v27  ;;  %v14829_v40 = vld [vmem:[#allocation17 + $0xe34] sm:$0xf0]  ;;  %v13016_v27 = vld [vmem:[#allocation17 + $0xe08] sm:$0xf]  ;;  %v14942_v28 = vld [vmem:[#allocation17 + $0x11c4] sm:$0xf]  ;;  %v13361_v22 = vor.u32 %v14912_v2, %v13360_v58  ;;  %v13365_v60 = vor.u32 %v14910_v37, %v13362_v21 }
 0x8c2   : > { %v7098_v25 = vadd.f32 %v7097_v31, %v7084_v14  ;;  %v13033_v11 = vor.u32 %v14829_v40, %v13032_v3  ;;  %v13146_v31 = vld [vmem:[#allocation17 + $0xf18] sm:$0xf0]  ;;  %v13490_v14 = vld [vmem:[#allocation17 + $0x11d0] sm:$0xf0]  ;;  %v14906_v3 = vld [vmem:[#allocation17 + $0x10a4] sm:$0xf] }
 0x8c3   : > { %v7099_v46 = vpop.f32.mrf.mxu0  ;;  %v13149_v62 = vor.u32 %v14855_v63, %v13146_v31  ;;  %v13346_v40 = vld [vmem:[#allocation17 + $0x10b0] sm:$0xf0]  ;;  %v14932_v31 = vld [vmem:[#allocation17 + $0x116c] sm:$0xf0] }
 0x8c4   : > { %8114 = vmatpush.bf16.msrb.mxu2 %v13097_v39  ;;  %8127 = vmatpush.bf16.msra.mxu1 %v13225_v34  ;;  %v17044_v5 = vadd.f32 %v7098_v25, %v17016_v30  ;;  %v14859_v39 = vld [vmem:[#allocation17 + $0xf2c] sm:$0xf]  ;;  %v13162_v34 = vld [vmem:[#allocation17 + $0xf38] sm:$0xf0]  ;;  %v13037_v30 = vor.u32 %v14827_v61, %v13034_v50  ;;  %v14908_v25 = vld [vmem:[#allocation17 + $0x10ac] sm:$0xf0]  ;;  %v13493_v46 = vor.u32 %v14942_v28, %v13490_v14 }
 0x8c5   : > { %8140 = vmatpush.bf16.msra.mxu3 %v13101_v32  ;;  %8153 = vmatpush.bf16.msra.mxu0 %v13229_v44  ;;  %v14825_v32 = vld [vmem:[#allocation17 + $0xe14] sm:$0xf0]  ;;  %v13144_v44 = vld [vmem:[#allocation17 + $0xf08] sm:$0xf]  ;;  %v13165_v48 = vor.u32 %v14859_v39, %v13162_v34  ;;  %v13345_v26 = vor.u32 %v14908_v25, %v13344_v19  ;;  %v13328_v61 = vld [vmem:[#allocation17 + $0x1080] sm:$0xf]  ;;  %v13349_v39 = vor.u32 %v14906_v3, %v13346_v40 }
 0x8c6   : > { %v7060_v43 = vpop.f32.mrf.mxu2  ;;  %v13145_v33 = vor.u32 %v14857_v16, %v13144_v44  ;;  %v14904_v50 = vld [vmem:[#allocation17 + $0x108c] sm:$0xf0]  ;;  %v14934_v44 = vld [vmem:[#allocation17 + $0x1184] sm:$0xf]  ;;  %v13458_v16 = vld [vmem:[#allocation17 + $0x1190] sm:$0xf0] }
 0x8c7   : > { %v13312_v43 = vld [vmem:[#allocation17 + $0x1060] sm:$0xf]  ;;  %v13461_v63 = vor.u32 %v14934_v44, %v13458_v16  ;;  %v14892_v19 = vld [vmem:[#allocation17 + $0x102c] sm:$0xf0]  ;;  %v14890_v3 = vld [vmem:[#allocation17 + $0x1024] sm:$0xf] }
 0x8c8   : > { %8115 = vmatpush.bf16.msrb.mxu2 %v13081_v42  ;;  %8128 = vmatpush.bf16.msra.mxu1 %v13209_v52  ;;  %v13376_v42 = vld [vmem:[#allocation17 + $0x10e0] sm:$0xf]  ;;  %v14916_v52 = vld [vmem:[#allocation17 + $0x10ec] sm:$0xf0]  ;;  %v13282_v40 = vld [vmem:[#allocation17 + $0x1030] sm:$0xf0] }
 0x8c9   : > { %8141 = vmatpush.bf16.msra.mxu3 %v13085_v53  ;;  %8154 = vmatpush.bf16.msra.mxu0 %v13213_v29  ;;  %v7086_v55 = vpop.f32.mrf.mxu3  ;;  %v14914_v53 = vld [vmem:[#allocation17 + $0x10e4] sm:$0xf]  ;;  %v13017_v29 = vor.u32 %v14825_v32, %v13016_v27  ;;  %v13456_v27 = vld [vmem:[#allocation17 + $0x1180] sm:$0xf]  ;;  %v13330_v32 = vld [vmem:[#allocation17 + $0x1090] sm:$0xf0] }
 0x8ca   : > { %v13440_v55 = vld [vmem:[#allocation17 + $0x1160] sm:$0xf]  ;;  %v13394_v16 = vld [vmem:[#allocation17 + $0x1110] sm:$0xf0] }
 0x8cc   : > { %8116 = vmatpush.bf16.msrb.mxu2 %v13065_v8  ;;  %8129 = vmatpush.bf16.msra.mxu1 %v13193_v20  ;;  %v13377_v8 = vor.u32 %v14916_v52, %v13376_v42  ;;  %v13505_v20 = vor.u32 %v14948_v47, %v13504_v36  ;;  %v14898_v42 = vld [vmem:[#allocation17 + $0x1064] sm:$0xf]  ;;  %v13314_v52 = vld [vmem:[#allocation17 + $0x1070] sm:$0xf0] }
 0x8cd   : > { %8142 = vmatpush.bf16.msra.mxu3 %v13069_v12  ;;  %8155 = vmatpush.bf16.msra.mxu0 %v13197_v1  ;;  %v13381_v12 = vor.u32 %v14914_v53, %v13378_v9  ;;  %v13509_v1 = vor.u32 %v14946_v38, %v13506_v24  ;;  %v14930_v36 = vld [vmem:[#allocation17 + $0x1164] sm:$0xf]  ;;  %v13442_v47 = vld [vmem:[#allocation17 + $0x1170] sm:$0xf0]  ;;  %v13313_v53 = vor.u32 %v14900_v57, %v13312_v43  ;;  %v14896_v9 = vld [vmem:[#allocation17 + $0x104c] sm:$0xf0] }
 0x8ce   : > { %v13317_v38 = vor.u32 %v14898_v42, %v13314_v52  ;;  %v13445_v24 = vor.u32 %v14930_v36, %v13442_v47  ;;  %v14915_v43 = vld [vmem:[#allocation17 + $0x10ec] sm:$0xf] }
 0x8d0   : > { %8117 = vmatpush.bf16.msrb.mxu2 %v13049_v56  ;;  %8130 = vmatpush.bf16.msra.mxu1 %v13177_v17  ;;  %v13472_v56 = vld [vmem:[#allocation17 + $0x11a0] sm:$0xf]  ;;  %v14940_v17 = vld [vmem:[#allocation17 + $0x11ac] sm:$0xf0] }
 0x8d1   : > { %8143 = vmatpush.bf16.msra.mxu3 %v13053_v4  ;;  %8156 = vmatpush.bf16.msra.mxu0 %v13181_v45  ;;  %v14938_v4 = vld [vmem:[#allocation17 + $0x11a4] sm:$0xf]  ;;  %v13474_v45 = vld [vmem:[#allocation17 + $0x11b0] sm:$0xf0]  ;;  %v13473_v51 = vor.u32 %v14940_v17, %v13472_v56  ;;  %v13408_v56 = vld [vmem:[#allocation17 + $0x1120] sm:$0xf] }
 0x8d2   : > { %v13477_v34 = vor.u32 %v14938_v4, %v13474_v45  ;;  %v14924_v17 = vld [vmem:[#allocation17 + $0x112c] sm:$0xf0]  ;;  %v14922_v4 = vld [vmem:[#allocation17 + $0x1124] sm:$0xf]  ;;  %v13410_v45 = vld [vmem:[#allocation17 + $0x1130] sm:$0xf0] }
 0x8d4   : > { %8118 = vmatpush.bf16.msrb.mxu2 %v13033_v11  ;;  %8131 = vmatpush.bf16.msra.mxu1 %v13161_v7  ;;  %v14936_v11 = vld [vmem:[#allocation17 + $0x118c] sm:$0xf0]  ;;  %v14902_v7 = vld [vmem:[#allocation17 + $0x1084] sm:$0xf] }
 0x8d5   : > { %8144 = vmatpush.bf16.msra.mxu3 %v13037_v30  ;;  %8157 = vmatpush.bf16.msra.mxu0 %v13165_v48  ;;  %v13457_v48 = vor.u32 %v14936_v11, %v13456_v27  ;;  %v13333_v54 = vor.u32 %v14902_v7, %v13330_v32  ;;  %v14886_v11 = vld [vmem:[#allocation17 + $0x1004] sm:$0xf]  ;;  %v13266_v7 = vld [vmem:[#allocation17 + $0x1010] sm:$0xf0] }
 0x8d6   : > { %v14918_v32 = vld [vmem:[#allocation17 + $0x1104] sm:$0xf]  ;;  %v13269_v42 = vor.u32 %v14886_v11, %v13266_v7  ;;  %v14901_v11 = vld [vmem:[#allocation17 + $0x1074] sm:$0xf0] }
 0x8d7   : > { %v13397_v52 = vor.u32 %v14918_v32, %v13394_v16  ;;  %v14933_v16 = vld [vmem:[#allocation17 + $0x1174] sm:$0xf0] }
 0x8d8   : > { %8119 = vmatpush.bf16.msrb.mxu2 %v13017_v29  ;;  %8132 = vmatpush.bf16.msra.mxu1 %v13145_v33  ;;  %v7123_v30 = vpop.f32.mrf.mxu1  ;;  %v13441_v29 = vor.u32 %v14932_v31, %v13440_v55  ;;  %v13296_v33 = vld [vmem:[#allocation17 + $0x1040] sm:$0xf]  ;;  %v14947_v55 = vld [vmem:[#allocation17 + $0x11ec] sm:$0xf]  ;;  %v13514_v31 = vld [vmem:[#allocation17 + $0x11f8] sm:$0xf0] }
 0x8d9   : > { %8145 = vmatpush.bf16.msra.mxu3 %v13021_v18  ;;  %8158 = vmatpush.bf16.msra.mxu0 %v13149_v62  ;;  %v13424_v62 = vld [vmem:[#allocation17 + $0x1140] sm:$0xf]  ;;  %v13297_v14 = vor.u32 %v14896_v9, %v13296_v33  ;;  %v13517_v9 = vor.u32 %v14947_v55, %v13514_v31 }
 0x8db   : > { %8120 = vmatmul.bf16.vlgmr.msrb.gmra.mxu2 %v17032_v15  ;;  %8133 = vmatmul.bf16.vlgmr.msra.gmra.mxu1 %v17034_v0 }
 0x8dc   : > { %8557 = vmatpush.bf16.msra.mxu2 %v13377_v8  ;;  %8570 = vmatpush.bf16.msrb.mxu1 %v13505_v20  ;;  %v14928_v8 = vld [vmem:[#allocation17 + $0x114c] sm:$0xf0]  ;;  %v14894_v20 = vld [vmem:[#allocation17 + $0x1044] sm:$0xf] }
 0x8dd   : > { %8583 = vmatpush.bf16.msrb.mxu3 %v13381_v12  ;;  %8596 = vmatpush.bf16.msrb.mxu0 %v13509_v1  ;;  %v13298_v12 = vld [vmem:[#allocation17 + $0x1050] sm:$0xf0]  ;;  %v14926_v1 = vld [vmem:[#allocation17 + $0x1144] sm:$0xf] }
 0x8de   : > { %8146 = vmatmul.bf16.vlgmr.msra.gmra.mxu3 %v17032_v15  ;;  %8159 = vmatmul.bf16.vlgmr.msra.gmra.mxu0 %v17034_v0  ;;  %v7149_v15 = vpop.f32.mrf.mxu0  ;;  %v13329_v0 = vor.u32 %v14904_v50, %v13328_v61  ;;  %v7110_v18 = vpop.f32.mrf.mxu2  ;;  %v14888_v61 = vld [vmem:[#allocation17 + $0x100c] sm:$0xf0]  ;;  %v13392_v50 = vld [vmem:[#allocation17 + $0x1100] sm:$0xf] }
 0x8df   : > { %v7124_v58 = vadd.f32 %v7123_v30, %v7110_v18  ;;  %v13384_v30 = vld [vmem:[#allocation17 + $0x10e8] sm:$0xf]  ;;  %v14911_v18 = vld [vmem:[#allocation17 + $0x10cc] sm:$0xf] }
 0x8e0   : > { %8558 = vmatpush.bf16.msra.mxu2 %v13361_v22  ;;  %8571 = vmatpush.bf16.msrb.mxu1 %v13489_v59  ;;  %v7125_v37 = vpop.f32.mrf.mxu1  ;;  %v13425_v22 = vor.u32 %v14928_v8, %v13424_v62  ;;  %v13280_v59 = vld [vmem:[#allocation17 + $0x1020] sm:$0xf]  ;;  %v13370_v62 = vld [vmem:[#allocation17 + $0x10d8] sm:$0xf0]  ;;  %v14943_v8 = vld [vmem:[#allocation17 + $0x11cc] sm:$0xf] }
 0x8e1   : > { %8584 = vmatpush.bf16.msrb.mxu3 %v13365_v60  ;;  %8597 = vmatpush.bf16.msrb.mxu0 %v13493_v46  ;;  %v7136_v2 = vpop.f32.mrf.mxu3  ;;  %v17051_v21 = vadd.f32 %v7124_v58, %v17023_v13  ;;  %v13301_v60 = vor.u32 %v14894_v20, %v13298_v12  ;;  %v13429_v46 = vor.u32 %v14926_v1, %v13426_v23  ;;  %v13264_v13 = vld [vmem:[#allocation17 + $0x1000] sm:$0xf]  ;;  %v13498_v20 = vld [vmem:[#allocation17 + $0x11d8] sm:$0xf0]  ;;  %v17057_v58 = vrot.slane %v16865_v49, 1 }
 0x8e2   : > { %v7150_v6 = vadd.f32 %v7149_v15, %v7136_v2  ;;  %v14917_v15 = vld [vmem:[#allocation17 + $0x10f4] sm:$0xf0]  ;;  %v13265_v57 = vor.u32 %v14888_v61, %v13264_v13  ;;  %v17060_v2 = vrot.slane %v16868_v35, 1  ;;  %v13352_v23 = vld [vmem:[#allocation17 + $0x10a8] sm:$0xf]  ;;  %v13373_v37 = vor.u32 %v14911_v18, %v13370_v62 }
 0x8e3   : > { %v13385_v36 = vor.u32 %v14917_v15, %v13384_v30  ;;  %v13354_v49 = vld [vmem:[#allocation17 + $0x10b8] sm:$0xf0]  ;;  %v14939_v35 = vld [vmem:[#allocation17 + $0x11ac] sm:$0xf] }
 0x8e4   : > { %8559 = vmatpush.bf16.msra.mxu2 %v13345_v26  ;;  %8572 = vmatpush.bf16.msrb.mxu1 %v13473_v51  ;;  %v17054_v25 = vadd.f32 %v7150_v6, %v17026_v10  ;;  %v13281_v26 = vor.u32 %v14892_v19, %v13280_v59  ;;  %v13409_v51 = vor.u32 %v14924_v17, %v13408_v56  ;;  %v14909_v6 = vld [vmem:[#allocation17 + $0x10b4] sm:$0xf0]  ;;  %v14907_v59 = vld [vmem:[#allocation17 + $0x10ac] sm:$0xf]  ;;  %v13482_v19 = vld [vmem:[#allocation17 + $0x11b8] sm:$0xf0] }
 0x8e5   : > { %8585 = vmatpush.bf16.msrb.mxu3 %v13349_v39  ;;  %8598 = vmatpush.bf16.msrb.mxu0 %v13477_v34  ;;  %v14920_v39 = vld [vmem:[#allocation17 + $0x110c] sm:$0xf0]  ;;  %v13285_v10 = vor.u32 %v14890_v3, %v13282_v40  ;;  %v13413_v34 = vor.u32 %v14922_v4, %v13410_v45  ;;  %v13336_v56 = vld [vmem:[#allocation17 + $0x1088] sm:$0xf]  ;;  %v14905_v17 = vld [vmem:[#allocation17 + $0x1094] sm:$0xf0]  ;;  %v13357_v3 = vor.u32 %v14907_v59, %v13354_v49 }
 0x8e6   : > { %v7151_v28 = vpop.f32.mrf.mxu0  ;;  %v7112_v27 = vpop.f32.mrf.mxu2  ;;  %v13485_v40 = vor.u32 %v14939_v35, %v13482_v19  ;;  %v13464_v4 = vld [vmem:[#allocation17 + $0x1188] sm:$0xf]  ;;  %v14937_v45 = vld [vmem:[#allocation17 + $0x1194] sm:$0xf0]  ;;  %v14903_v13 = vld [vmem:[#allocation17 + $0x108c] sm:$0xf] }
 0x8e7   : > { %v13501_v28 = vor.u32 %v14943_v8, %v13498_v20  ;;  %v13466_v61 = vld [vmem:[#allocation17 + $0x1198] sm:$0xf0]  ;;  %v13320_v27 = vld [vmem:[#allocation17 + $0x1068] sm:$0xf]  ;;  %v14899_v30 = vld [vmem:[#allocation17 + $0x106c] sm:$0xf] }
 0x8e8   : > { %8560 = vmatpush.bf16.msra.mxu2 %v13329_v0  ;;  %8573 = vmatpush.bf16.msrb.mxu1 %v13457_v48  ;;  %v13512_v0 = vld [vmem:[#allocation17 + $0x11e8] sm:$0xf]  ;;  %v14949_v48 = vld [vmem:[#allocation17 + $0x11f4] sm:$0xf0]  ;;  %v13322_v15 = vld [vmem:[#allocation17 + $0x1078] sm:$0xf0] }
 0x8e9   : > { %8586 = vmatpush.bf16.msrb.mxu3 %v13333_v54  ;;  %8599 = vmatpush.bf16.msrb.mxu0 %v13461_v63  ;;  %v7138_v44 = vpop.f32.mrf.mxu3  ;;  %v13393_v54 = vor.u32 %v14920_v39, %v13392_v50  ;;  %v13386_v63 = vld [vmem:[#allocation17 + $0x10f8] sm:$0xf0]  ;;  %v13513_v47 = vor.u32 %v14949_v48, %v13512_v0  ;;  %v14931_v0 = vld [vmem:[#allocation17 + $0x116c] sm:$0xf]  ;;  %v13325_v55 = vor.u32 %v14899_v30, %v13322_v15 }
 0x8ea   : > { %v13389_v33 = vor.u32 %v14915_v43, %v13386_v63  ;;  %v13448_v44 = vld [vmem:[#allocation17 + $0x1168] sm:$0xf]  ;;  %v13450_v48 = vld [vmem:[#allocation17 + $0x1178] sm:$0xf0]  ;;  %v13321_v43 = vor.u32 %v14901_v11, %v13320_v27  ;;  %v14897_v63 = vld [vmem:[#allocation17 + $0x1054] sm:$0xf0] }
 0x8eb   : > { %v13453_v31 = vor.u32 %v14931_v0, %v13450_v48  ;;  %v14891_v59 = vld [vmem:[#allocation17 + $0x102c] sm:$0xf]  ;;  %v13290_v49 = vld [vmem:[#allocation17 + $0x1038] sm:$0xf0] }
 0x8ec   : > { %8561 = vmatpush.bf16.msra.mxu2 %v13313_v53  ;;  %8574 = vmatpush.bf16.msrb.mxu1 %v13441_v29  ;;  %v13368_v53 = vld [vmem:[#allocation17 + $0x10c8] sm:$0xf]  ;;  %v14913_v29 = vld [vmem:[#allocation17 + $0x10d4] sm:$0xf0]  ;;  %v14923_v35 = vld [vmem:[#allocation17 + $0x112c] sm:$0xf] }
 0x8ed   : > { %8587 = vmatpush.bf16.msrb.mxu3 %v13317_v38  ;;  %8600 = vmatpush.bf16.msrb.mxu0 %v13445_v24  ;;  %v13496_v38 = vld [vmem:[#allocation17 + $0x11c8] sm:$0xf]  ;;  %v14945_v24 = vld [vmem:[#allocation17 + $0x11d4] sm:$0xf0]  ;;  %v13369_v12 = vor.u32 %v14913_v29, %v13368_v53  ;;  %v13418_v19 = vld [vmem:[#allocation17 + $0x1138] sm:$0xf0] }
 0x8ee   : > { %v13497_v1 = vor.u32 %v14945_v24, %v13496_v38  ;;  %v13434_v38 = vld [vmem:[#allocation17 + $0x1158] sm:$0xf0] }
 0x8f0   : > { %8562 = vmatpush.bf16.msra.mxu2 %v13297_v14  ;;  %8575 = vmatpush.bf16.msrb.mxu1 %v13425_v22  ;;  %v13480_v14 = vld [vmem:[#allocation17 + $0x11a8] sm:$0xf]  ;;  %v14941_v22 = vld [vmem:[#allocation17 + $0x11b4] sm:$0xf0] }
 0x8f1   : > { %8588 = vmatpush.bf16.msrb.mxu3 %v13301_v60  ;;  %8601 = vmatpush.bf16.msrb.mxu0 %v13429_v46  ;;  %v13353_v60 = vor.u32 %v14909_v6, %v13352_v23  ;;  %v13481_v46 = vor.u32 %v14941_v22, %v13480_v14  ;;  %v14893_v23 = vld [vmem:[#allocation17 + $0x1034] sm:$0xf0]  ;;  %v13416_v14 = vld [vmem:[#allocation17 + $0x1128] sm:$0xf] }
 0x8f2   : > { %v14925_v22 = vld [vmem:[#allocation17 + $0x1134] sm:$0xf0] }
 0x8f4   : > { %8563 = vmatpush.bf16.msra.mxu2 %v13281_v26  ;;  %8576 = vmatpush.bf16.msrb.mxu1 %v13409_v51  ;;  %v13338_v26 = vld [vmem:[#allocation17 + $0x1098] sm:$0xf0]  ;;  %v14935_v51 = vld [vmem:[#allocation17 + $0x118c] sm:$0xf] }
 0x8f5   : > { %8589 = vmatpush.bf16.msrb.mxu3 %v13285_v10  ;;  %8602 = vmatpush.bf16.msrb.mxu0 %v13413_v34  ;;  %v13337_v10 = vor.u32 %v14905_v17, %v13336_v56  ;;  %v13465_v34 = vor.u32 %v14937_v45, %v13464_v4  ;;  %v13341_v7 = vor.u32 %v14903_v13, %v13338_v26  ;;  %v14889_v56 = vld [vmem:[#allocation17 + $0x1014] sm:$0xf0]  ;;  %v14887_v45 = vld [vmem:[#allocation17 + $0x100c] sm:$0xf]  ;;  %v13274_v26 = vld [vmem:[#allocation17 + $0x1018] sm:$0xf0] }
 0x8f6   : > { %v13469_v32 = vor.u32 %v14935_v51, %v13466_v61  ;;  %v13293_v17 = vor.u32 %v14891_v59, %v13290_v49  ;;  %v14921_v4 = vld [vmem:[#allocation17 + $0x1114] sm:$0xf0]  ;;  %v14919_v51 = vld [vmem:[#allocation17 + $0x110c] sm:$0xf]  ;;  %v13402_v61 = vld [vmem:[#allocation17 + $0x1118] sm:$0xf0] }
 0x8f7   : > { %v13584_v59 = vld [vmem:[#allocation20 + $0x80] sm:$0xf]  ;;  %v14968_v49 = vld [vmem:[#allocation20 + $0x8c] sm:$0xf0] }
 0x8f8   : > { %8564 = vmatpush.bf16.msra.mxu2 %v13265_v57  ;;  %8577 = vmatpush.bf16.msrb.mxu1 %v13393_v54  ;;  %v7568_v50 = vpop.f32.mrf.mxu1  ;;  %v13449_v57 = vor.u32 %v14933_v16, %v13448_v44  ;;  %v13304_v54 = vld [vmem:[#allocation17 + $0x1048] sm:$0xf] }
 0x8f9   : > { %8590 = vmatpush.bf16.msrb.mxu3 %v13269_v42  ;;  %8603 = vmatpush.bf16.msrb.mxu0 %v13397_v52  ;;  %v13432_v52 = vld [vmem:[#allocation17 + $0x1148] sm:$0xf]  ;;  %v13305_v20 = vor.u32 %v14897_v63, %v13304_v54  ;;  %v13632_v54 = vld [vmem:[#allocation20 + $0xe0] sm:$0xf] }
 0x8fa   : > { %v13760_v63 = vld [vmem:[#allocation20 + $0x1e0] sm:$0xf] }
 0x8fb   : > { %8565 = vmatmul.bf16.vlgmr.msra.gmra.mxu2 %v17057_v58  ;;  %8578 = vmatmul.bf16.vlgmr.msrb.gmra.mxu1 %v17060_v2  ;;  %v7594_v39 = vpop.f32.mrf.mxu0 }
 0x8fc   : > { %8609 = vmatpush.bf16.msrb.mxu2 %v13385_v36  ;;  %8622 = vmatpush.bf16.msra.mxu1 %v13513_v47  ;;  %v14929_v36 = vld [vmem:[#allocation17 + $0x1154] sm:$0xf0]  ;;  %v14895_v47 = vld [vmem:[#allocation17 + $0x104c] sm:$0xf] }
 0x8fd   : > { %8635 = vmatpush.bf16.msra.mxu3 %v13389_v33  ;;  %8648 = vmatpush.bf16.msra.mxu0 %v13517_v9  ;;  %v13306_v33 = vld [vmem:[#allocation17 + $0x1058] sm:$0xf0]  ;;  %v14927_v9 = vld [vmem:[#allocation17 + $0x114c] sm:$0xf] }
 0x8fe   : > { %8591 = vmatmul.bf16.vlgmr.msrb.gmra.mxu3 %v17057_v58  ;;  %8604 = vmatmul.bf16.vlgmr.msrb.gmra.mxu0 %v17060_v2  ;;  %v7555_v42 = vpop.f32.mrf.mxu2 }
 0x8ff   : > { %v7569_v53 = vadd.f32 %v7568_v50, %v7555_v42 }
 0x900   : > { %8610 = vmatpush.bf16.msrb.mxu2 %v13369_v12  ;;  %8623 = vmatpush.bf16.msra.mxu1 %v13497_v1  ;;  %v7570_v18 = vpop.f32.mrf.mxu1  ;;  %v13433_v12 = vor.u32 %v14929_v36, %v13432_v52  ;;  %v13288_v1 = vld [vmem:[#allocation17 + $0x1028] sm:$0xf] }
 0x901   : > { %8636 = vmatpush.bf16.msra.mxu3 %v13373_v37  ;;  %8649 = vmatpush.bf16.msra.mxu0 %v13501_v28  ;;  %v7581_v29 = vpop.f32.mrf.mxu3  ;;  %v17067_v62 = vadd.f32 %v7569_v53, %v17041_v41  ;;  %v13309_v37 = vor.u32 %v14895_v47, %v13306_v33  ;;  %v13437_v28 = vor.u32 %v14927_v9, %v13434_v38  ;;  %v13616_v47 = vld [vmem:[#allocation20 + $0xc0] sm:$0xf]  ;;  %v15008_v9 = vld [vmem:[#allocation20 + $0x1cc] sm:$0xf0] }
 0x902   : > { %v7595_v24 = vadd.f32 %v7594_v39, %v7581_v29  ;;  %v13289_v41 = vor.u32 %v14893_v23, %v13288_v1  ;;  %v13744_v53 = vld [vmem:[#allocation20 + $0x1c0] sm:$0xf] }
 0x903   : > { %v7596_v8 = vpop.f32.mrf.mxu0  ;;  %v13745_v18 = vor.u32 %v15008_v9, %v13744_v53 }
 0x904   : > { %8611 = vmatpush.bf16.msrb.mxu2 %v13353_v60  ;;  %8624 = vmatpush.bf16.msra.mxu1 %v13481_v46  ;;  %v17070_v6 = vadd.f32 %v7595_v24, %v17044_v5  ;;  %v13417_v60 = vor.u32 %v14925_v22, %v13416_v14  ;;  %v13272_v46 = vld [vmem:[#allocation17 + $0x1008] sm:$0xf]  ;;  %v13600_v8 = vld [vmem:[#allocation20 + $0xa0] sm:$0xf] }
 0x905   : > { %8637 = vmatpush.bf16.msra.mxu3 %v13357_v3  ;;  %8650 = vmatpush.bf16.msra.mxu0 %v13485_v40  ;;  %v13421_v3 = vor.u32 %v14923_v35, %v13418_v19  ;;  %v13400_v40 = vld [vmem:[#allocation17 + $0x1108] sm:$0xf]  ;;  %v13273_v50 = vor.u32 %v14889_v56, %v13272_v46  ;;  %v13712_v35 = vld [vmem:[#allocation20 + $0x180] sm:$0xf] }
 0x906   : > { %v7557_v5 = vpop.f32.mrf.mxu2  ;;  %v13401_v39 = vor.u32 %v14921_v4, %v13400_v40  ;;  %v13568_v46 = vld [vmem:[#allocation20 + $0x60] sm:$0xf] }
 0x907   : > { %v14996_v5 = vld [vmem:[#allocation20 + $0x16c] sm:$0xf0]  ;;  %v13552_v4 = vld [vmem:[#allocation20 + $0x40] sm:$0xf] }
 0x908   : > { %8612 = vmatpush.bf16.msrb.mxu2 %v13337_v10  ;;  %8625 = vmatpush.bf16.msra.mxu1 %v13465_v34  ;;  %v13277_v10 = vor.u32 %v14887_v45, %v13274_v26  ;;  %v13405_v34 = vor.u32 %v14919_v51, %v13402_v61  ;;  %v14960_v45 = vld [vmem:[#allocation20 + $0x4c] sm:$0xf0] }
 0x909   : > { %8638 = vmatpush.bf16.msra.mxu3 %v13341_v7  ;;  %8651 = vmatpush.bf16.msra.mxu0 %v13469_v32  ;;  %v7583_v13 = vpop.f32.mrf.mxu3  ;;  %v14992_v26 = vld [vmem:[#allocation20 + $0x14c] sm:$0xf0]  ;;  %v13553_v51 = vor.u32 %v14960_v45, %v13552_v4  ;;  %v13840_v4 = vld [vmem:[#allocation20 + $0x280] sm:$0xf] }
 0x90a   : > { %v13680_v13 = vld [vmem:[#allocation20 + $0x140] sm:$0xf]  ;;  %v15032_v45 = vld [vmem:[#allocation20 + $0x28c] sm:$0xf0] }
 0x90b   : > { %v13681_v61 = vor.u32 %v14992_v26, %v13680_v13  ;;  %v13841_v26 = vor.u32 %v15032_v45, %v13840_v4  ;;  %v14950_v4 = vld [vmem:[#allocation20 + $0x4] sm:$0xf]  ;;  %v13522_v45 = vld [vmem:[#allocation20 + $0x10] sm:$0xf0] }
 0x90c   : > { %8613 = vmatpush.bf16.msrb.mxu2 %v13321_v43  ;;  %8626 = vmatpush.bf16.msra.mxu1 %v13449_v57 }
 0x90d   : > { %8639 = vmatpush.bf16.msra.mxu3 %v13325_v55  ;;  %8652 = vmatpush.bf16.msra.mxu0 %v13453_v31  ;;  %v15012_v31 = vld [vmem:[#allocation20 + $0x1ec] sm:$0xf0] }
 0x90e   : > { %v13761_v52 = vor.u32 %v15012_v31, %v13760_v63  ;;  %v14978_v31 = vld [vmem:[#allocation20 + $0xe4] sm:$0xf] }
 0x910   : > { %8614 = vmatpush.bf16.msrb.mxu2 %v13305_v20  ;;  %8627 = vmatpush.bf16.msra.mxu1 %v13433_v12  ;;  %v14972_v20 = vld [vmem:[#allocation20 + $0xac] sm:$0xf0]  ;;  %v13728_v12 = vld [vmem:[#allocation20 + $0x1a0] sm:$0xf] }
 0x911   : > { %8640 = vmatpush.bf16.msra.mxu3 %v13309_v37  ;;  %8653 = vmatpush.bf16.msra.mxu0 %v13437_v28  ;;  %v13601_v37 = vor.u32 %v14972_v20, %v13600_v8  ;;  %v15004_v28 = vld [vmem:[#allocation20 + $0x1ac] sm:$0xf0]  ;;  %v13618_v8 = vld [vmem:[#allocation20 + $0xd0] sm:$0xf0] }
 0x912   : > { %v13729_v22 = vor.u32 %v15004_v28, %v13728_v12  ;;  %v13746_v28 = vld [vmem:[#allocation20 + $0x1d0] sm:$0xf0] }
 0x914   : > { %8615 = vmatpush.bf16.msrb.mxu2 %v13289_v41  ;;  %8628 = vmatpush.bf16.msra.mxu1 %v13417_v60  ;;  %v13585_v41 = vor.u32 %v14968_v49, %v13584_v59  ;;  %v15000_v60 = vld [vmem:[#allocation20 + $0x18c] sm:$0xf0] }
 0x915   : > { %8641 = vmatpush.bf16.msra.mxu3 %v13293_v17  ;;  %8654 = vmatpush.bf16.msra.mxu0 %v13421_v3  ;;  %v13713_v17 = vor.u32 %v15000_v60, %v13712_v35  ;;  %v13696_v3 = vld [vmem:[#allocation20 + $0x160] sm:$0xf] }
 0x916   : > { %v13856_v35 = vld [vmem:[#allocation20 + $0x2a0] sm:$0xf] }
 0x918   : > { %8616 = vmatpush.bf16.msrb.mxu2 %v13273_v50  ;;  %8629 = vmatpush.bf16.msra.mxu1 %v13401_v39  ;;  %v7620_v27 = vpop.f32.mrf.mxu1  ;;  %v13536_v50 = vld [vmem:[#allocation20 + $0x20] sm:$0xf]  ;;  %v14956_v39 = vld [vmem:[#allocation20 + $0x2c] sm:$0xf0] }
 0x919   : > { %8642 = vmatpush.bf16.msra.mxu3 %v13277_v10  ;;  %8655 = vmatpush.bf16.msra.mxu0 %v13405_v34  ;;  %v13664_v10 = vld [vmem:[#allocation20 + $0x120] sm:$0xf]  ;;  %v14988_v34 = vld [vmem:[#allocation20 + $0x12c] sm:$0xf0] }
 0x91b   : > { %8617 = vmatmul.bf16.vlgmr.msrb.gmra.mxu2 %v17057_v58  ;;  %8630 = vmatmul.bf16.vlgmr.msra.gmra.mxu1 %v17060_v2  ;;  %v7646_v11 = vpop.f32.mrf.mxu0 }
 0x91c   : > { %8643 = vmatmul.bf16.vlgmr.msra.gmra.mxu3 %v17057_v58  ;;  %8656 = vmatmul.bf16.vlgmr.msra.gmra.mxu0 %v17060_v2  ;;  %v14980_v58 = vld [vmem:[#allocation20 + $0xec] sm:$0xf0] }
 0x91d   : > { %v13633_v55 = vor.u32 %v14980_v58, %v13632_v54  ;;  %9525 = vmatpush.bf16.msrb.mxu1 %v13761_v52  ;;  %v13634_v52 = vld [vmem:[#allocation20 + $0xf0] sm:$0xf0] }
 0x91e   : > { %v7607_v7 = vpop.f32.mrf.mxu2 }
 0x91f   : > { %v7621_v32 = vadd.f32 %v7620_v27, %v7607_v7  ;;  %9512 = vmatpush.bf16.msra.mxu2 %v13633_v55  ;;  %v13537_v27 = vor.u32 %v14956_v39, %v13536_v50  ;;  %v13520_v7 = vld [vmem:[#allocation20] sm:$0xf]  ;;  %v15076_v55 = vld [vmem:[#allocation20 + $0x3ec] sm:$0xf0]  ;;  %v14966_v50 = vld [vmem:[#allocation20 + $0x84] sm:$0xf] }
 0x920   : > { %v7622_v30 = vpop.f32.mrf.mxu1 }
 0x921   : > { %v7633_v44 = vpop.f32.mrf.mxu3  ;;  %v17077_v15 = vadd.f32 %v7621_v32, %v17051_v21  ;;  %v14976_v21 = vld [vmem:[#allocation20 + $0xcc] sm:$0xf0]  ;;  %9526 = vmatpush.bf16.msrb.mxu1 %v13745_v18  ;;  %v14974_v18 = vld [vmem:[#allocation20 + $0xc4] sm:$0xf] }
 0x922   : > { %v7647_v16 = vadd.f32 %v7646_v11, %v7633_v44  ;;  %v13665_v11 = vor.u32 %v14988_v34, %v13664_v10  ;;  %v14952_v32 = vld [vmem:[#allocation20 + $0xc] sm:$0xf0]  ;;  %v13648_v44 = vld [vmem:[#allocation20 + $0x100] sm:$0xf]  ;;  %v13586_v34 = vld [vmem:[#allocation20 + $0x90] sm:$0xf0] }
 0x923   : > { %v7648_v0 = vpop.f32.mrf.mxu0  ;;  %v13521_v30 = vor.u32 %v14952_v32, %v13520_v7  ;;  %v13714_v7 = vld [vmem:[#allocation20 + $0x190] sm:$0xf0] }
 0x924   : > { %v17080_v48 = vadd.f32 %v7647_v16, %v17054_v25  ;;  %v13617_v25 = vor.u32 %v14976_v21, %v13616_v47  ;;  %v14984_v0 = vld [vmem:[#allocation20 + $0x10c] sm:$0xf0]  ;;  %v13762_v47 = vld [vmem:[#allocation20 + $0x1f0] sm:$0xf0]  ;;  %v13637_v21 = vor.u32 %v14978_v31, %v13634_v52  ;;  %v14994_v31 = vld [vmem:[#allocation20 + $0x164] sm:$0xf] }
 0x925   : > { %9527 = vmatpush.bf16.msrb.mxu1 %v13729_v22  ;;  %v13649_v58 = vor.u32 %v14984_v0, %v13648_v44  ;;  %v13824_v44 = vld [vmem:[#allocation20 + $0x260] sm:$0xf] }
 0x926   : > { %v7609_v43 = vpop.f32.mrf.mxu2  ;;  %9513 = vmatpush.bf16.msra.mxu2 %v13617_v25  ;;  %v14000_v25 = vld [vmem:[#allocation20 + $0x3c0] sm:$0xf] }
 0x927   : > { %v13888_v43 = vld [vmem:[#allocation20 + $0x2e0] sm:$0xf] }
 0x928   : > { %v13952_v0 = vld [vmem:[#allocation20 + $0x360] sm:$0xf] }
 0x929   : > { %v7635_v57 = vpop.f32.mrf.mxu3  ;;  %9528 = vmatpush.bf16.msrb.mxu1 %v13713_v17  ;;  %v13602_v17 = vld [vmem:[#allocation20 + $0xb0] sm:$0xf0] }
 0x92a   : > { %9514 = vmatpush.bf16.msra.mxu2 %v13601_v37  ;;  %v15044_v57 = vld [vmem:[#allocation20 + $0x2ec] sm:$0xf0]  ;;  %v15006_v37 = vld [vmem:[#allocation20 + $0x1c4] sm:$0xf] }
 0x92b   : > { %v13889_v63 = vor.u32 %v15044_v57, %v13888_v43  ;;  %v13749_v59 = vor.u32 %v15006_v37, %v13746_v28  ;;  %v15060_v57 = vld [vmem:[#allocation20 + $0x36c] sm:$0xf0]  ;;  %v13920_v28 = vld [vmem:[#allocation20 + $0x320] sm:$0xf] }
 0x92c   : > { %v15020_v37 = vld [vmem:[#allocation20 + $0x22c] sm:$0xf0] }
 0x92d   : > { %9538 = vmatpush.bf16.msrb.mxu3 %v13889_v63  ;;  %v13570_v63 = vld [vmem:[#allocation20 + $0x70] sm:$0xf0] }
 0x92e   : > { %9515 = vmatpush.bf16.msra.mxu2 %v13585_v41  ;;  %v13984_v41 = vld [vmem:[#allocation20 + $0x3a0] sm:$0xf] }
 0x938   : > { %v8082_v2 = vpop.f32.mrf.mxu1 }
 0x93b   : > { %v8108_v42 = vpop.f32.mrf.mxu0 }
 0x93e   : > { %v8069_v36 = vpop.f32.mrf.mxu2 }
 0x93f   : > { %v8083_v29 = vadd.f32 %v8082_v2, %v8069_v36  ;;  %v14016_v2 = vld [vmem:[#allocation20 + $0x3e0] sm:$0xf]  ;;  %v15010_v36 = vld [vmem:[#allocation20 + $0x1e4] sm:$0xf] }
 0x940   : > { %v8084_v24 = vpop.f32.mrf.mxu1  ;;  %v13765_v53 = vor.u32 %v15010_v36, %v13762_v47  ;;  %v13808_v36 = vld [vmem:[#allocation20 + $0x240] sm:$0xf]  ;;  %v15024_v47 = vld [vmem:[#allocation20 + $0x24c] sm:$0xf0] }
 0x941   : > { %v8095_v33 = vpop.f32.mrf.mxu3  ;;  %v17083_v1 = vadd.f32 %v8083_v29, %v17067_v62  ;;  %v14964_v62 = vld [vmem:[#allocation20 + $0x6c] sm:$0xf0]  ;;  %v13872_v29 = vld [vmem:[#allocation20 + $0x2c0] sm:$0xf] }
 0x942   : > { %v8109_v38 = vadd.f32 %v8108_v42, %v8095_v33  ;;  %v13569_v40 = vor.u32 %v14964_v62, %v13568_v46  ;;  %v14017_v42 = vor.u32 %v15076_v55, %v14016_v2  ;;  %v15040_v33 = vld [vmem:[#allocation20 + $0x2cc] sm:$0xf0]  ;;  %v14970_v62 = vld [vmem:[#allocation20 + $0xa4] sm:$0xf]  ;;  %v13953_v2 = vor.u32 %v15060_v57, %v13952_v0  ;;  %v13874_v57 = vld [vmem:[#allocation20 + $0x2d0] sm:$0xf0] }
 0x943   : > { %v8110_v23 = vpop.f32.mrf.mxu0  ;;  %v15072_v24 = vld [vmem:[#allocation20 + $0x3cc] sm:$0xf0] }
 0x944   : > { %v17086_v14 = vadd.f32 %v8109_v38, %v17070_v6  ;;  %v13697_v6 = vor.u32 %v14996_v5, %v13696_v3  ;;  %9516 = vmatpush.bf16.msra.mxu2 %v13569_v40  ;;  %9551 = vmatpush.bf16.msrb.mxu0 %v14017_v42  ;;  %v13873_v38 = vor.u32 %v15040_v33, %v13872_v29  ;;  %v15068_v46 = vld [vmem:[#allocation20 + $0x3ac] sm:$0xf0]  ;;  %v15002_v3 = vld [vmem:[#allocation20 + $0x1a4] sm:$0xf]  ;;  %v13730_v40 = vld [vmem:[#allocation20 + $0x1b0] sm:$0xf0] }
 0x945   : > { %v14001_v12 = vor.u32 %v15072_v24, %v14000_v25  ;;  %v13621_v23 = vor.u32 %v14974_v18, %v13618_v8  ;;  %v13605_v5 = vor.u32 %v14970_v62, %v13602_v17  ;;  %v13698_v42 = vld [vmem:[#allocation20 + $0x170] sm:$0xf0]  ;;  %v15056_v29 = vld [vmem:[#allocation20 + $0x34c] sm:$0xf0]  ;;  %v14958_v33 = vld [vmem:[#allocation20 + $0x44] sm:$0xf] }
 0x946   : > { %v8071_v19 = vpop.f32.mrf.mxu2  ;;  %9529 = vmatpush.bf16.msrb.mxu1 %v13697_v6  ;;  %9539 = vmatpush.bf16.msrb.mxu3 %v13873_v38  ;;  %v13733_v6 = vor.u32 %v15002_v3, %v13730_v40  ;;  %v13701_v52 = vor.u32 %v14994_v31, %v13698_v42  ;;  %v13554_v25 = vld [vmem:[#allocation20 + $0x50] sm:$0xf0]  ;;  %v14990_v18 = vld [vmem:[#allocation20 + $0x144] sm:$0xf]  ;;  %v15016_v17 = vld [vmem:[#allocation20 + $0x20c] sm:$0xf0] }
 0x947   : > { %v15036_v19 = vld [vmem:[#allocation20 + $0x2ac] sm:$0xf0]  ;;  %v13557_v24 = vor.u32 %v14958_v33, %v13554_v25  ;;  %v13682_v8 = vld [vmem:[#allocation20 + $0x150] sm:$0xf0]  ;;  %v13904_v3 = vld [vmem:[#allocation20 + $0x300] sm:$0xf] }
 0x948   : > { %9517 = vmatpush.bf16.msra.mxu2 %v13553_v51  ;;  %9552 = vmatpush.bf16.msrb.mxu0 %v14001_v12  ;;  %v13857_v60 = vor.u32 %v15036_v19, %v13856_v35  ;;  %v13968_v51 = vld [vmem:[#allocation20 + $0x380] sm:$0xf]  ;;  %v13685_v12 = vor.u32 %v14990_v18, %v13682_v8  ;;  %v13538_v35 = vld [vmem:[#allocation20 + $0x30] sm:$0xf0]  ;;  %v15034_v33 = vld [vmem:[#allocation20 + $0x2a4] sm:$0xf] }
 0x949   : > { %v8097_v56 = vpop.f32.mrf.mxu3  ;;  %v13858_v25 = vld [vmem:[#allocation20 + $0x2b0] sm:$0xf0] }
 0x94a   : > { %9530 = vmatpush.bf16.msrb.mxu1 %v13681_v61  ;;  %v13985_v56 = vor.u32 %v15068_v46, %v13984_v41  ;;  %9540 = vmatpush.bf16.msrb.mxu3 %v13857_v60  ;;  %v15064_v61 = vld [vmem:[#allocation20 + $0x38c] sm:$0xf0]  ;;  %v14986_v60 = vld [vmem:[#allocation20 + $0x124] sm:$0xf]  ;;  %v13666_v46 = vld [vmem:[#allocation20 + $0x130] sm:$0xf0]  ;;  %v13861_v8 = vor.u32 %v15034_v33, %v13858_v25 }
 0x94b   : > { %v13969_v10 = vor.u32 %v15064_v61, %v13968_v51  ;;  %v13669_v62 = vor.u32 %v14986_v60, %v13666_v46  ;;  %v13525_v51 = vor.u32 %v14950_v4, %v13522_v45  ;;  %v14982_v61 = vld [vmem:[#allocation20 + $0x104] sm:$0xf]  ;;  %v13970_v60 = vld [vmem:[#allocation20 + $0x390] sm:$0xf0]  ;;  %v15013_v33 = vld [vmem:[#allocation20 + $0x1f4] sm:$0xf0] }
 0x94c   : > { %9518 = vmatpush.bf16.msra.mxu2 %v13537_v27  ;;  %9553 = vmatpush.bf16.msrb.mxu0 %v13985_v56  ;;  %v14998_v27 = vld [vmem:[#allocation20 + $0x184] sm:$0xf]  ;;  %v13776_v56 = vld [vmem:[#allocation20 + $0x200] sm:$0xf] }
 0x94d   : > { %v13717_v32 = vor.u32 %v14998_v27, %v13714_v7  ;;  %v13777_v40 = vor.u32 %v15016_v17, %v13776_v56  ;;  %v13890_v27 = vld [vmem:[#allocation20 + $0x2f0] sm:$0xf0]  ;;  %v15014_v25 = vld [vmem:[#allocation20 + $0x204] sm:$0xf] }
 0x94e   : > { %9531 = vmatpush.bf16.msrb.mxu1 %v13665_v11  ;;  %9541 = vmatpush.bf16.msrb.mxu3 %v13841_v26  ;;  %v13589_v11 = vor.u32 %v14966_v50, %v13586_v34  ;;  %v13650_v50 = vld [vmem:[#allocation20 + $0x110] sm:$0xf0] }
 0x94f   : > { %v13653_v34 = vor.u32 %v14982_v61, %v13650_v50  ;;  %v14018_v7 = vld [vmem:[#allocation20 + $0x3f0] sm:$0xf0] }
 0x950   : > { %9519 = vmatpush.bf16.msra.mxu2 %v13521_v30  ;;  %9554 = vmatpush.bf16.msrb.mxu0 %v13969_v10  ;;  %v15028_v30 = vld [vmem:[#allocation20 + $0x26c] sm:$0xf0] }
 0x951   : > { %v13825_v43 = vor.u32 %v15028_v30, %v13824_v44  ;;  %v17096_v30 = vld [vmem:[#allocation19] sm:$0xf] }
 0x952   : > { %9532 = vmatpush.bf16.msrb.mxu1 %v13649_v58  ;;  %v14962_v58 = vld [vmem:[#allocation20 + $0x64] sm:$0xf] }
 0x953   : > { %v13573_v55 = vor.u32 %v14962_v58, %v13570_v63  ;;  %9542 = vmatpush.bf16.msrb.mxu3 %v13825_v43  ;;  %v15038_v43 = vld [vmem:[#allocation20 + $0x2c4] sm:$0xf] }
 0x954   : > { %9564 = vmatpush.bf16.msrb.mxu2 %v13637_v21  ;;  %9555 = vmatpush.bf16.msrb.mxu0 %v13953_v2  ;;  %v13936_v21 = vld [vmem:[#allocation20 + $0x340] sm:$0xf]  ;;  %v15070_v58 = vld [vmem:[#allocation20 + $0x3c4] sm:$0xf]  ;;  %v13877_v63 = vor.u32 %v15038_v43, %v13874_v57  ;;  %v14002_v2 = vld [vmem:[#allocation20 + $0x3d0] sm:$0xf0] }
 0x955   : > { %v13937_v38 = vor.u32 %v15056_v29, %v13936_v21  ;;  %v14005_v31 = vor.u32 %v15070_v58, %v14002_v2  ;;  %v8668_v21 = vperm.slane %v17096_v30, 1  ;;  %v15018_v58 = vld [vmem:[#allocation20 + $0x224] sm:$0xf] }
 0x956   : > { %9577 = vmatpush.bf16.msra.mxu1 %v13765_v53  ;;  %v13809_v53 = vor.u32 %v15024_v47, %v13808_v36 }
 0x958   : > { %v17088_v16 = vpop.f32.mrf.mxu1  ;;  %9565 = vmatpush.bf16.msrb.mxu2 %v13621_v23  ;;  %9543 = vmatpush.bf16.msrb.mxu3 %v13809_v53  ;;  %v13792_v23 = vld [vmem:[#allocation20 + $0x220] sm:$0xf] }
 0x959   : > { %9556 = vmatpush.bf16.msrb.mxu0 %v13937_v38  ;;  %v15066_v38 = vld [vmem:[#allocation20 + $0x3a4] sm:$0xf] }
 0x95a   : > { %9578 = vmatpush.bf16.msra.mxu1 %v13749_v59  ;;  %v15052_v59 = vld [vmem:[#allocation20 + $0x32c] sm:$0xf0] }
 0x95b   : > { %v17090_v54 = vpop.f32.mrf.mxu0  ;;  %v13921_v19 = vor.u32 %v15052_v59, %v13920_v28 }
 0x95c   : > { %9566 = vmatpush.bf16.msrb.mxu2 %v13605_v5  ;;  %v8683_v5 = vlaneseq }
 0x95d   : > { %9557 = vmatpush.bf16.msrb.mxu0 %v13921_v19  ;;  %v15062_v19 = vld [vmem:[#allocation20 + $0x384] sm:$0xf] }
 0x95e   : > { %v17092_v9 = vpop.f32.mrf.mxu2  ;;  %9579 = vmatpush.bf16.msra.mxu1 %v13733_v6  ;;  %v15048_v6 = vld [vmem:[#allocation20 + $0x30c] sm:$0xf0]  ;;  %v8684_v0 = vshrl.u32 %v8683_v5, 7  ;;  %v13973_v56 = vor.u32 %v15062_v19, %v13970_v60  ;;  %v13624_v19 = vld [vmem:[#allocation20 + $0xc8] sm:$0xf] }
 0x95f   : > { %v13905_v26 = vor.u32 %v15048_v6, %v13904_v3  ;;  %v13826_v6 = vld [vmem:[#allocation20 + $0x270] sm:$0xf0] }
 0x960   : > { %v8136_v22 = vpop.f32.mrf.mxu1  ;;  %9567 = vmatpush.bf16.msrb.mxu2 %v13589_v11  ;;  %v15074_v11 = vld [vmem:[#allocation20 + $0x3e4] sm:$0xf]  ;;  %v8689_v36 = vand.u32 3, %v8684_v0 }
 0x961   : > { %v17094_v20 = vpop.f32.mrf.mxu3  ;;  %v13793_v22 = vor.u32 %v15020_v37, %v13792_v23  ;;  %v14021_v44 = vor.u32 %v15074_v11, %v14018_v7  ;;  %9558 = vmatpush.bf16.msrb.mxu0 %v13905_v26  ;;  %v13954_v26 = vld [vmem:[#allocation20 + $0x370] sm:$0xf0]  ;;  %v15054_v7 = vld [vmem:[#allocation20 + $0x344] sm:$0xf] }
 0x962   : > { %9580 = vmatpush.bf16.msra.mxu1 %v13717_v32  ;;  %vm17102_vm0 = vcmp.lt.s32.totalorder %v8689_v36, 2  ;;  %v13640_v36 = vld [vmem:[#allocation20 + $0xe8] sm:$0xf] }
 0x963   : > { %v8162_v49 = vpop.f32.mrf.mxu0  ;;  %9544 = vmatpush.bf16.msrb.mxu3 %v13793_v22 }
 0x964   : > { %9568 = vmatpush.bf16.msrb.mxu2 %v13573_v55  ;;  %v14954_v49 = vld [vmem:[#allocation20 + $0x24] sm:$0xf] }
 0x965   : > { %v13541_v41 = vor.u32 %v14954_v49, %v13538_v35  ;;  %9603 = vmatpush.bf16.msra.mxu0 %v14021_v44  ;;  %v15030_v49 = vld [vmem:[#allocation20 + $0x284] sm:$0xf]  ;;  %v13842_v35 = vld [vmem:[#allocation20 + $0x290] sm:$0xf0] }
 0x966   : > { %v8123_v13 = vpop.f32.mrf.mxu2  ;;  %9581 = vmatpush.bf16.msra.mxu1 %v13701_v52  ;;  %v8667_v52 = vperm.slane %v17096_v30, 0 }
 0x967   : > { %9545 = vmatpush.bf16.msrb.mxu3 %v13777_v40  ;;  %v15026_v40 = vld [vmem:[#allocation20 + $0x264] sm:$0xf] }
 0x968   : > { %9569 = vmatpush.bf16.msrb.mxu2 %v13557_v24  ;;  %v13829_v45 = vor.u32 %v15026_v40, %v13826_v6  ;;  %v14973_v40 = vld [vmem:[#allocation20 + $0xb4] sm:$0xf0] }
 0x969   : > { %v8149_v39 = vpop.f32.mrf.mxu3  ;;  %9604 = vmatpush.bf16.msra.mxu0 %v14005_v31  ;;  %v15050_v31 = vld [vmem:[#allocation20 + $0x324] sm:$0xf] }
 0x96a   : > { %9582 = vmatpush.bf16.msra.mxu1 %v13685_v12  ;;  %v15042_v39 = vld [vmem:[#allocation20 + $0x2e4] sm:$0xf]  ;;  %v13986_v12 = vld [vmem:[#allocation20 + $0x3b0] sm:$0xf0] }
 0x96b   : > { %v13893_v32 = vor.u32 %v15042_v39, %v13890_v27  ;;  %v13989_v37 = vor.u32 %v15066_v38, %v13986_v12  ;;  %v13778_v38 = vld [vmem:[#allocation20 + $0x210] sm:$0xf0] }
 0x96c   : > { %9570 = vmatpush.bf16.msrb.mxu2 %v13541_v41  ;;  %v13906_v12 = vld [vmem:[#allocation20 + $0x310] sm:$0xf0] }
 0x96d   : > { %9590 = vmatpush.bf16.msra.mxu3 %v13893_v32  ;;  %9605 = vmatpush.bf16.msra.mxu0 %v13989_v37  ;;  %v13938_v32 = vld [vmem:[#allocation20 + $0x350] sm:$0xf0] }
 0x96e   : > { %9583 = vmatpush.bf16.msra.mxu1 %v13669_v62  ;;  %v13941_v0 = vor.u32 %v15054_v7, %v13938_v32  ;;  %v15001_v32 = vld [vmem:[#allocation20 + $0x194] sm:$0xf0] }
 0x970   : > { %9571 = vmatpush.bf16.msrb.mxu2 %v13525_v51 }
 0x971   : > { %9591 = vmatpush.bf16.msra.mxu3 %v13877_v63  ;;  %9606 = vmatpush.bf16.msra.mxu0 %v13973_v56  ;;  %v13794_v63 = vld [vmem:[#allocation20 + $0x230] sm:$0xf0]  ;;  %v8135_v56 = vadd.f32 %v17088_v16, %v17092_v9 }
 0x972   : > { %9584 = vmatpush.bf16.msra.mxu1 %v13653_v34  ;;  %v13810_v34 = vld [vmem:[#allocation20 + $0x250] sm:$0xf0] }
 0x973   : > { %v8166_v16 = vadd.f32 %v8135_v56, %v17077_v15  ;;  %v13720_v15 = vld [vmem:[#allocation20 + $0x188] sm:$0xf] }
 0x974   : > { %v13528_v56 = vld [vmem:[#allocation20 + $0x8] sm:$0xf] }
 0x975   : > { %9592 = vmatpush.bf16.msra.mxu3 %v13861_v8  ;;  %v15046_v8 = vld [vmem:[#allocation20 + $0x304] sm:$0xf] }
 0x978   : > { %v8579_v13 = vpop.f32.mrf.mxu1 }
 0x97b   : > { %v8605_v10 = vpop.f32.mrf.mxu0 }
 0x97e   : > { %v8566_v55 = vpop.f32.mrf.mxu2 }
 0x97f   : > { %v8580_v42 = vadd.f32 %v8579_v13, %v8566_v55  ;;  %v15058_v13 = vld [vmem:[#allocation20 + $0x364] sm:$0xf]  ;;  %v13797_v55 = vor.u32 %v15018_v58, %v13794_v63  ;;  %v14965_v58 = vld [vmem:[#allocation20 + $0x74] sm:$0xf0] }
 0x980   : > { %v8581_v29 = vpop.f32.mrf.mxu1  ;;  %v13957_v61 = vor.u32 %v15058_v13, %v13954_v26  ;;  %v8669_v13 = vperm.slane %v17096_v30, 2 }
 0x981   : > { %v8592_v47 = vpop.f32.mrf.mxu3  ;;  %v8661_v24 = vadd.f32 %v8580_v42, %v17083_v1  ;;  %v13845_v1 = vor.u32 %v15030_v49, %v13842_v35  ;;  %v13922_v42 = vld [vmem:[#allocation20 + $0x330] sm:$0xf0] }
 0x982   : > { %v8606_v53 = vadd.f32 %v8605_v10, %v8592_v47  ;;  %v15022_v10 = vld [vmem:[#allocation20 + $0x244] sm:$0xf]  ;;  %9607 = vmatpush.bf16.msra.mxu0 %v13957_v61  ;;  %v14981_v47 = vld [vmem:[#allocation20 + $0xf4] sm:$0xf0] }
 0x983   : > { %v8607_v18 = vpop.f32.mrf.mxu0  ;;  %v8675_v28 = vadd.f32 %v8667_v52, %v8661_v24  ;;  %9593 = vmatpush.bf16.msra.mxu3 %v13845_v1  ;;  %v13813_v11 = vor.u32 %v15022_v10, %v13810_v34  ;;  %v13909_v1 = vor.u32 %v15046_v8, %v13906_v12 }
 0x984   : > { %v8662_v23 = vadd.f32 %v8606_v53, %v17086_v14  ;;  %v13925_v53 = vor.u32 %v15050_v31, %v13922_v42  ;;  %v13781_v18 = vor.u32 %v15014_v25, %v13778_v38  ;;  %v14997_v31 = vld [vmem:[#allocation20 + $0x174] sm:$0xf0] }
 0x985   : > { %v8679_v41 = vmax.f32 %v8675_v28, 0.0  ;;  %v13641_v28 = vor.u32 %v14981_v47, %v13640_v36  ;;  %v14961_v25 = vld [vmem:[#allocation20 + $0x54] sm:$0xf0] }
 0x986   : > { %v8676_v59 = vadd.f32 %v8668_v21, %v8662_v23  ;;  %v8568_v62 = vpop.f32.mrf.mxu2  ;;  %9608 = vmatpush.bf16.msra.mxu0 %v13941_v0  ;;  %v13768_v21 = vld [vmem:[#allocation20 + $0x1e8] sm:$0xf] }
 0x987   : > { %v8698_v14 = vsel %vm17102_vm0, %v8679_v41, 0.0  ;;  %9594 = vmatpush.bf16.msra.mxu3 %v13829_v45  ;;  %v13769_v35 = vor.u32 %v15013_v33, %v13768_v21  ;;  %v14977_v41 = vld [vmem:[#allocation20 + $0xd4] sm:$0xf0]  ;;  %v13560_v33 = vld [vmem:[#allocation20 + $0x48] sm:$0xf] }
 0x988   : > { %v8680_v46 = vmax.f32 %v8676_v59, 0.0  ;;  %v8702_v3 = vrot.slane %v8698_v14, 4  ;;  %v15009_v62 = vld [vmem:[#allocation20 + $0x1d4] sm:$0xf0] }
 0x989   : > { %v8594_v17 = vpop.f32.mrf.mxu3  ;;  %v15005_v45 = vld [vmem:[#allocation20 + $0x1b4] sm:$0xf0] }
 0x98a   : > { %v8699_v5 = vsel %vm17102_vm0, %v8680_v46, 0.0  ;;  %v8703_v51 = vadd.f32 %v8702_v3, %v8698_v14  ;;  %9609 = vmatpush.bf16.msra.mxu0 %v13925_v53  ;;  %v13752_v46 = vld [vmem:[#allocation20 + $0x1c8] sm:$0xf]  ;;  %v8161_v14 = vadd.f32 %v17090_v54, %v17094_v20  ;;  %v13625_v17 = vor.u32 %v14977_v41, %v13624_v19  ;;  %v14989_v41 = vld [vmem:[#allocation20 + $0x134] sm:$0xf0] }
 0x98b   : > { %v8708_v4 = vrot.slane %v8699_v5, 4  ;;  %9595 = vmatpush.bf16.msra.mxu3 %v13813_v11  ;;  %v13753_v3 = vor.u32 %v15009_v62, %v13752_v46  ;;  %v14969_v11 = vld [vmem:[#allocation20 + $0x94] sm:$0xf0]  ;;  %v13672_v19 = vld [vmem:[#allocation20 + $0x128] sm:$0xf] }
 0x98c   : > { %v8704_v39 = vrot.slane %v8703_v51, 2  ;;  %v8167_v54 = vadd.f32 %v8161_v14, %v17080_v48  ;;  %v14953_v14 = vld [vmem:[#allocation20 + $0x14] sm:$0xf0] }
 0x98d   : > { %v8709_v50 = vadd.f32 %v8708_v4, %v8699_v5  ;;  %v13608_v5 = vld [vmem:[#allocation20 + $0xa8] sm:$0xf] }
 0x98e   : > { %v8705_v44 = vadd.f32 %v8704_v39, %v8703_v51  ;;  %9610 = vmatpush.bf16.msra.mxu0 %v13909_v1  ;;  %v13736_v4 = vld [vmem:[#allocation20 + $0x1a8] sm:$0xf]  ;;  %v8670_v51 = vperm.slane %v17096_v30, 3 }
 0x98f   : > { %v8710_v27 = vrot.slane %v8709_v50, 2  ;;  %9596 = vmatpush.bf16.msra.mxu3 %v13797_v55  ;;  %v13737_v34 = vor.u32 %v15005_v45, %v13736_v4  ;;  %v13576_v30 = vld [vmem:[#allocation20 + $0x68] sm:$0xf]  ;;  %v15045_v45 = vld [vmem:[#allocation20 + $0x2f4] sm:$0xf0] }
 0x990   : > { %v8706_v57 = vrot.slane %v8705_v44, 1  ;;  %v13704_v55 = vld [vmem:[#allocation20 + $0x168] sm:$0xf]  ;;  %v13577_v21 = vor.u32 %v14965_v58, %v13576_v30  ;;  %v13626_v30 = vld [vmem:[#allocation20 + $0xd8] sm:$0xf0] }
 0x991   : > { %v8711_v43 = vadd.f32 %v8710_v27, %v8709_v50  ;;  %v13609_v50 = vor.u32 %v14973_v40, %v13608_v5  ;;  %v13592_v27 = vld [vmem:[#allocation20 + $0x88] sm:$0xf]  ;;  %v14985_v40 = vld [vmem:[#allocation20 + $0x114] sm:$0xf0]  ;;  %v15007_v58 = vld [vmem:[#allocation20 + $0x1cc] sm:$0xf] }
 0x992   : > { %v8707_v52 = vadd.f32 %v8706_v57, %v8705_v44  ;;  %v13721_v57 = vor.u32 %v15001_v32, %v13720_v15  ;;  %v13656_v5 = vld [vmem:[#allocation20 + $0x108] sm:$0xf]  ;;  %v15041_v15 = vld [vmem:[#allocation20 + $0x2d4] sm:$0xf0] }
 0x993   : > { %v8712_v2 = vrot.slane %v8711_v43, 1  ;;  %9597 = vmatpush.bf16.msra.mxu3 %v13781_v18  ;;  %v14993_v18 = vld [vmem:[#allocation20 + $0x154] sm:$0xf0]  ;;  %v13896_v4 = vld [vmem:[#allocation20 + $0x2e8] sm:$0xf] }
 0x994   : > { %v8726_v24 = vmul.f32 0.25, %v8707_v52 }
 0x995   : > { %v8713_v29 = vadd.f32 %v8712_v2, %v8711_v43  ;;  %v13593_v43 = vor.u32 %v14969_v11, %v13592_v27  ;;  %v13897_v27 = vor.u32 %v15045_v45, %v13896_v4  ;;  %v13706_v4 = vld [vmem:[#allocation20 + $0x178] sm:$0xf0] }
 0x996   : > { %v17110_v49 = vpack.c.bf16 %v8726_v24, %v8726_v24  ;;  %v13688_v24 = vld [vmem:[#allocation20 + $0x148] sm:$0xf] }
 0x997   : > { %v8727_v37 = vmul.f32 0.25, %v8713_v29  ;;  %v13705_v29 = vor.u32 %v14997_v31, %v13704_v55  ;;  %v13864_v31 = vld [vmem:[#allocation20 + $0x2a8] sm:$0xf] }
 0x998   : > { %v8631_v23 = vpop.f32.mrf.mxu1  ;;  %9520 = vmatmul.bf16.vlgmr.msra.gmra.mxu2 %v17110_v49 }
 0x999   : > { %v8657_v59 = vpop.f32.mrf.mxu0  ;;  %v17112_v60 = vpack.c.bf16 %v8727_v37, %v8727_v37  ;;  %9616 = vmatpush.bf16.msra.mxu2 %v13641_v28  ;;  %v13689_v37 = vor.u32 %v14993_v18, %v13688_v24  ;;  %v13544_v28 = vld [vmem:[#allocation20 + $0x28] sm:$0xf] }
 0x99a   : > { %v13848_v18 = vld [vmem:[#allocation20 + $0x288] sm:$0xf] }
 0x99b   : > { %9533 = vmatmul.bf16.vlgmr.msrb.gmra.mxu1 %v17112_v60 }
 0x99c   : > { %9629 = vmatpush.bf16.msrb.mxu1 %v13769_v35 }
 0x99d   : > { %9617 = vmatpush.bf16.msra.mxu2 %v13625_v17 }
 0x99e   : > { %v8618_v6 = vpop.f32.mrf.mxu2 }
 0x99f   : > { %v8632_v9 = vadd.f32 %v8631_v23, %v8618_v6  ;;  %v8644_v26 = vpop.f32.mrf.mxu3  ;;  %v13561_v23 = vor.u32 %v14961_v25, %v13560_v33  ;;  %v15003_v33 = vld [vmem:[#allocation20 + $0x1ac] sm:$0xf]  ;;  %v13738_v25 = vld [vmem:[#allocation20 + $0x1b8] sm:$0xf0] }
 0x9a0   : > { %v8658_v20 = vadd.f32 %v8657_v59, %v8644_v26  ;;  %v8633_v61 = vpop.f32.mrf.mxu1  ;;  %9630 = vmatpush.bf16.msrb.mxu1 %v13753_v3  ;;  %v14957_v59 = vld [vmem:[#allocation20 + $0x34] sm:$0xf0]  ;;  %v13673_v3 = vor.u32 %v14989_v41, %v13672_v19  ;;  %v14979_v26 = vld [vmem:[#allocation20 + $0xec] sm:$0xf]  ;;  %v13722_v19 = vld [vmem:[#allocation20 + $0x198] sm:$0xf0] }
 0x9a1   : > { %v8663_v39 = vadd.f32 %v8632_v9, %v8166_v16  ;;  %v8659_v10 = vpop.f32.mrf.mxu0  ;;  %9618 = vmatpush.bf16.msra.mxu2 %v13609_v50  ;;  %v13545_v62 = vor.u32 %v14957_v59, %v13544_v28  ;;  %v14024_v16 = vld [vmem:[#allocation20 + $0x3e8] sm:$0xf]  ;;  %v15011_v61 = vld [vmem:[#allocation20 + $0x1ec] sm:$0xf]  ;;  %v13770_v50 = vld [vmem:[#allocation20 + $0x1f8] sm:$0xf0] }
 0x9a2   : > { %v8664_v7 = vadd.f32 %v8658_v20, %v8167_v54  ;;  %v13642_v54 = vld [vmem:[#allocation20 + $0xf8] sm:$0xf0]  ;;  %v13529_v20 = vor.u32 %v14953_v14, %v13528_v56  ;;  %v14967_v28 = vld [vmem:[#allocation20 + $0x8c] sm:$0xf] }
 0x9a3   : > { %v8677_v44 = vadd.f32 %v8669_v13, %v8663_v39  ;;  %v15077_v13 = vld [vmem:[#allocation20 + $0x3f4] sm:$0xf0]  ;;  %v13657_v39 = vor.u32 %v14985_v40, %v13656_v5  ;;  %v13594_v59 = vld [vmem:[#allocation20 + $0x98] sm:$0xf0]  ;;  %v14963_v5 = vld [vmem:[#allocation20 + $0x6c] sm:$0xf] }
 0x9a4   : > { %v8678_v0 = vadd.f32 %v8670_v51, %v8664_v7  ;;  %9631 = vmatpush.bf16.msrb.mxu1 %v13737_v34  ;;  %v14025_v11 = vor.u32 %v15077_v13, %v14024_v16  ;;  %v13880_v7 = vld [vmem:[#allocation20 + $0x2c8] sm:$0xf]  ;;  %v13597_v56 = vor.u32 %v14967_v28, %v13594_v59  ;;  %v13578_v40 = vld [vmem:[#allocation20 + $0x78] sm:$0xf0]  ;;  %v15025_v13 = vld [vmem:[#allocation20 + $0x254] sm:$0xf0] }
 0x9a5   : > { %v8681_v48 = vmax.f32 %v8677_v44, 0.0  ;;  %9619 = vmatpush.bf16.msra.mxu2 %v13593_v43  ;;  %v13645_v44 = vor.u32 %v14979_v26, %v13642_v54  ;;  %v14008_v43 = vld [vmem:[#allocation20 + $0x3c8] sm:$0xf]  ;;  %v13581_v26 = vor.u32 %v14963_v5, %v13578_v40 }
 0x9a6   : > { %v8682_v63 = vmax.f32 %v8678_v0, 0.0  ;;  %v8620_v2 = vpop.f32.mrf.mxu2  ;;  %v13773_v0 = vor.u32 %v15011_v61, %v13770_v50  ;;  %v14959_v61 = vld [vmem:[#allocation20 + $0x4c] sm:$0xf]  ;;  %v13562_v50 = vld [vmem:[#allocation20 + $0x58] sm:$0xf0] }
 0x9a7   : > { %v8700_v42 = vsel %vm17102_vm0, %v8681_v48, 0.0  ;;  %v8646_v52 = vpop.f32.mrf.mxu3  ;;  %v15073_v48 = vld [vmem:[#allocation20 + $0x3d4] sm:$0xf0]  ;;  %v13881_v2 = vor.u32 %v15041_v15, %v13880_v7  ;;  %v13800_v7 = vld [vmem:[#allocation20 + $0x228] sm:$0xf] }
 0x9a8   : > { %v8714_v36 = vrot.slane %v8700_v42, 4  ;;  %v8701_v47 = vsel %vm17102_vm0, %v8682_v63, 0.0  ;;  %9632 = vmatpush.bf16.msrb.mxu1 %v13721_v57  ;;  %9572 = vmatmul.bf16.vlgmr.msrb.gmra.mxu2 %v17110_v49  ;;  %v14975_v57 = vld [vmem:[#allocation20 + $0xcc] sm:$0xf]  ;;  %v13754_v63 = vld [vmem:[#allocation20 + $0x1d8] sm:$0xf0]  ;;  %v14009_v55 = vor.u32 %v15073_v48, %v14008_v43 }
 0x9a9   : > { %v8720_v53 = vrot.slane %v8701_v47, 4  ;;  %9620 = vmatpush.bf16.msra.mxu2 %v13577_v21  ;;  %v13629_v52 = vor.u32 %v14975_v57, %v13626_v30  ;;  %v15069_v21 = vld [vmem:[#allocation20 + $0x3b4] sm:$0xf0]  ;;  %v13928_v43 = vld [vmem:[#allocation20 + $0x328] sm:$0xf] }
 0x9aa   : > { %v8715_v38 = vadd.f32 %v8714_v36, %v8700_v42  ;;  %v15037_v42 = vld [vmem:[#allocation20 + $0x2b4] sm:$0xf0]  ;;  %v13757_v36 = vor.u32 %v15007_v58, %v13754_v63  ;;  %v14955_v57 = vld [vmem:[#allocation20 + $0x2c] sm:$0xf]  ;;  %v13546_v30 = vld [vmem:[#allocation20 + $0x38] sm:$0xf0] }
 0x9ab   : > { %v8721_v8 = vadd.f32 %v8720_v53, %v8701_v47  ;;  %9585 = vmatmul.bf16.vlgmr.msra.gmra.mxu1 %v17112_v60  ;;  %v13992_v47 = vld [vmem:[#allocation20 + $0x3a8] sm:$0xf]  ;;  %v14971_v53 = vld [vmem:[#allocation20 + $0xac] sm:$0xf]  ;;  %v15021_v15 = vld [vmem:[#allocation20 + $0x234] sm:$0xf0] }
 0x9ac   : > { %v8716_v12 = vrot.slane %v8715_v38, 2  ;;  %9633 = vmatpush.bf16.msrb.mxu1 %v13705_v29  ;;  %v13610_v29 = vld [vmem:[#allocation20 + $0xb8] sm:$0xf0]  ;;  %v13993_v24 = vor.u32 %v15069_v21, %v13992_v47  ;;  %v15053_v48 = vld [vmem:[#allocation20 + $0x334] sm:$0xf0] }
 0x9ad   : > { %v8722_v22 = vrot.slane %v8721_v8, 2  ;;  %9621 = vmatpush.bf16.msra.mxu2 %v13561_v23  ;;  %v13741_v23 = vor.u32 %v15003_v33, %v13738_v25  ;;  %v14987_v58 = vld [vmem:[#allocation20 + $0x12c] sm:$0xf]  ;;  %v13674_v63 = vld [vmem:[#allocation20 + $0x138] sm:$0xf0] }
 0x9ae   : > { %v8717_v35 = vadd.f32 %v8716_v12, %v8715_v38  ;;  %v13865_v38 = vor.u32 %v15037_v42, %v13864_v31  ;;  %v13613_v12 = vor.u32 %v14971_v53, %v13610_v29  ;;  %v13784_v31 = vld [vmem:[#allocation20 + $0x208] sm:$0xf]  ;;  %v15017_v42 = vld [vmem:[#allocation20 + $0x214] sm:$0xf0]  ;;  %v13677_v47 = vor.u32 %v14987_v58, %v13674_v63  ;;  %v14951_v53 = vld [vmem:[#allocation20 + $0xc] sm:$0xf] }
 0x9af   : > { %v8723_v1 = vadd.f32 %v8722_v22, %v8721_v8  ;;  %v15033_v8 = vld [vmem:[#allocation20 + $0x294] sm:$0xf0]  ;;  %v13976_v22 = vld [vmem:[#allocation20 + $0x388] sm:$0xf]  ;;  %v13530_v29 = vld [vmem:[#allocation20 + $0x18] sm:$0xf0] }
 0x9b0   : > { %v8718_v46 = vrot.slane %v8717_v35, 1  ;;  %9634 = vmatpush.bf16.msrb.mxu1 %v13689_v37  ;;  %v15065_v37 = vld [vmem:[#allocation20 + $0x394] sm:$0xf0]  ;;  %v13849_v41 = vor.u32 %v15033_v8, %v13848_v18  ;;  %v14983_v33 = vld [vmem:[#allocation20 + $0x10c] sm:$0xf] }
 0x9b1   : > { %v8724_v17 = vrot.slane %v8723_v1, 1  ;;  %9622 = vmatpush.bf16.msra.mxu2 %v13545_v62  ;;  %v15029_v62 = vld [vmem:[#allocation20 + $0x274] sm:$0xf0]  ;;  %v13658_v25 = vld [vmem:[#allocation20 + $0x118] sm:$0xf0] }
 0x9b2   : > { %v8719_v6 = vadd.f32 %v8718_v46, %v8717_v35  ;;  %v14999_v35 = vld [vmem:[#allocation20 + $0x18c] sm:$0xf]  ;;  %v13832_v46 = vld [vmem:[#allocation20 + $0x268] sm:$0xf]  ;;  %v15049_v21 = vld [vmem:[#allocation20 + $0x314] sm:$0xf0] }
 0x9b3   : > { %v8725_v9 = vadd.f32 %v8724_v17, %v8723_v1  ;;  %v13977_v1 = vor.u32 %v15065_v37, %v13976_v22  ;;  %v13725_v14 = vor.u32 %v14999_v35, %v13722_v19  ;;  %v13960_v17 = vld [vmem:[#allocation20 + $0x368] sm:$0xf]  ;;  %v13833_v45 = vor.u32 %v15029_v62, %v13832_v46  ;;  %v15075_v18 = vld [vmem:[#allocation20 + $0x3ec] sm:$0xf]  ;;  %v14026_v8 = vld [vmem:[#allocation20 + $0x3f8] sm:$0xf0] }
 0x9b4   : > { %v8728_v51 = vmul.f32 0.25, %v8719_v6  ;;  %9635 = vmatpush.bf16.msrb.mxu1 %v13673_v3  ;;  %v15061_v3 = vld [vmem:[#allocation20 + $0x374] sm:$0xf0]  ;;  %v14995_v6 = vld [vmem:[#allocation20 + $0x16c] sm:$0xf]  ;;  %v13533_v22 = vor.u32 %v14951_v53, %v13530_v29  ;;  %v13661_v37 = vor.u32 %v14983_v33, %v13658_v25  ;;  %v14029_v59 = vor.u32 %v15075_v18, %v14026_v8  ;;  %v15090_v18 = vld [vmem:[#allocation23 + $0x60] sm:$0xff] }
 0x9b5   : > { %v8729_v10 = vmul.f32 0.25, %v8725_v9  ;;  %9623 = vmatpush.bf16.msra.mxu2 %v13529_v20  ;;  %v13961_v16 = vor.u32 %v15061_v3, %v13960_v17  ;;  %v13816_v9 = vld [vmem:[#allocation20 + $0x248] sm:$0xf]  ;;  %v13709_v54 = vor.u32 %v14995_v6, %v13706_v4  ;;  %v15039_v35 = vld [vmem:[#allocation20 + $0x2cc] sm:$0xf]  ;;  %v15080_v29 = vld [vmem:[#allocation23 + $0x10] sm:$0xff] }
 0x9b6   : > { %v17130_v34 = vpack.c.bf16 %v8728_v51, %v8728_v51  ;;  %v13944_v20 = vld [vmem:[#allocation20 + $0x348] sm:$0xf]  ;;  %v15057_v51 = vld [vmem:[#allocation20 + $0x354] sm:$0xf0]  ;;  %v13882_v19 = vld [vmem:[#allocation20 + $0x2d8] sm:$0xf0] }
 0x9b7   : > { %v17132_v32 = vpack.c.bf16 %v8729_v10, %v8729_v10  ;;  %v13690_v10 = vld [vmem:[#allocation20 + $0x158] sm:$0xf0]  ;;  %v13885_v46 = vor.u32 %v15039_v35, %v13882_v19  ;;  %v15067_v17 = vld [vmem:[#allocation20 + $0x3ac] sm:$0xf]  ;;  %v15092_v33 = vld [vmem:[#allocation23 + $0x70] sm:$0xff] }
 0x9b8   : > { %9546 = vmatmul.bf16.vlgmr.msrb.gmra.mxu3 %v17130_v34  ;;  %9636 = vmatpush.bf16.msrb.mxu1 %v13657_v39  ;;  %v14991_v39 = vld [vmem:[#allocation20 + $0x14c] sm:$0xf]  ;;  %v13994_v3 = vld [vmem:[#allocation20 + $0x3b8] sm:$0xf0] }
 0x9b9   : > { %9559 = vmatmul.bf16.vlgmr.msrb.gmra.mxu0 %v17132_v32  ;;  %9642 = vmatpush.bf16.msrb.mxu3 %v13897_v27  ;;  %v13817_v27 = vor.u32 %v15025_v13, %v13816_v9  ;;  %v13997_v40 = vor.u32 %v15067_v17, %v13994_v3  ;;  %v15031_v6 = vld [vmem:[#allocation20 + $0x28c] sm:$0xf]  ;;  %v13850_v4 = vld [vmem:[#allocation20 + $0x298] sm:$0xf0] }
 0x9ba   : > { %9655 = vmatpush.bf16.msrb.mxu0 %v14025_v11  ;;  %9668 = vmatpush.bf16.msrb.mxu2 %v13645_v44  ;;  %v13945_v11 = vor.u32 %v15057_v51, %v13944_v20  ;;  %v13565_v44 = vor.u32 %v14959_v61, %v13562_v50  ;;  %v13853_v9 = vor.u32 %v15031_v6, %v13850_v4  ;;  %v15059_v20 = vld [vmem:[#allocation20 + $0x36c] sm:$0xf]  ;;  %v13962_v51 = vld [vmem:[#allocation20 + $0x378] sm:$0xf0] }
 0x9bb   : > { %9624 = vmatmul.bf16.vlgmr.msra.gmra.mxu2 %v17110_v49  ;;  %9637 = vmatmul.bf16.vlgmr.msrb.gmra.mxu1 %v17112_v60  ;;  %v15023_v61 = vld [vmem:[#allocation20 + $0x24c] sm:$0xf]  ;;  %v13818_v50 = vld [vmem:[#allocation20 + $0x258] sm:$0xf0] }
 0x9bc   : > { %9681 = vmatpush.bf16.msra.mxu1 %v13773_v0  ;;  %v13693_v0 = vor.u32 %v14991_v39, %v13690_v10  ;;  %v15055_v39 = vld [vmem:[#allocation20 + $0x34c] sm:$0xf]  ;;  %v13946_v10 = vld [vmem:[#allocation20 + $0x358] sm:$0xf0] }
 0x9bd   : > { %9643 = vmatpush.bf16.msrb.mxu3 %v13881_v2  ;;  %v13801_v2 = vor.u32 %v15021_v15, %v13800_v7  ;;  %v15019_v7 = vld [vmem:[#allocation20 + $0x22c] sm:$0xf]  ;;  %v13802_v15 = vld [vmem:[#allocation20 + $0x238] sm:$0xf0] }
 0x9be   : > { %9656 = vmatpush.bf16.msrb.mxu0 %v14009_v55  ;;  %9669 = vmatpush.bf16.msrb.mxu2 %v13629_v52  ;;  %v13929_v55 = vor.u32 %v15053_v48, %v13928_v43  ;;  %v13912_v52 = vld [vmem:[#allocation20 + $0x308] sm:$0xf]  ;;  %v13805_v43 = vor.u32 %v15019_v7, %v13802_v15  ;;  %v15047_v58 = vld [vmem:[#allocation20 + $0x30c] sm:$0xf]  ;;  %v13914_v63 = vld [vmem:[#allocation20 + $0x318] sm:$0xf0] }
 0x9bf   : > { %v15079_v25 = vld [vmem:[#allocation23 + $0x8] sm:$0xff] }
 0x9c0   : > { %9682 = vmatpush.bf16.msra.mxu1 %v13757_v36  ;;  %v13549_v36 = vor.u32 %v14955_v57, %v13546_v30  ;;  %v15015_v57 = vld [vmem:[#allocation20 + $0x20c] sm:$0xf]  ;;  %v13786_v30 = vld [vmem:[#allocation20 + $0x218] sm:$0xf0] }
 0x9c1   : > { %9644 = vmatpush.bf16.msrb.mxu3 %v13865_v38  ;;  %v15043_v38 = vld [vmem:[#allocation20 + $0x2ec] sm:$0xf] }
 0x9c2   : > { %9657 = vmatpush.bf16.msrb.mxu0 %v13993_v24  ;;  %9670 = vmatpush.bf16.msrb.mxu2 %v13613_v12  ;;  %v13898_v24 = vld [vmem:[#allocation20 + $0x2f8] sm:$0xf0]  ;;  %v13785_v12 = vor.u32 %v15017_v42, %v13784_v31  ;;  %v15084_v42 = vld [vmem:[#allocation23 + $0x30] sm:$0xff]  ;;  %v15087_v35 = vld [vmem:[#allocation23 + $0x48] sm:$0xff] }
 0x9c3   : > { %v13901_v28 = vor.u32 %v15043_v38, %v13898_v24  ;;  %v15085_v31 = vld [vmem:[#allocation23 + $0x38] sm:$0xff]  ;;  %v15078_v24 = vld [vmem:[#allocation23] sm:$0xff]  ;;  %v15099_v19 = vld [vmem:[#allocation23 + $0xa8] sm:$0xff] }
 0x9c4   : > { %9683 = vmatpush.bf16.msra.mxu1 %v13741_v23  ;;  %v13913_v23 = vor.u32 %v15049_v21, %v13912_v52  ;;  %v15083_v52 = vld [vmem:[#allocation23 + $0x28] sm:$0xff]  ;;  %v15093_v21 = vld [vmem:[#allocation23 + $0x78] sm:$0xff] }
 0x9c5   : > { %9645 = vmatpush.bf16.msrb.mxu3 %v13849_v41  ;;  %v15071_v41 = vld [vmem:[#allocation20 + $0x3cc] sm:$0xf] }
 0x9c6   : > { %9658 = vmatpush.bf16.msrb.mxu0 %v13977_v1  ;;  %9671 = vmatpush.bf16.msrb.mxu2 %v13597_v56  ;;  %v14010_v1 = vld [vmem:[#allocation20 + $0x3d8] sm:$0xf0]  ;;  %v15035_v56 = vld [vmem:[#allocation20 + $0x2ac] sm:$0xf] }
 0x9c7   : > { %v14013_v62 = vor.u32 %v15071_v41, %v14010_v1  ;;  %v17146_v41 = vld [vmem:[#allocation22] sm:$0xf]  ;;  %v15107_v15 = vld [vmem:[#allocation23 + $0xe8] sm:$0xff] }
 0x9c8   : > { %9684 = vmatpush.bf16.msra.mxu1 %v13725_v14  ;;  %9598 = vmatmul.bf16.vlgmr.msra.gmra.mxu3 %v17130_v34  ;;  %v13866_v14 = vld [vmem:[#allocation20 + $0x2b8] sm:$0xf0] }
 0x9c9   : > { %9611 = vmatmul.bf16.vlgmr.msra.gmra.mxu0 %v17132_v32  ;;  %9646 = vmatpush.bf16.msrb.mxu3 %v13833_v45  ;;  %v13869_v5 = vor.u32 %v15035_v56, %v13866_v14  ;;  %v15063_v45 = vld [vmem:[#allocation20 + $0x38c] sm:$0xf]  ;;  %v15098_v56 = vld [vmem:[#allocation23 + $0xa0] sm:$0xff] }
 0x9ca   : > { %9659 = vmatpush.bf16.msrb.mxu0 %v13961_v16  ;;  %9672 = vmatpush.bf16.msrb.mxu2 %v13581_v26  ;;  %v13978_v16 = vld [vmem:[#allocation20 + $0x398] sm:$0xf0]  ;;  %v15027_v26 = vld [vmem:[#allocation20 + $0x26c] sm:$0xf] }
 0x9cb   : > { %v13981_v13 = vor.u32 %v15063_v45, %v13978_v16 }
 0x9cc   : > { %9685 = vmatpush.bf16.msra.mxu1 %v13709_v54  ;;  %v13834_v54 = vld [vmem:[#allocation20 + $0x278] sm:$0xf0] }
 0x9cd   : > { %9647 = vmatpush.bf16.msrb.mxu3 %v13817_v27  ;;  %v13821_v27 = vor.u32 %v15023_v61, %v13818_v50  ;;  %v15094_v61 = vld [vmem:[#allocation23 + $0x80] sm:$0xff]  ;;  %v15109_v50 = vld [vmem:[#allocation23 + $0xf8] sm:$0xff] }
 0x9ce   : > { %9660 = vmatpush.bf16.msrb.mxu0 %v13945_v11  ;;  %9673 = vmatpush.bf16.msrb.mxu2 %v13565_v44  ;;  %v13949_v11 = vor.u32 %v15055_v39, %v13946_v10  ;;  %v15051_v44 = vld [vmem:[#allocation20 + $0x32c] sm:$0xf]  ;;  %v15108_v10 = vld [vmem:[#allocation23 + $0xf0] sm:$0xff] }
 0x9d0   : > { %9686 = vmatpush.bf16.msra.mxu1 %v13693_v0  ;;  %v13930_v0 = vld [vmem:[#allocation20 + $0x338] sm:$0xf0] }
 0x9d1   : > { %9648 = vmatpush.bf16.msrb.mxu3 %v13801_v2  ;;  %v13933_v48 = vor.u32 %v15051_v44, %v13930_v0  ;;  %v13789_v2 = vor.u32 %v15015_v57, %v13786_v30 }
 0x9d2   : > { %9661 = vmatpush.bf16.msrb.mxu0 %v13929_v55  ;;  %9674 = vmatpush.bf16.msrb.mxu2 %v13549_v36  ;;  %v13917_v55 = vor.u32 %v15047_v58, %v13914_v63  ;;  %v15082_v36 = vld [vmem:[#allocation23 + $0x20] sm:$0xff] }
 0x9d4   : > { %9687 = vmatpush.bf16.msra.mxu1 %v13677_v47  ;;  %v15081_v47 = vld [vmem:[#allocation23 + $0x18] sm:$0xff] }
 0x9d5   : > { %9649 = vmatpush.bf16.msrb.mxu3 %v13785_v12  ;;  %v15089_v12 = vld [vmem:[#allocation23 + $0x58] sm:$0xff] }
 0x9d6   : > { %9662 = vmatpush.bf16.msrb.mxu0 %v13913_v23  ;;  %9675 = vmatpush.bf16.msrb.mxu2 %v13533_v22  ;;  %v15101_v23 = vld [vmem:[#allocation23 + $0xb8] sm:$0xff]  ;;  %v15088_v22 = vld [vmem:[#allocation23 + $0x50] sm:$0xff] }
 0x9d8   : > { %9688 = vmatpush.bf16.msra.mxu1 %v13661_v37  ;;  %9650 = vmatmul.bf16.vlgmr.msrb.gmra.mxu3 %v17130_v34  ;;  %v15100_v37 = vld [vmem:[#allocation23 + $0xb0] sm:$0xff] }
 0x9d9   : > { %9694 = vmatpush.bf16.msra.mxu3 %v13901_v28  ;;  %9663 = vmatmul.bf16.vlgmr.msrb.gmra.mxu0 %v17132_v32 }
 0x9da   : > { %9707 = vmatpush.bf16.msra.mxu0 %v14029_v59  ;;  %9676 = vmatmul.bf16.vlgmr.msrb.gmra.mxu2 %v17110_v49  ;;  %v13837_v49 = vor.u32 %v15027_v26, %v13834_v54  ;;  %v15095_v26 = vld [vmem:[#allocation23 + $0x88] sm:$0xff] }
 0x9db   : > { %9689 = vmatmul.bf16.vlgmr.msra.gmra.mxu1 %v17112_v60  ;;  %v13965_v60 = vor.u32 %v15059_v20, %v13962_v51  ;;  %9985 = vmatpush.bf16.msra.mxu2 %v15085_v31 }
 0x9dc   : > { %9998 = vmatpush.bf16.msrb.mxu1 %v15093_v21  ;;  %v15103_v21 = vld [vmem:[#allocation23 + $0xc8] sm:$0xff] }
 0x9dd   : > { %9695 = vmatpush.bf16.msra.mxu3 %v13885_v46  ;;  %v9504_v46 = vperm.slane %v17146_v41, 0 }
 0x9de   : > { %9708 = vmatpush.bf16.msra.mxu0 %v14013_v62  ;;  %v15086_v62 = vld [vmem:[#allocation23 + $0x40] sm:$0xff] }
 0x9df   : > { %9986 = vmatpush.bf16.msra.mxu2 %v15084_v42  ;;  %v15104_v42 = vld [vmem:[#allocation23 + $0xd0] sm:$0xff] }
 0x9e0   : > { %9999 = vmatpush.bf16.msrb.mxu1 %v15092_v33 }
 0x9e1   : > { %9696 = vmatpush.bf16.msra.mxu3 %v13869_v5  ;;  %v15097_v5 = vld [vmem:[#allocation23 + $0x98] sm:$0xff] }
 0x9e2   : > { %9709 = vmatpush.bf16.msra.mxu0 %v13997_v40  ;;  %v15096_v40 = vld [vmem:[#allocation23 + $0x90] sm:$0xff] }
 0x9e3   : > { %9987 = vmatpush.bf16.msra.mxu2 %v15083_v52 }
 0x9e5   : > { %9697 = vmatpush.bf16.msra.mxu3 %v13853_v9 }
 0x9e6   : > { %9710 = vmatpush.bf16.msra.mxu0 %v13981_v13 }
 0x9e7   : > { %9988 = vmatpush.bf16.msra.mxu2 %v15082_v36 }
 0x9e9   : > { %9698 = vmatpush.bf16.msra.mxu3 %v13837_v49  ;;  %v9505_v49 = vperm.slane %v17146_v41, 1 }
 0x9ea   : > { %9711 = vmatpush.bf16.msra.mxu0 %v13965_v60 }
 0x9eb   : > { %9989 = vmatpush.bf16.msra.mxu2 %v15081_v47 }
 0x9ed   : > { %9699 = vmatpush.bf16.msra.mxu3 %v13821_v27 }
 0x9ee   : > { %9712 = vmatpush.bf16.msra.mxu0 %v13949_v11 }
 0x9ef   : > { %9990 = vmatpush.bf16.msra.mxu2 %v15080_v29 }
 0x9f1   : > { %9700 = vmatpush.bf16.msra.mxu3 %v13805_v43 }
 0x9f2   : > { %9713 = vmatpush.bf16.msra.mxu0 %v13933_v48  ;;  %v15106_v48 = vld [vmem:[#allocation23 + $0xe0] sm:$0xff] }
 0x9f3   : > { %9991 = vmatpush.bf16.msra.mxu2 %v15079_v25 }
 0x9f5   : > { %9701 = vmatpush.bf16.msra.mxu3 %v13789_v2  ;;  %v15105_v2 = vld [vmem:[#allocation23 + $0xd8] sm:$0xff] }
 0x9f6   : > { %9714 = vmatpush.bf16.msra.mxu0 %v13917_v55  ;;  %v9506_v55 = vperm.slane %v17146_v41, 2 }
 0x9f7   : > { %9992 = vmatpush.bf16.msra.mxu2 %v15078_v24 }
 0x9f8   : > { %9702 = vmatmul.bf16.vlgmr.msra.gmra.mxu3 %v17130_v34 }
 0x9f9   : > { %9715 = vmatmul.bf16.vlgmr.msra.gmra.mxu0 %v17132_v32  ;;  %v15091_v32 = vld [vmem:[#allocation23 + $0x68] sm:$0xff]  ;;  %10011 = vmatpush.bf16.msrb.mxu3 %v15101_v23 }
 0x9fa   : > { %10000 = vmatpush.bf16.msrb.mxu1 %v15091_v32  ;;  %10024 = vmatpush.bf16.msrb.mxu0 %v15109_v50  ;;  %v15102_v32 = vld [vmem:[#allocation23 + $0xc0] sm:$0xff] }
 0x9fd   : > { %10012 = vmatpush.bf16.msrb.mxu3 %v15100_v37 }
 0x9fe   : > { %10001 = vmatpush.bf16.msrb.mxu1 %v15090_v18  ;;  %10025 = vmatpush.bf16.msrb.mxu0 %v15108_v10 }
 0xa01   : > { %10013 = vmatpush.bf16.msrb.mxu3 %v15099_v19 }
 0xa02   : > { %10002 = vmatpush.bf16.msrb.mxu1 %v15089_v12  ;;  %10026 = vmatpush.bf16.msrb.mxu0 %v15107_v15 }
 0xa05   : > { %10014 = vmatpush.bf16.msrb.mxu3 %v15098_v56 }
 0xa06   : > { %10003 = vmatpush.bf16.msrb.mxu1 %v15088_v22  ;;  %10027 = vmatpush.bf16.msrb.mxu0 %v15106_v48  ;;  %v9507_v22 = vperm.slane %v17146_v41, 3  ;;  %v9792_v41 = vld [vmem:[#allocation25] sm:$0x1] }
 0xa09   : > { %10015 = vmatpush.bf16.msrb.mxu3 %v15097_v5 }
 0xa0a   : > { %10004 = vmatpush.bf16.msrb.mxu1 %v15087_v35  ;;  %10028 = vmatpush.bf16.msrb.mxu0 %v15105_v2 }
 0xa0d   : > { %10016 = vmatpush.bf16.msrb.mxu3 %v15096_v40 }
 0xa0e   : > { %10005 = vmatpush.bf16.msrb.mxu1 %v15086_v62  ;;  %10029 = vmatpush.bf16.msrb.mxu0 %v15104_v42 }
 0xa11   : > { %10017 = vmatpush.bf16.msrb.mxu3 %v15095_v26 }
 0xa12   : > { %10030 = vmatpush.bf16.msrb.mxu0 %v15103_v21 }
 0xa15   : > { %10018 = vmatpush.bf16.msrb.mxu3 %v15094_v61 }
 0xa16   : > { %10031 = vmatpush.bf16.msrb.mxu0 %v15102_v32 }
 0xa18   : > { %v9534_v53 = vpop.f32.mrf.mxu1 }
 0xa1b   : > { %v9521_v34 = vpop.f32.mrf.mxu2 }
 0xa1c   : > { %v9522_v14 = vadd.f32 %v9521_v34, %v9504_v46 }
 0xa1e   : > { %v9535_v4 = vadd.f32 %v9534_v53, %v9522_v14 }
 0xa20   : > { %v9536_v38 = vpop.f32.mrf.mxu1 }
 0xa23   : > { %v9523_v8 = vpop.f32.mrf.mxu2 }
 0xa28   : > { %v9586_v28 = vpop.f32.mrf.mxu1 }
 0xa2b   : > { %v9573_v59 = vpop.f32.mrf.mxu2 }
 0xa2c   : > { %v9574_v27 = vadd.f32 %v9573_v59, %v9505_v49 }
 0xa2e   : > { %v9587_v44 = vadd.f32 %v9586_v28, %v9574_v27 }
 0xa30   : > { %v9588_v1 = vpop.f32.mrf.mxu1 }
 0xa33   : > { %v9575_v3 = vpop.f32.mrf.mxu2 }
 0xa36   : > { %v9560_v17 = vpop.f32.mrf.mxu0 }
 0xa38   : > { %v9638_v6 = vpop.f32.mrf.mxu1 }
 0xa3b   : > { %v9547_v45 = vpop.f32.mrf.mxu3 }
 0xa3c   : > { %v9548_v16 = vadd.f32 %v9547_v45, %v9535_v4 }
 0xa3e   : > { %v9561_v9 = vadd.f32 %v9560_v17, %v9548_v16  ;;  %v9562_v13 = vpop.f32.mrf.mxu0  ;;  %v9625_v54 = vpop.f32.mrf.mxu2 }
 0xa3f   : > { %v9626_v36 = vadd.f32 %v9625_v54, %v9506_v55 }
 0xa40   : > { %v9720_v20 = vmax.f32 %v9561_v9, 0.0  ;;  %v9640_v51 = vpop.f32.mrf.mxu1 }
 0xa41   : > { %v9639_v53 = vadd.f32 %v9638_v6, %v9626_v36 }
 0xa42   : > { %v9724_v60 = vpack.c.bf16 %v9720_v20, %v9720_v20 }
 0xa43   : > { %v9549_v39 = vpop.f32.mrf.mxu3 }
 0xa44   : > { %9993 = vmatmul.bf16.vlgmr.msra.gmra.mxu2 %v9724_v60 }
 0xa46   : > { %v9612_v11 = vpop.f32.mrf.mxu0  ;;  %v9627_v7 = vpop.f32.mrf.mxu2 }
 0xa4b   : > { %v9599_v0 = vpop.f32.mrf.mxu3 }
 0xa4c   : > { %v9600_v43 = vadd.f32 %v9599_v0, %v9587_v44 }
 0xa4e   : > { %v9613_v57 = vadd.f32 %v9612_v11, %v9600_v43  ;;  %v9614_v30 = vpop.f32.mrf.mxu0 }
 0xa50   : > { %v9721_v58 = vmax.f32 %v9613_v57, 0.0 }
 0xa52   : > { %v9725_v63 = vpack.c.bf16 %v9721_v58, %v9721_v58 }
 0xa53   : > { %v9601_v31 = vpop.f32.mrf.mxu3 }
 0xa54   : > { %10006 = vmatmul.bf16.vlgmr.msrb.gmra.mxu1 %v9725_v63 }
 0xa56   : > { %v9664_v52 = vpop.f32.mrf.mxu0 }
 0xa58   : > { %v9690_v47 = vpop.f32.mrf.mxu1 }
 0xa5b   : > { %v9651_v29 = vpop.f32.mrf.mxu3 }
 0xa5c   : > { %v9652_v34 = vadd.f32 %v9651_v29, %v9639_v53 }
 0xa5d   : > { %v9677_v33 = vpop.f32.mrf.mxu2 }
 0xa5e   : > { %v9666_v25 = vpop.f32.mrf.mxu0  ;;  %v9665_v38 = vadd.f32 %v9664_v52, %v9652_v34  ;;  %v9678_v28 = vadd.f32 %v9677_v33, %v9507_v22 }
 0xa60   : > { %v9692_v24 = vpop.f32.mrf.mxu1  ;;  %v9722_v18 = vmax.f32 %v9665_v38, 0.0  ;;  %v9691_v59 = vadd.f32 %v9690_v47, %v9678_v28 }
 0xa62   : > { %v9726_v8 = vpack.c.bf16 %v9722_v18, %v9722_v18 }
 0xa63   : > { %v9653_v12 = vpop.f32.mrf.mxu3 }
 0xa64   : > { %10019 = vmatmul.bf16.vlgmr.msrb.gmra.mxu3 %v9726_v8 }
 0xa65   : > { %v9679_v23 = vpop.f32.mrf.mxu2 }
 0xa76   : > { %v9716_v37 = vpop.f32.mrf.mxu0 }
 0xa7b   : > { %v9703_v35 = vpop.f32.mrf.mxu3 }
 0xa7c   : > { %v9704_v19 = vadd.f32 %v9703_v35, %v9691_v59 }
 0xa7e   : > { %v9718_v1 = vpop.f32.mrf.mxu0  ;;  %v9717_v46 = vadd.f32 %v9716_v37, %v9704_v19 }
 0xa80   : > { %v9723_v62 = vmax.f32 %v9717_v46, 0.0 }
 0xa82   : > { %v9727_v56 = vpack.c.bf16 %v9723_v62, %v9723_v62 }
 0xa83   : > { %v9705_v14 = vpop.f32.mrf.mxu3 }
 0xa84   : > { %10032 = vmatmul.bf16.vlgmr.msrb.gmra.mxu0 %v9727_v56 }
 0xac7   : > { %v9994_v17 = vpop.f32.mrf.mxu2 }
 0xac8   : > { %v9995_v45 = vadd.f32 %v9994_v17, %v9792_v41 }
 0xacf   : > { %v9996_v3 = vpop.f32.mrf.mxu2 }
 0xad1   : > { %v10007_v5 = vpop.f32.mrf.mxu1 }
 0xad2   : > { %v10008_v16 = vadd.f32 %v10007_v5, %v9995_v45 }
 0xad9   : > { %v10009_v40 = vpop.f32.mrf.mxu1 }
 0xae7   : > { %v10020_v6 = vpop.f32.mrf.mxu3 }
 0xae8   : > { %v10021_v9 = vadd.f32 %v10020_v6, %v10008_v16 }
 0xaef   : > { %v10022_v4 = vpop.f32.mrf.mxu3 }
 0xb01   : > { %v10033_v13 = vpop.f32.mrf.mxu0 }
 0xb02   : > { %v10034_v26 = vadd.f32 %v10033_v13, %v10021_v9 }
 0xb04   : > { %10037 = vst [vmem:[%s749_s26] sm:$0x1] %v10034_v26 }
 0xb05   : > { %15787 = shalt.err (!%p15784_p8)
}
 0xb06   : > { %15170 = dma.vmem_to_hbm [thread:$0]  (%p16002_p5), %s10050_s20, 16, %s10052_s27, %s10039_s21  }
 0xb09   : > { %v10035_v54 = vpop.f32.mrf.mxu0 }
 0xb0a PF: > { %s17243_s6 = sld [smem:[#allocation38_spill]] }
 0xb0b   : > { %s17244_s19 = sld [smem:[#allocation36_spill]] }
 0xb10   : > { %p15252_p9 = scmp.ge.s32.totalorder %s17243_s6, 2 }
 0xb11   : > { %s10063_s24 = sand.u32 1, %s17244_s19  }
 0xb12   : > { %p15219_p10 = pnand %p15252_p9, %p16006_p6  ;;  %s10064_s2 = scalar_lea.sflag [#allocation4], %s10063_s24 }
 0xb14   : > { %p15220_p11 = pneg %p15219_p10 }
 0xb16   : > { %15837 = dma.done.wait (%p15220_p11), %s10064_s2, 16  }
 0xb17   : > { %15839 = vsyncadd (%p15220_p11), %s10064_s2, 4294967280  ;;  %s17246_s24 = sld [smem:[#allocation39_spill]]  ;;  %s17249_s21 = smov %s15846_s22 }
 0xb18   : > { %s17247_s0 = sld [smem:[#allocation37_spill]] }
 0xb19   : > { %s17248_s23 = sld [smem:[#allocation40_spill]] }
 0xb1d   : > { %p34_p12 = scmp.ge.s32.totalorder %s17246_s24, 4  }
 0xb1e   : > { %s17250_s22 = smov %s17247_s0 }
 0xb1f   :  { %36 = sbr.rel (!%p34_p12) target bundleno = 19 (0x13), region = 204 }
 0xb24   :  { %10069 = vsyncpa [#allocation3], 1 }
 0xb25   :  { %10071 = vsyncpa [#allocation3 + $0x1], 1 }
 0xb26   :  { %10072 = vsyncpa [#allocation6], 1 }
 0xb27   :  { %10073 = vsyncpa [#allocation9], 1 }
 0xb28   :  { %10074 = vsyncpa [#allocation12], 1 }
 0xb29   :  { %10075 = vsyncpa [#allocation15], 1 }
 0xb2a   :  { %10076 = vsyncpa [#allocation18], 1 }
 0xb2b   :  { %10077 = vsyncpa [#allocation21], 1 }
 0xb2c   :  { %10078 = vsyncpa [#allocation24], 1 }
 0xb2d   :  { %10079 = vsyncpa [#allocation4], 1 }
 0xb2e   :  { %10081 = vsyncpa [#allocation4 + $0x1], 1 }

</bundles_post_ra>
